<compile_context>
chip_gen: v7x
topology: tpu7x:2x2x1
jax: 0.10.0
libtpu: 0.0.40
codegen_flags: <defaults>
</compile_context>

<pallas_src>
import numpy as np
import jax
import jax.numpy as jnp
from jax import lax
from jax.experimental import pallas as pl
from jax.experimental.pallas import tpu as pltpu


# --------------------------- fused Pallas kernel ---------------------------

def _layernorm(x, g, b, eps=1e-5):
    mean = jnp.mean(x, axis=-1, keepdims=True)
    var = jnp.mean(jnp.square(x - mean), axis=-1, keepdims=True)
    return (x - mean) * lax.rsqrt(var + eps) * g + b


def _make_fused_kernel(cfg):
    B = cfg["batch"]
    P = cfg["past_len"]
    FL = cfg["future_len"]
    D = cfg["d_model"]
    H = cfg["num_heads"]
    L = cfg["num_layers"]
    O = cfg["num_objects"]
    R = cfg["num_relations"]
    F = O * R
    hd = D // H
    scale = 1.0 / float(np.sqrt(hd))
    f32 = jnp.float32

    def kernel(past_ref, pos_ref,
               w_in_ref, b_in_ref, w_out_ref, b_out_ref, w_io_ref, b_io_ref,
               w_qkv_ref, b_qkv_ref, w_o_ref, b_o_ref,
               w_ff1_ref, b_ff1_ref, w_ff2_ref, b_ff2_ref,
               ln1_g_ref, ln1_b_ref, ln2_g_ref, ln2_b_ref,
               w_tail_ref, b_tail_ref,
               fg_ref, ffg_ref):

        pos = pos_ref[...]                                     # (1, P, D)

        def encoder_layer(h, l):
            # --- self-attention block (pre-LN, inference / no dropout) ---
            x2d = h.reshape(B * P, D)
            ln = _layernorm(x2d, ln1_g_ref[l], ln1_b_ref[l])
            qkv = jnp.dot(ln, w_qkv_ref[l],
                          preferred_element_type=f32) + b_qkv_ref[l]   # (B*P, 3D)
            q3 = qkv[:, 0:D].reshape(B, P, D)
            k3 = qkv[:, D:2 * D].reshape(B, P, D)
            v3 = qkv[:, 2 * D:3 * D].reshape(B, P, D)

            head_outs = []
            for hh in range(H):                                # static head loop
                sl = slice(hh * hd, (hh + 1) * hd)
                qh, kh, vh = q3[:, :, sl], k3[:, :, sl], v3[:, :, sl]
                s = jnp.einsum('bqd,bkd->bqk', qh, kh,
                               preferred_element_type=f32) * scale      # (B, P, P)
                s = s - jnp.max(s, axis=-1, keepdims=True)
                p = jnp.exp(s)
                p = p / jnp.sum(p, axis=-1, keepdims=True)
                head_outs.append(jnp.einsum('bqk,bkd->bqd', p, vh,
                                            preferred_element_type=f32))
            a = jnp.concatenate(head_outs, axis=-1).reshape(B * P, D)
            a = jnp.dot(a, w_o_ref[l], preferred_element_type=f32) + b_o_ref[l]
            h = h + a.reshape(B, P, D)

            # --- feed-forward block (pre-LN) ---
            x2d = h.reshape(B * P, D)
            ln2 = _layernorm(x2d, ln2_g_ref[l], ln2_b_ref[l])
            f1 = jnp.maximum(
                jnp.dot(ln2, w_ff1_ref[l], preferred_element_type=f32) + b_ff1_ref[l],
                0.0)
            f2 = jnp.dot(f1, w_ff2_ref[l], preferred_element_type=f32) + b_ff2_ref[l]
            return h + f2.reshape(B, P, D)

        # Project the initial past window ONCE (the only F->D matmul).
        proj = (jnp.dot(past_ref[...].astype(f32).reshape(B * P, F), w_in_ref[...],
                        preferred_element_type=f32)
                + b_in_ref[...]).reshape(B, P, D)               # (B, P, D)

        # -------- autoregressive FL loop, fully resident in VMEM --------
        preds = []
        for step in range(FL):                                  # static unroll
            h = proj + pos
            for l in range(L):                                  # static unroll
                h = encoder_layer(h, l)
            h_last = h[:, P - 1, :]                             # (B, D)
            pred = jnp.dot(h_last, w_out_ref[...],
                           preferred_element_type=f32) + b_out_ref[...]   # (B, F)
            preds.append(pred)
            if step + 1 < FL:
                # in_proj(out_proj(h_last)) folded to one small DxD matmul.
                new_row = (jnp.dot(h_last, w_io_ref[...],
                                   preferred_element_type=f32) + b_io_ref[...])  # (B, D)
                proj = jnp.concatenate([proj[:, 1:, :], new_row[:, None, :]], axis=1)

        future = jnp.concatenate([p[:, None, :] for p in preds], axis=1)  # (B, FL, F)
        fg_ref[...] = future.astype(fg_ref.dtype)

        # -------- fused rel-compress + y-head (single block-diag matmul) --------
        fut2d = future.reshape(B * FL, F)
        y = jnp.dot(fut2d, w_tail_ref[...], preferred_element_type=f32) + b_tail_ref[...]
        sig = 1.0 / (1.0 + jnp.exp(-y))
        boundary = 1e-10
        ffg = (1.0 - 2.0 * boundary) * sig + boundary
        ffg_ref[...] = ffg.reshape(B, FL, O * 26).astype(ffg_ref.dtype)

    return kernel


# ------------------------------ model wrapper --------------------------------

def graph_model_forward(params, cfg, x, gt_final_graphs, gt_actual_graphs):
    P, FL, D = cfg["past_len"], cfg["future_len"], cfg["d_model"]
    O, R = cfg["num_objects"], cfg["num_relations"]
    B, T = x.shape[0], x.shape[1]
    F = O * R

    past_graphs = x[:, :P].reshape(B, P, F)
    gt_graphs = x[:, P:].reshape(B, T - P, F)
    gt_actual = gt_actual_graphs[:, P:].reshape(B, T - P, -1)
    # gt_final_graphs[:, P:] is computed in the torch forward but never used (dead code).

    # sinusoidal positional embedding (constant, numpy f64 then cast)
    inv_freq = 1.0 / (10000.0 ** (np.arange(0.0, D, 2.0) / D))
    pos_seq = np.arange(P - 1, -1, -1, dtype=np.float64)
    sinusoid = np.outer(pos_seq, inv_freq)
    pos_emb = jnp.asarray(
        np.concatenate([np.sin(sinusoid), np.cos(sinusoid)], axis=-1),
        dtype=x.dtype)[None]                                    # (1, P, D)

    # ---- host-side weight folding ----
    # (1) out_proj followed by in_proj (next-step window row) -> one DxD matmul
    w_io = jnp.dot(params["w_out"], params["w_in"])                       # (D, D)
    b_io = (params["b_out"] @ params["w_in"] + params["b_in"]).reshape(1, D)

    # (2) a/s/c rel-compress + folded y head: y0(-z)+y1(z) = z@(W_y1-W_y0)+(b_y0+b_y1)
    #     and z = fut@W_rel + b_rel  =>  y = fut@(W_rel@W_yd) + (b_rel@W_yd + b_y)
    w_rel = jnp.concatenate([params["w_a"], params["w_s"], params["w_c"]], axis=1)  # (R, 26)
    b_rel = jnp.concatenate([params["b_a"], params["b_s"], params["b_c"]], axis=0)  # (26,)
    w_yd = params["w_y1"] - params["w_y0"]                                # (26, 26)
    b_y = params["b_y0"] + params["b_y1"]                                 # (26,)
    w_tail = jnp.dot(w_rel, w_yd)                                         # (R, 26)
    b_tail = b_rel @ w_yd + b_y                                           # (26,)
    eye_o = jnp.eye(O, dtype=jnp.float32)
    w_tail_blk = jnp.kron(eye_o, w_tail)                 # (O*R, O*26) per-object block-diag
    b_tail_blk = jnp.tile(b_tail, O).reshape(1, O * 26)

    # stack per-layer weights so the whole encoder stack is one kernel input each
    def stk(name):
        return jnp.stack([lp[name] for lp in params["layers"]], axis=0)

    w_qkv = stk("w_qkv"); b_qkv = stk("b_qkv")[:, None, :]
    w_o = stk("w_o"); b_o = stk("b_o")[:, None, :]
    w_ff1 = stk("w_ff1"); b_ff1 = stk("b_ff1")[:, None, :]
    w_ff2 = stk("w_ff2"); b_ff2 = stk("b_ff2")[:, None, :]
    ln1_g = stk("ln1_g")[:, None, :]; ln1_b = stk("ln1_b")[:, None, :]
    ln2_g = stk("ln2_g")[:, None, :]; ln2_b = stk("ln2_b")[:, None, :]

    inputs = (
        past_graphs, pos_emb,
        params["w_in"], params["b_in"].reshape(1, D),
        params["w_out"], params["b_out"].reshape(1, F),
        w_io, b_io,
        w_qkv, b_qkv, w_o, b_o, w_ff1, b_ff1, w_ff2, b_ff2,
        ln1_g, ln1_b, ln2_g, ln2_b,
        w_tail_blk, b_tail_blk,
    )

    kcfg = dict(cfg)
    kcfg["batch"] = B
    kernel = _make_fused_kernel(kcfg)

    def full_spec(a):
        nd = a.ndim
        return pl.BlockSpec(a.shape, lambda i, _nd=nd: (0,) * _nd)

    fg, ffg = pl.pallas_call(
        kernel,
        out_shape=(jax.ShapeDtypeStruct((B, FL, F), x.dtype),
                   jax.ShapeDtypeStruct((B, FL, O * 26), x.dtype)),
        grid=(1,),
        in_specs=[full_spec(a) for a in inputs],
        out_specs=(pl.BlockSpec((B, FL, F), lambda i: (0, 0, 0)),
                   pl.BlockSpec((B, FL, O * 26), lambda i: (0, 0, 0))),
        compiler_params=pltpu.CompilerParams(
            dimension_semantics=("arbitrary",),
            vmem_limit_bytes=32 * 1024 * 1024),
    )(*inputs)

    return fg, gt_graphs, ffg, gt_actual


def init_params(key, cfg):
    D, FFN, F, R = cfg["d_model"], cfg["ffn_dim"], cfg["num_features"], cfg["num_relations"]
    keys = iter(jax.random.split(key, 32 + 8 * cfg["num_layers"]))

    def lin(fan_in, fan_out):
        k = next(keys)
        kw, kb = jax.random.split(k)
        lim = 1.0 / float(np.sqrt(fan_in))
        w = jax.random.uniform(kw, (fan_in, fan_out), jnp.float32, -lim, lim)
        b = jax.random.uniform(kb, (fan_out,), jnp.float32, -lim, lim)
        return w, b

    p = {}
    p["w_in"], p["b_in"] = lin(F, D)
    p["w_out"], p["b_out"] = lin(D, F)
    p["w_y0"], p["b_y0"] = lin(26, 26)
    p["w_y1"], p["b_y1"] = lin(26, 26)
    p["w_a"], p["b_a"] = lin(R, 3)
    p["w_s"], p["b_s"] = lin(R, 6)
    p["w_c"], p["b_c"] = lin(R, 17)
    layers = []
    for _ in range(cfg["num_layers"]):
        lp = {}
        lp["w_qkv"], lp["b_qkv"] = lin(D, 3 * D)
        lp["w_o"], lp["b_o"] = lin(D, D)
        lp["w_ff1"], lp["b_ff1"] = lin(D, FFN)
        lp["w_ff2"], lp["b_ff2"] = lin(FFN, D)
        lp["ln1_g"] = jnp.ones((D,), jnp.float32)
        lp["ln1_b"] = jnp.zeros((D,), jnp.float32)
        lp["ln2_g"] = jnp.ones((D,), jnp.float32)
        lp["ln2_b"] = jnp.zeros((D,), jnp.float32)
        layers.append(lp)
    p["layers"] = layers
    return p


if __name__ == "__main__":
    # Scaled-down config consistent with the module (past_len == future_len,
    # num_features = num_objects * num_relations, heads | d_model).
    cfg = dict(past_len=3, future_len=3, d_model=32, num_heads=4,
               num_layers=2, ffn_dim=64, num_objects=5, num_relations=32)
    cfg["num_features"] = cfg["num_objects"] * cfg["num_relations"]

    key = jax.random.PRNGKey(0)
    kp, kx, kg, ka = jax.random.split(key, 4)
    params = init_params(kp, cfg)

    B = 2
    T = cfg["past_len"] + cfg["future_len"]
    x = jax.random.normal(kx, (B, T, cfg["num_objects"], cfg["num_relations"]), jnp.float32)
    gt_final = jax.random.normal(kg, (B, T, cfg["num_objects"], cfg["num_relations"]), jnp.float32)
    gt_actual = (jax.random.uniform(ka, (B, T, cfg["num_objects"], 26)) > 0.5).astype(jnp.float32)

    @jax.jit
    def run(x, gt_final, gt_actual):
        return graph_model_forward(params, cfg, x, gt_final, gt_actual)

    out = run(x, gt_final, gt_actual)
    jax.block_until_ready(out)

    fg, gtg, ffg, gta = out
    assert fg.shape == (B, cfg["future_len"], cfg["num_features"])
    assert gtg.shape == (B, cfg["future_len"], cfg["num_features"])
    assert ffg.shape == (B, cfg["future_len"], cfg["num_objects"] * 26)
    assert gta.shape == (B, cfg["future_len"], cfg["num_objects"] * 26)
    assert bool(jnp.all(jnp.isfinite(fg))) and bool(jnp.all(jnp.isfinite(ffg)))
    assert bool(jnp.all(ffg > 0.0)) and bool(jnp.all(ffg < 1.0))
    print("KERNEL_OK")
</pallas_src>

<mosaic_0001>
module attributes {stable_mosaic.version = 11 : i64} {
  func.func @kernel(%arg0: i32, %arg1: memref<2x3x160xf32, #tpu.memory_space<vmem>>, %arg2: memref<1x3x32xf32, #tpu.memory_space<vmem>>, %arg3: memref<160x32xf32, #tpu.memory_space<vmem>>, %arg4: memref<1x32xf32, #tpu.memory_space<vmem>>, %arg5: memref<32x160xf32, #tpu.memory_space<vmem>>, %arg6: memref<1x160xf32, #tpu.memory_space<vmem>>, %arg7: memref<32x32xf32, #tpu.memory_space<vmem>>, %arg8: memref<1x32xf32, #tpu.memory_space<vmem>>, %arg9: memref<2x32x96xf32, #tpu.memory_space<vmem>>, %arg10: memref<2x1x96xf32, #tpu.memory_space<vmem>>, %arg11: memref<2x32x32xf32, #tpu.memory_space<vmem>>, %arg12: memref<2x1x32xf32, #tpu.memory_space<vmem>>, %arg13: memref<2x32x64xf32, #tpu.memory_space<vmem>>, %arg14: memref<2x1x64xf32, #tpu.memory_space<vmem>>, %arg15: memref<2x64x32xf32, #tpu.memory_space<vmem>>, %arg16: memref<2x1x32xf32, #tpu.memory_space<vmem>>, %arg17: memref<2x1x32xf32, #tpu.memory_space<vmem>>, %arg18: memref<2x1x32xf32, #tpu.memory_space<vmem>>, %arg19: memref<2x1x32xf32, #tpu.memory_space<vmem>>, %arg20: memref<2x1x32xf32, #tpu.memory_space<vmem>>, %arg21: memref<160x130xf32, #tpu.memory_space<vmem>>, %arg22: memref<1x130xf32, #tpu.memory_space<vmem>>, %arg23: memref<2x3x160xf32, #tpu.memory_space<vmem>>, %arg24: memref<2x3x130xf32, #tpu.memory_space<vmem>>) attributes {dimension_semantics = [#tpu.dimension_semantics<arbitrary>], iteration_bounds = array<i64: 1>, scalar_prefetch = 0 : i64, scratch_operands = 0 : i64, tpu.core_type = #tpu.core_type<tc>, window_params = [{pipeline_mode = #tpu.pipeline_mode<synchronous>, transform_indices = @transform_0, window_bounds = array<i64: 2, 3, 160>}, {pipeline_mode = #tpu.pipeline_mode<synchronous>, transform_indices = @transform_1, window_bounds = array<i64: 1, 3, 32>}, {pipeline_mode = #tpu.pipeline_mode<synchronous>, transform_indices = @transform_2, window_bounds = array<i64: 160, 32>}, {pipeline_mode = #tpu.pipeline_mode<synchronous>, transform_indices = @transform_3, window_bounds = array<i64: 1, 32>}, {pipeline_mode = #tpu.pipeline_mode<synchronous>, transform_indices = @transform_4, window_bounds = array<i64: 32, 160>}, {pipeline_mode = #tpu.pipeline_mode<synchronous>, transform_indices = @transform_5, window_bounds = array<i64: 1, 160>}, {pipeline_mode = #tpu.pipeline_mode<synchronous>, transform_indices = @transform_6, window_bounds = array<i64: 32, 32>}, {pipeline_mode = #tpu.pipeline_mode<synchronous>, transform_indices = @transform_7, window_bounds = array<i64: 1, 32>}, {pipeline_mode = #tpu.pipeline_mode<synchronous>, transform_indices = @transform_8, window_bounds = array<i64: 2, 32, 96>}, {pipeline_mode = #tpu.pipeline_mode<synchronous>, transform_indices = @transform_9, window_bounds = array<i64: 2, 1, 96>}, {pipeline_mode = #tpu.pipeline_mode<synchronous>, transform_indices = @transform_10, window_bounds = array<i64: 2, 32, 32>}, {pipeline_mode = #tpu.pipeline_mode<synchronous>, transform_indices = @transform_11, window_bounds = array<i64: 2, 1, 32>}, {pipeline_mode = #tpu.pipeline_mode<synchronous>, transform_indices = @transform_12, window_bounds = array<i64: 2, 32, 64>}, {pipeline_mode = #tpu.pipeline_mode<synchronous>, transform_indices = @transform_13, window_bounds = array<i64: 2, 1, 64>}, {pipeline_mode = #tpu.pipeline_mode<synchronous>, transform_indices = @transform_14, window_bounds = array<i64: 2, 64, 32>}, {pipeline_mode = #tpu.pipeline_mode<synchronous>, transform_indices = @transform_15, window_bounds = array<i64: 2, 1, 32>}, {pipeline_mode = #tpu.pipeline_mode<synchronous>, transform_indices = @transform_16, window_bounds = array<i64: 2, 1, 32>}, {pipeline_mode = #tpu.pipeline_mode<synchronous>, transform_indices = @transform_17, window_bounds = array<i64: 2, 1, 32>}, {pipeline_mode = #tpu.pipeline_mode<synchronous>, transform_indices = @transform_18, window_bounds = array<i64: 2, 1, 32>}, {pipeline_mode = #tpu.pipeline_mode<synchronous>, transform_indices = @transform_19, window_bounds = array<i64: 2, 1, 32>}, {pipeline_mode = #tpu.pipeline_mode<synchronous>, transform_indices = @transform_20, window_bounds = array<i64: 160, 130>}, {pipeline_mode = #tpu.pipeline_mode<synchronous>, transform_indices = @transform_21, window_bounds = array<i64: 1, 130>}, {pipeline_mode = #tpu.pipeline_mode<synchronous>, transform_indices = @transform_22, window_bounds = array<i64: 2, 3, 160>}, {pipeline_mode = #tpu.pipeline_mode<synchronous>, transform_indices = @transform_23, window_bounds = array<i64: 2, 3, 130>}]} {
    %c0 = arith.constant 0 : index
    %c0_0 = arith.constant 0 : index
    %c0_1 = arith.constant 0 : index
    %0 = vector.load %arg2[%c0, %c0_0, %c0_1] : memref<1x3x32xf32, #tpu.memory_space<vmem>>, vector<1x3x32xf32>
    %c0_2 = arith.constant 0 : index
    %c0_3 = arith.constant 0 : index
    %c0_4 = arith.constant 0 : index
    %1 = vector.load %arg1[%c0_2, %c0_3, %c0_4] : memref<2x3x160xf32, #tpu.memory_space<vmem>>, vector<2x3x160xf32>
    %2 = vector.shape_cast %1 : vector<2x3x160xf32> to vector<6x160xf32>
    %c0_5 = arith.constant 0 : index
    %c0_6 = arith.constant 0 : index
    %3 = vector.load %arg3[%c0_5, %c0_6] : memref<160x32xf32, #tpu.memory_space<vmem>>, vector<160x32xf32>
    %cst = arith.constant dense<0.000000e+00> : vector<6x32xf32>
    %4 = tpu.matmul %2, %3, %cst {dimension_numbers = #tpu.dot_dimension_numbers<[1], [0], [0], [1], [0, 0, 1, 1], [], []>} : vector<6x160xf32>, vector<160x32xf32>, vector<6x32xf32> -> vector<6x32xf32>
    %c0_7 = arith.constant 0 : index
    %c0_8 = arith.constant 0 : index
    %5 = vector.load %arg4[%c0_7, %c0_8] : memref<1x32xf32, #tpu.memory_space<vmem>>, vector<1x32xf32>
    %6 = vector.broadcast %5 : vector<1x32xf32> to vector<6x32xf32>
    %7 = arith.addf %4, %6 : vector<6x32xf32>
    %8 = vector.shape_cast %7 : vector<6x32xf32> to vector<2x3x32xf32>
    %9 = vector.broadcast %0 : vector<1x3x32xf32> to vector<2x3x32xf32>
    %10 = arith.addf %8, %9 : vector<2x3x32xf32>
    %11 = vector.shape_cast %10 : vector<2x3x32xf32> to vector<6x32xf32>
    %c0_9 = arith.constant 0 : index
    %c0_10 = arith.constant 0 : index
    %c0_11 = arith.constant 0 : index
    %12 = vector.load %arg17[%c0_9, %c0_10, %c0_11] : memref<2x1x32xf32, #tpu.memory_space<vmem>>, vector<1x1x32xf32>
    %13 = vector.shape_cast %12 : vector<1x1x32xf32> to vector<1x32xf32>
    %c0_12 = arith.constant 0 : index
    %c0_13 = arith.constant 0 : index
    %c0_14 = arith.constant 0 : index
    %14 = vector.load %arg18[%c0_12, %c0_13, %c0_14] : memref<2x1x32xf32, #tpu.memory_space<vmem>>, vector<1x1x32xf32>
    %15 = vector.shape_cast %14 : vector<1x1x32xf32> to vector<1x32xf32>
    %cst_15 = arith.constant dense<0.000000e+00> : vector<6xf32>
    %16 = vector.multi_reduction <add>, %11, %cst_15 [1] : vector<6x32xf32> to vector<6xf32>
    %17 = vector.shape_cast %16 : vector<6xf32> to vector<6x1xf32>
    %cst_16 = arith.constant 3.200000e+01 : f32
    %18 = vector.broadcast %cst_16 : f32 to vector<6x1xf32>
    %19 = arith.divf %17, %18 : vector<6x1xf32>
    %20 = vector.broadcast %19 : vector<6x1xf32> to vector<6x32xf32>
    %21 = arith.subf %11, %20 : vector<6x32xf32>
    %22 = arith.mulf %21, %21 : vector<6x32xf32>
    %cst_17 = arith.constant dense<0.000000e+00> : vector<6xf32>
    %23 = vector.multi_reduction <add>, %22, %cst_17 [1] : vector<6x32xf32> to vector<6xf32>
    %24 = vector.shape_cast %23 : vector<6xf32> to vector<6x1xf32>
    %cst_18 = arith.constant 3.200000e+01 : f32
    %25 = vector.broadcast %cst_18 : f32 to vector<6x1xf32>
    %26 = arith.divf %24, %25 : vector<6x1xf32>
    %27 = vector.broadcast %19 : vector<6x1xf32> to vector<6x32xf32>
    %28 = arith.subf %11, %27 : vector<6x32xf32>
    %cst_19 = arith.constant 9.99999974E-6 : f32
    %29 = vector.broadcast %cst_19 : f32 to vector<6x1xf32>
    %30 = arith.addf %26, %29 : vector<6x1xf32>
    %31 = math.rsqrt %30 : vector<6x1xf32>
    %32 = vector.broadcast %31 : vector<6x1xf32> to vector<6x32xf32>
    %33 = arith.mulf %28, %32 : vector<6x32xf32>
    %34 = vector.broadcast %13 : vector<1x32xf32> to vector<6x32xf32>
    %35 = arith.mulf %33, %34 : vector<6x32xf32>
    %36 = vector.broadcast %15 : vector<1x32xf32> to vector<6x32xf32>
    %37 = arith.addf %35, %36 : vector<6x32xf32>
    %c0_20 = arith.constant 0 : index
    %c0_21 = arith.constant 0 : index
    %c0_22 = arith.constant 0 : index
    %38 = vector.load %arg9[%c0_20, %c0_21, %c0_22] : memref<2x32x96xf32, #tpu.memory_space<vmem>>, vector<1x32x96xf32>
    %39 = vector.shape_cast %38 : vector<1x32x96xf32> to vector<32x96xf32>
    %cst_23 = arith.constant dense<0.000000e+00> : vector<6x96xf32>
    %40 = tpu.matmul %37, %39, %cst_23 {dimension_numbers = #tpu.dot_dimension_numbers<[1], [0], [0], [1], [0, 0, 1, 1], [], []>} : vector<6x32xf32>, vector<32x96xf32>, vector<6x96xf32> -> vector<6x96xf32>
    %c0_24 = arith.constant 0 : index
    %c0_25 = arith.constant 0 : index
    %c0_26 = arith.constant 0 : index
    %41 = vector.load %arg10[%c0_24, %c0_25, %c0_26] : memref<2x1x96xf32, #tpu.memory_space<vmem>>, vector<1x1x96xf32>
    %42 = vector.shape_cast %41 : vector<1x1x96xf32> to vector<1x96xf32>
    %43 = vector.broadcast %42 : vector<1x96xf32> to vector<6x96xf32>
    %44 = arith.addf %40, %43 : vector<6x96xf32>
    %45 = vector.extract_strided_slice %44 {offsets = [0, 0], sizes = [6, 32], strides = [1, 1]} : vector<6x96xf32> to vector<6x32xf32>
    %46 = vector.shape_cast %45 : vector<6x32xf32> to vector<2x3x32xf32>
    %47 = vector.extract_strided_slice %44 {offsets = [0, 32], sizes = [6, 32], strides = [1, 1]} : vector<6x96xf32> to vector<6x32xf32>
    %48 = vector.shape_cast %47 : vector<6x32xf32> to vector<2x3x32xf32>
    %49 = vector.extract_strided_slice %44 {offsets = [0, 64], sizes = [6, 32], strides = [1, 1]} : vector<6x96xf32> to vector<6x32xf32>
    %50 = vector.shape_cast %49 : vector<6x32xf32> to vector<2x3x32xf32>
    %51 = vector.extract_strided_slice %46 {offsets = [0, 0, 0], sizes = [2, 3, 8], strides = [1, 1, 1]} : vector<2x3x32xf32> to vector<2x3x8xf32>
    %52 = vector.extract_strided_slice %48 {offsets = [0, 0, 0], sizes = [2, 3, 8], strides = [1, 1, 1]} : vector<2x3x32xf32> to vector<2x3x8xf32>
    %53 = vector.extract_strided_slice %50 {offsets = [0, 0, 0], sizes = [2, 3, 8], strides = [1, 1, 1]} : vector<2x3x32xf32> to vector<2x3x8xf32>
    "tpu.trace_start"() <{level = 10 : i32, message = "bqd,bkd->bqk"}> : () -> ()
    %cst_27 = arith.constant dense<0.000000e+00> : vector<2x3x3xf32>
    %54 = tpu.matmul %51, %52, %cst_27 {dimension_numbers = #tpu.dot_dimension_numbers<[2], [2], [1], [1], [0, 0, 0, 1, 1, 1], [0], [0]>} : vector<2x3x8xf32>, vector<2x3x8xf32>, vector<2x3x3xf32> -> vector<2x3x3xf32>
    "tpu.trace_stop"() : () -> ()
    %cst_28 = arith.constant 0.353553385 : f32
    %55 = vector.broadcast %cst_28 : f32 to vector<2x3x3xf32>
    %56 = arith.mulf %54, %55 : vector<2x3x3xf32>
    %cst_29 = arith.constant dense<0xFF800000> : vector<2x3xf32>
    %57 = vector.multi_reduction <maximumf>, %56, %cst_29 [2] : vector<2x3x3xf32> to vector<2x3xf32>
    %58 = vector.shape_cast %57 : vector<2x3xf32> to vector<2x3x1xf32>
    %59 = vector.broadcast %58 : vector<2x3x1xf32> to vector<2x3x3xf32>
    %60 = arith.subf %56, %59 : vector<2x3x3xf32>
    %61 = math.exp %60 : vector<2x3x3xf32>
    %cst_30 = arith.constant dense<0.000000e+00> : vector<2x3xf32>
    %62 = vector.multi_reduction <add>, %61, %cst_30 [2] : vector<2x3x3xf32> to vector<2x3xf32>
    %63 = vector.shape_cast %62 : vector<2x3xf32> to vector<2x3x1xf32>
    %64 = vector.broadcast %63 : vector<2x3x1xf32> to vector<2x3x3xf32>
    %65 = arith.divf %61, %64 : vector<2x3x3xf32>
    "tpu.trace_start"() <{level = 10 : i32, message = "bqk,bkd->bqd"}> : () -> ()
    %cst_31 = arith.constant dense<0.000000e+00> : vector<2x3x8xf32>
    %66 = tpu.matmul %65, %53, %cst_31 {dimension_numbers = #tpu.dot_dimension_numbers<[2], [1], [1], [2], [0, 0, 0, 1, 1, 2], [0], [0]>} : vector<2x3x3xf32>, vector<2x3x8xf32>, vector<2x3x8xf32> -> vector<2x3x8xf32>
    "tpu.trace_stop"() : () -> ()
    %67 = vector.extract_strided_slice %46 {offsets = [0, 0, 8], sizes = [2, 3, 8], strides = [1, 1, 1]} : vector<2x3x32xf32> to vector<2x3x8xf32>
    %68 = vector.extract_strided_slice %48 {offsets = [0, 0, 8], sizes = [2, 3, 8], strides = [1, 1, 1]} : vector<2x3x32xf32> to vector<2x3x8xf32>
    %69 = vector.extract_strided_slice %50 {offsets = [0, 0, 8], sizes = [2, 3, 8], strides = [1, 1, 1]} : vector<2x3x32xf32> to vector<2x3x8xf32>
    "tpu.trace_start"() <{level = 10 : i32, message = "bqd,bkd->bqk"}> : () -> ()
    %cst_32 = arith.constant dense<0.000000e+00> : vector<2x3x3xf32>
    %70 = tpu.matmul %67, %68, %cst_32 {dimension_numbers = #tpu.dot_dimension_numbers<[2], [2], [1], [1], [0, 0, 0, 1, 1, 1], [0], [0]>} : vector<2x3x8xf32>, vector<2x3x8xf32>, vector<2x3x3xf32> -> vector<2x3x3xf32>
    "tpu.trace_stop"() : () -> ()
    %cst_33 = arith.constant 0.353553385 : f32
    %71 = vector.broadcast %cst_33 : f32 to vector<2x3x3xf32>
    %72 = arith.mulf %70, %71 : vector<2x3x3xf32>
    %cst_34 = arith.constant dense<0xFF800000> : vector<2x3xf32>
    %73 = vector.multi_reduction <maximumf>, %72, %cst_34 [2] : vector<2x3x3xf32> to vector<2x3xf32>
    %74 = vector.shape_cast %73 : vector<2x3xf32> to vector<2x3x1xf32>
    %75 = vector.broadcast %74 : vector<2x3x1xf32> to vector<2x3x3xf32>
    %76 = arith.subf %72, %75 : vector<2x3x3xf32>
    %77 = math.exp %76 : vector<2x3x3xf32>
    %cst_35 = arith.constant dense<0.000000e+00> : vector<2x3xf32>
    %78 = vector.multi_reduction <add>, %77, %cst_35 [2] : vector<2x3x3xf32> to vector<2x3xf32>
    %79 = vector.shape_cast %78 : vector<2x3xf32> to vector<2x3x1xf32>
    %80 = vector.broadcast %79 : vector<2x3x1xf32> to vector<2x3x3xf32>
    %81 = arith.divf %77, %80 : vector<2x3x3xf32>
    "tpu.trace_start"() <{level = 10 : i32, message = "bqk,bkd->bqd"}> : () -> ()
    %cst_36 = arith.constant dense<0.000000e+00> : vector<2x3x8xf32>
    %82 = tpu.matmul %81, %69, %cst_36 {dimension_numbers = #tpu.dot_dimension_numbers<[2], [1], [1], [2], [0, 0, 0, 1, 1, 2], [0], [0]>} : vector<2x3x3xf32>, vector<2x3x8xf32>, vector<2x3x8xf32> -> vector<2x3x8xf32>
    "tpu.trace_stop"() : () -> ()
    %83 = vector.extract_strided_slice %46 {offsets = [0, 0, 16], sizes = [2, 3, 8], strides = [1, 1, 1]} : vector<2x3x32xf32> to vector<2x3x8xf32>
    %84 = vector.extract_strided_slice %48 {offsets = [0, 0, 16], sizes = [2, 3, 8], strides = [1, 1, 1]} : vector<2x3x32xf32> to vector<2x3x8xf32>
    %85 = vector.extract_strided_slice %50 {offsets = [0, 0, 16], sizes = [2, 3, 8], strides = [1, 1, 1]} : vector<2x3x32xf32> to vector<2x3x8xf32>
    "tpu.trace_start"() <{level = 10 : i32, message = "bqd,bkd->bqk"}> : () -> ()
    %cst_37 = arith.constant dense<0.000000e+00> : vector<2x3x3xf32>
    %86 = tpu.matmul %83, %84, %cst_37 {dimension_numbers = #tpu.dot_dimension_numbers<[2], [2], [1], [1], [0, 0, 0, 1, 1, 1], [0], [0]>} : vector<2x3x8xf32>, vector<2x3x8xf32>, vector<2x3x3xf32> -> vector<2x3x3xf32>
    "tpu.trace_stop"() : () -> ()
    %cst_38 = arith.constant 0.353553385 : f32
    %87 = vector.broadcast %cst_38 : f32 to vector<2x3x3xf32>
    %88 = arith.mulf %86, %87 : vector<2x3x3xf32>
    %cst_39 = arith.constant dense<0xFF800000> : vector<2x3xf32>
    %89 = vector.multi_reduction <maximumf>, %88, %cst_39 [2] : vector<2x3x3xf32> to vector<2x3xf32>
    %90 = vector.shape_cast %89 : vector<2x3xf32> to vector<2x3x1xf32>
    %91 = vector.broadcast %90 : vector<2x3x1xf32> to vector<2x3x3xf32>
    %92 = arith.subf %88, %91 : vector<2x3x3xf32>
    %93 = math.exp %92 : vector<2x3x3xf32>
    %cst_40 = arith.constant dense<0.000000e+00> : vector<2x3xf32>
    %94 = vector.multi_reduction <add>, %93, %cst_40 [2] : vector<2x3x3xf32> to vector<2x3xf32>
    %95 = vector.shape_cast %94 : vector<2x3xf32> to vector<2x3x1xf32>
    %96 = vector.broadcast %95 : vector<2x3x1xf32> to vector<2x3x3xf32>
    %97 = arith.divf %93, %96 : vector<2x3x3xf32>
    "tpu.trace_start"() <{level = 10 : i32, message = "bqk,bkd->bqd"}> : () -> ()
    %cst_41 = arith.constant dense<0.000000e+00> : vector<2x3x8xf32>
    %98 = tpu.matmul %97, %85, %cst_41 {dimension_numbers = #tpu.dot_dimension_numbers<[2], [1], [1], [2], [0, 0, 0, 1, 1, 2], [0], [0]>} : vector<2x3x3xf32>, vector<2x3x8xf32>, vector<2x3x8xf32> -> vector<2x3x8xf32>
    "tpu.trace_stop"() : () -> ()
    %99 = vector.extract_strided_slice %46 {offsets = [0, 0, 24], sizes = [2, 3, 8], strides = [1, 1, 1]} : vector<2x3x32xf32> to vector<2x3x8xf32>
    %100 = vector.extract_strided_slice %48 {offsets = [0, 0, 24], sizes = [2, 3, 8], strides = [1, 1, 1]} : vector<2x3x32xf32> to vector<2x3x8xf32>
    %101 = vector.extract_strided_slice %50 {offsets = [0, 0, 24], sizes = [2, 3, 8], strides = [1, 1, 1]} : vector<2x3x32xf32> to vector<2x3x8xf32>
    "tpu.trace_start"() <{level = 10 : i32, message = "bqd,bkd->bqk"}> : () -> ()
    %cst_42 = arith.constant dense<0.000000e+00> : vector<2x3x3xf32>
    %102 = tpu.matmul %99, %100, %cst_42 {dimension_numbers = #tpu.dot_dimension_numbers<[2], [2], [1], [1], [0, 0, 0, 1, 1, 1], [0], [0]>} : vector<2x3x8xf32>, vector<2x3x8xf32>, vector<2x3x3xf32> -> vector<2x3x3xf32>
    "tpu.trace_stop"() : () -> ()
    %cst_43 = arith.constant 0.353553385 : f32
    %103 = vector.broadcast %cst_43 : f32 to vector<2x3x3xf32>
    %104 = arith.mulf %102, %103 : vector<2x3x3xf32>
    %cst_44 = arith.constant dense<0xFF800000> : vector<2x3xf32>
    %105 = vector.multi_reduction <maximumf>, %104, %cst_44 [2] : vector<2x3x3xf32> to vector<2x3xf32>
    %106 = vector.shape_cast %105 : vector<2x3xf32> to vector<2x3x1xf32>
    %107 = vector.broadcast %106 : vector<2x3x1xf32> to vector<2x3x3xf32>
    %108 = arith.subf %104, %107 : vector<2x3x3xf32>
    %109 = math.exp %108 : vector<2x3x3xf32>
    %cst_45 = arith.constant dense<0.000000e+00> : vector<2x3xf32>
    %110 = vector.multi_reduction <add>, %109, %cst_45 [2] : vector<2x3x3xf32> to vector<2x3xf32>
    %111 = vector.shape_cast %110 : vector<2x3xf32> to vector<2x3x1xf32>
    %112 = vector.broadcast %111 : vector<2x3x1xf32> to vector<2x3x3xf32>
    %113 = arith.divf %109, %112 : vector<2x3x3xf32>
    "tpu.trace_start"() <{level = 10 : i32, message = "bqk,bkd->bqd"}> : () -> ()
    %cst_46 = arith.constant dense<0.000000e+00> : vector<2x3x8xf32>
    %114 = tpu.matmul %113, %101, %cst_46 {dimension_numbers = #tpu.dot_dimension_numbers<[2], [1], [1], [2], [0, 0, 0, 1, 1, 2], [0], [0]>} : vector<2x3x3xf32>, vector<2x3x8xf32>, vector<2x3x8xf32> -> vector<2x3x8xf32>
    "tpu.trace_stop"() : () -> ()
    %115 = tpu.concatenate %66, %82, %98, %114 in 2 : vector<2x3x8xf32>, vector<2x3x8xf32>, vector<2x3x8xf32>, vector<2x3x8xf32> -> vector<2x3x32xf32>
    %116 = vector.shape_cast %115 : vector<2x3x32xf32> to vector<6x32xf32>
    %c0_47 = arith.constant 0 : index
    %c0_48 = arith.constant 0 : index
    %c0_49 = arith.constant 0 : index
    %117 = vector.load %arg11[%c0_47, %c0_48, %c0_49] : memref<2x32x32xf32, #tpu.memory_space<vmem>>, vector<1x32x32xf32>
    %118 = vector.shape_cast %117 : vector<1x32x32xf32> to vector<32x32xf32>
    %cst_50 = arith.constant dense<0.000000e+00> : vector<6x32xf32>
    %119 = tpu.matmul %116, %118, %cst_50 {dimension_numbers = #tpu.dot_dimension_numbers<[1], [0], [0], [1], [0, 0, 1, 1], [], []>} : vector<6x32xf32>, vector<32x32xf32>, vector<6x32xf32> -> vector<6x32xf32>
    %c0_51 = arith.constant 0 : index
    %c0_52 = arith.constant 0 : index
    %c0_53 = arith.constant 0 : index
    %120 = vector.load %arg12[%c0_51, %c0_52, %c0_53] : memref<2x1x32xf32, #tpu.memory_space<vmem>>, vector<1x1x32xf32>
    %121 = vector.shape_cast %120 : vector<1x1x32xf32> to vector<1x32xf32>
    %122 = vector.broadcast %121 : vector<1x32xf32> to vector<6x32xf32>
    %123 = arith.addf %119, %122 : vector<6x32xf32>
    %124 = vector.shape_cast %123 : vector<6x32xf32> to vector<2x3x32xf32>
    %125 = arith.addf %10, %124 : vector<2x3x32xf32>
    %126 = vector.shape_cast %125 : vector<2x3x32xf32> to vector<6x32xf32>
    %c0_54 = arith.constant 0 : index
    %c0_55 = arith.constant 0 : index
    %c0_56 = arith.constant 0 : index
    %127 = vector.load %arg19[%c0_54, %c0_55, %c0_56] : memref<2x1x32xf32, #tpu.memory_space<vmem>>, vector<1x1x32xf32>
    %128 = vector.shape_cast %127 : vector<1x1x32xf32> to vector<1x32xf32>
    %c0_57 = arith.constant 0 : index
    %c0_58 = arith.constant 0 : index
    %c0_59 = arith.constant 0 : index
    %129 = vector.load %arg20[%c0_57, %c0_58, %c0_59] : memref<2x1x32xf32, #tpu.memory_space<vmem>>, vector<1x1x32xf32>
    %130 = vector.shape_cast %129 : vector<1x1x32xf32> to vector<1x32xf32>
    %cst_60 = arith.constant dense<0.000000e+00> : vector<6xf32>
    %131 = vector.multi_reduction <add>, %126, %cst_60 [1] : vector<6x32xf32> to vector<6xf32>
    %132 = vector.shape_cast %131 : vector<6xf32> to vector<6x1xf32>
    %cst_61 = arith.constant 3.200000e+01 : f32
    %133 = vector.broadcast %cst_61 : f32 to vector<6x1xf32>
    %134 = arith.divf %132, %133 : vector<6x1xf32>
    %135 = vector.broadcast %134 : vector<6x1xf32> to vector<6x32xf32>
    %136 = arith.subf %126, %135 : vector<6x32xf32>
    %137 = arith.mulf %136, %136 : vector<6x32xf32>
    %cst_62 = arith.constant dense<0.000000e+00> : vector<6xf32>
    %138 = vector.multi_reduction <add>, %137, %cst_62 [1] : vector<6x32xf32> to vector<6xf32>
    %139 = vector.shape_cast %138 : vector<6xf32> to vector<6x1xf32>
    %cst_63 = arith.constant 3.200000e+01 : f32
    %140 = vector.broadcast %cst_63 : f32 to vector<6x1xf32>
    %141 = arith.divf %139, %140 : vector<6x1xf32>
    %142 = vector.broadcast %134 : vector<6x1xf32> to vector<6x32xf32>
    %143 = arith.subf %126, %142 : vector<6x32xf32>
    %cst_64 = arith.constant 9.99999974E-6 : f32
    %144 = vector.broadcast %cst_64 : f32 to vector<6x1xf32>
    %145 = arith.addf %141, %144 : vector<6x1xf32>
    %146 = math.rsqrt %145 : vector<6x1xf32>
    %147 = vector.broadcast %146 : vector<6x1xf32> to vector<6x32xf32>
    %148 = arith.mulf %143, %147 : vector<6x32xf32>
    %149 = vector.broadcast %128 : vector<1x32xf32> to vector<6x32xf32>
    %150 = arith.mulf %148, %149 : vector<6x32xf32>
    %151 = vector.broadcast %130 : vector<1x32xf32> to vector<6x32xf32>
    %152 = arith.addf %150, %151 : vector<6x32xf32>
    %c0_65 = arith.constant 0 : index
    %c0_66 = arith.constant 0 : index
    %c0_67 = arith.constant 0 : index
    %153 = vector.load %arg13[%c0_65, %c0_66, %c0_67] : memref<2x32x64xf32, #tpu.memory_space<vmem>>, vector<1x32x64xf32>
    %154 = vector.shape_cast %153 : vector<1x32x64xf32> to vector<32x64xf32>
    %cst_68 = arith.constant dense<0.000000e+00> : vector<6x64xf32>
    %155 = tpu.matmul %152, %154, %cst_68 {dimension_numbers = #tpu.dot_dimension_numbers<[1], [0], [0], [1], [0, 0, 1, 1], [], []>} : vector<6x32xf32>, vector<32x64xf32>, vector<6x64xf32> -> vector<6x64xf32>
    %c0_69 = arith.constant 0 : index
    %c0_70 = arith.constant 0 : index
    %c0_71 = arith.constant 0 : index
    %156 = vector.load %arg14[%c0_69, %c0_70, %c0_71] : memref<2x1x64xf32, #tpu.memory_space<vmem>>, vector<1x1x64xf32>
    %157 = vector.shape_cast %156 : vector<1x1x64xf32> to vector<1x64xf32>
    %158 = vector.broadcast %157 : vector<1x64xf32> to vector<6x64xf32>
    %159 = arith.addf %155, %158 : vector<6x64xf32>
    %cst_72 = arith.constant 0.000000e+00 : f32
    %160 = vector.broadcast %cst_72 : f32 to vector<6x64xf32>
    %161 = arith.maximumf %159, %160 : vector<6x64xf32>
    %c0_73 = arith.constant 0 : index
    %c0_74 = arith.constant 0 : index
    %c0_75 = arith.constant 0 : index
    %162 = vector.load %arg15[%c0_73, %c0_74, %c0_75] : memref<2x64x32xf32, #tpu.memory_space<vmem>>, vector<1x64x32xf32>
    %163 = vector.shape_cast %162 : vector<1x64x32xf32> to vector<64x32xf32>
    %cst_76 = arith.constant dense<0.000000e+00> : vector<6x32xf32>
    %164 = tpu.matmul %161, %163, %cst_76 {dimension_numbers = #tpu.dot_dimension_numbers<[1], [0], [0], [1], [0, 0, 1, 1], [], []>} : vector<6x64xf32>, vector<64x32xf32>, vector<6x32xf32> -> vector<6x32xf32>
    %c0_77 = arith.constant 0 : index
    %c0_78 = arith.constant 0 : index
    %c0_79 = arith.constant 0 : index
    %165 = vector.load %arg16[%c0_77, %c0_78, %c0_79] : memref<2x1x32xf32, #tpu.memory_space<vmem>>, vector<1x1x32xf32>
    %166 = vector.shape_cast %165 : vector<1x1x32xf32> to vector<1x32xf32>
    %167 = vector.broadcast %166 : vector<1x32xf32> to vector<6x32xf32>
    %168 = arith.addf %164, %167 : vector<6x32xf32>
    %169 = vector.shape_cast %168 : vector<6x32xf32> to vector<2x3x32xf32>
    %170 = arith.addf %125, %169 : vector<2x3x32xf32>
    %171 = vector.shape_cast %170 : vector<2x3x32xf32> to vector<6x32xf32>
    %c1 = arith.constant 1 : index
    %c0_80 = arith.constant 0 : index
    %c0_81 = arith.constant 0 : index
    %172 = vector.load %arg17[%c1, %c0_80, %c0_81] : memref<2x1x32xf32, #tpu.memory_space<vmem>>, vector<1x1x32xf32>
    %173 = vector.shape_cast %172 : vector<1x1x32xf32> to vector<1x32xf32>
    %c1_82 = arith.constant 1 : index
    %c0_83 = arith.constant 0 : index
    %c0_84 = arith.constant 0 : index
    %174 = vector.load %arg18[%c1_82, %c0_83, %c0_84] : memref<2x1x32xf32, #tpu.memory_space<vmem>>, vector<1x1x32xf32>
    %175 = vector.shape_cast %174 : vector<1x1x32xf32> to vector<1x32xf32>
    %cst_85 = arith.constant dense<0.000000e+00> : vector<6xf32>
    %176 = vector.multi_reduction <add>, %171, %cst_85 [1] : vector<6x32xf32> to vector<6xf32>
    %177 = vector.shape_cast %176 : vector<6xf32> to vector<6x1xf32>
    %cst_86 = arith.constant 3.200000e+01 : f32
    %178 = vector.broadcast %cst_86 : f32 to vector<6x1xf32>
    %179 = arith.divf %177, %178 : vector<6x1xf32>
    %180 = vector.broadcast %179 : vector<6x1xf32> to vector<6x32xf32>
    %181 = arith.subf %171, %180 : vector<6x32xf32>
    %182 = arith.mulf %181, %181 : vector<6x32xf32>
    %cst_87 = arith.constant dense<0.000000e+00> : vector<6xf32>
    %183 = vector.multi_reduction <add>, %182, %cst_87 [1] : vector<6x32xf32> to vector<6xf32>
    %184 = vector.shape_cast %183 : vector<6xf32> to vector<6x1xf32>
    %cst_88 = arith.constant 3.200000e+01 : f32
    %185 = vector.broadcast %cst_88 : f32 to vector<6x1xf32>
    %186 = arith.divf %184, %185 : vector<6x1xf32>
    %187 = vector.broadcast %179 : vector<6x1xf32> to vector<6x32xf32>
    %188 = arith.subf %171, %187 : vector<6x32xf32>
    %cst_89 = arith.constant 9.99999974E-6 : f32
    %189 = vector.broadcast %cst_89 : f32 to vector<6x1xf32>
    %190 = arith.addf %186, %189 : vector<6x1xf32>
    %191 = math.rsqrt %190 : vector<6x1xf32>
    %192 = vector.broadcast %191 : vector<6x1xf32> to vector<6x32xf32>
    %193 = arith.mulf %188, %192 : vector<6x32xf32>
    %194 = vector.broadcast %173 : vector<1x32xf32> to vector<6x32xf32>
    %195 = arith.mulf %193, %194 : vector<6x32xf32>
    %196 = vector.broadcast %175 : vector<1x32xf32> to vector<6x32xf32>
    %197 = arith.addf %195, %196 : vector<6x32xf32>
    %c1_90 = arith.constant 1 : index
    %c0_91 = arith.constant 0 : index
    %c0_92 = arith.constant 0 : index
    %198 = vector.load %arg9[%c1_90, %c0_91, %c0_92] : memref<2x32x96xf32, #tpu.memory_space<vmem>>, vector<1x32x96xf32>
    %199 = vector.shape_cast %198 : vector<1x32x96xf32> to vector<32x96xf32>
    %cst_93 = arith.constant dense<0.000000e+00> : vector<6x96xf32>
    %200 = tpu.matmul %197, %199, %cst_93 {dimension_numbers = #tpu.dot_dimension_numbers<[1], [0], [0], [1], [0, 0, 1, 1], [], []>} : vector<6x32xf32>, vector<32x96xf32>, vector<6x96xf32> -> vector<6x96xf32>
    %c1_94 = arith.constant 1 : index
    %c0_95 = arith.constant 0 : index
    %c0_96 = arith.constant 0 : index
    %201 = vector.load %arg10[%c1_94, %c0_95, %c0_96] : memref<2x1x96xf32, #tpu.memory_space<vmem>>, vector<1x1x96xf32>
    %202 = vector.shape_cast %201 : vector<1x1x96xf32> to vector<1x96xf32>
    %203 = vector.broadcast %202 : vector<1x96xf32> to vector<6x96xf32>
    %204 = arith.addf %200, %203 : vector<6x96xf32>
    %205 = vector.extract_strided_slice %204 {offsets = [0, 0], sizes = [6, 32], strides = [1, 1]} : vector<6x96xf32> to vector<6x32xf32>
    %206 = vector.shape_cast %205 : vector<6x32xf32> to vector<2x3x32xf32>
    %207 = vector.extract_strided_slice %204 {offsets = [0, 32], sizes = [6, 32], strides = [1, 1]} : vector<6x96xf32> to vector<6x32xf32>
    %208 = vector.shape_cast %207 : vector<6x32xf32> to vector<2x3x32xf32>
    %209 = vector.extract_strided_slice %204 {offsets = [0, 64], sizes = [6, 32], strides = [1, 1]} : vector<6x96xf32> to vector<6x32xf32>
    %210 = vector.shape_cast %209 : vector<6x32xf32> to vector<2x3x32xf32>
    %211 = vector.extract_strided_slice %206 {offsets = [0, 0, 0], sizes = [2, 3, 8], strides = [1, 1, 1]} : vector<2x3x32xf32> to vector<2x3x8xf32>
    %212 = vector.extract_strided_slice %208 {offsets = [0, 0, 0], sizes = [2, 3, 8], strides = [1, 1, 1]} : vector<2x3x32xf32> to vector<2x3x8xf32>
    %213 = vector.extract_strided_slice %210 {offsets = [0, 0, 0], sizes = [2, 3, 8], strides = [1, 1, 1]} : vector<2x3x32xf32> to vector<2x3x8xf32>
    "tpu.trace_start"() <{level = 10 : i32, message = "bqd,bkd->bqk"}> : () -> ()
    %cst_97 = arith.constant dense<0.000000e+00> : vector<2x3x3xf32>
    %214 = tpu.matmul %211, %212, %cst_97 {dimension_numbers = #tpu.dot_dimension_numbers<[2], [2], [1], [1], [0, 0, 0, 1, 1, 1], [0], [0]>} : vector<2x3x8xf32>, vector<2x3x8xf32>, vector<2x3x3xf32> -> vector<2x3x3xf32>
    "tpu.trace_stop"() : () -> ()
    %cst_98 = arith.constant 0.353553385 : f32
    %215 = vector.broadcast %cst_98 : f32 to vector<2x3x3xf32>
    %216 = arith.mulf %214, %215 : vector<2x3x3xf32>
    %cst_99 = arith.constant dense<0xFF800000> : vector<2x3xf32>
    %217 = vector.multi_reduction <maximumf>, %216, %cst_99 [2] : vector<2x3x3xf32> to vector<2x3xf32>
    %218 = vector.shape_cast %217 : vector<2x3xf32> to vector<2x3x1xf32>
    %219 = vector.broadcast %218 : vector<2x3x1xf32> to vector<2x3x3xf32>
    %220 = arith.subf %216, %219 : vector<2x3x3xf32>
    %221 = math.exp %220 : vector<2x3x3xf32>
    %cst_100 = arith.constant dense<0.000000e+00> : vector<2x3xf32>
    %222 = vector.multi_reduction <add>, %221, %cst_100 [2] : vector<2x3x3xf32> to vector<2x3xf32>
    %223 = vector.shape_cast %222 : vector<2x3xf32> to vector<2x3x1xf32>
    %224 = vector.broadcast %223 : vector<2x3x1xf32> to vector<2x3x3xf32>
    %225 = arith.divf %221, %224 : vector<2x3x3xf32>
    "tpu.trace_start"() <{level = 10 : i32, message = "bqk,bkd->bqd"}> : () -> ()
    %cst_101 = arith.constant dense<0.000000e+00> : vector<2x3x8xf32>
    %226 = tpu.matmul %225, %213, %cst_101 {dimension_numbers = #tpu.dot_dimension_numbers<[2], [1], [1], [2], [0, 0, 0, 1, 1, 2], [0], [0]>} : vector<2x3x3xf32>, vector<2x3x8xf32>, vector<2x3x8xf32> -> vector<2x3x8xf32>
    "tpu.trace_stop"() : () -> ()
    %227 = vector.extract_strided_slice %206 {offsets = [0, 0, 8], sizes = [2, 3, 8], strides = [1, 1, 1]} : vector<2x3x32xf32> to vector<2x3x8xf32>
    %228 = vector.extract_strided_slice %208 {offsets = [0, 0, 8], sizes = [2, 3, 8], strides = [1, 1, 1]} : vector<2x3x32xf32> to vector<2x3x8xf32>
    %229 = vector.extract_strided_slice %210 {offsets = [0, 0, 8], sizes = [2, 3, 8], strides = [1, 1, 1]} : vector<2x3x32xf32> to vector<2x3x8xf32>
    "tpu.trace_start"() <{level = 10 : i32, message = "bqd,bkd->bqk"}> : () -> ()
    %cst_102 = arith.constant dense<0.000000e+00> : vector<2x3x3xf32>
    %230 = tpu.matmul %227, %228, %cst_102 {dimension_numbers = #tpu.dot_dimension_numbers<[2], [2], [1], [1], [0, 0, 0, 1, 1, 1], [0], [0]>} : vector<2x3x8xf32>, vector<2x3x8xf32>, vector<2x3x3xf32> -> vector<2x3x3xf32>
    "tpu.trace_stop"() : () -> ()
    %cst_103 = arith.constant 0.353553385 : f32
    %231 = vector.broadcast %cst_103 : f32 to vector<2x3x3xf32>
    %232 = arith.mulf %230, %231 : vector<2x3x3xf32>
    %cst_104 = arith.constant dense<0xFF800000> : vector<2x3xf32>
    %233 = vector.multi_reduction <maximumf>, %232, %cst_104 [2] : vector<2x3x3xf32> to vector<2x3xf32>
    %234 = vector.shape_cast %233 : vector<2x3xf32> to vector<2x3x1xf32>
    %235 = vector.broadcast %234 : vector<2x3x1xf32> to vector<2x3x3xf32>
    %236 = arith.subf %232, %235 : vector<2x3x3xf32>
    %237 = math.exp %236 : vector<2x3x3xf32>
    %cst_105 = arith.constant dense<0.000000e+00> : vector<2x3xf32>
    %238 = vector.multi_reduction <add>, %237, %cst_105 [2] : vector<2x3x3xf32> to vector<2x3xf32>
    %239 = vector.shape_cast %238 : vector<2x3xf32> to vector<2x3x1xf32>
    %240 = vector.broadcast %239 : vector<2x3x1xf32> to vector<2x3x3xf32>
    %241 = arith.divf %237, %240 : vector<2x3x3xf32>
    "tpu.trace_start"() <{level = 10 : i32, message = "bqk,bkd->bqd"}> : () -> ()
    %cst_106 = arith.constant dense<0.000000e+00> : vector<2x3x8xf32>
    %242 = tpu.matmul %241, %229, %cst_106 {dimension_numbers = #tpu.dot_dimension_numbers<[2], [1], [1], [2], [0, 0, 0, 1, 1, 2], [0], [0]>} : vector<2x3x3xf32>, vector<2x3x8xf32>, vector<2x3x8xf32> -> vector<2x3x8xf32>
    "tpu.trace_stop"() : () -> ()
    %243 = vector.extract_strided_slice %206 {offsets = [0, 0, 16], sizes = [2, 3, 8], strides = [1, 1, 1]} : vector<2x3x32xf32> to vector<2x3x8xf32>
    %244 = vector.extract_strided_slice %208 {offsets = [0, 0, 16], sizes = [2, 3, 8], strides = [1, 1, 1]} : vector<2x3x32xf32> to vector<2x3x8xf32>
    %245 = vector.extract_strided_slice %210 {offsets = [0, 0, 16], sizes = [2, 3, 8], strides = [1, 1, 1]} : vector<2x3x32xf32> to vector<2x3x8xf32>
    "tpu.trace_start"() <{level = 10 : i32, message = "bqd,bkd->bqk"}> : () -> ()
    %cst_107 = arith.constant dense<0.000000e+00> : vector<2x3x3xf32>
    %246 = tpu.matmul %243, %244, %cst_107 {dimension_numbers = #tpu.dot_dimension_numbers<[2], [2], [1], [1], [0, 0, 0, 1, 1, 1], [0], [0]>} : vector<2x3x8xf32>, vector<2x3x8xf32>, vector<2x3x3xf32> -> vector<2x3x3xf32>
    "tpu.trace_stop"() : () -> ()
    %cst_108 = arith.constant 0.353553385 : f32
    %247 = vector.broadcast %cst_108 : f32 to vector<2x3x3xf32>
    %248 = arith.mulf %246, %247 : vector<2x3x3xf32>
    %cst_109 = arith.constant dense<0xFF800000> : vector<2x3xf32>
    %249 = vector.multi_reduction <maximumf>, %248, %cst_109 [2] : vector<2x3x3xf32> to vector<2x3xf32>
    %250 = vector.shape_cast %249 : vector<2x3xf32> to vector<2x3x1xf32>
    %251 = vector.broadcast %250 : vector<2x3x1xf32> to vector<2x3x3xf32>
    %252 = arith.subf %248, %251 : vector<2x3x3xf32>
    %253 = math.exp %252 : vector<2x3x3xf32>
    %cst_110 = arith.constant dense<0.000000e+00> : vector<2x3xf32>
    %254 = vector.multi_reduction <add>, %253, %cst_110 [2] : vector<2x3x3xf32> to vector<2x3xf32>
    %255 = vector.shape_cast %254 : vector<2x3xf32> to vector<2x3x1xf32>
    %256 = vector.broadcast %255 : vector<2x3x1xf32> to vector<2x3x3xf32>
    %257 = arith.divf %253, %256 : vector<2x3x3xf32>
    "tpu.trace_start"() <{level = 10 : i32, message = "bqk,bkd->bqd"}> : () -> ()
    %cst_111 = arith.constant dense<0.000000e+00> : vector<2x3x8xf32>
    %258 = tpu.matmul %257, %245, %cst_111 {dimension_numbers = #tpu.dot_dimension_numbers<[2], [1], [1], [2], [0, 0, 0, 1, 1, 2], [0], [0]>} : vector<2x3x3xf32>, vector<2x3x8xf32>, vector<2x3x8xf32> -> vector<2x3x8xf32>
    "tpu.trace_stop"() : () -> ()
    %259 = vector.extract_strided_slice %206 {offsets = [0, 0, 24], sizes = [2, 3, 8], strides = [1, 1, 1]} : vector<2x3x32xf32> to vector<2x3x8xf32>
    %260 = vector.extract_strided_slice %208 {offsets = [0, 0, 24], sizes = [2, 3, 8], strides = [1, 1, 1]} : vector<2x3x32xf32> to vector<2x3x8xf32>
    %261 = vector.extract_strided_slice %210 {offsets = [0, 0, 24], sizes = [2, 3, 8], strides = [1, 1, 1]} : vector<2x3x32xf32> to vector<2x3x8xf32>
    "tpu.trace_start"() <{level = 10 : i32, message = "bqd,bkd->bqk"}> : () -> ()
    %cst_112 = arith.constant dense<0.000000e+00> : vector<2x3x3xf32>
    %262 = tpu.matmul %259, %260, %cst_112 {dimension_numbers = #tpu.dot_dimension_numbers<[2], [2], [1], [1], [0, 0, 0, 1, 1, 1], [0], [0]>} : vector<2x3x8xf32>, vector<2x3x8xf32>, vector<2x3x3xf32> -> vector<2x3x3xf32>
    "tpu.trace_stop"() : () -> ()
    %cst_113 = arith.constant 0.353553385 : f32
    %263 = vector.broadcast %cst_113 : f32 to vector<2x3x3xf32>
    %264 = arith.mulf %262, %263 : vector<2x3x3xf32>
    %cst_114 = arith.constant dense<0xFF800000> : vector<2x3xf32>
    %265 = vector.multi_reduction <maximumf>, %264, %cst_114 [2] : vector<2x3x3xf32> to vector<2x3xf32>
    %266 = vector.shape_cast %265 : vector<2x3xf32> to vector<2x3x1xf32>
    %267 = vector.broadcast %266 : vector<2x3x1xf32> to vector<2x3x3xf32>
    %268 = arith.subf %264, %267 : vector<2x3x3xf32>
    %269 = math.exp %268 : vector<2x3x3xf32>
    %cst_115 = arith.constant dense<0.000000e+00> : vector<2x3xf32>
    %270 = vector.multi_reduction <add>, %269, %cst_115 [2] : vector<2x3x3xf32> to vector<2x3xf32>
    %271 = vector.shape_cast %270 : vector<2x3xf32> to vector<2x3x1xf32>
    %272 = vector.broadcast %271 : vector<2x3x1xf32> to vector<2x3x3xf32>
    %273 = arith.divf %269, %272 : vector<2x3x3xf32>
    "tpu.trace_start"() <{level = 10 : i32, message = "bqk,bkd->bqd"}> : () -> ()
    %cst_116 = arith.constant dense<0.000000e+00> : vector<2x3x8xf32>
    %274 = tpu.matmul %273, %261, %cst_116 {dimension_numbers = #tpu.dot_dimension_numbers<[2], [1], [1], [2], [0, 0, 0, 1, 1, 2], [0], [0]>} : vector<2x3x3xf32>, vector<2x3x8xf32>, vector<2x3x8xf32> -> vector<2x3x8xf32>
    "tpu.trace_stop"() : () -> ()
    %275 = tpu.concatenate %226, %242, %258, %274 in 2 : vector<2x3x8xf32>, vector<2x3x8xf32>, vector<2x3x8xf32>, vector<2x3x8xf32> -> vector<2x3x32xf32>
    %276 = vector.shape_cast %275 : vector<2x3x32xf32> to vector<6x32xf32>
    %c1_117 = arith.constant 1 : index
    %c0_118 = arith.constant 0 : index
    %c0_119 = arith.constant 0 : index
    %277 = vector.load %arg11[%c1_117, %c0_118, %c0_119] : memref<2x32x32xf32, #tpu.memory_space<vmem>>, vector<1x32x32xf32>
    %278 = vector.shape_cast %277 : vector<1x32x32xf32> to vector<32x32xf32>
    %cst_120 = arith.constant dense<0.000000e+00> : vector<6x32xf32>
    %279 = tpu.matmul %276, %278, %cst_120 {dimension_numbers = #tpu.dot_dimension_numbers<[1], [0], [0], [1], [0, 0, 1, 1], [], []>} : vector<6x32xf32>, vector<32x32xf32>, vector<6x32xf32> -> vector<6x32xf32>
    %c1_121 = arith.constant 1 : index
    %c0_122 = arith.constant 0 : index
    %c0_123 = arith.constant 0 : index
    %280 = vector.load %arg12[%c1_121, %c0_122, %c0_123] : memref<2x1x32xf32, #tpu.memory_space<vmem>>, vector<1x1x32xf32>
    %281 = vector.shape_cast %280 : vector<1x1x32xf32> to vector<1x32xf32>
    %282 = vector.broadcast %281 : vector<1x32xf32> to vector<6x32xf32>
    %283 = arith.addf %279, %282 : vector<6x32xf32>
    %284 = vector.shape_cast %283 : vector<6x32xf32> to vector<2x3x32xf32>
    %285 = arith.addf %170, %284 : vector<2x3x32xf32>
    %286 = vector.shape_cast %285 : vector<2x3x32xf32> to vector<6x32xf32>
    %c1_124 = arith.constant 1 : index
    %c0_125 = arith.constant 0 : index
    %c0_126 = arith.constant 0 : index
    %287 = vector.load %arg19[%c1_124, %c0_125, %c0_126] : memref<2x1x32xf32, #tpu.memory_space<vmem>>, vector<1x1x32xf32>
    %288 = vector.shape_cast %287 : vector<1x1x32xf32> to vector<1x32xf32>
    %c1_127 = arith.constant 1 : index
    %c0_128 = arith.constant 0 : index
    %c0_129 = arith.constant 0 : index
    %289 = vector.load %arg20[%c1_127, %c0_128, %c0_129] : memref<2x1x32xf32, #tpu.memory_space<vmem>>, vector<1x1x32xf32>
    %290 = vector.shape_cast %289 : vector<1x1x32xf32> to vector<1x32xf32>
    %cst_130 = arith.constant dense<0.000000e+00> : vector<6xf32>
    %291 = vector.multi_reduction <add>, %286, %cst_130 [1] : vector<6x32xf32> to vector<6xf32>
    %292 = vector.shape_cast %291 : vector<6xf32> to vector<6x1xf32>
    %cst_131 = arith.constant 3.200000e+01 : f32
    %293 = vector.broadcast %cst_131 : f32 to vector<6x1xf32>
    %294 = arith.divf %292, %293 : vector<6x1xf32>
    %295 = vector.broadcast %294 : vector<6x1xf32> to vector<6x32xf32>
    %296 = arith.subf %286, %295 : vector<6x32xf32>
    %297 = arith.mulf %296, %296 : vector<6x32xf32>
    %cst_132 = arith.constant dense<0.000000e+00> : vector<6xf32>
    %298 = vector.multi_reduction <add>, %297, %cst_132 [1] : vector<6x32xf32> to vector<6xf32>
    %299 = vector.shape_cast %298 : vector<6xf32> to vector<6x1xf32>
    %cst_133 = arith.constant 3.200000e+01 : f32
    %300 = vector.broadcast %cst_133 : f32 to vector<6x1xf32>
    %301 = arith.divf %299, %300 : vector<6x1xf32>
    %302 = vector.broadcast %294 : vector<6x1xf32> to vector<6x32xf32>
    %303 = arith.subf %286, %302 : vector<6x32xf32>
    %cst_134 = arith.constant 9.99999974E-6 : f32
    %304 = vector.broadcast %cst_134 : f32 to vector<6x1xf32>
    %305 = arith.addf %301, %304 : vector<6x1xf32>
    %306 = math.rsqrt %305 : vector<6x1xf32>
    %307 = vector.broadcast %306 : vector<6x1xf32> to vector<6x32xf32>
    %308 = arith.mulf %303, %307 : vector<6x32xf32>
    %309 = vector.broadcast %288 : vector<1x32xf32> to vector<6x32xf32>
    %310 = arith.mulf %308, %309 : vector<6x32xf32>
    %311 = vector.broadcast %290 : vector<1x32xf32> to vector<6x32xf32>
    %312 = arith.addf %310, %311 : vector<6x32xf32>
    %c1_135 = arith.constant 1 : index
    %c0_136 = arith.constant 0 : index
    %c0_137 = arith.constant 0 : index
    %313 = vector.load %arg13[%c1_135, %c0_136, %c0_137] : memref<2x32x64xf32, #tpu.memory_space<vmem>>, vector<1x32x64xf32>
    %314 = vector.shape_cast %313 : vector<1x32x64xf32> to vector<32x64xf32>
    %cst_138 = arith.constant dense<0.000000e+00> : vector<6x64xf32>
    %315 = tpu.matmul %312, %314, %cst_138 {dimension_numbers = #tpu.dot_dimension_numbers<[1], [0], [0], [1], [0, 0, 1, 1], [], []>} : vector<6x32xf32>, vector<32x64xf32>, vector<6x64xf32> -> vector<6x64xf32>
    %c1_139 = arith.constant 1 : index
    %c0_140 = arith.constant 0 : index
    %c0_141 = arith.constant 0 : index
    %316 = vector.load %arg14[%c1_139, %c0_140, %c0_141] : memref<2x1x64xf32, #tpu.memory_space<vmem>>, vector<1x1x64xf32>
    %317 = vector.shape_cast %316 : vector<1x1x64xf32> to vector<1x64xf32>
    %318 = vector.broadcast %317 : vector<1x64xf32> to vector<6x64xf32>
    %319 = arith.addf %315, %318 : vector<6x64xf32>
    %cst_142 = arith.constant 0.000000e+00 : f32
    %320 = vector.broadcast %cst_142 : f32 to vector<6x64xf32>
    %321 = arith.maximumf %319, %320 : vector<6x64xf32>
    %c1_143 = arith.constant 1 : index
    %c0_144 = arith.constant 0 : index
    %c0_145 = arith.constant 0 : index
    %322 = vector.load %arg15[%c1_143, %c0_144, %c0_145] : memref<2x64x32xf32, #tpu.memory_space<vmem>>, vector<1x64x32xf32>
    %323 = vector.shape_cast %322 : vector<1x64x32xf32> to vector<64x32xf32>
    %cst_146 = arith.constant dense<0.000000e+00> : vector<6x32xf32>
    %324 = tpu.matmul %321, %323, %cst_146 {dimension_numbers = #tpu.dot_dimension_numbers<[1], [0], [0], [1], [0, 0, 1, 1], [], []>} : vector<6x64xf32>, vector<64x32xf32>, vector<6x32xf32> -> vector<6x32xf32>
    %c1_147 = arith.constant 1 : index
    %c0_148 = arith.constant 0 : index
    %c0_149 = arith.constant 0 : index
    %325 = vector.load %arg16[%c1_147, %c0_148, %c0_149] : memref<2x1x32xf32, #tpu.memory_space<vmem>>, vector<1x1x32xf32>
    %326 = vector.shape_cast %325 : vector<1x1x32xf32> to vector<1x32xf32>
    %327 = vector.broadcast %326 : vector<1x32xf32> to vector<6x32xf32>
    %328 = arith.addf %324, %327 : vector<6x32xf32>
    %329 = vector.shape_cast %328 : vector<6x32xf32> to vector<2x3x32xf32>
    %330 = arith.addf %285, %329 : vector<2x3x32xf32>
    %331 = vector.extract_strided_slice %330 {offsets = [0, 2, 0], sizes = [2, 1, 32], strides = [1, 1, 1]} : vector<2x3x32xf32> to vector<2x1x32xf32>
    %332 = vector.shape_cast %331 : vector<2x1x32xf32> to vector<2x32xf32>
    %c0_150 = arith.constant 0 : index
    %c0_151 = arith.constant 0 : index
    %333 = vector.load %arg5[%c0_150, %c0_151] : memref<32x160xf32, #tpu.memory_space<vmem>>, vector<32x160xf32>
    %cst_152 = arith.constant dense<0.000000e+00> : vector<2x160xf32>
    %334 = tpu.matmul %332, %333, %cst_152 {dimension_numbers = #tpu.dot_dimension_numbers<[1], [0], [0], [1], [0, 0, 1, 1], [], []>} : vector<2x32xf32>, vector<32x160xf32>, vector<2x160xf32> -> vector<2x160xf32>
    %c0_153 = arith.constant 0 : index
    %c0_154 = arith.constant 0 : index
    %335 = vector.load %arg6[%c0_153, %c0_154] : memref<1x160xf32, #tpu.memory_space<vmem>>, vector<1x160xf32>
    %336 = vector.broadcast %335 : vector<1x160xf32> to vector<2x160xf32>
    %337 = arith.addf %334, %336 : vector<2x160xf32>
    %c0_155 = arith.constant 0 : index
    %c0_156 = arith.constant 0 : index
    %338 = vector.load %arg7[%c0_155, %c0_156] : memref<32x32xf32, #tpu.memory_space<vmem>>, vector<32x32xf32>
    %cst_157 = arith.constant dense<0.000000e+00> : vector<2x32xf32>
    %339 = tpu.matmul %332, %338, %cst_157 {dimension_numbers = #tpu.dot_dimension_numbers<[1], [0], [0], [1], [0, 0, 1, 1], [], []>} : vector<2x32xf32>, vector<32x32xf32>, vector<2x32xf32> -> vector<2x32xf32>
    %c0_158 = arith.constant 0 : index
    %c0_159 = arith.constant 0 : index
    %340 = vector.load %arg8[%c0_158, %c0_159] : memref<1x32xf32, #tpu.memory_space<vmem>>, vector<1x32xf32>
    %341 = vector.broadcast %340 : vector<1x32xf32> to vector<2x32xf32>
    %342 = arith.addf %339, %341 : vector<2x32xf32>
    %343 = vector.extract_strided_slice %8 {offsets = [0, 1, 0], sizes = [2, 2, 32], strides = [1, 1, 1]} : vector<2x3x32xf32> to vector<2x2x32xf32>
    %344 = vector.shape_cast %342 : vector<2x32xf32> to vector<2x1x32xf32>
    %345 = tpu.concatenate %343, %344 in 1 : vector<2x2x32xf32>, vector<2x1x32xf32> -> vector<2x3x32xf32>
    %346 = vector.broadcast %0 : vector<1x3x32xf32> to vector<2x3x32xf32>
    %347 = arith.addf %345, %346 : vector<2x3x32xf32>
    %348 = vector.shape_cast %347 : vector<2x3x32xf32> to vector<6x32xf32>
    %c0_160 = arith.constant 0 : index
    %c0_161 = arith.constant 0 : index
    %c0_162 = arith.constant 0 : index
    %349 = vector.load %arg17[%c0_160, %c0_161, %c0_162] : memref<2x1x32xf32, #tpu.memory_space<vmem>>, vector<1x1x32xf32>
    %350 = vector.shape_cast %349 : vector<1x1x32xf32> to vector<1x32xf32>
    %c0_163 = arith.constant 0 : index
    %c0_164 = arith.constant 0 : index
    %c0_165 = arith.constant 0 : index
    %351 = vector.load %arg18[%c0_163, %c0_164, %c0_165] : memref<2x1x32xf32, #tpu.memory_space<vmem>>, vector<1x1x32xf32>
    %352 = vector.shape_cast %351 : vector<1x1x32xf32> to vector<1x32xf32>
    %cst_166 = arith.constant dense<0.000000e+00> : vector<6xf32>
    %353 = vector.multi_reduction <add>, %348, %cst_166 [1] : vector<6x32xf32> to vector<6xf32>
    %354 = vector.shape_cast %353 : vector<6xf32> to vector<6x1xf32>
    %cst_167 = arith.constant 3.200000e+01 : f32
    %355 = vector.broadcast %cst_167 : f32 to vector<6x1xf32>
    %356 = arith.divf %354, %355 : vector<6x1xf32>
    %357 = vector.broadcast %356 : vector<6x1xf32> to vector<6x32xf32>
    %358 = arith.subf %348, %357 : vector<6x32xf32>
    %359 = arith.mulf %358, %358 : vector<6x32xf32>
    %cst_168 = arith.constant dense<0.000000e+00> : vector<6xf32>
    %360 = vector.multi_reduction <add>, %359, %cst_168 [1] : vector<6x32xf32> to vector<6xf32>
    %361 = vector.shape_cast %360 : vector<6xf32> to vector<6x1xf32>
    %cst_169 = arith.constant 3.200000e+01 : f32
    %362 = vector.broadcast %cst_169 : f32 to vector<6x1xf32>
    %363 = arith.divf %361, %362 : vector<6x1xf32>
    %364 = vector.broadcast %356 : vector<6x1xf32> to vector<6x32xf32>
    %365 = arith.subf %348, %364 : vector<6x32xf32>
    %cst_170 = arith.constant 9.99999974E-6 : f32
    %366 = vector.broadcast %cst_170 : f32 to vector<6x1xf32>
    %367 = arith.addf %363, %366 : vector<6x1xf32>
    %368 = math.rsqrt %367 : vector<6x1xf32>
    %369 = vector.broadcast %368 : vector<6x1xf32> to vector<6x32xf32>
    %370 = arith.mulf %365, %369 : vector<6x32xf32>
    %371 = vector.broadcast %350 : vector<1x32xf32> to vector<6x32xf32>
    %372 = arith.mulf %370, %371 : vector<6x32xf32>
    %373 = vector.broadcast %352 : vector<1x32xf32> to vector<6x32xf32>
    %374 = arith.addf %372, %373 : vector<6x32xf32>
    %c0_171 = arith.constant 0 : index
    %c0_172 = arith.constant 0 : index
    %c0_173 = arith.constant 0 : index
    %375 = vector.load %arg9[%c0_171, %c0_172, %c0_173] : memref<2x32x96xf32, #tpu.memory_space<vmem>>, vector<1x32x96xf32>
    %376 = vector.shape_cast %375 : vector<1x32x96xf32> to vector<32x96xf32>
    %cst_174 = arith.constant dense<0.000000e+00> : vector<6x96xf32>
    %377 = tpu.matmul %374, %376, %cst_174 {dimension_numbers = #tpu.dot_dimension_numbers<[1], [0], [0], [1], [0, 0, 1, 1], [], []>} : vector<6x32xf32>, vector<32x96xf32>, vector<6x96xf32> -> vector<6x96xf32>
    %c0_175 = arith.constant 0 : index
    %c0_176 = arith.constant 0 : index
    %c0_177 = arith.constant 0 : index
    %378 = vector.load %arg10[%c0_175, %c0_176, %c0_177] : memref<2x1x96xf32, #tpu.memory_space<vmem>>, vector<1x1x96xf32>
    %379 = vector.shape_cast %378 : vector<1x1x96xf32> to vector<1x96xf32>
    %380 = vector.broadcast %379 : vector<1x96xf32> to vector<6x96xf32>
    %381 = arith.addf %377, %380 : vector<6x96xf32>
    %382 = vector.extract_strided_slice %381 {offsets = [0, 0], sizes = [6, 32], strides = [1, 1]} : vector<6x96xf32> to vector<6x32xf32>
    %383 = vector.shape_cast %382 : vector<6x32xf32> to vector<2x3x32xf32>
    %384 = vector.extract_strided_slice %381 {offsets = [0, 32], sizes = [6, 32], strides = [1, 1]} : vector<6x96xf32> to vector<6x32xf32>
    %385 = vector.shape_cast %384 : vector<6x32xf32> to vector<2x3x32xf32>
    %386 = vector.extract_strided_slice %381 {offsets = [0, 64], sizes = [6, 32], strides = [1, 1]} : vector<6x96xf32> to vector<6x32xf32>
    %387 = vector.shape_cast %386 : vector<6x32xf32> to vector<2x3x32xf32>
    %388 = vector.extract_strided_slice %383 {offsets = [0, 0, 0], sizes = [2, 3, 8], strides = [1, 1, 1]} : vector<2x3x32xf32> to vector<2x3x8xf32>
    %389 = vector.extract_strided_slice %385 {offsets = [0, 0, 0], sizes = [2, 3, 8], strides = [1, 1, 1]} : vector<2x3x32xf32> to vector<2x3x8xf32>
    %390 = vector.extract_strided_slice %387 {offsets = [0, 0, 0], sizes = [2, 3, 8], strides = [1, 1, 1]} : vector<2x3x32xf32> to vector<2x3x8xf32>
    "tpu.trace_start"() <{level = 10 : i32, message = "bqd,bkd->bqk"}> : () -> ()
    %cst_178 = arith.constant dense<0.000000e+00> : vector<2x3x3xf32>
    %391 = tpu.matmul %388, %389, %cst_178 {dimension_numbers = #tpu.dot_dimension_numbers<[2], [2], [1], [1], [0, 0, 0, 1, 1, 1], [0], [0]>} : vector<2x3x8xf32>, vector<2x3x8xf32>, vector<2x3x3xf32> -> vector<2x3x3xf32>
    "tpu.trace_stop"() : () -> ()
    %cst_179 = arith.constant 0.353553385 : f32
    %392 = vector.broadcast %cst_179 : f32 to vector<2x3x3xf32>
    %393 = arith.mulf %391, %392 : vector<2x3x3xf32>
    %cst_180 = arith.constant dense<0xFF800000> : vector<2x3xf32>
    %394 = vector.multi_reduction <maximumf>, %393, %cst_180 [2] : vector<2x3x3xf32> to vector<2x3xf32>
    %395 = vector.shape_cast %394 : vector<2x3xf32> to vector<2x3x1xf32>
    %396 = vector.broadcast %395 : vector<2x3x1xf32> to vector<2x3x3xf32>
    %397 = arith.subf %393, %396 : vector<2x3x3xf32>
    %398 = math.exp %397 : vector<2x3x3xf32>
    %cst_181 = arith.constant dense<0.000000e+00> : vector<2x3xf32>
    %399 = vector.multi_reduction <add>, %398, %cst_181 [2] : vector<2x3x3xf32> to vector<2x3xf32>
    %400 = vector.shape_cast %399 : vector<2x3xf32> to vector<2x3x1xf32>
    %401 = vector.broadcast %400 : vector<2x3x1xf32> to vector<2x3x3xf32>
    %402 = arith.divf %398, %401 : vector<2x3x3xf32>
    "tpu.trace_start"() <{level = 10 : i32, message = "bqk,bkd->bqd"}> : () -> ()
    %cst_182 = arith.constant dense<0.000000e+00> : vector<2x3x8xf32>
    %403 = tpu.matmul %402, %390, %cst_182 {dimension_numbers = #tpu.dot_dimension_numbers<[2], [1], [1], [2], [0, 0, 0, 1, 1, 2], [0], [0]>} : vector<2x3x3xf32>, vector<2x3x8xf32>, vector<2x3x8xf32> -> vector<2x3x8xf32>
    "tpu.trace_stop"() : () -> ()
    %404 = vector.extract_strided_slice %383 {offsets = [0, 0, 8], sizes = [2, 3, 8], strides = [1, 1, 1]} : vector<2x3x32xf32> to vector<2x3x8xf32>
    %405 = vector.extract_strided_slice %385 {offsets = [0, 0, 8], sizes = [2, 3, 8], strides = [1, 1, 1]} : vector<2x3x32xf32> to vector<2x3x8xf32>
    %406 = vector.extract_strided_slice %387 {offsets = [0, 0, 8], sizes = [2, 3, 8], strides = [1, 1, 1]} : vector<2x3x32xf32> to vector<2x3x8xf32>
    "tpu.trace_start"() <{level = 10 : i32, message = "bqd,bkd->bqk"}> : () -> ()
    %cst_183 = arith.constant dense<0.000000e+00> : vector<2x3x3xf32>
    %407 = tpu.matmul %404, %405, %cst_183 {dimension_numbers = #tpu.dot_dimension_numbers<[2], [2], [1], [1], [0, 0, 0, 1, 1, 1], [0], [0]>} : vector<2x3x8xf32>, vector<2x3x8xf32>, vector<2x3x3xf32> -> vector<2x3x3xf32>
    "tpu.trace_stop"() : () -> ()
    %cst_184 = arith.constant 0.353553385 : f32
    %408 = vector.broadcast %cst_184 : f32 to vector<2x3x3xf32>
    %409 = arith.mulf %407, %408 : vector<2x3x3xf32>
    %cst_185 = arith.constant dense<0xFF800000> : vector<2x3xf32>
    %410 = vector.multi_reduction <maximumf>, %409, %cst_185 [2] : vector<2x3x3xf32> to vector<2x3xf32>
    %411 = vector.shape_cast %410 : vector<2x3xf32> to vector<2x3x1xf32>
    %412 = vector.broadcast %411 : vector<2x3x1xf32> to vector<2x3x3xf32>
    %413 = arith.subf %409, %412 : vector<2x3x3xf32>
    %414 = math.exp %413 : vector<2x3x3xf32>
    %cst_186 = arith.constant dense<0.000000e+00> : vector<2x3xf32>
    %415 = vector.multi_reduction <add>, %414, %cst_186 [2] : vector<2x3x3xf32> to vector<2x3xf32>
    %416 = vector.shape_cast %415 : vector<2x3xf32> to vector<2x3x1xf32>
    %417 = vector.broadcast %416 : vector<2x3x1xf32> to vector<2x3x3xf32>
    %418 = arith.divf %414, %417 : vector<2x3x3xf32>
    "tpu.trace_start"() <{level = 10 : i32, message = "bqk,bkd->bqd"}> : () -> ()
    %cst_187 = arith.constant dense<0.000000e+00> : vector<2x3x8xf32>
    %419 = tpu.matmul %418, %406, %cst_187 {dimension_numbers = #tpu.dot_dimension_numbers<[2], [1], [1], [2], [0, 0, 0, 1, 1, 2], [0], [0]>} : vector<2x3x3xf32>, vector<2x3x8xf32>, vector<2x3x8xf32> -> vector<2x3x8xf32>
    "tpu.trace_stop"() : () -> ()
    %420 = vector.extract_strided_slice %383 {offsets = [0, 0, 16], sizes = [2, 3, 8], strides = [1, 1, 1]} : vector<2x3x32xf32> to vector<2x3x8xf32>
    %421 = vector.extract_strided_slice %385 {offsets = [0, 0, 16], sizes = [2, 3, 8], strides = [1, 1, 1]} : vector<2x3x32xf32> to vector<2x3x8xf32>
    %422 = vector.extract_strided_slice %387 {offsets = [0, 0, 16], sizes = [2, 3, 8], strides = [1, 1, 1]} : vector<2x3x32xf32> to vector<2x3x8xf32>
    "tpu.trace_start"() <{level = 10 : i32, message = "bqd,bkd->bqk"}> : () -> ()
    %cst_188 = arith.constant dense<0.000000e+00> : vector<2x3x3xf32>
    %423 = tpu.matmul %420, %421, %cst_188 {dimension_numbers = #tpu.dot_dimension_numbers<[2], [2], [1], [1], [0, 0, 0, 1, 1, 1], [0], [0]>} : vector<2x3x8xf32>, vector<2x3x8xf32>, vector<2x3x3xf32> -> vector<2x3x3xf32>
    "tpu.trace_stop"() : () -> ()
    %cst_189 = arith.constant 0.353553385 : f32
    %424 = vector.broadcast %cst_189 : f32 to vector<2x3x3xf32>
    %425 = arith.mulf %423, %424 : vector<2x3x3xf32>
    %cst_190 = arith.constant dense<0xFF800000> : vector<2x3xf32>
    %426 = vector.multi_reduction <maximumf>, %425, %cst_190 [2] : vector<2x3x3xf32> to vector<2x3xf32>
    %427 = vector.shape_cast %426 : vector<2x3xf32> to vector<2x3x1xf32>
    %428 = vector.broadcast %427 : vector<2x3x1xf32> to vector<2x3x3xf32>
    %429 = arith.subf %425, %428 : vector<2x3x3xf32>
    %430 = math.exp %429 : vector<2x3x3xf32>
    %cst_191 = arith.constant dense<0.000000e+00> : vector<2x3xf32>
    %431 = vector.multi_reduction <add>, %430, %cst_191 [2] : vector<2x3x3xf32> to vector<2x3xf32>
    %432 = vector.shape_cast %431 : vector<2x3xf32> to vector<2x3x1xf32>
    %433 = vector.broadcast %432 : vector<2x3x1xf32> to vector<2x3x3xf32>
    %434 = arith.divf %430, %433 : vector<2x3x3xf32>
    "tpu.trace_start"() <{level = 10 : i32, message = "bqk,bkd->bqd"}> : () -> ()
    %cst_192 = arith.constant dense<0.000000e+00> : vector<2x3x8xf32>
    %435 = tpu.matmul %434, %422, %cst_192 {dimension_numbers = #tpu.dot_dimension_numbers<[2], [1], [1], [2], [0, 0, 0, 1, 1, 2], [0], [0]>} : vector<2x3x3xf32>, vector<2x3x8xf32>, vector<2x3x8xf32> -> vector<2x3x8xf32>
    "tpu.trace_stop"() : () -> ()
    %436 = vector.extract_strided_slice %383 {offsets = [0, 0, 24], sizes = [2, 3, 8], strides = [1, 1, 1]} : vector<2x3x32xf32> to vector<2x3x8xf32>
    %437 = vector.extract_strided_slice %385 {offsets = [0, 0, 24], sizes = [2, 3, 8], strides = [1, 1, 1]} : vector<2x3x32xf32> to vector<2x3x8xf32>
    %438 = vector.extract_strided_slice %387 {offsets = [0, 0, 24], sizes = [2, 3, 8], strides = [1, 1, 1]} : vector<2x3x32xf32> to vector<2x3x8xf32>
    "tpu.trace_start"() <{level = 10 : i32, message = "bqd,bkd->bqk"}> : () -> ()
    %cst_193 = arith.constant dense<0.000000e+00> : vector<2x3x3xf32>
    %439 = tpu.matmul %436, %437, %cst_193 {dimension_numbers = #tpu.dot_dimension_numbers<[2], [2], [1], [1], [0, 0, 0, 1, 1, 1], [0], [0]>} : vector<2x3x8xf32>, vector<2x3x8xf32>, vector<2x3x3xf32> -> vector<2x3x3xf32>
    "tpu.trace_stop"() : () -> ()
    %cst_194 = arith.constant 0.353553385 : f32
    %440 = vector.broadcast %cst_194 : f32 to vector<2x3x3xf32>
    %441 = arith.mulf %439, %440 : vector<2x3x3xf32>
    %cst_195 = arith.constant dense<0xFF800000> : vector<2x3xf32>
    %442 = vector.multi_reduction <maximumf>, %441, %cst_195 [2] : vector<2x3x3xf32> to vector<2x3xf32>
    %443 = vector.shape_cast %442 : vector<2x3xf32> to vector<2x3x1xf32>
    %444 = vector.broadcast %443 : vector<2x3x1xf32> to vector<2x3x3xf32>
    %445 = arith.subf %441, %444 : vector<2x3x3xf32>
    %446 = math.exp %445 : vector<2x3x3xf32>
    %cst_196 = arith.constant dense<0.000000e+00> : vector<2x3xf32>
    %447 = vector.multi_reduction <add>, %446, %cst_196 [2] : vector<2x3x3xf32> to vector<2x3xf32>
    %448 = vector.shape_cast %447 : vector<2x3xf32> to vector<2x3x1xf32>
    %449 = vector.broadcast %448 : vector<2x3x1xf32> to vector<2x3x3xf32>
    %450 = arith.divf %446, %449 : vector<2x3x3xf32>
    "tpu.trace_start"() <{level = 10 : i32, message = "bqk,bkd->bqd"}> : () -> ()
    %cst_197 = arith.constant dense<0.000000e+00> : vector<2x3x8xf32>
    %451 = tpu.matmul %450, %438, %cst_197 {dimension_numbers = #tpu.dot_dimension_numbers<[2], [1], [1], [2], [0, 0, 0, 1, 1, 2], [0], [0]>} : vector<2x3x3xf32>, vector<2x3x8xf32>, vector<2x3x8xf32> -> vector<2x3x8xf32>
    "tpu.trace_stop"() : () -> ()
    %452 = tpu.concatenate %403, %419, %435, %451 in 2 : vector<2x3x8xf32>, vector<2x3x8xf32>, vector<2x3x8xf32>, vector<2x3x8xf32> -> vector<2x3x32xf32>
    %453 = vector.shape_cast %452 : vector<2x3x32xf32> to vector<6x32xf32>
    %c0_198 = arith.constant 0 : index
    %c0_199 = arith.constant 0 : index
    %c0_200 = arith.constant 0 : index
    %454 = vector.load %arg11[%c0_198, %c0_199, %c0_200] : memref<2x32x32xf32, #tpu.memory_space<vmem>>, vector<1x32x32xf32>
    %455 = vector.shape_cast %454 : vector<1x32x32xf32> to vector<32x32xf32>
    %cst_201 = arith.constant dense<0.000000e+00> : vector<6x32xf32>
    %456 = tpu.matmul %453, %455, %cst_201 {dimension_numbers = #tpu.dot_dimension_numbers<[1], [0], [0], [1], [0, 0, 1, 1], [], []>} : vector<6x32xf32>, vector<32x32xf32>, vector<6x32xf32> -> vector<6x32xf32>
    %c0_202 = arith.constant 0 : index
    %c0_203 = arith.constant 0 : index
    %c0_204 = arith.constant 0 : index
    %457 = vector.load %arg12[%c0_202, %c0_203, %c0_204] : memref<2x1x32xf32, #tpu.memory_space<vmem>>, vector<1x1x32xf32>
    %458 = vector.shape_cast %457 : vector<1x1x32xf32> to vector<1x32xf32>
    %459 = vector.broadcast %458 : vector<1x32xf32> to vector<6x32xf32>
    %460 = arith.addf %456, %459 : vector<6x32xf32>
    %461 = vector.shape_cast %460 : vector<6x32xf32> to vector<2x3x32xf32>
    %462 = arith.addf %347, %461 : vector<2x3x32xf32>
    %463 = vector.shape_cast %462 : vector<2x3x32xf32> to vector<6x32xf32>
    %c0_205 = arith.constant 0 : index
    %c0_206 = arith.constant 0 : index
    %c0_207 = arith.constant 0 : index
    %464 = vector.load %arg19[%c0_205, %c0_206, %c0_207] : memref<2x1x32xf32, #tpu.memory_space<vmem>>, vector<1x1x32xf32>
    %465 = vector.shape_cast %464 : vector<1x1x32xf32> to vector<1x32xf32>
    %c0_208 = arith.constant 0 : index
    %c0_209 = arith.constant 0 : index
    %c0_210 = arith.constant 0 : index
    %466 = vector.load %arg20[%c0_208, %c0_209, %c0_210] : memref<2x1x32xf32, #tpu.memory_space<vmem>>, vector<1x1x32xf32>
    %467 = vector.shape_cast %466 : vector<1x1x32xf32> to vector<1x32xf32>
    %cst_211 = arith.constant dense<0.000000e+00> : vector<6xf32>
    %468 = vector.multi_reduction <add>, %463, %cst_211 [1] : vector<6x32xf32> to vector<6xf32>
    %469 = vector.shape_cast %468 : vector<6xf32> to vector<6x1xf32>
    %cst_212 = arith.constant 3.200000e+01 : f32
    %470 = vector.broadcast %cst_212 : f32 to vector<6x1xf32>
    %471 = arith.divf %469, %470 : vector<6x1xf32>
    %472 = vector.broadcast %471 : vector<6x1xf32> to vector<6x32xf32>
    %473 = arith.subf %463, %472 : vector<6x32xf32>
    %474 = arith.mulf %473, %473 : vector<6x32xf32>
    %cst_213 = arith.constant dense<0.000000e+00> : vector<6xf32>
    %475 = vector.multi_reduction <add>, %474, %cst_213 [1] : vector<6x32xf32> to vector<6xf32>
    %476 = vector.shape_cast %475 : vector<6xf32> to vector<6x1xf32>
    %cst_214 = arith.constant 3.200000e+01 : f32
    %477 = vector.broadcast %cst_214 : f32 to vector<6x1xf32>
    %478 = arith.divf %476, %477 : vector<6x1xf32>
    %479 = vector.broadcast %471 : vector<6x1xf32> to vector<6x32xf32>
    %480 = arith.subf %463, %479 : vector<6x32xf32>
    %cst_215 = arith.constant 9.99999974E-6 : f32
    %481 = vector.broadcast %cst_215 : f32 to vector<6x1xf32>
    %482 = arith.addf %478, %481 : vector<6x1xf32>
    %483 = math.rsqrt %482 : vector<6x1xf32>
    %484 = vector.broadcast %483 : vector<6x1xf32> to vector<6x32xf32>
    %485 = arith.mulf %480, %484 : vector<6x32xf32>
    %486 = vector.broadcast %465 : vector<1x32xf32> to vector<6x32xf32>
    %487 = arith.mulf %485, %486 : vector<6x32xf32>
    %488 = vector.broadcast %467 : vector<1x32xf32> to vector<6x32xf32>
    %489 = arith.addf %487, %488 : vector<6x32xf32>
    %c0_216 = arith.constant 0 : index
    %c0_217 = arith.constant 0 : index
    %c0_218 = arith.constant 0 : index
    %490 = vector.load %arg13[%c0_216, %c0_217, %c0_218] : memref<2x32x64xf32, #tpu.memory_space<vmem>>, vector<1x32x64xf32>
    %491 = vector.shape_cast %490 : vector<1x32x64xf32> to vector<32x64xf32>
    %cst_219 = arith.constant dense<0.000000e+00> : vector<6x64xf32>
    %492 = tpu.matmul %489, %491, %cst_219 {dimension_numbers = #tpu.dot_dimension_numbers<[1], [0], [0], [1], [0, 0, 1, 1], [], []>} : vector<6x32xf32>, vector<32x64xf32>, vector<6x64xf32> -> vector<6x64xf32>
    %c0_220 = arith.constant 0 : index
    %c0_221 = arith.constant 0 : index
    %c0_222 = arith.constant 0 : index
    %493 = vector.load %arg14[%c0_220, %c0_221, %c0_222] : memref<2x1x64xf32, #tpu.memory_space<vmem>>, vector<1x1x64xf32>
    %494 = vector.shape_cast %493 : vector<1x1x64xf32> to vector<1x64xf32>
    %495 = vector.broadcast %494 : vector<1x64xf32> to vector<6x64xf32>
    %496 = arith.addf %492, %495 : vector<6x64xf32>
    %cst_223 = arith.constant 0.000000e+00 : f32
    %497 = vector.broadcast %cst_223 : f32 to vector<6x64xf32>
    %498 = arith.maximumf %496, %497 : vector<6x64xf32>
    %c0_224 = arith.constant 0 : index
    %c0_225 = arith.constant 0 : index
    %c0_226 = arith.constant 0 : index
    %499 = vector.load %arg15[%c0_224, %c0_225, %c0_226] : memref<2x64x32xf32, #tpu.memory_space<vmem>>, vector<1x64x32xf32>
    %500 = vector.shape_cast %499 : vector<1x64x32xf32> to vector<64x32xf32>
    %cst_227 = arith.constant dense<0.000000e+00> : vector<6x32xf32>
    %501 = tpu.matmul %498, %500, %cst_227 {dimension_numbers = #tpu.dot_dimension_numbers<[1], [0], [0], [1], [0, 0, 1, 1], [], []>} : vector<6x64xf32>, vector<64x32xf32>, vector<6x32xf32> -> vector<6x32xf32>
    %c0_228 = arith.constant 0 : index
    %c0_229 = arith.constant 0 : index
    %c0_230 = arith.constant 0 : index
    %502 = vector.load %arg16[%c0_228, %c0_229, %c0_230] : memref<2x1x32xf32, #tpu.memory_space<vmem>>, vector<1x1x32xf32>
    %503 = vector.shape_cast %502 : vector<1x1x32xf32> to vector<1x32xf32>
    %504 = vector.broadcast %503 : vector<1x32xf32> to vector<6x32xf32>
    %505 = arith.addf %501, %504 : vector<6x32xf32>
    %506 = vector.shape_cast %505 : vector<6x32xf32> to vector<2x3x32xf32>
    %507 = arith.addf %462, %506 : vector<2x3x32xf32>
    %508 = vector.shape_cast %507 : vector<2x3x32xf32> to vector<6x32xf32>
    %c1_231 = arith.constant 1 : index
    %c0_232 = arith.constant 0 : index
    %c0_233 = arith.constant 0 : index
    %509 = vector.load %arg17[%c1_231, %c0_232, %c0_233] : memref<2x1x32xf32, #tpu.memory_space<vmem>>, vector<1x1x32xf32>
    %510 = vector.shape_cast %509 : vector<1x1x32xf32> to vector<1x32xf32>
    %c1_234 = arith.constant 1 : index
    %c0_235 = arith.constant 0 : index
    %c0_236 = arith.constant 0 : index
    %511 = vector.load %arg18[%c1_234, %c0_235, %c0_236] : memref<2x1x32xf32, #tpu.memory_space<vmem>>, vector<1x1x32xf32>
    %512 = vector.shape_cast %511 : vector<1x1x32xf32> to vector<1x32xf32>
    %cst_237 = arith.constant dense<0.000000e+00> : vector<6xf32>
    %513 = vector.multi_reduction <add>, %508, %cst_237 [1] : vector<6x32xf32> to vector<6xf32>
    %514 = vector.shape_cast %513 : vector<6xf32> to vector<6x1xf32>
    %cst_238 = arith.constant 3.200000e+01 : f32
    %515 = vector.broadcast %cst_238 : f32 to vector<6x1xf32>
    %516 = arith.divf %514, %515 : vector<6x1xf32>
    %517 = vector.broadcast %516 : vector<6x1xf32> to vector<6x32xf32>
    %518 = arith.subf %508, %517 : vector<6x32xf32>
    %519 = arith.mulf %518, %518 : vector<6x32xf32>
    %cst_239 = arith.constant dense<0.000000e+00> : vector<6xf32>
    %520 = vector.multi_reduction <add>, %519, %cst_239 [1] : vector<6x32xf32> to vector<6xf32>
    %521 = vector.shape_cast %520 : vector<6xf32> to vector<6x1xf32>
    %cst_240 = arith.constant 3.200000e+01 : f32
    %522 = vector.broadcast %cst_240 : f32 to vector<6x1xf32>
    %523 = arith.divf %521, %522 : vector<6x1xf32>
    %524 = vector.broadcast %516 : vector<6x1xf32> to vector<6x32xf32>
    %525 = arith.subf %508, %524 : vector<6x32xf32>
    %cst_241 = arith.constant 9.99999974E-6 : f32
    %526 = vector.broadcast %cst_241 : f32 to vector<6x1xf32>
    %527 = arith.addf %523, %526 : vector<6x1xf32>
    %528 = math.rsqrt %527 : vector<6x1xf32>
    %529 = vector.broadcast %528 : vector<6x1xf32> to vector<6x32xf32>
    %530 = arith.mulf %525, %529 : vector<6x32xf32>
    %531 = vector.broadcast %510 : vector<1x32xf32> to vector<6x32xf32>
    %532 = arith.mulf %530, %531 : vector<6x32xf32>
    %533 = vector.broadcast %512 : vector<1x32xf32> to vector<6x32xf32>
    %534 = arith.addf %532, %533 : vector<6x32xf32>
    %c1_242 = arith.constant 1 : index
    %c0_243 = arith.constant 0 : index
    %c0_244 = arith.constant 0 : index
    %535 = vector.load %arg9[%c1_242, %c0_243, %c0_244] : memref<2x32x96xf32, #tpu.memory_space<vmem>>, vector<1x32x96xf32>
    %536 = vector.shape_cast %535 : vector<1x32x96xf32> to vector<32x96xf32>
    %cst_245 = arith.constant dense<0.000000e+00> : vector<6x96xf32>
    %537 = tpu.matmul %534, %536, %cst_245 {dimension_numbers = #tpu.dot_dimension_numbers<[1], [0], [0], [1], [0, 0, 1, 1], [], []>} : vector<6x32xf32>, vector<32x96xf32>, vector<6x96xf32> -> vector<6x96xf32>
    %c1_246 = arith.constant 1 : index
    %c0_247 = arith.constant 0 : index
    %c0_248 = arith.constant 0 : index
    %538 = vector.load %arg10[%c1_246, %c0_247, %c0_248] : memref<2x1x96xf32, #tpu.memory_space<vmem>>, vector<1x1x96xf32>
    %539 = vector.shape_cast %538 : vector<1x1x96xf32> to vector<1x96xf32>
    %540 = vector.broadcast %539 : vector<1x96xf32> to vector<6x96xf32>
    %541 = arith.addf %537, %540 : vector<6x96xf32>
    %542 = vector.extract_strided_slice %541 {offsets = [0, 0], sizes = [6, 32], strides = [1, 1]} : vector<6x96xf32> to vector<6x32xf32>
    %543 = vector.shape_cast %542 : vector<6x32xf32> to vector<2x3x32xf32>
    %544 = vector.extract_strided_slice %541 {offsets = [0, 32], sizes = [6, 32], strides = [1, 1]} : vector<6x96xf32> to vector<6x32xf32>
    %545 = vector.shape_cast %544 : vector<6x32xf32> to vector<2x3x32xf32>
    %546 = vector.extract_strided_slice %541 {offsets = [0, 64], sizes = [6, 32], strides = [1, 1]} : vector<6x96xf32> to vector<6x32xf32>
    %547 = vector.shape_cast %546 : vector<6x32xf32> to vector<2x3x32xf32>
    %548 = vector.extract_strided_slice %543 {offsets = [0, 0, 0], sizes = [2, 3, 8], strides = [1, 1, 1]} : vector<2x3x32xf32> to vector<2x3x8xf32>
    %549 = vector.extract_strided_slice %545 {offsets = [0, 0, 0], sizes = [2, 3, 8], strides = [1, 1, 1]} : vector<2x3x32xf32> to vector<2x3x8xf32>
    %550 = vector.extract_strided_slice %547 {offsets = [0, 0, 0], sizes = [2, 3, 8], strides = [1, 1, 1]} : vector<2x3x32xf32> to vector<2x3x8xf32>
    "tpu.trace_start"() <{level = 10 : i32, message = "bqd,bkd->bqk"}> : () -> ()
    %cst_249 = arith.constant dense<0.000000e+00> : vector<2x3x3xf32>
    %551 = tpu.matmul %548, %549, %cst_249 {dimension_numbers = #tpu.dot_dimension_numbers<[2], [2], [1], [1], [0, 0, 0, 1, 1, 1], [0], [0]>} : vector<2x3x8xf32>, vector<2x3x8xf32>, vector<2x3x3xf32> -> vector<2x3x3xf32>
    "tpu.trace_stop"() : () -> ()
    %cst_250 = arith.constant 0.353553385 : f32
    %552 = vector.broadcast %cst_250 : f32 to vector<2x3x3xf32>
    %553 = arith.mulf %551, %552 : vector<2x3x3xf32>
    %cst_251 = arith.constant dense<0xFF800000> : vector<2x3xf32>
    %554 = vector.multi_reduction <maximumf>, %553, %cst_251 [2] : vector<2x3x3xf32> to vector<2x3xf32>
    %555 = vector.shape_cast %554 : vector<2x3xf32> to vector<2x3x1xf32>
    %556 = vector.broadcast %555 : vector<2x3x1xf32> to vector<2x3x3xf32>
    %557 = arith.subf %553, %556 : vector<2x3x3xf32>
    %558 = math.exp %557 : vector<2x3x3xf32>
    %cst_252 = arith.constant dense<0.000000e+00> : vector<2x3xf32>
    %559 = vector.multi_reduction <add>, %558, %cst_252 [2] : vector<2x3x3xf32> to vector<2x3xf32>
    %560 = vector.shape_cast %559 : vector<2x3xf32> to vector<2x3x1xf32>
    %561 = vector.broadcast %560 : vector<2x3x1xf32> to vector<2x3x3xf32>
    %562 = arith.divf %558, %561 : vector<2x3x3xf32>
    "tpu.trace_start"() <{level = 10 : i32, message = "bqk,bkd->bqd"}> : () -> ()
    %cst_253 = arith.constant dense<0.000000e+00> : vector<2x3x8xf32>
    %563 = tpu.matmul %562, %550, %cst_253 {dimension_numbers = #tpu.dot_dimension_numbers<[2], [1], [1], [2], [0, 0, 0, 1, 1, 2], [0], [0]>} : vector<2x3x3xf32>, vector<2x3x8xf32>, vector<2x3x8xf32> -> vector<2x3x8xf32>
    "tpu.trace_stop"() : () -> ()
    %564 = vector.extract_strided_slice %543 {offsets = [0, 0, 8], sizes = [2, 3, 8], strides = [1, 1, 1]} : vector<2x3x32xf32> to vector<2x3x8xf32>
    %565 = vector.extract_strided_slice %545 {offsets = [0, 0, 8], sizes = [2, 3, 8], strides = [1, 1, 1]} : vector<2x3x32xf32> to vector<2x3x8xf32>
    %566 = vector.extract_strided_slice %547 {offsets = [0, 0, 8], sizes = [2, 3, 8], strides = [1, 1, 1]} : vector<2x3x32xf32> to vector<2x3x8xf32>
    "tpu.trace_start"() <{level = 10 : i32, message = "bqd,bkd->bqk"}> : () -> ()
    %cst_254 = arith.constant dense<0.000000e+00> : vector<2x3x3xf32>
    %567 = tpu.matmul %564, %565, %cst_254 {dimension_numbers = #tpu.dot_dimension_numbers<[2], [2], [1], [1], [0, 0, 0, 1, 1, 1], [0], [0]>} : vector<2x3x8xf32>, vector<2x3x8xf32>, vector<2x3x3xf32> -> vector<2x3x3xf32>
    "tpu.trace_stop"() : () -> ()
    %cst_255 = arith.constant 0.353553385 : f32
    %568 = vector.broadcast %cst_255 : f32 to vector<2x3x3xf32>
    %569 = arith.mulf %567, %568 : vector<2x3x3xf32>
    %cst_256 = arith.constant dense<0xFF800000> : vector<2x3xf32>
    %570 = vector.multi_reduction <maximumf>, %569, %cst_256 [2] : vector<2x3x3xf32> to vector<2x3xf32>
    %571 = vector.shape_cast %570 : vector<2x3xf32> to vector<2x3x1xf32>
    %572 = vector.broadcast %571 : vector<2x3x1xf32> to vector<2x3x3xf32>
    %573 = arith.subf %569, %572 : vector<2x3x3xf32>
    %574 = math.exp %573 : vector<2x3x3xf32>
    %cst_257 = arith.constant dense<0.000000e+00> : vector<2x3xf32>
    %575 = vector.multi_reduction <add>, %574, %cst_257 [2] : vector<2x3x3xf32> to vector<2x3xf32>
    %576 = vector.shape_cast %575 : vector<2x3xf32> to vector<2x3x1xf32>
    %577 = vector.broadcast %576 : vector<2x3x1xf32> to vector<2x3x3xf32>
    %578 = arith.divf %574, %577 : vector<2x3x3xf32>
    "tpu.trace_start"() <{level = 10 : i32, message = "bqk,bkd->bqd"}> : () -> ()
    %cst_258 = arith.constant dense<0.000000e+00> : vector<2x3x8xf32>
    %579 = tpu.matmul %578, %566, %cst_258 {dimension_numbers = #tpu.dot_dimension_numbers<[2], [1], [1], [2], [0, 0, 0, 1, 1, 2], [0], [0]>} : vector<2x3x3xf32>, vector<2x3x8xf32>, vector<2x3x8xf32> -> vector<2x3x8xf32>
    "tpu.trace_stop"() : () -> ()
    %580 = vector.extract_strided_slice %543 {offsets = [0, 0, 16], sizes = [2, 3, 8], strides = [1, 1, 1]} : vector<2x3x32xf32> to vector<2x3x8xf32>
    %581 = vector.extract_strided_slice %545 {offsets = [0, 0, 16], sizes = [2, 3, 8], strides = [1, 1, 1]} : vector<2x3x32xf32> to vector<2x3x8xf32>
    %582 = vector.extract_strided_slice %547 {offsets = [0, 0, 16], sizes = [2, 3, 8], strides = [1, 1, 1]} : vector<2x3x32xf32> to vector<2x3x8xf32>
    "tpu.trace_start"() <{level = 10 : i32, message = "bqd,bkd->bqk"}> : () -> ()
    %cst_259 = arith.constant dense<0.000000e+00> : vector<2x3x3xf32>
    %583 = tpu.matmul %580, %581, %cst_259 {dimension_numbers = #tpu.dot_dimension_numbers<[2], [2], [1], [1], [0, 0, 0, 1, 1, 1], [0], [0]>} : vector<2x3x8xf32>, vector<2x3x8xf32>, vector<2x3x3xf32> -> vector<2x3x3xf32>
    "tpu.trace_stop"() : () -> ()
    %cst_260 = arith.constant 0.353553385 : f32
    %584 = vector.broadcast %cst_260 : f32 to vector<2x3x3xf32>
    %585 = arith.mulf %583, %584 : vector<2x3x3xf32>
    %cst_261 = arith.constant dense<0xFF800000> : vector<2x3xf32>
    %586 = vector.multi_reduction <maximumf>, %585, %cst_261 [2] : vector<2x3x3xf32> to vector<2x3xf32>
    %587 = vector.shape_cast %586 : vector<2x3xf32> to vector<2x3x1xf32>
    %588 = vector.broadcast %587 : vector<2x3x1xf32> to vector<2x3x3xf32>
    %589 = arith.subf %585, %588 : vector<2x3x3xf32>
    %590 = math.exp %589 : vector<2x3x3xf32>
    %cst_262 = arith.constant dense<0.000000e+00> : vector<2x3xf32>
    %591 = vector.multi_reduction <add>, %590, %cst_262 [2] : vector<2x3x3xf32> to vector<2x3xf32>
    %592 = vector.shape_cast %591 : vector<2x3xf32> to vector<2x3x1xf32>
    %593 = vector.broadcast %592 : vector<2x3x1xf32> to vector<2x3x3xf32>
    %594 = arith.divf %590, %593 : vector<2x3x3xf32>
    "tpu.trace_start"() <{level = 10 : i32, message = "bqk,bkd->bqd"}> : () -> ()
    %cst_263 = arith.constant dense<0.000000e+00> : vector<2x3x8xf32>
    %595 = tpu.matmul %594, %582, %cst_263 {dimension_numbers = #tpu.dot_dimension_numbers<[2], [1], [1], [2], [0, 0, 0, 1, 1, 2], [0], [0]>} : vector<2x3x3xf32>, vector<2x3x8xf32>, vector<2x3x8xf32> -> vector<2x3x8xf32>
    "tpu.trace_stop"() : () -> ()
    %596 = vector.extract_strided_slice %543 {offsets = [0, 0, 24], sizes = [2, 3, 8], strides = [1, 1, 1]} : vector<2x3x32xf32> to vector<2x3x8xf32>
    %597 = vector.extract_strided_slice %545 {offsets = [0, 0, 24], sizes = [2, 3, 8], strides = [1, 1, 1]} : vector<2x3x32xf32> to vector<2x3x8xf32>
    %598 = vector.extract_strided_slice %547 {offsets = [0, 0, 24], sizes = [2, 3, 8], strides = [1, 1, 1]} : vector<2x3x32xf32> to vector<2x3x8xf32>
    "tpu.trace_start"() <{level = 10 : i32, message = "bqd,bkd->bqk"}> : () -> ()
    %cst_264 = arith.constant dense<0.000000e+00> : vector<2x3x3xf32>
    %599 = tpu.matmul %596, %597, %cst_264 {dimension_numbers = #tpu.dot_dimension_numbers<[2], [2], [1], [1], [0, 0, 0, 1, 1, 1], [0], [0]>} : vector<2x3x8xf32>, vector<2x3x8xf32>, vector<2x3x3xf32> -> vector<2x3x3xf32>
    "tpu.trace_stop"() : () -> ()
    %cst_265 = arith.constant 0.353553385 : f32
    %600 = vector.broadcast %cst_265 : f32 to vector<2x3x3xf32>
    %601 = arith.mulf %599, %600 : vector<2x3x3xf32>
    %cst_266 = arith.constant dense<0xFF800000> : vector<2x3xf32>
    %602 = vector.multi_reduction <maximumf>, %601, %cst_266 [2] : vector<2x3x3xf32> to vector<2x3xf32>
    %603 = vector.shape_cast %602 : vector<2x3xf32> to vector<2x3x1xf32>
    %604 = vector.broadcast %603 : vector<2x3x1xf32> to vector<2x3x3xf32>
    %605 = arith.subf %601, %604 : vector<2x3x3xf32>
    %606 = math.exp %605 : vector<2x3x3xf32>
    %cst_267 = arith.constant dense<0.000000e+00> : vector<2x3xf32>
    %607 = vector.multi_reduction <add>, %606, %cst_267 [2] : vector<2x3x3xf32> to vector<2x3xf32>
    %608 = vector.shape_cast %607 : vector<2x3xf32> to vector<2x3x1xf32>
    %609 = vector.broadcast %608 : vector<2x3x1xf32> to vector<2x3x3xf32>
    %610 = arith.divf %606, %609 : vector<2x3x3xf32>
    "tpu.trace_start"() <{level = 10 : i32, message = "bqk,bkd->bqd"}> : () -> ()
    %cst_268 = arith.constant dense<0.000000e+00> : vector<2x3x8xf32>
    %611 = tpu.matmul %610, %598, %cst_268 {dimension_numbers = #tpu.dot_dimension_numbers<[2], [1], [1], [2], [0, 0, 0, 1, 1, 2], [0], [0]>} : vector<2x3x3xf32>, vector<2x3x8xf32>, vector<2x3x8xf32> -> vector<2x3x8xf32>
    "tpu.trace_stop"() : () -> ()
    %612 = tpu.concatenate %563, %579, %595, %611 in 2 : vector<2x3x8xf32>, vector<2x3x8xf32>, vector<2x3x8xf32>, vector<2x3x8xf32> -> vector<2x3x32xf32>
    %613 = vector.shape_cast %612 : vector<2x3x32xf32> to vector<6x32xf32>
    %c1_269 = arith.constant 1 : index
    %c0_270 = arith.constant 0 : index
    %c0_271 = arith.constant 0 : index
    %614 = vector.load %arg11[%c1_269, %c0_270, %c0_271] : memref<2x32x32xf32, #tpu.memory_space<vmem>>, vector<1x32x32xf32>
    %615 = vector.shape_cast %614 : vector<1x32x32xf32> to vector<32x32xf32>
    %cst_272 = arith.constant dense<0.000000e+00> : vector<6x32xf32>
    %616 = tpu.matmul %613, %615, %cst_272 {dimension_numbers = #tpu.dot_dimension_numbers<[1], [0], [0], [1], [0, 0, 1, 1], [], []>} : vector<6x32xf32>, vector<32x32xf32>, vector<6x32xf32> -> vector<6x32xf32>
    %c1_273 = arith.constant 1 : index
    %c0_274 = arith.constant 0 : index
    %c0_275 = arith.constant 0 : index
    %617 = vector.load %arg12[%c1_273, %c0_274, %c0_275] : memref<2x1x32xf32, #tpu.memory_space<vmem>>, vector<1x1x32xf32>
    %618 = vector.shape_cast %617 : vector<1x1x32xf32> to vector<1x32xf32>
    %619 = vector.broadcast %618 : vector<1x32xf32> to vector<6x32xf32>
    %620 = arith.addf %616, %619 : vector<6x32xf32>
    %621 = vector.shape_cast %620 : vector<6x32xf32> to vector<2x3x32xf32>
    %622 = arith.addf %507, %621 : vector<2x3x32xf32>
    %623 = vector.shape_cast %622 : vector<2x3x32xf32> to vector<6x32xf32>
    %c1_276 = arith.constant 1 : index
    %c0_277 = arith.constant 0 : index
    %c0_278 = arith.constant 0 : index
    %624 = vector.load %arg19[%c1_276, %c0_277, %c0_278] : memref<2x1x32xf32, #tpu.memory_space<vmem>>, vector<1x1x32xf32>
    %625 = vector.shape_cast %624 : vector<1x1x32xf32> to vector<1x32xf32>
    %c1_279 = arith.constant 1 : index
    %c0_280 = arith.constant 0 : index
    %c0_281 = arith.constant 0 : index
    %626 = vector.load %arg20[%c1_279, %c0_280, %c0_281] : memref<2x1x32xf32, #tpu.memory_space<vmem>>, vector<1x1x32xf32>
    %627 = vector.shape_cast %626 : vector<1x1x32xf32> to vector<1x32xf32>
    %cst_282 = arith.constant dense<0.000000e+00> : vector<6xf32>
    %628 = vector.multi_reduction <add>, %623, %cst_282 [1] : vector<6x32xf32> to vector<6xf32>
    %629 = vector.shape_cast %628 : vector<6xf32> to vector<6x1xf32>
    %cst_283 = arith.constant 3.200000e+01 : f32
    %630 = vector.broadcast %cst_283 : f32 to vector<6x1xf32>
    %631 = arith.divf %629, %630 : vector<6x1xf32>
    %632 = vector.broadcast %631 : vector<6x1xf32> to vector<6x32xf32>
    %633 = arith.subf %623, %632 : vector<6x32xf32>
    %634 = arith.mulf %633, %633 : vector<6x32xf32>
    %cst_284 = arith.constant dense<0.000000e+00> : vector<6xf32>
    %635 = vector.multi_reduction <add>, %634, %cst_284 [1] : vector<6x32xf32> to vector<6xf32>
    %636 = vector.shape_cast %635 : vector<6xf32> to vector<6x1xf32>
    %cst_285 = arith.constant 3.200000e+01 : f32
    %637 = vector.broadcast %cst_285 : f32 to vector<6x1xf32>
    %638 = arith.divf %636, %637 : vector<6x1xf32>
    %639 = vector.broadcast %631 : vector<6x1xf32> to vector<6x32xf32>
    %640 = arith.subf %623, %639 : vector<6x32xf32>
    %cst_286 = arith.constant 9.99999974E-6 : f32
    %641 = vector.broadcast %cst_286 : f32 to vector<6x1xf32>
    %642 = arith.addf %638, %641 : vector<6x1xf32>
    %643 = math.rsqrt %642 : vector<6x1xf32>
    %644 = vector.broadcast %643 : vector<6x1xf32> to vector<6x32xf32>
    %645 = arith.mulf %640, %644 : vector<6x32xf32>
    %646 = vector.broadcast %625 : vector<1x32xf32> to vector<6x32xf32>
    %647 = arith.mulf %645, %646 : vector<6x32xf32>
    %648 = vector.broadcast %627 : vector<1x32xf32> to vector<6x32xf32>
    %649 = arith.addf %647, %648 : vector<6x32xf32>
    %c1_287 = arith.constant 1 : index
    %c0_288 = arith.constant 0 : index
    %c0_289 = arith.constant 0 : index
    %650 = vector.load %arg13[%c1_287, %c0_288, %c0_289] : memref<2x32x64xf32, #tpu.memory_space<vmem>>, vector<1x32x64xf32>
    %651 = vector.shape_cast %650 : vector<1x32x64xf32> to vector<32x64xf32>
    %cst_290 = arith.constant dense<0.000000e+00> : vector<6x64xf32>
    %652 = tpu.matmul %649, %651, %cst_290 {dimension_numbers = #tpu.dot_dimension_numbers<[1], [0], [0], [1], [0, 0, 1, 1], [], []>} : vector<6x32xf32>, vector<32x64xf32>, vector<6x64xf32> -> vector<6x64xf32>
    %c1_291 = arith.constant 1 : index
    %c0_292 = arith.constant 0 : index
    %c0_293 = arith.constant 0 : index
    %653 = vector.load %arg14[%c1_291, %c0_292, %c0_293] : memref<2x1x64xf32, #tpu.memory_space<vmem>>, vector<1x1x64xf32>
    %654 = vector.shape_cast %653 : vector<1x1x64xf32> to vector<1x64xf32>
    %655 = vector.broadcast %654 : vector<1x64xf32> to vector<6x64xf32>
    %656 = arith.addf %652, %655 : vector<6x64xf32>
    %cst_294 = arith.constant 0.000000e+00 : f32
    %657 = vector.broadcast %cst_294 : f32 to vector<6x64xf32>
    %658 = arith.maximumf %656, %657 : vector<6x64xf32>
    %c1_295 = arith.constant 1 : index
    %c0_296 = arith.constant 0 : index
    %c0_297 = arith.constant 0 : index
    %659 = vector.load %arg15[%c1_295, %c0_296, %c0_297] : memref<2x64x32xf32, #tpu.memory_space<vmem>>, vector<1x64x32xf32>
    %660 = vector.shape_cast %659 : vector<1x64x32xf32> to vector<64x32xf32>
    %cst_298 = arith.constant dense<0.000000e+00> : vector<6x32xf32>
    %661 = tpu.matmul %658, %660, %cst_298 {dimension_numbers = #tpu.dot_dimension_numbers<[1], [0], [0], [1], [0, 0, 1, 1], [], []>} : vector<6x64xf32>, vector<64x32xf32>, vector<6x32xf32> -> vector<6x32xf32>
    %c1_299 = arith.constant 1 : index
    %c0_300 = arith.constant 0 : index
    %c0_301 = arith.constant 0 : index
    %662 = vector.load %arg16[%c1_299, %c0_300, %c0_301] : memref<2x1x32xf32, #tpu.memory_space<vmem>>, vector<1x1x32xf32>
    %663 = vector.shape_cast %662 : vector<1x1x32xf32> to vector<1x32xf32>
    %664 = vector.broadcast %663 : vector<1x32xf32> to vector<6x32xf32>
    %665 = arith.addf %661, %664 : vector<6x32xf32>
    %666 = vector.shape_cast %665 : vector<6x32xf32> to vector<2x3x32xf32>
    %667 = arith.addf %622, %666 : vector<2x3x32xf32>
    %668 = vector.extract_strided_slice %667 {offsets = [0, 2, 0], sizes = [2, 1, 32], strides = [1, 1, 1]} : vector<2x3x32xf32> to vector<2x1x32xf32>
    %669 = vector.shape_cast %668 : vector<2x1x32xf32> to vector<2x32xf32>
    %c0_302 = arith.constant 0 : index
    %c0_303 = arith.constant 0 : index
    %670 = vector.load %arg5[%c0_302, %c0_303] : memref<32x160xf32, #tpu.memory_space<vmem>>, vector<32x160xf32>
    %cst_304 = arith.constant dense<0.000000e+00> : vector<2x160xf32>
    %671 = tpu.matmul %669, %670, %cst_304 {dimension_numbers = #tpu.dot_dimension_numbers<[1], [0], [0], [1], [0, 0, 1, 1], [], []>} : vector<2x32xf32>, vector<32x160xf32>, vector<2x160xf32> -> vector<2x160xf32>
    %c0_305 = arith.constant 0 : index
    %c0_306 = arith.constant 0 : index
    %672 = vector.load %arg6[%c0_305, %c0_306] : memref<1x160xf32, #tpu.memory_space<vmem>>, vector<1x160xf32>
    %673 = vector.broadcast %672 : vector<1x160xf32> to vector<2x160xf32>
    %674 = arith.addf %671, %673 : vector<2x160xf32>
    %c0_307 = arith.constant 0 : index
    %c0_308 = arith.constant 0 : index
    %675 = vector.load %arg7[%c0_307, %c0_308] : memref<32x32xf32, #tpu.memory_space<vmem>>, vector<32x32xf32>
    %cst_309 = arith.constant dense<0.000000e+00> : vector<2x32xf32>
    %676 = tpu.matmul %669, %675, %cst_309 {dimension_numbers = #tpu.dot_dimension_numbers<[1], [0], [0], [1], [0, 0, 1, 1], [], []>} : vector<2x32xf32>, vector<32x32xf32>, vector<2x32xf32> -> vector<2x32xf32>
    %c0_310 = arith.constant 0 : index
    %c0_311 = arith.constant 0 : index
    %677 = vector.load %arg8[%c0_310, %c0_311] : memref<1x32xf32, #tpu.memory_space<vmem>>, vector<1x32xf32>
    %678 = vector.broadcast %677 : vector<1x32xf32> to vector<2x32xf32>
    %679 = arith.addf %676, %678 : vector<2x32xf32>
    %680 = vector.extract_strided_slice %345 {offsets = [0, 1, 0], sizes = [2, 2, 32], strides = [1, 1, 1]} : vector<2x3x32xf32> to vector<2x2x32xf32>
    %681 = vector.shape_cast %679 : vector<2x32xf32> to vector<2x1x32xf32>
    %682 = tpu.concatenate %680, %681 in 1 : vector<2x2x32xf32>, vector<2x1x32xf32> -> vector<2x3x32xf32>
    %683 = vector.broadcast %0 : vector<1x3x32xf32> to vector<2x3x32xf32>
    %684 = arith.addf %682, %683 : vector<2x3x32xf32>
    %685 = vector.shape_cast %684 : vector<2x3x32xf32> to vector<6x32xf32>
    %c0_312 = arith.constant 0 : index
    %c0_313 = arith.constant 0 : index
    %c0_314 = arith.constant 0 : index
    %686 = vector.load %arg17[%c0_312, %c0_313, %c0_314] : memref<2x1x32xf32, #tpu.memory_space<vmem>>, vector<1x1x32xf32>
    %687 = vector.shape_cast %686 : vector<1x1x32xf32> to vector<1x32xf32>
    %c0_315 = arith.constant 0 : index
    %c0_316 = arith.constant 0 : index
    %c0_317 = arith.constant 0 : index
    %688 = vector.load %arg18[%c0_315, %c0_316, %c0_317] : memref<2x1x32xf32, #tpu.memory_space<vmem>>, vector<1x1x32xf32>
    %689 = vector.shape_cast %688 : vector<1x1x32xf32> to vector<1x32xf32>
    %cst_318 = arith.constant dense<0.000000e+00> : vector<6xf32>
    %690 = vector.multi_reduction <add>, %685, %cst_318 [1] : vector<6x32xf32> to vector<6xf32>
    %691 = vector.shape_cast %690 : vector<6xf32> to vector<6x1xf32>
    %cst_319 = arith.constant 3.200000e+01 : f32
    %692 = vector.broadcast %cst_319 : f32 to vector<6x1xf32>
    %693 = arith.divf %691, %692 : vector<6x1xf32>
    %694 = vector.broadcast %693 : vector<6x1xf32> to vector<6x32xf32>
    %695 = arith.subf %685, %694 : vector<6x32xf32>
    %696 = arith.mulf %695, %695 : vector<6x32xf32>
    %cst_320 = arith.constant dense<0.000000e+00> : vector<6xf32>
    %697 = vector.multi_reduction <add>, %696, %cst_320 [1] : vector<6x32xf32> to vector<6xf32>
    %698 = vector.shape_cast %697 : vector<6xf32> to vector<6x1xf32>
    %cst_321 = arith.constant 3.200000e+01 : f32
    %699 = vector.broadcast %cst_321 : f32 to vector<6x1xf32>
    %700 = arith.divf %698, %699 : vector<6x1xf32>
    %701 = vector.broadcast %693 : vector<6x1xf32> to vector<6x32xf32>
    %702 = arith.subf %685, %701 : vector<6x32xf32>
    %cst_322 = arith.constant 9.99999974E-6 : f32
    %703 = vector.broadcast %cst_322 : f32 to vector<6x1xf32>
    %704 = arith.addf %700, %703 : vector<6x1xf32>
    %705 = math.rsqrt %704 : vector<6x1xf32>
    %706 = vector.broadcast %705 : vector<6x1xf32> to vector<6x32xf32>
    %707 = arith.mulf %702, %706 : vector<6x32xf32>
    %708 = vector.broadcast %687 : vector<1x32xf32> to vector<6x32xf32>
    %709 = arith.mulf %707, %708 : vector<6x32xf32>
    %710 = vector.broadcast %689 : vector<1x32xf32> to vector<6x32xf32>
    %711 = arith.addf %709, %710 : vector<6x32xf32>
    %c0_323 = arith.constant 0 : index
    %c0_324 = arith.constant 0 : index
    %c0_325 = arith.constant 0 : index
    %712 = vector.load %arg9[%c0_323, %c0_324, %c0_325] : memref<2x32x96xf32, #tpu.memory_space<vmem>>, vector<1x32x96xf32>
    %713 = vector.shape_cast %712 : vector<1x32x96xf32> to vector<32x96xf32>
    %cst_326 = arith.constant dense<0.000000e+00> : vector<6x96xf32>
    %714 = tpu.matmul %711, %713, %cst_326 {dimension_numbers = #tpu.dot_dimension_numbers<[1], [0], [0], [1], [0, 0, 1, 1], [], []>} : vector<6x32xf32>, vector<32x96xf32>, vector<6x96xf32> -> vector<6x96xf32>
    %c0_327 = arith.constant 0 : index
    %c0_328 = arith.constant 0 : index
    %c0_329 = arith.constant 0 : index
    %715 = vector.load %arg10[%c0_327, %c0_328, %c0_329] : memref<2x1x96xf32, #tpu.memory_space<vmem>>, vector<1x1x96xf32>
    %716 = vector.shape_cast %715 : vector<1x1x96xf32> to vector<1x96xf32>
    %717 = vector.broadcast %716 : vector<1x96xf32> to vector<6x96xf32>
    %718 = arith.addf %714, %717 : vector<6x96xf32>
    %719 = vector.extract_strided_slice %718 {offsets = [0, 0], sizes = [6, 32], strides = [1, 1]} : vector<6x96xf32> to vector<6x32xf32>
    %720 = vector.shape_cast %719 : vector<6x32xf32> to vector<2x3x32xf32>
    %721 = vector.extract_strided_slice %718 {offsets = [0, 32], sizes = [6, 32], strides = [1, 1]} : vector<6x96xf32> to vector<6x32xf32>
    %722 = vector.shape_cast %721 : vector<6x32xf32> to vector<2x3x32xf32>
    %723 = vector.extract_strided_slice %718 {offsets = [0, 64], sizes = [6, 32], strides = [1, 1]} : vector<6x96xf32> to vector<6x32xf32>
    %724 = vector.shape_cast %723 : vector<6x32xf32> to vector<2x3x32xf32>
    %725 = vector.extract_strided_slice %720 {offsets = [0, 0, 0], sizes = [2, 3, 8], strides = [1, 1, 1]} : vector<2x3x32xf32> to vector<2x3x8xf32>
    %726 = vector.extract_strided_slice %722 {offsets = [0, 0, 0], sizes = [2, 3, 8], strides = [1, 1, 1]} : vector<2x3x32xf32> to vector<2x3x8xf32>
    %727 = vector.extract_strided_slice %724 {offsets = [0, 0, 0], sizes = [2, 3, 8], strides = [1, 1, 1]} : vector<2x3x32xf32> to vector<2x3x8xf32>
    "tpu.trace_start"() <{level = 10 : i32, message = "bqd,bkd->bqk"}> : () -> ()
    %cst_330 = arith.constant dense<0.000000e+00> : vector<2x3x3xf32>
    %728 = tpu.matmul %725, %726, %cst_330 {dimension_numbers = #tpu.dot_dimension_numbers<[2], [2], [1], [1], [0, 0, 0, 1, 1, 1], [0], [0]>} : vector<2x3x8xf32>, vector<2x3x8xf32>, vector<2x3x3xf32> -> vector<2x3x3xf32>
    "tpu.trace_stop"() : () -> ()
    %cst_331 = arith.constant 0.353553385 : f32
    %729 = vector.broadcast %cst_331 : f32 to vector<2x3x3xf32>
    %730 = arith.mulf %728, %729 : vector<2x3x3xf32>
    %cst_332 = arith.constant dense<0xFF800000> : vector<2x3xf32>
    %731 = vector.multi_reduction <maximumf>, %730, %cst_332 [2] : vector<2x3x3xf32> to vector<2x3xf32>
    %732 = vector.shape_cast %731 : vector<2x3xf32> to vector<2x3x1xf32>
    %733 = vector.broadcast %732 : vector<2x3x1xf32> to vector<2x3x3xf32>
    %734 = arith.subf %730, %733 : vector<2x3x3xf32>
    %735 = math.exp %734 : vector<2x3x3xf32>
    %cst_333 = arith.constant dense<0.000000e+00> : vector<2x3xf32>
    %736 = vector.multi_reduction <add>, %735, %cst_333 [2] : vector<2x3x3xf32> to vector<2x3xf32>
    %737 = vector.shape_cast %736 : vector<2x3xf32> to vector<2x3x1xf32>
    %738 = vector.broadcast %737 : vector<2x3x1xf32> to vector<2x3x3xf32>
    %739 = arith.divf %735, %738 : vector<2x3x3xf32>
    "tpu.trace_start"() <{level = 10 : i32, message = "bqk,bkd->bqd"}> : () -> ()
    %cst_334 = arith.constant dense<0.000000e+00> : vector<2x3x8xf32>
    %740 = tpu.matmul %739, %727, %cst_334 {dimension_numbers = #tpu.dot_dimension_numbers<[2], [1], [1], [2], [0, 0, 0, 1, 1, 2], [0], [0]>} : vector<2x3x3xf32>, vector<2x3x8xf32>, vector<2x3x8xf32> -> vector<2x3x8xf32>
    "tpu.trace_stop"() : () -> ()
    %741 = vector.extract_strided_slice %720 {offsets = [0, 0, 8], sizes = [2, 3, 8], strides = [1, 1, 1]} : vector<2x3x32xf32> to vector<2x3x8xf32>
    %742 = vector.extract_strided_slice %722 {offsets = [0, 0, 8], sizes = [2, 3, 8], strides = [1, 1, 1]} : vector<2x3x32xf32> to vector<2x3x8xf32>
    %743 = vector.extract_strided_slice %724 {offsets = [0, 0, 8], sizes = [2, 3, 8], strides = [1, 1, 1]} : vector<2x3x32xf32> to vector<2x3x8xf32>
    "tpu.trace_start"() <{level = 10 : i32, message = "bqd,bkd->bqk"}> : () -> ()
    %cst_335 = arith.constant dense<0.000000e+00> : vector<2x3x3xf32>
    %744 = tpu.matmul %741, %742, %cst_335 {dimension_numbers = #tpu.dot_dimension_numbers<[2], [2], [1], [1], [0, 0, 0, 1, 1, 1], [0], [0]>} : vector<2x3x8xf32>, vector<2x3x8xf32>, vector<2x3x3xf32> -> vector<2x3x3xf32>
    "tpu.trace_stop"() : () -> ()
    %cst_336 = arith.constant 0.353553385 : f32
    %745 = vector.broadcast %cst_336 : f32 to vector<2x3x3xf32>
    %746 = arith.mulf %744, %745 : vector<2x3x3xf32>
    %cst_337 = arith.constant dense<0xFF800000> : vector<2x3xf32>
    %747 = vector.multi_reduction <maximumf>, %746, %cst_337 [2] : vector<2x3x3xf32> to vector<2x3xf32>
    %748 = vector.shape_cast %747 : vector<2x3xf32> to vector<2x3x1xf32>
    %749 = vector.broadcast %748 : vector<2x3x1xf32> to vector<2x3x3xf32>
    %750 = arith.subf %746, %749 : vector<2x3x3xf32>
    %751 = math.exp %750 : vector<2x3x3xf32>
    %cst_338 = arith.constant dense<0.000000e+00> : vector<2x3xf32>
    %752 = vector.multi_reduction <add>, %751, %cst_338 [2] : vector<2x3x3xf32> to vector<2x3xf32>
    %753 = vector.shape_cast %752 : vector<2x3xf32> to vector<2x3x1xf32>
    %754 = vector.broadcast %753 : vector<2x3x1xf32> to vector<2x3x3xf32>
    %755 = arith.divf %751, %754 : vector<2x3x3xf32>
    "tpu.trace_start"() <{level = 10 : i32, message = "bqk,bkd->bqd"}> : () -> ()
    %cst_339 = arith.constant dense<0.000000e+00> : vector<2x3x8xf32>
    %756 = tpu.matmul %755, %743, %cst_339 {dimension_numbers = #tpu.dot_dimension_numbers<[2], [1], [1], [2], [0, 0, 0, 1, 1, 2], [0], [0]>} : vector<2x3x3xf32>, vector<2x3x8xf32>, vector<2x3x8xf32> -> vector<2x3x8xf32>
    "tpu.trace_stop"() : () -> ()
    %757 = vector.extract_strided_slice %720 {offsets = [0, 0, 16], sizes = [2, 3, 8], strides = [1, 1, 1]} : vector<2x3x32xf32> to vector<2x3x8xf32>
    %758 = vector.extract_strided_slice %722 {offsets = [0, 0, 16], sizes = [2, 3, 8], strides = [1, 1, 1]} : vector<2x3x32xf32> to vector<2x3x8xf32>
    %759 = vector.extract_strided_slice %724 {offsets = [0, 0, 16], sizes = [2, 3, 8], strides = [1, 1, 1]} : vector<2x3x32xf32> to vector<2x3x8xf32>
    "tpu.trace_start"() <{level = 10 : i32, message = "bqd,bkd->bqk"}> : () -> ()
    %cst_340 = arith.constant dense<0.000000e+00> : vector<2x3x3xf32>
    %760 = tpu.matmul %757, %758, %cst_340 {dimension_numbers = #tpu.dot_dimension_numbers<[2], [2], [1], [1], [0, 0, 0, 1, 1, 1], [0], [0]>} : vector<2x3x8xf32>, vector<2x3x8xf32>, vector<2x3x3xf32> -> vector<2x3x3xf32>
    "tpu.trace_stop"() : () -> ()
    %cst_341 = arith.constant 0.353553385 : f32
    %761 = vector.broadcast %cst_341 : f32 to vector<2x3x3xf32>
    %762 = arith.mulf %760, %761 : vector<2x3x3xf32>
    %cst_342 = arith.constant dense<0xFF800000> : vector<2x3xf32>
    %763 = vector.multi_reduction <maximumf>, %762, %cst_342 [2] : vector<2x3x3xf32> to vector<2x3xf32>
    %764 = vector.shape_cast %763 : vector<2x3xf32> to vector<2x3x1xf32>
    %765 = vector.broadcast %764 : vector<2x3x1xf32> to vector<2x3x3xf32>
    %766 = arith.subf %762, %765 : vector<2x3x3xf32>
    %767 = math.exp %766 : vector<2x3x3xf32>
    %cst_343 = arith.constant dense<0.000000e+00> : vector<2x3xf32>
    %768 = vector.multi_reduction <add>, %767, %cst_343 [2] : vector<2x3x3xf32> to vector<2x3xf32>
    %769 = vector.shape_cast %768 : vector<2x3xf32> to vector<2x3x1xf32>
    %770 = vector.broadcast %769 : vector<2x3x1xf32> to vector<2x3x3xf32>
    %771 = arith.divf %767, %770 : vector<2x3x3xf32>
    "tpu.trace_start"() <{level = 10 : i32, message = "bqk,bkd->bqd"}> : () -> ()
    %cst_344 = arith.constant dense<0.000000e+00> : vector<2x3x8xf32>
    %772 = tpu.matmul %771, %759, %cst_344 {dimension_numbers = #tpu.dot_dimension_numbers<[2], [1], [1], [2], [0, 0, 0, 1, 1, 2], [0], [0]>} : vector<2x3x3xf32>, vector<2x3x8xf32>, vector<2x3x8xf32> -> vector<2x3x8xf32>
    "tpu.trace_stop"() : () -> ()
    %773 = vector.extract_strided_slice %720 {offsets = [0, 0, 24], sizes = [2, 3, 8], strides = [1, 1, 1]} : vector<2x3x32xf32> to vector<2x3x8xf32>
    %774 = vector.extract_strided_slice %722 {offsets = [0, 0, 24], sizes = [2, 3, 8], strides = [1, 1, 1]} : vector<2x3x32xf32> to vector<2x3x8xf32>
    %775 = vector.extract_strided_slice %724 {offsets = [0, 0, 24], sizes = [2, 3, 8], strides = [1, 1, 1]} : vector<2x3x32xf32> to vector<2x3x8xf32>
    "tpu.trace_start"() <{level = 10 : i32, message = "bqd,bkd->bqk"}> : () -> ()
    %cst_345 = arith.constant dense<0.000000e+00> : vector<2x3x3xf32>
    %776 = tpu.matmul %773, %774, %cst_345 {dimension_numbers = #tpu.dot_dimension_numbers<[2], [2], [1], [1], [0, 0, 0, 1, 1, 1], [0], [0]>} : vector<2x3x8xf32>, vector<2x3x8xf32>, vector<2x3x3xf32> -> vector<2x3x3xf32>
    "tpu.trace_stop"() : () -> ()
    %cst_346 = arith.constant 0.353553385 : f32
    %777 = vector.broadcast %cst_346 : f32 to vector<2x3x3xf32>
    %778 = arith.mulf %776, %777 : vector<2x3x3xf32>
    %cst_347 = arith.constant dense<0xFF800000> : vector<2x3xf32>
    %779 = vector.multi_reduction <maximumf>, %778, %cst_347 [2] : vector<2x3x3xf32> to vector<2x3xf32>
    %780 = vector.shape_cast %779 : vector<2x3xf32> to vector<2x3x1xf32>
    %781 = vector.broadcast %780 : vector<2x3x1xf32> to vector<2x3x3xf32>
    %782 = arith.subf %778, %781 : vector<2x3x3xf32>
    %783 = math.exp %782 : vector<2x3x3xf32>
    %cst_348 = arith.constant dense<0.000000e+00> : vector<2x3xf32>
    %784 = vector.multi_reduction <add>, %783, %cst_348 [2] : vector<2x3x3xf32> to vector<2x3xf32>
    %785 = vector.shape_cast %784 : vector<2x3xf32> to vector<2x3x1xf32>
    %786 = vector.broadcast %785 : vector<2x3x1xf32> to vector<2x3x3xf32>
    %787 = arith.divf %783, %786 : vector<2x3x3xf32>
    "tpu.trace_start"() <{level = 10 : i32, message = "bqk,bkd->bqd"}> : () -> ()
    %cst_349 = arith.constant dense<0.000000e+00> : vector<2x3x8xf32>
    %788 = tpu.matmul %787, %775, %cst_349 {dimension_numbers = #tpu.dot_dimension_numbers<[2], [1], [1], [2], [0, 0, 0, 1, 1, 2], [0], [0]>} : vector<2x3x3xf32>, vector<2x3x8xf32>, vector<2x3x8xf32> -> vector<2x3x8xf32>
    "tpu.trace_stop"() : () -> ()
    %789 = tpu.concatenate %740, %756, %772, %788 in 2 : vector<2x3x8xf32>, vector<2x3x8xf32>, vector<2x3x8xf32>, vector<2x3x8xf32> -> vector<2x3x32xf32>
    %790 = vector.shape_cast %789 : vector<2x3x32xf32> to vector<6x32xf32>
    %c0_350 = arith.constant 0 : index
    %c0_351 = arith.constant 0 : index
    %c0_352 = arith.constant 0 : index
    %791 = vector.load %arg11[%c0_350, %c0_351, %c0_352] : memref<2x32x32xf32, #tpu.memory_space<vmem>>, vector<1x32x32xf32>
    %792 = vector.shape_cast %791 : vector<1x32x32xf32> to vector<32x32xf32>
    %cst_353 = arith.constant dense<0.000000e+00> : vector<6x32xf32>
    %793 = tpu.matmul %790, %792, %cst_353 {dimension_numbers = #tpu.dot_dimension_numbers<[1], [0], [0], [1], [0, 0, 1, 1], [], []>} : vector<6x32xf32>, vector<32x32xf32>, vector<6x32xf32> -> vector<6x32xf32>
    %c0_354 = arith.constant 0 : index
    %c0_355 = arith.constant 0 : index
    %c0_356 = arith.constant 0 : index
    %794 = vector.load %arg12[%c0_354, %c0_355, %c0_356] : memref<2x1x32xf32, #tpu.memory_space<vmem>>, vector<1x1x32xf32>
    %795 = vector.shape_cast %794 : vector<1x1x32xf32> to vector<1x32xf32>
    %796 = vector.broadcast %795 : vector<1x32xf32> to vector<6x32xf32>
    %797 = arith.addf %793, %796 : vector<6x32xf32>
    %798 = vector.shape_cast %797 : vector<6x32xf32> to vector<2x3x32xf32>
    %799 = arith.addf %684, %798 : vector<2x3x32xf32>
    %800 = vector.shape_cast %799 : vector<2x3x32xf32> to vector<6x32xf32>
    %c0_357 = arith.constant 0 : index
    %c0_358 = arith.constant 0 : index
    %c0_359 = arith.constant 0 : index
    %801 = vector.load %arg19[%c0_357, %c0_358, %c0_359] : memref<2x1x32xf32, #tpu.memory_space<vmem>>, vector<1x1x32xf32>
    %802 = vector.shape_cast %801 : vector<1x1x32xf32> to vector<1x32xf32>
    %c0_360 = arith.constant 0 : index
    %c0_361 = arith.constant 0 : index
    %c0_362 = arith.constant 0 : index
    %803 = vector.load %arg20[%c0_360, %c0_361, %c0_362] : memref<2x1x32xf32, #tpu.memory_space<vmem>>, vector<1x1x32xf32>
    %804 = vector.shape_cast %803 : vector<1x1x32xf32> to vector<1x32xf32>
    %cst_363 = arith.constant dense<0.000000e+00> : vector<6xf32>
    %805 = vector.multi_reduction <add>, %800, %cst_363 [1] : vector<6x32xf32> to vector<6xf32>
    %806 = vector.shape_cast %805 : vector<6xf32> to vector<6x1xf32>
    %cst_364 = arith.constant 3.200000e+01 : f32
    %807 = vector.broadcast %cst_364 : f32 to vector<6x1xf32>
    %808 = arith.divf %806, %807 : vector<6x1xf32>
    %809 = vector.broadcast %808 : vector<6x1xf32> to vector<6x32xf32>
    %810 = arith.subf %800, %809 : vector<6x32xf32>
    %811 = arith.mulf %810, %810 : vector<6x32xf32>
    %cst_365 = arith.constant dense<0.000000e+00> : vector<6xf32>
    %812 = vector.multi_reduction <add>, %811, %cst_365 [1] : vector<6x32xf32> to vector<6xf32>
    %813 = vector.shape_cast %812 : vector<6xf32> to vector<6x1xf32>
    %cst_366 = arith.constant 3.200000e+01 : f32
    %814 = vector.broadcast %cst_366 : f32 to vector<6x1xf32>
    %815 = arith.divf %813, %814 : vector<6x1xf32>
    %816 = vector.broadcast %808 : vector<6x1xf32> to vector<6x32xf32>
    %817 = arith.subf %800, %816 : vector<6x32xf32>
    %cst_367 = arith.constant 9.99999974E-6 : f32
    %818 = vector.broadcast %cst_367 : f32 to vector<6x1xf32>
    %819 = arith.addf %815, %818 : vector<6x1xf32>
    %820 = math.rsqrt %819 : vector<6x1xf32>
    %821 = vector.broadcast %820 : vector<6x1xf32> to vector<6x32xf32>
    %822 = arith.mulf %817, %821 : vector<6x32xf32>
    %823 = vector.broadcast %802 : vector<1x32xf32> to vector<6x32xf32>
    %824 = arith.mulf %822, %823 : vector<6x32xf32>
    %825 = vector.broadcast %804 : vector<1x32xf32> to vector<6x32xf32>
    %826 = arith.addf %824, %825 : vector<6x32xf32>
    %c0_368 = arith.constant 0 : index
    %c0_369 = arith.constant 0 : index
    %c0_370 = arith.constant 0 : index
    %827 = vector.load %arg13[%c0_368, %c0_369, %c0_370] : memref<2x32x64xf32, #tpu.memory_space<vmem>>, vector<1x32x64xf32>
    %828 = vector.shape_cast %827 : vector<1x32x64xf32> to vector<32x64xf32>
    %cst_371 = arith.constant dense<0.000000e+00> : vector<6x64xf32>
    %829 = tpu.matmul %826, %828, %cst_371 {dimension_numbers = #tpu.dot_dimension_numbers<[1], [0], [0], [1], [0, 0, 1, 1], [], []>} : vector<6x32xf32>, vector<32x64xf32>, vector<6x64xf32> -> vector<6x64xf32>
    %c0_372 = arith.constant 0 : index
    %c0_373 = arith.constant 0 : index
    %c0_374 = arith.constant 0 : index
    %830 = vector.load %arg14[%c0_372, %c0_373, %c0_374] : memref<2x1x64xf32, #tpu.memory_space<vmem>>, vector<1x1x64xf32>
    %831 = vector.shape_cast %830 : vector<1x1x64xf32> to vector<1x64xf32>
    %832 = vector.broadcast %831 : vector<1x64xf32> to vector<6x64xf32>
    %833 = arith.addf %829, %832 : vector<6x64xf32>
    %cst_375 = arith.constant 0.000000e+00 : f32
    %834 = vector.broadcast %cst_375 : f32 to vector<6x64xf32>
    %835 = arith.maximumf %833, %834 : vector<6x64xf32>
    %c0_376 = arith.constant 0 : index
    %c0_377 = arith.constant 0 : index
    %c0_378 = arith.constant 0 : index
    %836 = vector.load %arg15[%c0_376, %c0_377, %c0_378] : memref<2x64x32xf32, #tpu.memory_space<vmem>>, vector<1x64x32xf32>
    %837 = vector.shape_cast %836 : vector<1x64x32xf32> to vector<64x32xf32>
    %cst_379 = arith.constant dense<0.000000e+00> : vector<6x32xf32>
    %838 = tpu.matmul %835, %837, %cst_379 {dimension_numbers = #tpu.dot_dimension_numbers<[1], [0], [0], [1], [0, 0, 1, 1], [], []>} : vector<6x64xf32>, vector<64x32xf32>, vector<6x32xf32> -> vector<6x32xf32>
    %c0_380 = arith.constant 0 : index
    %c0_381 = arith.constant 0 : index
    %c0_382 = arith.constant 0 : index
    %839 = vector.load %arg16[%c0_380, %c0_381, %c0_382] : memref<2x1x32xf32, #tpu.memory_space<vmem>>, vector<1x1x32xf32>
    %840 = vector.shape_cast %839 : vector<1x1x32xf32> to vector<1x32xf32>
    %841 = vector.broadcast %840 : vector<1x32xf32> to vector<6x32xf32>
    %842 = arith.addf %838, %841 : vector<6x32xf32>
    %843 = vector.shape_cast %842 : vector<6x32xf32> to vector<2x3x32xf32>
    %844 = arith.addf %799, %843 : vector<2x3x32xf32>
    %845 = vector.shape_cast %844 : vector<2x3x32xf32> to vector<6x32xf32>
    %c1_383 = arith.constant 1 : index
    %c0_384 = arith.constant 0 : index
    %c0_385 = arith.constant 0 : index
    %846 = vector.load %arg17[%c1_383, %c0_384, %c0_385] : memref<2x1x32xf32, #tpu.memory_space<vmem>>, vector<1x1x32xf32>
    %847 = vector.shape_cast %846 : vector<1x1x32xf32> to vector<1x32xf32>
    %c1_386 = arith.constant 1 : index
    %c0_387 = arith.constant 0 : index
    %c0_388 = arith.constant 0 : index
    %848 = vector.load %arg18[%c1_386, %c0_387, %c0_388] : memref<2x1x32xf32, #tpu.memory_space<vmem>>, vector<1x1x32xf32>
    %849 = vector.shape_cast %848 : vector<1x1x32xf32> to vector<1x32xf32>
    %cst_389 = arith.constant dense<0.000000e+00> : vector<6xf32>
    %850 = vector.multi_reduction <add>, %845, %cst_389 [1] : vector<6x32xf32> to vector<6xf32>
    %851 = vector.shape_cast %850 : vector<6xf32> to vector<6x1xf32>
    %cst_390 = arith.constant 3.200000e+01 : f32
    %852 = vector.broadcast %cst_390 : f32 to vector<6x1xf32>
    %853 = arith.divf %851, %852 : vector<6x1xf32>
    %854 = vector.broadcast %853 : vector<6x1xf32> to vector<6x32xf32>
    %855 = arith.subf %845, %854 : vector<6x32xf32>
    %856 = arith.mulf %855, %855 : vector<6x32xf32>
    %cst_391 = arith.constant dense<0.000000e+00> : vector<6xf32>
    %857 = vector.multi_reduction <add>, %856, %cst_391 [1] : vector<6x32xf32> to vector<6xf32>
    %858 = vector.shape_cast %857 : vector<6xf32> to vector<6x1xf32>
    %cst_392 = arith.constant 3.200000e+01 : f32
    %859 = vector.broadcast %cst_392 : f32 to vector<6x1xf32>
    %860 = arith.divf %858, %859 : vector<6x1xf32>
    %861 = vector.broadcast %853 : vector<6x1xf32> to vector<6x32xf32>
    %862 = arith.subf %845, %861 : vector<6x32xf32>
    %cst_393 = arith.constant 9.99999974E-6 : f32
    %863 = vector.broadcast %cst_393 : f32 to vector<6x1xf32>
    %864 = arith.addf %860, %863 : vector<6x1xf32>
    %865 = math.rsqrt %864 : vector<6x1xf32>
    %866 = vector.broadcast %865 : vector<6x1xf32> to vector<6x32xf32>
    %867 = arith.mulf %862, %866 : vector<6x32xf32>
    %868 = vector.broadcast %847 : vector<1x32xf32> to vector<6x32xf32>
    %869 = arith.mulf %867, %868 : vector<6x32xf32>
    %870 = vector.broadcast %849 : vector<1x32xf32> to vector<6x32xf32>
    %871 = arith.addf %869, %870 : vector<6x32xf32>
    %c1_394 = arith.constant 1 : index
    %c0_395 = arith.constant 0 : index
    %c0_396 = arith.constant 0 : index
    %872 = vector.load %arg9[%c1_394, %c0_395, %c0_396] : memref<2x32x96xf32, #tpu.memory_space<vmem>>, vector<1x32x96xf32>
    %873 = vector.shape_cast %872 : vector<1x32x96xf32> to vector<32x96xf32>
    %cst_397 = arith.constant dense<0.000000e+00> : vector<6x96xf32>
    %874 = tpu.matmul %871, %873, %cst_397 {dimension_numbers = #tpu.dot_dimension_numbers<[1], [0], [0], [1], [0, 0, 1, 1], [], []>} : vector<6x32xf32>, vector<32x96xf32>, vector<6x96xf32> -> vector<6x96xf32>
    %c1_398 = arith.constant 1 : index
    %c0_399 = arith.constant 0 : index
    %c0_400 = arith.constant 0 : index
    %875 = vector.load %arg10[%c1_398, %c0_399, %c0_400] : memref<2x1x96xf32, #tpu.memory_space<vmem>>, vector<1x1x96xf32>
    %876 = vector.shape_cast %875 : vector<1x1x96xf32> to vector<1x96xf32>
    %877 = vector.broadcast %876 : vector<1x96xf32> to vector<6x96xf32>
    %878 = arith.addf %874, %877 : vector<6x96xf32>
    %879 = vector.extract_strided_slice %878 {offsets = [0, 0], sizes = [6, 32], strides = [1, 1]} : vector<6x96xf32> to vector<6x32xf32>
    %880 = vector.shape_cast %879 : vector<6x32xf32> to vector<2x3x32xf32>
    %881 = vector.extract_strided_slice %878 {offsets = [0, 32], sizes = [6, 32], strides = [1, 1]} : vector<6x96xf32> to vector<6x32xf32>
    %882 = vector.shape_cast %881 : vector<6x32xf32> to vector<2x3x32xf32>
    %883 = vector.extract_strided_slice %878 {offsets = [0, 64], sizes = [6, 32], strides = [1, 1]} : vector<6x96xf32> to vector<6x32xf32>
    %884 = vector.shape_cast %883 : vector<6x32xf32> to vector<2x3x32xf32>
    %885 = vector.extract_strided_slice %880 {offsets = [0, 0, 0], sizes = [2, 3, 8], strides = [1, 1, 1]} : vector<2x3x32xf32> to vector<2x3x8xf32>
    %886 = vector.extract_strided_slice %882 {offsets = [0, 0, 0], sizes = [2, 3, 8], strides = [1, 1, 1]} : vector<2x3x32xf32> to vector<2x3x8xf32>
    %887 = vector.extract_strided_slice %884 {offsets = [0, 0, 0], sizes = [2, 3, 8], strides = [1, 1, 1]} : vector<2x3x32xf32> to vector<2x3x8xf32>
    "tpu.trace_start"() <{level = 10 : i32, message = "bqd,bkd->bqk"}> : () -> ()
    %cst_401 = arith.constant dense<0.000000e+00> : vector<2x3x3xf32>
    %888 = tpu.matmul %885, %886, %cst_401 {dimension_numbers = #tpu.dot_dimension_numbers<[2], [2], [1], [1], [0, 0, 0, 1, 1, 1], [0], [0]>} : vector<2x3x8xf32>, vector<2x3x8xf32>, vector<2x3x3xf32> -> vector<2x3x3xf32>
    "tpu.trace_stop"() : () -> ()
    %cst_402 = arith.constant 0.353553385 : f32
    %889 = vector.broadcast %cst_402 : f32 to vector<2x3x3xf32>
    %890 = arith.mulf %888, %889 : vector<2x3x3xf32>
    %cst_403 = arith.constant dense<0xFF800000> : vector<2x3xf32>
    %891 = vector.multi_reduction <maximumf>, %890, %cst_403 [2] : vector<2x3x3xf32> to vector<2x3xf32>
    %892 = vector.shape_cast %891 : vector<2x3xf32> to vector<2x3x1xf32>
    %893 = vector.broadcast %892 : vector<2x3x1xf32> to vector<2x3x3xf32>
    %894 = arith.subf %890, %893 : vector<2x3x3xf32>
    %895 = math.exp %894 : vector<2x3x3xf32>
    %cst_404 = arith.constant dense<0.000000e+00> : vector<2x3xf32>
    %896 = vector.multi_reduction <add>, %895, %cst_404 [2] : vector<2x3x3xf32> to vector<2x3xf32>
    %897 = vector.shape_cast %896 : vector<2x3xf32> to vector<2x3x1xf32>
    %898 = vector.broadcast %897 : vector<2x3x1xf32> to vector<2x3x3xf32>
    %899 = arith.divf %895, %898 : vector<2x3x3xf32>
    "tpu.trace_start"() <{level = 10 : i32, message = "bqk,bkd->bqd"}> : () -> ()
    %cst_405 = arith.constant dense<0.000000e+00> : vector<2x3x8xf32>
    %900 = tpu.matmul %899, %887, %cst_405 {dimension_numbers = #tpu.dot_dimension_numbers<[2], [1], [1], [2], [0, 0, 0, 1, 1, 2], [0], [0]>} : vector<2x3x3xf32>, vector<2x3x8xf32>, vector<2x3x8xf32> -> vector<2x3x8xf32>
    "tpu.trace_stop"() : () -> ()
    %901 = vector.extract_strided_slice %880 {offsets = [0, 0, 8], sizes = [2, 3, 8], strides = [1, 1, 1]} : vector<2x3x32xf32> to vector<2x3x8xf32>
    %902 = vector.extract_strided_slice %882 {offsets = [0, 0, 8], sizes = [2, 3, 8], strides = [1, 1, 1]} : vector<2x3x32xf32> to vector<2x3x8xf32>
    %903 = vector.extract_strided_slice %884 {offsets = [0, 0, 8], sizes = [2, 3, 8], strides = [1, 1, 1]} : vector<2x3x32xf32> to vector<2x3x8xf32>
    "tpu.trace_start"() <{level = 10 : i32, message = "bqd,bkd->bqk"}> : () -> ()
    %cst_406 = arith.constant dense<0.000000e+00> : vector<2x3x3xf32>
    %904 = tpu.matmul %901, %902, %cst_406 {dimension_numbers = #tpu.dot_dimension_numbers<[2], [2], [1], [1], [0, 0, 0, 1, 1, 1], [0], [0]>} : vector<2x3x8xf32>, vector<2x3x8xf32>, vector<2x3x3xf32> -> vector<2x3x3xf32>
    "tpu.trace_stop"() : () -> ()
    %cst_407 = arith.constant 0.353553385 : f32
    %905 = vector.broadcast %cst_407 : f32 to vector<2x3x3xf32>
    %906 = arith.mulf %904, %905 : vector<2x3x3xf32>
    %cst_408 = arith.constant dense<0xFF800000> : vector<2x3xf32>
    %907 = vector.multi_reduction <maximumf>, %906, %cst_408 [2] : vector<2x3x3xf32> to vector<2x3xf32>
    %908 = vector.shape_cast %907 : vector<2x3xf32> to vector<2x3x1xf32>
    %909 = vector.broadcast %908 : vector<2x3x1xf32> to vector<2x3x3xf32>
    %910 = arith.subf %906, %909 : vector<2x3x3xf32>
    %911 = math.exp %910 : vector<2x3x3xf32>
    %cst_409 = arith.constant dense<0.000000e+00> : vector<2x3xf32>
    %912 = vector.multi_reduction <add>, %911, %cst_409 [2] : vector<2x3x3xf32> to vector<2x3xf32>
    %913 = vector.shape_cast %912 : vector<2x3xf32> to vector<2x3x1xf32>
    %914 = vector.broadcast %913 : vector<2x3x1xf32> to vector<2x3x3xf32>
    %915 = arith.divf %911, %914 : vector<2x3x3xf32>
    "tpu.trace_start"() <{level = 10 : i32, message = "bqk,bkd->bqd"}> : () -> ()
    %cst_410 = arith.constant dense<0.000000e+00> : vector<2x3x8xf32>
    %916 = tpu.matmul %915, %903, %cst_410 {dimension_numbers = #tpu.dot_dimension_numbers<[2], [1], [1], [2], [0, 0, 0, 1, 1, 2], [0], [0]>} : vector<2x3x3xf32>, vector<2x3x8xf32>, vector<2x3x8xf32> -> vector<2x3x8xf32>
    "tpu.trace_stop"() : () -> ()
    %917 = vector.extract_strided_slice %880 {offsets = [0, 0, 16], sizes = [2, 3, 8], strides = [1, 1, 1]} : vector<2x3x32xf32> to vector<2x3x8xf32>
    %918 = vector.extract_strided_slice %882 {offsets = [0, 0, 16], sizes = [2, 3, 8], strides = [1, 1, 1]} : vector<2x3x32xf32> to vector<2x3x8xf32>
    %919 = vector.extract_strided_slice %884 {offsets = [0, 0, 16], sizes = [2, 3, 8], strides = [1, 1, 1]} : vector<2x3x32xf32> to vector<2x3x8xf32>
    "tpu.trace_start"() <{level = 10 : i32, message = "bqd,bkd->bqk"}> : () -> ()
    %cst_411 = arith.constant dense<0.000000e+00> : vector<2x3x3xf32>
    %920 = tpu.matmul %917, %918, %cst_411 {dimension_numbers = #tpu.dot_dimension_numbers<[2], [2], [1], [1], [0, 0, 0, 1, 1, 1], [0], [0]>} : vector<2x3x8xf32>, vector<2x3x8xf32>, vector<2x3x3xf32> -> vector<2x3x3xf32>
    "tpu.trace_stop"() : () -> ()
    %cst_412 = arith.constant 0.353553385 : f32
    %921 = vector.broadcast %cst_412 : f32 to vector<2x3x3xf32>
    %922 = arith.mulf %920, %921 : vector<2x3x3xf32>
    %cst_413 = arith.constant dense<0xFF800000> : vector<2x3xf32>
    %923 = vector.multi_reduction <maximumf>, %922, %cst_413 [2] : vector<2x3x3xf32> to vector<2x3xf32>
    %924 = vector.shape_cast %923 : vector<2x3xf32> to vector<2x3x1xf32>
    %925 = vector.broadcast %924 : vector<2x3x1xf32> to vector<2x3x3xf32>
    %926 = arith.subf %922, %925 : vector<2x3x3xf32>
    %927 = math.exp %926 : vector<2x3x3xf32>
    %cst_414 = arith.constant dense<0.000000e+00> : vector<2x3xf32>
    %928 = vector.multi_reduction <add>, %927, %cst_414 [2] : vector<2x3x3xf32> to vector<2x3xf32>
    %929 = vector.shape_cast %928 : vector<2x3xf32> to vector<2x3x1xf32>
    %930 = vector.broadcast %929 : vector<2x3x1xf32> to vector<2x3x3xf32>
    %931 = arith.divf %927, %930 : vector<2x3x3xf32>
    "tpu.trace_start"() <{level = 10 : i32, message = "bqk,bkd->bqd"}> : () -> ()
    %cst_415 = arith.constant dense<0.000000e+00> : vector<2x3x8xf32>
    %932 = tpu.matmul %931, %919, %cst_415 {dimension_numbers = #tpu.dot_dimension_numbers<[2], [1], [1], [2], [0, 0, 0, 1, 1, 2], [0], [0]>} : vector<2x3x3xf32>, vector<2x3x8xf32>, vector<2x3x8xf32> -> vector<2x3x8xf32>
    "tpu.trace_stop"() : () -> ()
    %933 = vector.extract_strided_slice %880 {offsets = [0, 0, 24], sizes = [2, 3, 8], strides = [1, 1, 1]} : vector<2x3x32xf32> to vector<2x3x8xf32>
    %934 = vector.extract_strided_slice %882 {offsets = [0, 0, 24], sizes = [2, 3, 8], strides = [1, 1, 1]} : vector<2x3x32xf32> to vector<2x3x8xf32>
    %935 = vector.extract_strided_slice %884 {offsets = [0, 0, 24], sizes = [2, 3, 8], strides = [1, 1, 1]} : vector<2x3x32xf32> to vector<2x3x8xf32>
    "tpu.trace_start"() <{level = 10 : i32, message = "bqd,bkd->bqk"}> : () -> ()
    %cst_416 = arith.constant dense<0.000000e+00> : vector<2x3x3xf32>
    %936 = tpu.matmul %933, %934, %cst_416 {dimension_numbers = #tpu.dot_dimension_numbers<[2], [2], [1], [1], [0, 0, 0, 1, 1, 1], [0], [0]>} : vector<2x3x8xf32>, vector<2x3x8xf32>, vector<2x3x3xf32> -> vector<2x3x3xf32>
    "tpu.trace_stop"() : () -> ()
    %cst_417 = arith.constant 0.353553385 : f32
    %937 = vector.broadcast %cst_417 : f32 to vector<2x3x3xf32>
    %938 = arith.mulf %936, %937 : vector<2x3x3xf32>
    %cst_418 = arith.constant dense<0xFF800000> : vector<2x3xf32>
    %939 = vector.multi_reduction <maximumf>, %938, %cst_418 [2] : vector<2x3x3xf32> to vector<2x3xf32>
    %940 = vector.shape_cast %939 : vector<2x3xf32> to vector<2x3x1xf32>
    %941 = vector.broadcast %940 : vector<2x3x1xf32> to vector<2x3x3xf32>
    %942 = arith.subf %938, %941 : vector<2x3x3xf32>
    %943 = math.exp %942 : vector<2x3x3xf32>
    %cst_419 = arith.constant dense<0.000000e+00> : vector<2x3xf32>
    %944 = vector.multi_reduction <add>, %943, %cst_419 [2] : vector<2x3x3xf32> to vector<2x3xf32>
    %945 = vector.shape_cast %944 : vector<2x3xf32> to vector<2x3x1xf32>
    %946 = vector.broadcast %945 : vector<2x3x1xf32> to vector<2x3x3xf32>
    %947 = arith.divf %943, %946 : vector<2x3x3xf32>
    "tpu.trace_start"() <{level = 10 : i32, message = "bqk,bkd->bqd"}> : () -> ()
    %cst_420 = arith.constant dense<0.000000e+00> : vector<2x3x8xf32>
    %948 = tpu.matmul %947, %935, %cst_420 {dimension_numbers = #tpu.dot_dimension_numbers<[2], [1], [1], [2], [0, 0, 0, 1, 1, 2], [0], [0]>} : vector<2x3x3xf32>, vector<2x3x8xf32>, vector<2x3x8xf32> -> vector<2x3x8xf32>
    "tpu.trace_stop"() : () -> ()
    %949 = tpu.concatenate %900, %916, %932, %948 in 2 : vector<2x3x8xf32>, vector<2x3x8xf32>, vector<2x3x8xf32>, vector<2x3x8xf32> -> vector<2x3x32xf32>
    %950 = vector.shape_cast %949 : vector<2x3x32xf32> to vector<6x32xf32>
    %c1_421 = arith.constant 1 : index
    %c0_422 = arith.constant 0 : index
    %c0_423 = arith.constant 0 : index
    %951 = vector.load %arg11[%c1_421, %c0_422, %c0_423] : memref<2x32x32xf32, #tpu.memory_space<vmem>>, vector<1x32x32xf32>
    %952 = vector.shape_cast %951 : vector<1x32x32xf32> to vector<32x32xf32>
    %cst_424 = arith.constant dense<0.000000e+00> : vector<6x32xf32>
    %953 = tpu.matmul %950, %952, %cst_424 {dimension_numbers = #tpu.dot_dimension_numbers<[1], [0], [0], [1], [0, 0, 1, 1], [], []>} : vector<6x32xf32>, vector<32x32xf32>, vector<6x32xf32> -> vector<6x32xf32>
    %c1_425 = arith.constant 1 : index
    %c0_426 = arith.constant 0 : index
    %c0_427 = arith.constant 0 : index
    %954 = vector.load %arg12[%c1_425, %c0_426, %c0_427] : memref<2x1x32xf32, #tpu.memory_space<vmem>>, vector<1x1x32xf32>
    %955 = vector.shape_cast %954 : vector<1x1x32xf32> to vector<1x32xf32>
    %956 = vector.broadcast %955 : vector<1x32xf32> to vector<6x32xf32>
    %957 = arith.addf %953, %956 : vector<6x32xf32>
    %958 = vector.shape_cast %957 : vector<6x32xf32> to vector<2x3x32xf32>
    %959 = arith.addf %844, %958 : vector<2x3x32xf32>
    %960 = vector.shape_cast %959 : vector<2x3x32xf32> to vector<6x32xf32>
    %c1_428 = arith.constant 1 : index
    %c0_429 = arith.constant 0 : index
    %c0_430 = arith.constant 0 : index
    %961 = vector.load %arg19[%c1_428, %c0_429, %c0_430] : memref<2x1x32xf32, #tpu.memory_space<vmem>>, vector<1x1x32xf32>
    %962 = vector.shape_cast %961 : vector<1x1x32xf32> to vector<1x32xf32>
    %c1_431 = arith.constant 1 : index
    %c0_432 = arith.constant 0 : index
    %c0_433 = arith.constant 0 : index
    %963 = vector.load %arg20[%c1_431, %c0_432, %c0_433] : memref<2x1x32xf32, #tpu.memory_space<vmem>>, vector<1x1x32xf32>
    %964 = vector.shape_cast %963 : vector<1x1x32xf32> to vector<1x32xf32>
    %cst_434 = arith.constant dense<0.000000e+00> : vector<6xf32>
    %965 = vector.multi_reduction <add>, %960, %cst_434 [1] : vector<6x32xf32> to vector<6xf32>
    %966 = vector.shape_cast %965 : vector<6xf32> to vector<6x1xf32>
    %cst_435 = arith.constant 3.200000e+01 : f32
    %967 = vector.broadcast %cst_435 : f32 to vector<6x1xf32>
    %968 = arith.divf %966, %967 : vector<6x1xf32>
    %969 = vector.broadcast %968 : vector<6x1xf32> to vector<6x32xf32>
    %970 = arith.subf %960, %969 : vector<6x32xf32>
    %971 = arith.mulf %970, %970 : vector<6x32xf32>
    %cst_436 = arith.constant dense<0.000000e+00> : vector<6xf32>
    %972 = vector.multi_reduction <add>, %971, %cst_436 [1] : vector<6x32xf32> to vector<6xf32>
    %973 = vector.shape_cast %972 : vector<6xf32> to vector<6x1xf32>
    %cst_437 = arith.constant 3.200000e+01 : f32
    %974 = vector.broadcast %cst_437 : f32 to vector<6x1xf32>
    %975 = arith.divf %973, %974 : vector<6x1xf32>
    %976 = vector.broadcast %968 : vector<6x1xf32> to vector<6x32xf32>
    %977 = arith.subf %960, %976 : vector<6x32xf32>
    %cst_438 = arith.constant 9.99999974E-6 : f32
    %978 = vector.broadcast %cst_438 : f32 to vector<6x1xf32>
    %979 = arith.addf %975, %978 : vector<6x1xf32>
    %980 = math.rsqrt %979 : vector<6x1xf32>
    %981 = vector.broadcast %980 : vector<6x1xf32> to vector<6x32xf32>
    %982 = arith.mulf %977, %981 : vector<6x32xf32>
    %983 = vector.broadcast %962 : vector<1x32xf32> to vector<6x32xf32>
    %984 = arith.mulf %982, %983 : vector<6x32xf32>
    %985 = vector.broadcast %964 : vector<1x32xf32> to vector<6x32xf32>
    %986 = arith.addf %984, %985 : vector<6x32xf32>
    %c1_439 = arith.constant 1 : index
    %c0_440 = arith.constant 0 : index
    %c0_441 = arith.constant 0 : index
    %987 = vector.load %arg13[%c1_439, %c0_440, %c0_441] : memref<2x32x64xf32, #tpu.memory_space<vmem>>, vector<1x32x64xf32>
    %988 = vector.shape_cast %987 : vector<1x32x64xf32> to vector<32x64xf32>
    %cst_442 = arith.constant dense<0.000000e+00> : vector<6x64xf32>
    %989 = tpu.matmul %986, %988, %cst_442 {dimension_numbers = #tpu.dot_dimension_numbers<[1], [0], [0], [1], [0, 0, 1, 1], [], []>} : vector<6x32xf32>, vector<32x64xf32>, vector<6x64xf32> -> vector<6x64xf32>
    %c1_443 = arith.constant 1 : index
    %c0_444 = arith.constant 0 : index
    %c0_445 = arith.constant 0 : index
    %990 = vector.load %arg14[%c1_443, %c0_444, %c0_445] : memref<2x1x64xf32, #tpu.memory_space<vmem>>, vector<1x1x64xf32>
    %991 = vector.shape_cast %990 : vector<1x1x64xf32> to vector<1x64xf32>
    %992 = vector.broadcast %991 : vector<1x64xf32> to vector<6x64xf32>
    %993 = arith.addf %989, %992 : vector<6x64xf32>
    %cst_446 = arith.constant 0.000000e+00 : f32
    %994 = vector.broadcast %cst_446 : f32 to vector<6x64xf32>
    %995 = arith.maximumf %993, %994 : vector<6x64xf32>
    %c1_447 = arith.constant 1 : index
    %c0_448 = arith.constant 0 : index
    %c0_449 = arith.constant 0 : index
    %996 = vector.load %arg15[%c1_447, %c0_448, %c0_449] : memref<2x64x32xf32, #tpu.memory_space<vmem>>, vector<1x64x32xf32>
    %997 = vector.shape_cast %996 : vector<1x64x32xf32> to vector<64x32xf32>
    %cst_450 = arith.constant dense<0.000000e+00> : vector<6x32xf32>
    %998 = tpu.matmul %995, %997, %cst_450 {dimension_numbers = #tpu.dot_dimension_numbers<[1], [0], [0], [1], [0, 0, 1, 1], [], []>} : vector<6x64xf32>, vector<64x32xf32>, vector<6x32xf32> -> vector<6x32xf32>
    %c1_451 = arith.constant 1 : index
    %c0_452 = arith.constant 0 : index
    %c0_453 = arith.constant 0 : index
    %999 = vector.load %arg16[%c1_451, %c0_452, %c0_453] : memref<2x1x32xf32, #tpu.memory_space<vmem>>, vector<1x1x32xf32>
    %1000 = vector.shape_cast %999 : vector<1x1x32xf32> to vector<1x32xf32>
    %1001 = vector.broadcast %1000 : vector<1x32xf32> to vector<6x32xf32>
    %1002 = arith.addf %998, %1001 : vector<6x32xf32>
    %1003 = vector.shape_cast %1002 : vector<6x32xf32> to vector<2x3x32xf32>
    %1004 = arith.addf %959, %1003 : vector<2x3x32xf32>
    %1005 = vector.extract_strided_slice %1004 {offsets = [0, 2, 0], sizes = [2, 1, 32], strides = [1, 1, 1]} : vector<2x3x32xf32> to vector<2x1x32xf32>
    %1006 = vector.shape_cast %1005 : vector<2x1x32xf32> to vector<2x32xf32>
    %c0_454 = arith.constant 0 : index
    %c0_455 = arith.constant 0 : index
    %1007 = vector.load %arg5[%c0_454, %c0_455] : memref<32x160xf32, #tpu.memory_space<vmem>>, vector<32x160xf32>
    %cst_456 = arith.constant dense<0.000000e+00> : vector<2x160xf32>
    %1008 = tpu.matmul %1006, %1007, %cst_456 {dimension_numbers = #tpu.dot_dimension_numbers<[1], [0], [0], [1], [0, 0, 1, 1], [], []>} : vector<2x32xf32>, vector<32x160xf32>, vector<2x160xf32> -> vector<2x160xf32>
    %c0_457 = arith.constant 0 : index
    %c0_458 = arith.constant 0 : index
    %1009 = vector.load %arg6[%c0_457, %c0_458] : memref<1x160xf32, #tpu.memory_space<vmem>>, vector<1x160xf32>
    %1010 = vector.broadcast %1009 : vector<1x160xf32> to vector<2x160xf32>
    %1011 = arith.addf %1008, %1010 : vector<2x160xf32>
    %1012 = vector.shape_cast %337 : vector<2x160xf32> to vector<2x1x160xf32>
    %1013 = vector.shape_cast %674 : vector<2x160xf32> to vector<2x1x160xf32>
    %1014 = vector.shape_cast %1011 : vector<2x160xf32> to vector<2x1x160xf32>
    %1015 = tpu.concatenate %1012, %1013, %1014 in 1 : vector<2x1x160xf32>, vector<2x1x160xf32>, vector<2x1x160xf32> -> vector<2x3x160xf32>
    %c0_459 = arith.constant 0 : index
    %c0_460 = arith.constant 0 : index
    %c0_461 = arith.constant 0 : index
    %1016 = vector.load %arg23[%c0_459, %c0_460, %c0_461] : memref<2x3x160xf32, #tpu.memory_space<vmem>>, vector<2x3x160xf32>
    tpu.vector_store %arg23[%c0_459, %c0_460, %c0_461], %1015 {strides = array<i32>} : memref<2x3x160xf32, #tpu.memory_space<vmem>>, vector<2x3x160xf32>,
    %1017 = vector.shape_cast %1015 : vector<2x3x160xf32> to vector<6x160xf32>
    %c0_462 = arith.constant 0 : index
    %c0_463 = arith.constant 0 : index
    %1018 = vector.load %arg21[%c0_462, %c0_463] : memref<160x130xf32, #tpu.memory_space<vmem>>, vector<160x130xf32>
    %cst_464 = arith.constant dense<0.000000e+00> : vector<6x130xf32>
    %1019 = tpu.matmul %1017, %1018, %cst_464 {dimension_numbers = #tpu.dot_dimension_numbers<[1], [0], [0], [1], [0, 0, 1, 1], [], []>} : vector<6x160xf32>, vector<160x130xf32>, vector<6x130xf32> -> vector<6x130xf32>
    %c0_465 = arith.constant 0 : index
    %c0_466 = arith.constant 0 : index
    %1020 = vector.load %arg22[%c0_465, %c0_466] : memref<1x130xf32, #tpu.memory_space<vmem>>, vector<1x130xf32>
    %1021 = vector.broadcast %1020 : vector<1x130xf32> to vector<6x130xf32>
    %1022 = arith.addf %1019, %1021 : vector<6x130xf32>
    %cst_467 = arith.constant 0.000000e+00 : f32
    %1023 = vector.broadcast %cst_467 : f32 to vector<6x130xf32>
    %1024 = arith.subf %1023, %1022 : vector<6x130xf32>
    %1025 = math.exp %1024 : vector<6x130xf32>
    %cst_468 = arith.constant 1.000000e+00 : f32
    %1026 = vector.broadcast %cst_468 : f32 to vector<6x130xf32>
    %1027 = arith.addf %1026, %1025 : vector<6x130xf32>
    %cst_469 = arith.constant 1.000000e+00 : f32
    %1028 = vector.broadcast %cst_469 : f32 to vector<6x130xf32>
    %1029 = arith.divf %1028, %1027 : vector<6x130xf32>
    %cst_470 = arith.constant 1.000000e+00 : f32
    %1030 = vector.broadcast %cst_470 : f32 to vector<6x130xf32>
    %1031 = arith.mulf %1030, %1029 : vector<6x130xf32>
    %cst_471 = arith.constant 1.000000e-10 : f32
    %1032 = vector.broadcast %cst_471 : f32 to vector<6x130xf32>
    %1033 = arith.addf %1031, %1032 : vector<6x130xf32>
    %1034 = vector.shape_cast %1033 : vector<6x130xf32> to vector<2x3x130xf32>
    %c0_472 = arith.constant 0 : index
    %c0_473 = arith.constant 0 : index
    %c0_474 = arith.constant 0 : index
    %1035 = vector.load %arg24[%c0_472, %c0_473, %c0_474] : memref<2x3x130xf32, #tpu.memory_space<vmem>>, vector<2x3x130xf32>
    tpu.vector_store %arg24[%c0_472, %c0_473, %c0_474], %1034 {strides = array<i32>} : memref<2x3x130xf32, #tpu.memory_space<vmem>>, vector<2x3x130xf32>,
    return
  }
  func.func @transform_0(%arg0: i32) -> (i32, i32, i32) {
    %c0_i32 = arith.constant 0 : i32
    %c0_i32_0 = arith.constant 0 : i32
    %c0_i32_1 = arith.constant 0 : i32
    %c0_i32_2 = arith.constant 0 : i32
    return %c0_i32, %c0_i32_0, %c0_i32_1 : i32, i32, i32
  }
  func.func @transform_1(%arg0: i32) -> (i32, i32, i32) {
    %c0_i32 = arith.constant 0 : i32
    %c0_i32_0 = arith.constant 0 : i32
    %c0_i32_1 = arith.constant 0 : i32
    %c0_i32_2 = arith.constant 0 : i32
    return %c0_i32, %c0_i32_0, %c0_i32_1 : i32, i32, i32
  }
  func.func @transform_2(%arg0: i32) -> (i32, i32) {
    %c0_i32 = arith.constant 0 : i32
    %c0_i32_0 = arith.constant 0 : i32
    %c0_i32_1 = arith.constant 0 : i32
    return %c0_i32, %c0_i32_0 : i32, i32
  }
  func.func @transform_3(%arg0: i32) -> (i32, i32) {
    %c0_i32 = arith.constant 0 : i32
    %c0_i32_0 = arith.constant 0 : i32
    %c0_i32_1 = arith.constant 0 : i32
    return %c0_i32, %c0_i32_0 : i32, i32
  }
  func.func @transform_4(%arg0: i32) -> (i32, i32) {
    %c0_i32 = arith.constant 0 : i32
    %c0_i32_0 = arith.constant 0 : i32
    %c0_i32_1 = arith.constant 0 : i32
    return %c0_i32, %c0_i32_0 : i32, i32
  }
  func.func @transform_5(%arg0: i32) -> (i32, i32) {
    %c0_i32 = arith.constant 0 : i32
    %c0_i32_0 = arith.constant 0 : i32
    %c0_i32_1 = arith.constant 0 : i32
    return %c0_i32, %c0_i32_0 : i32, i32
  }
  func.func @transform_6(%arg0: i32) -> (i32, i32) {
    %c0_i32 = arith.constant 0 : i32
    %c0_i32_0 = arith.constant 0 : i32
    %c0_i32_1 = arith.constant 0 : i32
    return %c0_i32, %c0_i32_0 : i32, i32
  }
  func.func @transform_7(%arg0: i32) -> (i32, i32) {
    %c0_i32 = arith.constant 0 : i32
    %c0_i32_0 = arith.constant 0 : i32
    %c0_i32_1 = arith.constant 0 : i32
    return %c0_i32, %c0_i32_0 : i32, i32
  }
  func.func @transform_8(%arg0: i32) -> (i32, i32, i32) {
    %c0_i32 = arith.constant 0 : i32
    %c0_i32_0 = arith.constant 0 : i32
    %c0_i32_1 = arith.constant 0 : i32
    %c0_i32_2 = arith.constant 0 : i32
    return %c0_i32, %c0_i32_0, %c0_i32_1 : i32, i32, i32
  }
  func.func @transform_9(%arg0: i32) -> (i32, i32, i32) {
    %c0_i32 = arith.constant 0 : i32
    %c0_i32_0 = arith.constant 0 : i32
    %c0_i32_1 = arith.constant 0 : i32
    %c0_i32_2 = arith.constant 0 : i32
    return %c0_i32, %c0_i32_0, %c0_i32_1 : i32, i32, i32
  }
  func.func @transform_10(%arg0: i32) -> (i32, i32, i32) {
    %c0_i32 = arith.constant 0 : i32
    %c0_i32_0 = arith.constant 0 : i32
    %c0_i32_1 = arith.constant 0 : i32
    %c0_i32_2 = arith.constant 0 : i32
    return %c0_i32, %c0_i32_0, %c0_i32_1 : i32, i32, i32
  }
  func.func @transform_11(%arg0: i32) -> (i32, i32, i32) {
    %c0_i32 = arith.constant 0 : i32
    %c0_i32_0 = arith.constant 0 : i32
    %c0_i32_1 = arith.constant 0 : i32
    %c0_i32_2 = arith.constant 0 : i32
    return %c0_i32, %c0_i32_0, %c0_i32_1 : i32, i32, i32
  }
  func.func @transform_12(%arg0: i32) -> (i32, i32, i32) {
    %c0_i32 = arith.constant 0 : i32
    %c0_i32_0 = arith.constant 0 : i32
    %c0_i32_1 = arith.constant 0 : i32
    %c0_i32_2 = arith.constant 0 : i32
    return %c0_i32, %c0_i32_0, %c0_i32_1 : i32, i32, i32
  }
  func.func @transform_13(%arg0: i32) -> (i32, i32, i32) {
    %c0_i32 = arith.constant 0 : i32
    %c0_i32_0 = arith.constant 0 : i32
    %c0_i32_1 = arith.constant 0 : i32
    %c0_i32_2 = arith.constant 0 : i32
    return %c0_i32, %c0_i32_0, %c0_i32_1 : i32, i32, i32
  }
  func.func @transform_14(%arg0: i32) -> (i32, i32, i32) {
    %c0_i32 = arith.constant 0 : i32
    %c0_i32_0 = arith.constant 0 : i32
    %c0_i32_1 = arith.constant 0 : i32
    %c0_i32_2 = arith.constant 0 : i32
    return %c0_i32, %c0_i32_0, %c0_i32_1 : i32, i32, i32
  }
  func.func @transform_15(%arg0: i32) -> (i32, i32, i32) {
    %c0_i32 = arith.constant 0 : i32
    %c0_i32_0 = arith.constant 0 : i32
    %c0_i32_1 = arith.constant 0 : i32
    %c0_i32_2 = arith.constant 0 : i32
    return %c0_i32, %c0_i32_0, %c0_i32_1 : i32, i32, i32
  }
  func.func @transform_16(%arg0: i32) -> (i32, i32, i32) {
    %c0_i32 = arith.constant 0 : i32
    %c0_i32_0 = arith.constant 0 : i32
    %c0_i32_1 = arith.constant 0 : i32
    %c0_i32_2 = arith.constant 0 : i32
    return %c0_i32, %c0_i32_0, %c0_i32_1 : i32, i32, i32
  }
  func.func @transform_17(%arg0: i32) -> (i32, i32, i32) {
    %c0_i32 = arith.constant 0 : i32
    %c0_i32_0 = arith.constant 0 : i32
    %c0_i32_1 = arith.constant 0 : i32
    %c0_i32_2 = arith.constant 0 : i32
    return %c0_i32, %c0_i32_0, %c0_i32_1 : i32, i32, i32
  }
  func.func @transform_18(%arg0: i32) -> (i32, i32, i32) {
    %c0_i32 = arith.constant 0 : i32
    %c0_i32_0 = arith.constant 0 : i32
    %c0_i32_1 = arith.constant 0 : i32
    %c0_i32_2 = arith.constant 0 : i32
    return %c0_i32, %c0_i32_0, %c0_i32_1 : i32, i32, i32
  }
  func.func @transform_19(%arg0: i32) -> (i32, i32, i32) {
    %c0_i32 = arith.constant 0 : i32
    %c0_i32_0 = arith.constant 0 : i32
    %c0_i32_1 = arith.constant 0 : i32
    %c0_i32_2 = arith.constant 0 : i32
    return %c0_i32, %c0_i32_0, %c0_i32_1 : i32, i32, i32
  }
  func.func @transform_20(%arg0: i32) -> (i32, i32) {
    %c0_i32 = arith.constant 0 : i32
    %c0_i32_0 = arith.constant 0 : i32
    %c0_i32_1 = arith.constant 0 : i32
    return %c0_i32, %c0_i32_0 : i32, i32
  }
  func.func @transform_21(%arg0: i32) -> (i32, i32) {
    %c0_i32 = arith.constant 0 : i32
    %c0_i32_0 = arith.constant 0 : i32
    %c0_i32_1 = arith.constant 0 : i32
    return %c0_i32, %c0_i32_0 : i32, i32
  }
  func.func @transform_22(%arg0: i32) -> (i32, i32, i32) {
    %c0_i32 = arith.constant 0 : i32
    %c0_i32_0 = arith.constant 0 : i32
    %c0_i32_1 = arith.constant 0 : i32
    %c0_i32_2 = arith.constant 0 : i32
    return %c0_i32, %c0_i32_0, %c0_i32_1 : i32, i32, i32
  }
  func.func @transform_23(%arg0: i32) -> (i32, i32, i32) {
    %c0_i32 = arith.constant 0 : i32
    %c0_i32_0 = arith.constant 0 : i32
    %c0_i32_1 = arith.constant 0 : i32
    %c0_i32_2 = arith.constant 0 : i32
    return %c0_i32, %c0_i32_0, %c0_i32_1 : i32, i32, i32
  }
}

</mosaic_0001>

<bundles_post_ra>
// kernel: tile.8
= control target key start
LH: loop header
LB: loop body
LE: loop exit
PB: predicated region body
PF: predicated region fallthrough
CT: control target
= control target key end

     0   :  { %s22_s0 = inlined_call_operand.vmem [shape: f32[26], index: 0, kind: input, shape index: {}]   ;;  %s23_s1 = inlined_call_operand.vmem [shape: f32[5,26], index: 1, kind: output, shape index: {}]  }
   0x1   :  { %v4_v0 = vld [vmem:[%s22_s0] ss:$0 sm:$0xff] }
   0x2   :  { %5 = vst [vmem:[%s23_s1] sm:$0xff] %v4_v0 }

// kernel: tile.9
= control target key start
LH: loop header
LB: loop body
LE: loop exit
PB: predicated region body
PF: predicated region fallthrough
CT: control target
= control target key end

     0   :  { %vm9_vm0 = vcmask 195584   ;;  %s57_s12 = smov 104   ;;  %s58_s13 = smov 52   ;;  %vm3_vm1 = vcmask 211968   ;;  %vm13_vm2 = vcmask 15360   ;;  %vm16_vm3 = vcmask 1048384   ;;  %s95_s0 = inlined_call_operand.vmem [shape: f32[5,26], index: 0, kind: input, shape index: {}]   ;;  %s96_s1 = inlined_call_operand.vmem [shape: f32[1,130], index: 1, kind: output, shape index: {}]  }
   0x1   :  { %v47_v0 = vld [vmem:[%s95_s0 + $0x4] sm:$0x1]   ;;  %v50_v3 = vld [vmem:[%s95_s0 + $0x2] sm:$0x1]   ;;  %v49_v4 = vld [vmem:[%s95_s0 + $0x3] sm:$0x1]  }
   0x2   :  { %v48_v1 = vld [vmem:[%s95_s0 + $0x4] sm:$0x1]   ;;  %26 = vrot.lane.b32.xlu1 %v50_v3, %s58_s13  ;;  %v51_v5 = vld [vmem:[%s95_s0 + $0x1] sm:$0x1]   ;;  %v2_v6 = vld [vmem:[%s95_s0] sm:$0x1]  }
   0x3   :  { %v10_v2 = vsel %vm9_vm0, %v48_v1, %v47_v0  ;;  %4 = vst.msk [vmem:[#allocation0] sm:$0x1] %vm3_vm1, %v2_v6   ;;  %s59_s0 = smov 78   ;;  %s60_s20 = smov 26   ;;  %vm22_vm4 = vcmask 851568   ;;  %vm28_vm5 = vcmask 638368  }
   0x4   :  { %11 = vrot.lane.b32.xlu0 %v10_v2, %s57_s12  ;;  %vm34_vm6 = vcmask 425168  }
   0x6   :  { %32 = vrot.lane.b32.xlu1 %v51_v5, %s60_s20 }
   0x8   :  { %20 = vrot.lane.b32.xlu0 %v49_v4, %s59_s0 }
  0x74   :  { %v27_v8 = vpop.permute.xlu1 %26  }
  0x76   :  { %v12_v7 = vpop.permute.xlu0 %11  }
  0x77   :  { %15 = vst.msk [vmem:[#allocation0 + $0x8] sm:$0x1] %vm13_vm2, %v12_v7  }
  0x78   :  { %17 = vst.msk [vmem:[#allocation0] sm:$0x1] %vm16_vm3, %v12_v7   ;;  %v33_v10 = vpop.permute.xlu1 %32  }
  0x7a   :  { %v21_v9 = vpop.permute.xlu0 %20  }
  0x7b   :  { %23 = vst.msk [vmem:[#allocation0] sm:$0x1] %vm22_vm4, %v21_v9  }
  0x7c   :  { %29 = vst.msk [vmem:[#allocation0] sm:$0x1] %vm28_vm5, %v27_v8  }
  0x7d   :  { %35 = vst.msk [vmem:[#allocation0] sm:$0x1] %vm34_vm6, %v33_v10  }
  0x7e   :  { %v43_v11 = vld [vmem:[#allocation0 + $0x8] sm:$0x1] }
  0x7f   :  { %52 = vst [vmem:[%s96_s1 + $0x1] sm:$0x1] %v43_v11 }
  0x84   :  { %v39_v12 = vld [vmem:[#allocation0] sm:$0x1] }
  0x85   :  { %41 = vst [vmem:[%s96_s1] sm:$0x1] %v39_v12 }

// kernel: run.1
= control target key start
LH: loop header
LB: loop body
LE: loop exit
PB: predicated region body
PF: predicated region fallthrough
CT: control target
= control target key end

     0   :  { %v89_v0 = vlaneseq  ;;  %v20529_v1 = vmov 0.0|0.0   ;;  %v20530_v5 = vmov 1966171168   ;;  %vm209_vm0 = vcmask 261120   ;;  %s24225_s30 = smov 64   ;;  %s24221_s25 = smov 120   ;;  %s24172_s2 = inlined_call_operand.vmem [shape: f32[160,32], index: 2, kind: input, shape index: {}]   ;;  %s24173_s0 = inlined_call_operand.vmem [shape: f32[2,3,160], index: 0, kind: input, shape index: {}]   ;;  %s24174_s1 = inlined_call_operand.vmem [shape: f32[1,3,32], index: 1, kind: input, shape index: {}]   ;;  %s24175_s3 = inlined_call_operand.vmem [shape: f32[1,32], index: 3, kind: input, shape index: {}]   ;;  %s24176_s8 = inlined_call_operand.vmem [shape: f32[2,32,96], index: 8, kind: input, shape index: {}]   ;;  %s24177_s16 = inlined_call_operand.vmem [shape: f32[2,1,32], index: 16, kind: input, shape index: {}, may-alias: {16,18}]   ;;  %s24178_s17 = inlined_call_operand.vmem [shape: f32[2,1,32], index: 17, kind: input, shape index: {}, may-alias: {17,19}]   ;;  %s24179_s9 = inlined_call_operand.vmem [shape: f32[2,1,96], index: 9, kind: input, shape index: {}]   ;;  %s24180_s10 = inlined_call_operand.vmem [shape: f32[2,32,32], index: 10, kind: input, shape index: {}]   ;;  %s24181_s11 = inlined_call_operand.vmem [shape: f32[2,1,32], index: 11, kind: input, shape index: {}]   ;;  %s24182_s12 = inlined_call_operand.vmem [shape: f32[2,32,64], index: 12, kind: input, shape index: {}]   ;;  %s24183_s18 = inlined_call_operand.vmem [shape: f32[2,1,32], index: 18, kind: input, shape index: {}, may-alias: {16,18}]   ;;  %s24184_s19 = inlined_call_operand.vmem [shape: f32[2,1,32], index: 19, kind: input, shape index: {}, may-alias: {17,19}]   ;;  %s24185_s14 = inlined_call_operand.vmem [shape: f32[2,64,32], index: 14, kind: input, shape index: {}]   ;;  %s24186_s13 = inlined_call_operand.vmem [shape: f32[2,1,64], index: 13, kind: input, shape index: {}]   ;;  %s24187_s15 = inlined_call_operand.vmem [shape: f32[2,1,32], index: 15, kind: input, shape index: {}]   ;;  %s24188_s4 = inlined_call_operand.vmem [shape: f32[32,160], index: 4, kind: input, shape index: {}]   ;;  %s24189_s6 = inlined_call_operand.vmem [shape: f32[32,32], index: 6, kind: input, shape index: {}]   ;;  %s24190_s5 = inlined_call_operand.vmem [shape: f32[1,160], index: 5, kind: input, shape index: {}]   ;;  %s24191_s7 = inlined_call_operand.vmem [shape: f32[1,32], index: 7, kind: input, shape index: {}]   ;;  %s24192_s20 = inlined_call_operand.vmem [shape: f32[160,130], index: 20, kind: input, shape index: {}]   ;;  %s24193_s22 = inlined_call_operand.vmem [shape: f32[2,3,160], index: 22, kind: output, shape index: {0}]   ;;  %s24194_s21 = inlined_call_operand.vmem [shape: f32[1,130], index: 21, kind: input, shape index: {}]   ;;  %s24195_s23 = inlined_call_operand.vmem [shape: f32[2,3,130], index: 23, kind: output, shape index: {1}]  }
   0x1   :  { %24266 = sst [smem:[#allocation2_spill]] %s24172_s2  ;;  %19997 = vmatprep.subr.bf16.mxu0 %v20529_v1  ;;  %v87_v6 = vunpack.c.l.s4 %v20530_v5  ;;  %vm418_vm1 = vcmask 259072   ;;  %vm20531_vm2 = vmmov 0   ;;  %s24227_s2 = smov 96   ;;  %vm887_vm3 = vcmask 64512  }
   0x2   :  { %24267 = sst [smem:[#allocation3_spill]] %s24173_s0  ;;  %s24287_s24 = sld [smem:[#allocation2_spill]]  ;;  %v20681_v9 = vshrl.u32 %v89_v0, 7  ;;  %vm1063_vm4 = vcmask 18432   ;;  %vm1092_vm5 = vcmask 1042432   ;;  %vm1088_vm6 = vcmask 23552  }
   0x3   :  { %24268 = sst [smem:[#allocation4_spill]] %s24174_s1  ;;  %v88_v10 = vunpack.c.0.s8 %v87_v6  ;;  %s24217_s0 = smov 80   ;;  %vm2270_vm7 = vcmask 130048   ;;  %vm2273_vm8 = vcmask 195584   ;;  %vm2966_vm9 = vcmask 523264  }
   0x4   :  { %24269 = sst [smem:[#allocation5_spill]] %s24175_s3  ;;  %s24289_s26 = sld [smem:[#allocation4_spill]]  ;;  %vm6066_vm10 = vcmask 1041408   ;;  %vm11883_vm11 = vcmask 1041409   ;;  %vm18103_vm12 = vcmask 1040384   ;;  %vm18120_vm13 = vcmask 260100  }
   0x5   :  { %24270 = sst [smem:[#allocation6_spill]] %s24176_s8  ;;  %v20691_v14 = vsub.s32 %v88_v10, %v20681_v9  ;;  %s24288_s8 = sld [smem:[#allocation3_spill]]  ;;  %vm18121_vm14 = vmor %vm18120_vm13, %vm1092_vm5  ;;  %vm18465_vm15 = vcmask 14340  }
   0x6   :  { %24271 = sst [smem:[#allocation7_spill]] %s24177_s16  ;;  %s24291_s28 = sld [smem:[#allocation6_spill]] }
   0x7   :  { %24272 = sst [smem:[#allocation8_spill]] %s24178_s17  ;;  %s24292_s1 = sld [smem:[#allocation7_spill]] }
   0x8   :  { %24273 = sst [smem:[#allocation9_spill]] %s24179_s9  ;;  %v124_v2 = vld [vmem:[%s24287_s24] sm:$0xff]  ;;  %v125_v3 = vld [vmem:[%s24287_s24 + $0x8] sm:$0xff]  ;;  %v126_v4 = vld [vmem:[%s24287_s24 + $0x10] sm:$0xff]  ;;  %s24293_s27 = sld [smem:[#allocation8_spill]] }
   0x9   :  { %24274 = sst [smem:[#allocation10_spill]] %s24181_s11  ;;  %v19998_v7 = vpack.c.bf16 %v125_v3, %v124_v2  ;;  %v127_v8 = vld [vmem:[%s24287_s24 + $0x18] sm:$0xff]  ;;  %v128_v12 = vld [vmem:[%s24287_s24 + $0x20] sm:$0xff]  ;;  %v129_v13 = vld [vmem:[%s24287_s24 + $0x28] sm:$0xff]  ;;  %s24294_s3 = sld [smem:[#allocation9_spill]] }
   0xa   :  { %24275 = sst [smem:[#allocation11_spill]] %s24182_s12  ;;  %v20001_v11 = vpack.c.bf16 %v127_v8, %v126_v4  ;;  %v20004_v16 = vpack.c.bf16 %v129_v13, %v128_v12  ;;  %v130_v20 = vld [vmem:[%s24287_s24 + $0x30] sm:$0xff]  ;;  %v131_v21 = vld [vmem:[%s24287_s24 + $0x38] sm:$0xff]  ;;  %v132_v31 = vld [vmem:[%s24287_s24 + $0x40] sm:$0xff]  ;;  %s24219_s16 = smov 56  }
   0xb   :  { %24276 = sst [smem:[#allocation12_spill]] %s24184_s19  ;;  %19999 = vmatpush1.bf16.msra.mxu0 %v19998_v7  ;;  %v18477_v15 = vld.sshfl [vmem:[%s24288_s8] sm:$0x5f pattern:$0x75316420]  ;;  %v20007_v28 = vpack.c.bf16 %v131_v21, %v130_v20  ;;  %v133_v32 = vld [vmem:[%s24287_s24 + $0x48] sm:$0xff] }
   0xc   :  { %24277 = sst [smem:[#allocation13_spill]] %s24186_s13  ;;  %20000 = vmatprep.subr.bf16.mxu0 %v20529_v1  ;;  %v18478_v17 = vld.sshfl [vmem:[%s24288_s8 + $0x8] sm:$0x5f pattern:$0x75316420]  ;;  %v85_v18 = vcombine.high %v18477_v15, %v18477_v15  ;;  %v92_v19 = vrot.slane %v18477_v15, %v20691_v14  ;;  %v20010_v37 = vpack.c.bf16 %v133_v32, %v132_v31  ;;  %v134_v39 = vld [vmem:[%s24287_s24 + $0x50] sm:$0xff] }
   0xd   :  { %24278 = sst [smem:[#allocation14_spill]] %s24187_s15  ;;  %v108_v22 = vcombine.high %v18478_v17, %v18478_v17  ;;  %v115_v23 = vrot.slane %v18478_v17, %v20691_v14  ;;  %v135_v40 = vld [vmem:[%s24287_s24 + $0x58] sm:$0xff]  ;;  %v136_v45 = vld [vmem:[%s24287_s24 + $0x60] sm:$0xff]  ;;  %v137_v46 = vld [vmem:[%s24287_s24 + $0x68] sm:$0xff]  ;;  %s24223_s8 = smov 88  }
   0xe   :  { %24279 = sst [smem:[#allocation15_spill]] %s24188_s4  ;;  %v99_v24 = vrot.slane %v85_v18, %v20691_v14  ;;  %v100_v25 = vcombine.high %v92_v19, %v92_v19  ;;  %v20013_v44 = vpack.c.bf16 %v135_v40, %v134_v39  ;;  %v20016_v48 = vpack.c.bf16 %v137_v46, %v136_v45  ;;  %v138_v49 = vld [vmem:[%s24287_s24 + $0x70] sm:$0xff]  ;;  %v139_v50 = vld [vmem:[%s24287_s24 + $0x78] sm:$0xff]  ;;  %v140_v52 = vld [vmem:[%s24287_s24 + $0x80] sm:$0xff]  ;;  %s24215_s17 = smov 112  }
   0xf   :  { %24280 = sst [smem:[#allocation16_spill]] %s24189_s6  ;;  %20002 = vmatpush1.bf16.msra.mxu0 %v20001_v11  ;;  %v122_v26 = vrot.slane %v108_v22, %v20691_v14  ;;  %v123_v27 = vcombine.high %v115_v23, %v115_v23  ;;  %v20019_v51 = vpack.c.bf16 %v139_v50, %v138_v49  ;;  %v141_v53 = vld [vmem:[%s24287_s24 + $0x88] sm:$0xff]  ;;  %v142_v56 = vld [vmem:[%s24287_s24 + $0x90] sm:$0xff]  ;;  %v143_v57 = vld [vmem:[%s24287_s24 + $0x98] sm:$0xff]  ;;  %s24290_s24 = sld [smem:[#allocation5_spill]]  ;;  %v20819_v40 = vsub.s32 0, %v20681_v9 }
  0x10   :  { %24281 = sst [smem:[#allocation17_spill]] %s24190_s5  ;;  %20003 = vmatprep.subr.bf16.mxu0 %v20529_v1  ;;  %v151_v29 = vcombine.low %v92_v19, %v99_v24  ;;  %v152_v30 = vcombine.low %v100_v25, %v115_v23  ;;  %v20022_v55 = vpack.c.bf16 %v141_v53, %v140_v52  ;;  %v20025_v60 = vpack.c.bf16 %v143_v57, %v142_v56  ;;  %v20528_v62 = vld.sshfl [vmem:[%s24289_s26] sm:$0x13 pattern:$0x75316420]  ;;  %s24205_s9 = smov 72  }
  0x11   :  { %24282 = sst [smem:[#allocation18_spill]] %s24191_s7  ;;  %v153_v33 = vcombine.low %v122_v26, %v123_v27  ;;  %v344_v3 = vcombine.high %v20528_v62, %v20528_v62  ;;  %v351_v5 = vrot.slane %v20528_v62, %v20691_v14  ;;  %v20831_v45 = vsub.s32 4, %v20681_v9  ;;  %s24203_s29 = smov 104  }
  0x12   :  { %24283 = sst [smem:[#allocation19_spill]] %s24192_s20  ;;  %v160_v34 = vrot.slane %v151_v29, %v20691_v14  ;;  %v167_v35 = vrot.slane %v152_v30, %v20691_v14  ;;  %v20834_v46 = vsub.s32 5, %v20681_v9  ;;  %s24315_s20 = smov 16  }
  0x13   :  { %24284 = sst [smem:[#allocation20_spill]] %s24193_s22  ;;  %20005 = vmatpush1.bf16.msra.mxu0 %v20004_v16  ;;  %v174_v36 = vrot.slane %v153_v33, %v20691_v14  ;;  %v358_v12 = vrot.slane %v344_v3, %v20691_v14  ;;  %v359_v13 = vcombine.high %v351_v5, %v351_v5  ;;  %s24317_s22 = sld [smem:[#allocation13_spill]] }
  0x14   :  { %24285 = sst [smem:[#allocation21_spill]] %s24194_s21  ;;  %20006 = vmatprep.subr.bf16.mxu0 %v20529_v1  ;;  %v176_v38 = vcombine.high %v160_v34, %v167_v35  ;;  %v175_v54 = vcombine.low %v160_v34, %v167_v35  ;;  %s24306_s21 = smov 16  }
  0x15   :  { %24286 = sst [smem:[#allocation22_spill]] %s24195_s23  ;;  %v177_v41 = vcombine.high %v174_v36, %v174_v36  ;;  %v198_v59 = vrot.slane %v174_v36, %v20691_v14  ;;  %v18479_v63 = vld [vmem:[%s24290_s24] ss:$0 sm:$0xff]  ;;  %s24207_s24 = smov 48  }
  0x16   :  { %v191_v42 = vrot.slane %v176_v38, %v20691_v14  ;;  %v184_v58 = vrot.slane %v175_v54, %v20691_v14  ;;  %s24305_s23 = smov 8  }
  0x17   :  { %20008 = vmatpush1.bf16.msra.mxu0 %v20007_v28  ;;  %v205_v43 = vrot.slane %v177_v41, %v20691_v14  ;;  %v20822_v41 = vsub.s32 1, %v20681_v9 }
  0x18   :  { %20009 = vmatprep.subr.bf16.mxu0 %v20529_v1  ;;  %v206_v61 = vcombine.low %v184_v58, %v198_v59 }
  0x19   :  { %v207_v47 = vcombine.low %v191_v42, %v205_v43  ;;  %v20825_v42 = vsub.s32 2, %v20681_v9  ;;  %v20828_v43 = vsub.s32 3, %v20681_v9 }
  0x1b   :  { %20011 = vmatpush1.bf16.msra.mxu0 %v20010_v37  ;;  %18480 = vmatprep.mubr.msk.f32.mxu0 %vm209_vm0, %v207_v47 }
  0x1c   :  { %20012 = vmatprep.subr.bf16.mxu0 %v20529_v1 }
  0x1f   :  { %20014 = vmatpush1.bf16.msra.mxu0 %v20013_v44 }
  0x20   :  { %20015 = vmatprep.subr.bf16.mxu0 %v20529_v1 }
  0x23   :  { %20017 = vmatpush1.bf16.msra.mxu0 %v20016_v48 }
  0x24   :  { %20018 = vmatprep.subr.bf16.mxu0 %v20529_v1 }
  0x27   :  { %20020 = vmatpush1.bf16.msra.mxu0 %v20019_v51 }
  0x28   :  { %20021 = vmatprep.subr.bf16.mxu0 %v20529_v1 }
  0x2b   :  { %20023 = vmatpush1.bf16.msra.mxu0 %v20022_v55 }
  0x2c   :  { %20024 = vmatprep.subr.bf16.mxu0 %v20529_v1 }
  0x2f   :  { %20026 = vmatpush1.bf16.msra.mxu0 %v20025_v60 }
  0x30   :  { %20027 = vmatprep.subr.bf16.mxu0 %v20529_v1 }
  0x32   :  { %277 = vmatmul.mubr.f32.vlgmr.msra.gmra.mrb[0].mxu0 %v206_v61 }
 0x105   :  { %v278_v0 = vpop.f32.mrb[0].mxu0 }
 0x106   :  { %v279_v2 = vadd.f32 %v18479_v63, %v278_v0  ;;  %v280_v4 = vpop.f32.mrb[1].mxu0 }
 0x108   :  { %v283_v6 = vcombine.high %v279_v2, %v279_v2  ;;  %v290_v7 = vrot.slane %v279_v2, %v20691_v14 }
 0x10a   :  { %v297_v8 = vrot.slane %v283_v6, %v20691_v14  ;;  %v298_v10 = vcombine.high %v290_v7, %v290_v7  ;;  %v306_v11 = vrot.slane %v290_v7, %v20691_v14 }
 0x10c   :  { %v299_v15 = vcombine.high %v297_v8, %v297_v8  ;;  %v20774_v16 = vrot.slane %v297_v8, %v20691_v14  ;;  %v20777_v17 = vrot.slane %v298_v10, %v20691_v14  ;;  %v20779_v18 = vcombine.high %v306_v11, %v306_v11 }
 0x10d   :  { %v20786_v21 = vadd.f32 %v351_v5, %v306_v11 }
 0x10e   :  { %v20782_v19 = vrot.slane %v299_v15, %v20691_v14  ;;  %v329_v20 = vcombine.high %v20777_v17, %v20777_v17  ;;  %v20789_v22 = vadd.f32 %v358_v12, %v20777_v17  ;;  %v20792_v23 = vadd.f32 %v359_v13, %v20779_v18 }
 0x10f   :  { %v20795_v24 = vadd.f32 %v358_v12, %v20774_v16  ;;  %v6024_v25 = vcombine.low %v20777_v17, %v20779_v18 }
 0x110   :  { %v20799_v26 = vadd.f32 %v351_v5, %v329_v20  ;;  %v20802_v27 = vadd.f32 %v359_v13, %v20782_v19  ;;  %v6039_v28 = vcombine.low %v20774_v16, %v20782_v19  ;;  %v377_v29 = vcombine.low %v20786_v21, %v20789_v22  ;;  %v685_v20 = vld [vmem:[%s24291_s28] sm:$0xff] }
 0x111   :  { %v20526_v16 = vld [vmem:[%s24289_s26] sm:$0x7]  ;;  %s24316_s26 = sld [smem:[#allocation11_spill]] }
 0x112   :  { %v378_v30 = vcombine.low %v20792_v23, %v20799_v26  ;;  %v379_v31 = vcombine.low %v20795_v24, %v20802_v27  ;;  %v386_v32 = vrot.slane %v377_v29, %v20691_v14  ;;  %v686_v29 = vld [vmem:[%s24291_s28 + $0x8] sm:$0xff] }
 0x114   :  { %v393_v33 = vrot.slane %v378_v30, %v20691_v14  ;;  %v400_v34 = vrot.slane %v379_v31, %v20691_v14  ;;  %v687_v30 = vld [vmem:[%s24291_s28 + $0x10] sm:$0xff]  ;;  %v20532_v31 = vmov 0.0  }
 0x115   :  { %19191 = vmatprep.mubr.msk.f32.mxu0 %vm20531_vm2, %v20532_v31  ;;  %19194 = vmatprep.subr.mxu1 %v20532_v31 }
 0x116   :  { %v401_v35 = vcombine.low %v386_v32, %v393_v33  ;;  %v415_v37 = vrot.slane %v400_v34, %v20691_v14  ;;  %v20028_v32 = vpack.c.bf16 %v686_v29, %v685_v20  ;;  %v688_v33 = vld [vmem:[%s24291_s28 + $0x18] sm:$0xff]  ;;  %19196 = vmatprep.mubr.msk.f32.mxu1 %vm20531_vm2, %v20532_v31 }
 0x117   :  { %v20031_v34 = vpack.c.bf16 %v688_v33, %v687_v30 }
 0x118   :  { %v408_v36 = vrot.slane %v401_v35, %v20691_v14  ;;  %20029 = vmatpush3.bf16.msra.mxu0 %v20028_v32 }
 0x119   :  { %20030 = vmatprep.subr.bf16.mxu0 %v20529_v1 }
 0x11a   :  { %v416_v38 = vcombine.low %v408_v36, %v415_v37  ;;  %v18481_v36 = vld [vmem:[%s24292_s1] ss:$0 sm:$0xff] }
 0x11c   :  { %v419_v39 = vsel %vm418_vm1, %v416_v38, 0.0  ;;  %20032 = vmatpush3.bf16.msra.mxu0 %v20031_v34  ;;  %v18482_v38 = vld [vmem:[%s24293_s27] ss:$0 sm:$0xff] }
 0x11d   :  { %420 = vadd.xlane.f32.xlu0 %v419_v39  ;;  %19234 = vmatprep.subr.mxu0 %v20532_v31 }
 0x1aa   :  { %v421_v44 = vpop.xlane.xlu0 %420 }
 0x1ab   :  { %v423_v47 = vmul.f32 0.03125, %v421_v44  ;;  %v562_v44 = vcombine.high %v18481_v36, %v18481_v36 }
 0x1ad   :  { %v428_v48 = vrot.slane %v423_v47, %v20819_v40  ;;  %v432_v49 = vrot.slane %v423_v47, %v20822_v41  ;;  %v436_v50 = vrot.slane %v423_v47, %v20825_v42  ;;  %v440_v51 = vrot.slane %v423_v47, %v20828_v43 }
 0x1ae   :  { %v444_v52 = vrot.slane %v423_v47, %v20831_v45  ;;  %v448_v53 = vrot.slane %v423_v47, %v20834_v46  ;;  %v569_v47 = vrot.slane %v18481_v36, %v20691_v14 }
 0x1af   :  { %v20843_v54 = vsub.f32 %v20786_v21, %v428_v48  ;;  %v20846_v55 = vsub.f32 %v20789_v22, %v432_v49  ;;  %v20849_v56 = vsub.f32 %v20792_v23, %v436_v50  ;;  %v20852_v57 = vsub.f32 %v20799_v26, %v440_v51 }
 0x1b0   :  { %v20855_v58 = vsub.f32 %v20795_v24, %v444_v52  ;;  %v20858_v59 = vsub.f32 %v20802_v27, %v448_v53  ;;  %v633_v48 = vrot.slane %v18482_v38, %v20691_v14  ;;  %v576_v49 = vrot.slane %v562_v44, %v20691_v14 }
 0x1b1   :  { %v461_v60 = vmul.f32 %v20843_v54, %v20843_v54  ;;  %v462_v61 = vmul.f32 %v20846_v55, %v20846_v55  ;;  %v463_v62 = vmul.f32 %v20849_v56, %v20849_v56  ;;  %v464_v63 = vmul.f32 %v20852_v57, %v20852_v57 }
 0x1b2   :  { %v465_v0 = vmul.f32 %v20855_v58, %v20855_v58  ;;  %v466_v2 = vmul.f32 %v20858_v59, %v20858_v59  ;;  %v577_v50 = vcombine.high %v569_v47, %v569_v47  ;;  %v626_v51 = vcombine.high %v18482_v38, %v18482_v38 }
 0x1b3   :  { %v473_v3 = vcombine.low %v461_v60, %v462_v61  ;;  %v474_v4 = vcombine.low %v463_v62, %v464_v63  ;;  %v641_v52 = vcombine.high %v633_v48, %v633_v48  ;;  %v578_v53 = vcombine.high %v576_v49, %v576_v49 }
 0x1b4   :  { %v475_v5 = vcombine.low %v465_v0, %v466_v2  ;;  %v585_v60 = vrot.slane %v569_v47, %v20691_v14  ;;  %v599_v61 = vrot.slane %v577_v50, %v20691_v14  ;;  %v640_v62 = vrot.slane %v626_v51, %v20691_v14 }
 0x1b5   :  { %v482_v6 = vrot.slane %v473_v3, %v20691_v14  ;;  %v489_v7 = vrot.slane %v474_v4, %v20691_v14  ;;  %v649_v63 = vrot.slane %v633_v48, %v20691_v14  ;;  %v663_v0 = vrot.slane %v641_v52, %v20691_v14 }
 0x1b6   :  { %v496_v8 = vrot.slane %v475_v5, %v20691_v14  ;;  %v592_v2 = vrot.slane %v576_v49, %v20691_v14  ;;  %v606_v4 = vrot.slane %v578_v53, %v20691_v14  ;;  %v607_v5 = vcombine.high %v585_v60, %v585_v60 }
 0x1b7   :  { %v497_v10 = vcombine.low %v482_v6, %v489_v7  ;;  %v608_v6 = vcombine.high %v599_v61, %v599_v61  ;;  %v642_v7 = vcombine.high %v640_v62, %v640_v62  ;;  %v671_v20 = vcombine.high %v649_v63, %v649_v63 }
 0x1b8   :  { %v511_v12 = vrot.slane %v496_v8, %v20691_v14  ;;  %v672_v29 = vcombine.high %v663_v0, %v663_v0 }
 0x1b9   :  { %v504_v11 = vrot.slane %v497_v10, %v20691_v14  ;;  %v670_v38 = vrot.slane %v642_v7, %v20691_v14 }
 0x1bb   :  { %v512_v13 = vcombine.low %v504_v11, %v511_v12 }
 0x1bd   :  { %v514_v15 = vsel %vm418_vm1, %v512_v13, 0.0 }
 0x1be   :  { %515 = vadd.xlane.f32.xlu0 %v514_v15 }
 0x24b   :  { %v516_v35 = vpop.xlane.xlu0 %515 }
 0x24c   :  { %v517_v37 = vmul.f32 0.03125, %v516_v35 }
 0x24e   :  { %v518_v39 = vadd.f32 1e-05, %v517_v37  ;;  %v656_v37 = vrot.slane %v640_v62, %v20691_v14 }
 0x250   :  { %20302 = vrsqrt.f32 %v518_v39 }
 0x25a   :  { %v20303_v3 = vpop.eup %20302 }
 0x25b   :  { %v524_v8 = vrot.slane %v20303_v3, %v20819_v40  ;;  %v528_v10 = vrot.slane %v20303_v3, %v20822_v41  ;;  %v532_v11 = vrot.slane %v20303_v3, %v20825_v42  ;;  %v536_v12 = vrot.slane %v20303_v3, %v20828_v43 }
 0x25c   :  { %v540_v13 = vrot.slane %v20303_v3, %v20831_v45  ;;  %v544_v15 = vrot.slane %v20303_v3, %v20834_v46 }
 0x25d   :  { %v551_v30 = vmul.f32 %v524_v8, %v20843_v54  ;;  %v552_v32 = vmul.f32 %v528_v10, %v20846_v55  ;;  %v553_v33 = vmul.f32 %v532_v11, %v20849_v56  ;;  %v554_v34 = vmul.f32 %v536_v12, %v20852_v57 }
 0x25e   :  { %v555_v35 = vmul.f32 %v540_v13, %v20855_v58  ;;  %v556_v36 = vmul.f32 %v544_v15, %v20858_v59 }
 0x25f   :  { %v615_v39 = vmul.f32 %v585_v60, %v551_v30  ;;  %v616_v44 = vmul.f32 %v599_v61, %v552_v32  ;;  %v617_v47 = vmul.f32 %v607_v5, %v553_v33  ;;  %v618_v48 = vmul.f32 %v608_v6, %v554_v34 }
 0x260   :  { %v619_v49 = vmul.f32 %v592_v2, %v555_v35  ;;  %v620_v54 = vmul.f32 %v606_v4, %v556_v36 }
 0x261   :  { %v679_v50 = vadd.f32 %v649_v63, %v615_v39  ;;  %v680_v55 = vadd.f32 %v663_v0, %v616_v44  ;;  %v681_v51 = vadd.f32 %v671_v20, %v617_v47  ;;  %v682_v56 = vadd.f32 %v672_v29, %v618_v48  ;;  %v18483_v0 = vld [vmem:[%s24294_s3] ss:$0 sm:$0xff] }
 0x262   :  { %v683_v52 = vadd.f32 %v656_v37, %v619_v49  ;;  %v684_v57 = vadd.f32 %v670_v38, %v620_v54 }
 0x263   :  { %v702_v53 = vcombine.low %v679_v50, %v680_v55  ;;  %v703_v58 = vcombine.low %v681_v51, %v682_v56 }
 0x264   :  { %v704_v3 = vcombine.low %v683_v52, %v684_v57 }
 0x265   :  { %v711_v59 = vrot.slane %v702_v53, %v20691_v14  ;;  %v718_v62 = vrot.slane %v703_v58, %v20691_v14 }
 0x266   :  { %v725_v60 = vrot.slane %v704_v3, %v20691_v14 }
 0x267   :  { %v726_v61 = vcombine.low %v711_v59, %v718_v62 }
 0x268   :  { %v740_v2 = vrot.slane %v725_v60, %v20691_v14 }
 0x269   :  { %v733_v5 = vrot.slane %v726_v61, %v20691_v14 }
 0x26b   :  { %v741_v63 = vcombine.low %v733_v5, %v740_v2 }
 0x26d   :  { %19192 = vmatmul.mubr.msk.f32.vlgmr.msra.gmra.mrb[2].mxu0 %vm209_vm0, %v741_v63 }
 0x26e   :  { %19236 = vmatprep.mubr.msk.f32.mxu0 %vm20531_vm2, %v20532_v31 }
 0x340   :  { %v810_v4 = vpop.f32.mrb[2].mxu0 }
 0x341   :  { %v811_v6 = vadd.f32 %v18483_v0, %v810_v4  ;;  %v19193_v7 = vpop.f32.mrb[3].mxu0 }
 0x343   :  { %v815_v8 = vcombine.high %v811_v6, %v811_v6  ;;  %v822_v10 = vrot.slane %v811_v6, %v20691_v14 }
 0x345   :  { %v829_v11 = vrot.slane %v815_v8, %v20691_v14  ;;  %v830_v12 = vcombine.high %v822_v10, %v822_v10  ;;  %v838_v13 = vrot.slane %v822_v10, %v20691_v14 }
 0x347   :  { %v831_v15 = vcombine.high %v829_v11, %v829_v11  ;;  %v852_v20 = vrot.slane %v830_v12, %v20691_v14  ;;  %v860_v29 = vcombine.high %v838_v13, %v838_v13  ;;  %v845_v30 = vrot.slane %v829_v11, %v20691_v14 }
 0x349   :  { %v859_v32 = vrot.slane %v831_v15, %v20691_v14  ;;  %v861_v33 = vcombine.high %v852_v20, %v852_v20  ;;  %v862_v34 = vcombine.low %v838_v13, %v852_v20  ;;  %v876_v36 = vrot.slane %v860_v29, %v20691_v14 }
 0x34b   :  { %v869_v35 = vrot.slane %v862_v34, %v20691_v14  ;;  %v962_v37 = vcombine.low %v861_v33, %v845_v30  ;;  %v976_v44 = vrot.slane %v859_v32, %v20691_v14 }
 0x34d   :  { %v877_v38 = vcombine.low %v869_v35, %v876_v36  ;;  %v969_v39 = vrot.slane %v962_v37, %v20691_v14 }
 0x34f   :  { %v20949_v47 = vrot.slane %v877_v38, %v20691_v14  ;;  %v977_v48 = vcombine.low %v969_v39, %v976_v44 }
 0x351   :  { %885 = vrot.lane.b32.xlu1 %v20949_v47, %s24227_s2  ;;  %v20954_v49 = vrot.slane %v977_v48, %v20691_v14 }
 0x355   :  { %985 = vrot.lane.b32.xlu1 %v20954_v49, %s24227_s2 }
 0x3c3   :  { %v886_v54 = vpop.permute.xlu1 %885 }
 0x3c4   :  { %19195 = vmatpush3.xpose.msk.msra.mxu1 %vm887_vm3, %v886_v54 }
 0x3c5   :  { %19199 = vmatprep.subr.mxu1 %v20532_v31 }
 0x3c7   :  { %19197 = vmatmul.mubr.msk.f32.vlgmr.msra.gmra.mrb[0].mxu1 %vm887_vm3, %v20949_v47  ;;  %v986_v50 = vpop.permute.xlu1 %985 }
 0x3c8   :  { %19200 = vmatpush3.xpose.msk.msra.mxu1 %vm887_vm3, %v986_v50  ;;  %19201 = vmatprep.mubr.msk.f32.mxu1 %vm20531_vm2, %v20532_v31 }
 0x3c9   :  { %19204 = vmatprep.subr.mxu1 %v20532_v31 }
 0x3cb   :  { %19202 = vmatmul.mubr.msk.f32.vlgmr.msra.gmra.mrb[2].mxu1 %vm887_vm3, %v20954_v49 }
 0x3cc   :  { %19206 = vmatprep.mubr.msk.f32.mxu1 %vm20531_vm2, %v20532_v31 }
 0x49a   :  { %v958_v55 = vpop.f32.mrb[0].mxu1 }
 0x49b   :  { %v1061_v51 = vmul.f32 0.35355338, %v958_v55  ;;  %v19198_v56 = vpop.f32.mrb[1].mxu1 }
 0x49d   :  { %v1064_v52 = vsel %vm1063_vm4, %v1061_v51, -inf }
 0x49e   :  { %1065 = vmax.xlane.f32.xlu0 %v1064_v52  ;;  %v1057_v57 = vpop.f32.mrb[2].mxu1 }
 0x49f   :  { %v1062_v53 = vmul.f32 0.35355338, %v1057_v57  ;;  %v19203_v58 = vpop.f32.mrb[3].mxu1 }
 0x4a1   :  { %v1067_v3 = vsel %vm1063_vm4, %v1062_v53, -inf }
 0x4a2   :  { %1068 = vmax.xlane.f32.xlu1 %v1067_v3 }
 0x4b3   :  { %1244 = vrot.lane.b32.xlu1 %v20949_v47, %s24223_s8 }
 0x4b4   :  { %1086 = vrot.lane.b32.xlu0 %v20949_v47, %s24225_s30 }
 0x4b8   :  { %1165 = vrot.lane.b32.xlu0 %v20954_v49, %s24225_s30  ;;  %s24296_s30 = smov 88  }
 0x52b   :  { %v1066_v59 = vpop.xlane.xlu0 %1065 }
 0x52c   :  { %v1070_v62 = vsub.f32 %v1061_v51, %v1066_v59 }
 0x52e   :  { %v1072_v60 = vmul.f32 1.442695, %v1070_v62 }
 0x52f   :  { %v1087_v61 = vpop.permute.xlu0 %1086  ;;  %v1069_v5 = vpop.xlane.xlu1 %1068 }
 0x530   :  { %20304 = vpow2.f32 %v1072_v60  ;;  %v1071_v2 = vsub.f32 %v1062_v53, %v1069_v5  ;;  %19205 = vmatpush3.msk.msra.mxu1 %vm1092_vm5, %v1087_v61 }
 0x531   :  { %19209 = vmatprep.subr.mxu1 %v20532_v31 }
 0x532   :  { %v1074_v63 = vmul.f32 1.442695, %v1071_v2 }
 0x533   :  { %v1166_v8 = vpop.permute.xlu0 %1165  ;;  %v1245_v30 = vpop.permute.xlu1 %1244 }
 0x534   :  { %20306 = vpow2.f32 %v1074_v63 }
 0x53a   :  { %v20305_v0 = vpop.eup %20304 }
 0x53b   :  { %v1076_v4 = vsel %vm1063_vm4, %v20305_v0, 0.0 }
 0x53c   :  { %1077 = vadd.xlane.f32.xlu0 %v1076_v4 }
 0x53e   :  { %v20307_v6 = vpop.eup %20306 }
 0x53f   :  { %v1079_v7 = vsel %vm1063_vm4, %v20307_v6, 0.0 }
 0x540   :  { %1080 = vadd.xlane.f32.xlu0 %v1079_v7 }
 0x556   :  { %1242 = vrot.lane.b32.xlu0 %v20949_v47, %s24221_s25 }
 0x55a   :  { %1322 = vrot.lane.b32.xlu0 %v20954_v49, %s24223_s8  ;;  %s24295_s8 = smov 64  }
 0x55e   :  { %1320 = vrot.lane.b32.xlu0 %v20954_v49, %s24221_s25  ;;  %s24297_s25 = smov 120  }
 0x5c9   :  { %v1078_v10 = vpop.xlane.xlu0 %1077 }
 0x5ca   :  { %20308 = vrcp.f32 %v1078_v10 }
 0x5cd   :  { %v1081_v11 = vpop.xlane.xlu0 %1080 }
 0x5ce   :  { %20310 = vrcp.f32 %v1081_v11 }
 0x5d1   :  { %v1243_v20 = vpop.permute.xlu0 %1242 }
 0x5d4   :  { %v20309_v12 = vpop.eup %20308 }
 0x5d5   :  { %v1083_v13 = vmul.f32 %v20309_v12, %v20305_v0  ;;  %v1323_v32 = vpop.permute.xlu0 %1322 }
 0x5d7   :  { %19207 = vmatmul.mubr.msk.f32.vlgmr.msra.gmra.mrb[4].mxu1 %vm1088_vm6, %v1083_v13 }
 0x5d8   :  { %v20311_v15 = vpop.eup %20310  ;;  %19210 = vmatpush3.msk.msra.mxu1 %vm1092_vm5, %v1166_v8  ;;  %19211 = vmatprep.mubr.msk.f32.mxu1 %vm20531_vm2, %v20532_v31 }
 0x5d9   :  { %v1085_v29 = vmul.f32 %v20311_v15, %v20307_v6  ;;  %19214 = vmatprep.subr.mxu1 %v20532_v31  ;;  %v1321_v33 = vpop.permute.xlu0 %1320 }
 0x5db   :  { %19212 = vmatmul.mubr.msk.f32.vlgmr.msra.gmra.mrb[6].mxu1 %vm1088_vm6, %v1085_v29 }
 0x5dc   :  { %19216 = vmatprep.mubr.msk.f32.mxu1 %vm20531_vm2, %v20532_v31 }
 0x5df   :  { %19215 = vmatpush3.xpose.msk.msra.mxu1 %vm887_vm3, %v1245_v30 }
 0x5e0   :  { %19219 = vmatprep.subr.mxu1 %v20532_v31 }
 0x5e2   :  { %19217 = vmatmul.mubr.msk.f32.vlgmr.msra.gmra.mrb[8].mxu1 %vm887_vm3, %v1243_v20 }
 0x5e3   :  { %19220 = vmatpush3.xpose.msk.msra.mxu1 %vm887_vm3, %v1323_v32  ;;  %19221 = vmatprep.mubr.msk.f32.mxu1 %vm20531_vm2, %v20532_v31 }
 0x5e4   :  { %19224 = vmatprep.subr.mxu1 %v20532_v31 }
 0x5e6   :  { %19222 = vmatmul.mubr.msk.f32.vlgmr.msra.gmra.mrb[10].mxu1 %vm887_vm3, %v1321_v33 }
 0x5e7   :  { %19226 = vmatprep.mubr.msk.f32.mxu1 %vm20531_vm2, %v20532_v31 }
 0x6aa   :  { %v21006_v34 = vpop.f32.mrb[4].mxu1 }
 0x6ab   :  { %v19208_v35 = vpop.f32.mrb[5].mxu1 }
 0x6ae   :  { %v21008_v36 = vpop.f32.mrb[6].mxu1 }
 0x6af   :  { %v19213_v37 = vpop.f32.mrb[7].mxu1 }
 0x6b5   :  { %v1316_v38 = vpop.f32.mrb[8].mxu1 }
 0x6b6   :  { %v1398_v39 = vmul.f32 0.35355338, %v1316_v38  ;;  %v19218_v44 = vpop.f32.mrb[9].mxu1 }
 0x6b8   :  { %v1400_v48 = vsel %vm1063_vm4, %v1398_v39, -inf }
 0x6b9   :  { %1401 = vmax.xlane.f32.xlu0 %v1400_v48  ;;  %v1394_v54 = vpop.f32.mrb[10].mxu1 }
 0x6ba   :  { %v1399_v50 = vmul.f32 0.35355338, %v1394_v54  ;;  %v19223_v55 = vpop.f32.mrb[11].mxu1 }
 0x6bc   :  { %v1403_v51 = vsel %vm1063_vm4, %v1399_v50, -inf }
 0x6bd   :  { %1404 = vmax.xlane.f32.xlu1 %v1403_v51 }
 0x6ce   :  { %1499 = vrot.lane.b32.xlu1 %v20954_v49, %s24219_s16 }
 0x6cf   :  { %1422 = vrot.lane.b32.xlu0 %v20949_v47, %s24219_s16  ;;  %s24298_s16 = smov 56  }
 0x6d2   :  { %1578 = vrot.lane.b32.xlu1 %v20949_v47, %s24217_s0 }
 0x6d6   :  { %1656 = vrot.lane.b32.xlu1 %v20954_v49, %s24217_s0  ;;  %s24299_s0 = smov 80  }
 0x6da   :  { %1654 = vrot.lane.b32.xlu1 %v20954_v49, %s24215_s17 }
 0x746   :  { %v1402_v56 = vpop.xlane.xlu0 %1401 }
 0x747   :  { %v1406_v52 = vsub.f32 %v1398_v39, %v1402_v56 }
 0x749   :  { %v1408_v57 = vmul.f32 1.442695, %v1406_v52 }
 0x74a   :  { %v1423_v53 = vpop.permute.xlu0 %1422  ;;  %v1405_v58 = vpop.xlane.xlu1 %1404 }
 0x74b   :  { %20312 = vpow2.f32 %v1408_v57  ;;  %v1407_v3 = vsub.f32 %v1399_v50, %v1405_v58  ;;  %19225 = vmatpush3.msk.msra.mxu1 %vm1092_vm5, %v1423_v53 }
 0x74c   :  { %19229 = vmatprep.subr.mxu1 %v20532_v31 }
 0x74d   :  { %v1410_v59 = vmul.f32 1.442695, %v1407_v3 }
 0x74e   :  { %v1500_v62 = vpop.permute.xlu1 %1499 }
 0x74f   :  { %20314 = vpow2.f32 %v1410_v59 }
 0x752   :  { %v1579_v60 = vpop.permute.xlu1 %1578 }
 0x753   :  { %19235 = vmatpush3.xpose.msk.msra.mxu0 %vm887_vm3, %v1579_v60 }
 0x754   :  { %19244 = vmatprep.subr.mxu0 %v20532_v31 }
 0x755   :  { %v20313_v61 = vpop.eup %20312 }
 0x756   :  { %v1412_v5 = vsel %vm1063_vm4, %v20313_v61, 0.0  ;;  %v1657_v12 = vpop.permute.xlu1 %1656 }
 0x757   :  { %1413 = vadd.xlane.f32.xlu0 %v1412_v5 }
 0x759   :  { %v20315_v2 = vpop.eup %20314 }
 0x75a   :  { %v1415_v63 = vsel %vm1063_vm4, %v20315_v2, 0.0  ;;  %v1655_v13 = vpop.permute.xlu1 %1654 }
 0x75b   :  { %1416 = vadd.xlane.f32.xlu0 %v1415_v63 }
 0x771   :  { %1576 = vrot.lane.b32.xlu0 %v20949_v47, %s24215_s17  ;;  %s24300_s17 = smov 112  }
 0x7e4   :  { %v1414_v0 = vpop.xlane.xlu0 %1413 }
 0x7e5   :  { %20316 = vrcp.f32 %v1414_v0 }
 0x7e8   :  { %v1417_v4 = vpop.xlane.xlu0 %1416 }
 0x7e9   :  { %20318 = vrcp.f32 %v1417_v4 }
 0x7ec   :  { %v1577_v6 = vpop.permute.xlu0 %1576 }
 0x7ed   :  { %19237 = vmatmul.mubr.msk.f32.vlgmr.msra.gmra.mrb[4].mxu0 %vm887_vm3, %v1577_v6 }
 0x7ee   :  { %19246 = vmatprep.mubr.msk.f32.mxu0 %vm20531_vm2, %v20532_v31 }
 0x7ef   :  { %v20317_v7 = vpop.eup %20316 }
 0x7f0   :  { %v1419_v8 = vmul.f32 %v20317_v7, %v20313_v61 }
 0x7f2   :  { %19227 = vmatmul.mubr.msk.f32.vlgmr.msra.gmra.mrb[12].mxu1 %vm1088_vm6, %v1419_v8 }
 0x7f3   :  { %v20319_v10 = vpop.eup %20318  ;;  %19230 = vmatpush3.msk.msra.mxu1 %vm1092_vm5, %v1500_v62  ;;  %19231 = vmatprep.mubr.msk.f32.mxu1 %vm20531_vm2, %v20532_v31 }
 0x7f4   :  { %v1421_v11 = vmul.f32 %v20319_v10, %v20315_v2  ;;  %19239 = vmatprep.subr.mxu1 %v20532_v31 }
 0x7f6   :  { %19232 = vmatmul.mubr.msk.f32.vlgmr.msra.gmra.mrb[14].mxu1 %vm1088_vm6, %v1421_v11 }
 0x7f7   :  { %19241 = vmatprep.mubr.msk.f32.mxu1 %vm20531_vm2, %v20532_v31 }
 0x7fa   :  { %19240 = vmatpush3.xpose.msk.msra.mxu1 %vm887_vm3, %v1657_v12 }
 0x7fb   :  { %19249 = vmatprep.subr.mxu1 %v20532_v31 }
 0x7fd   :  { %19242 = vmatmul.mubr.msk.f32.vlgmr.msra.gmra.mrb[16].mxu1 %vm887_vm3, %v1655_v13 }
 0x7fe   :  { %19251 = vmatprep.mubr.msk.f32.mxu1 %vm20531_vm2, %v20532_v31 }
 0x8c0   :  { %v1650_v15 = vpop.f32.mrb[4].mxu0 }
 0x8c1   :  { %v1732_v20 = vmul.f32 0.35355338, %v1650_v15  ;;  %v19238_v29 = vpop.f32.mrb[5].mxu0 }
 0x8c3   :  { %v1734_v30 = vsel %vm1063_vm4, %v1732_v20, -inf }
 0x8c4   :  { %1735 = vmax.xlane.f32.xlu0 %v1734_v30 }
 0x8c5   :  { %v21047_v32 = vpop.f32.mrb[12].mxu1 }
 0x8c6   :  { %v19228_v33 = vpop.f32.mrb[13].mxu1 }
 0x8c9   :  { %v21049_v35 = vpop.f32.mrb[14].mxu1 }
 0x8ca   :  { %v19233_v37 = vpop.f32.mrb[15].mxu1 }
 0x8d0   :  { %v1728_v38 = vpop.f32.mrb[16].mxu1 }
 0x8d1   :  { %v1733_v39 = vmul.f32 0.35355338, %v1728_v38  ;;  %v19243_v44 = vpop.f32.mrb[17].mxu1 }
 0x8d3   :  { %v1737_v48 = vsel %vm1063_vm4, %v1733_v39, -inf }
 0x8d4   :  { %1738 = vmax.xlane.f32.xlu1 %v1737_v48 }
 0x8e5   :  { %1833 = vrot.lane.b32.xlu1 %v20954_v49, %s24207_s24 }
 0x8e9   :  { %1912 = vrot.lane.b32.xlu1 %v20949_v47, %s24205_s9 }
 0x8ed   :  { %1990 = vrot.lane.b32.xlu1 %v20954_v49, %s24205_s9  ;;  %s24211_s9 = smov 8  }
 0x8f1   :  { %1988 = vrot.lane.b32.xlu1 %v20954_v49, %s24203_s29 }
 0x951   :  { %v1736_v54 = vpop.xlane.xlu0 %1735 }
 0x952   :  { %v1740_v50 = vsub.f32 %v1732_v20, %v1736_v54 }
 0x954   :  { %v1742_v55 = vmul.f32 1.442695, %v1740_v50 }
 0x956   :  { %20320 = vpow2.f32 %v1742_v55 }
 0x960   :  { %v20321_v51 = vpop.eup %20320 }
 0x961   :  { %v1739_v56 = vpop.xlane.xlu1 %1738  ;;  %v1746_v52 = vsel %vm1063_vm4, %v20321_v51, 0.0 }
 0x962   :  { %1747 = vadd.xlane.f32.xlu0 %v1746_v52  ;;  %v1741_v53 = vsub.f32 %v1733_v39, %v1739_v56 }
 0x964   :  { %v1744_v58 = vmul.f32 1.442695, %v1741_v53 }
 0x965   :  { %v1834_v57 = vpop.permute.xlu1 %1833 }
 0x966   :  { %19250 = vmatpush3.msk.msra.mxu1 %vm1092_vm5, %v1834_v57  ;;  %20322 = vpow2.f32 %v1744_v58 }
 0x967   :  { %19259 = vmatprep.subr.mxu1 %v20532_v31 }
 0x969   :  { %v1913_v2 = vpop.permute.xlu1 %1912 }
 0x96d   :  { %v1991_v6 = vpop.permute.xlu1 %1990 }
 0x970   :  { %v20323_v3 = vpop.eup %20322 }
 0x971   :  { %v1749_v59 = vsel %vm1063_vm4, %v20323_v3, 0.0  ;;  %v1989_v8 = vpop.permute.xlu1 %1988 }
 0x978   :  { %1756 = vrot.lane.b32.xlu0 %v20949_v47, %s24207_s24  ;;  %s24209_s24 = smov 16  }
 0x997   :  { %1750 = vadd.xlane.f32.xlu0 %v1749_v59 }
 0x9ad   :  { %1910 = vrot.lane.b32.xlu0 %v20949_v47, %s24203_s29  ;;  %s24213_s29 = smov 40  }
 0x9ef   :  { %v1748_v62 = vpop.xlane.xlu0 %1747 }
 0x9f0   :  { %20324 = vrcp.f32 %v1748_v62 }
 0x9f3   :  { %v1757_v60 = vpop.permute.xlu0 %1756 }
 0x9f4   :  { %19245 = vmatpush3.msk.msra.mxu0 %vm1092_vm5, %v1757_v60 }
 0x9f5   :  { %19254 = vmatprep.subr.mxu0 %v20532_v31 }
 0x9fa   :  { %v20325_v61 = vpop.eup %20324 }
 0x9fb   :  { %v1753_v5 = vmul.f32 %v20325_v61, %v20321_v51 }
 0x9fd   :  { %19247 = vmatmul.mubr.msk.f32.vlgmr.msra.gmra.mrb[6].mxu0 %vm1088_vm6, %v1753_v5  ;;  %v2324_v5 = vld [vmem:[%s24180_s10] sm:$0xff] }
 0x9fe   :  { %19255 = vmatpush3.xpose.msk.msra.mxu0 %vm887_vm3, %v1913_v2  ;;  %19256 = vmatprep.mubr.msk.f32.mxu0 %vm20531_vm2, %v20532_v31  ;;  %v2325_v2 = vld [vmem:[%s24180_s10 + $0x8] sm:$0xff] }
 0x9ff   :  { %19264 = vmatprep.subr.mxu0 %v20532_v31 }
 0xa24   :  { %v1751_v63 = vpop.xlane.xlu0 %1750 }
 0xa25   :  { %20326 = vrcp.f32 %v1751_v63  ;;  %v20034_v63 = vpack.c.bf16 %v2325_v2, %v2324_v5 }
 0xa28   :  { %v1911_v0 = vpop.permute.xlu0 %1910 }
 0xa29   :  { %19257 = vmatmul.mubr.msk.f32.vlgmr.msra.gmra.mrb[8].mxu0 %vm887_vm3, %v1911_v0  ;;  %v2326_v0 = vld [vmem:[%s24180_s10 + $0x10] sm:$0xff] }
 0xa2a   :  { %19266 = vmatprep.mubr.msk.f32.mxu0 %vm20531_vm2, %v20532_v31 }
 0xa2f   :  { %v20327_v4 = vpop.eup %20326 }
 0xa30   :  { %v1755_v7 = vmul.f32 %v20327_v4, %v20323_v3  ;;  %v2327_v4 = vld [vmem:[%s24180_s10 + $0x18] sm:$0xff] }
 0xa32   :  { %19252 = vmatmul.mubr.msk.f32.vlgmr.msra.gmra.mrb[18].mxu1 %vm1088_vm6, %v1755_v7 }
 0xa33   :  { %19260 = vmatpush3.xpose.msk.msra.mxu1 %vm887_vm3, %v1991_v6  ;;  %19261 = vmatprep.mubr.msk.f32.mxu1 %vm20531_vm2, %v20532_v31  ;;  %v20037_v6 = vpack.c.bf16 %v2327_v4, %v2326_v0 }
 0xa34   :  { %19269 = vmatprep.subr.mxu1 %v20532_v31 }
 0xa36   :  { %19262 = vmatmul.mubr.msk.f32.vlgmr.msra.gmra.mrb[20].mxu1 %vm887_vm3, %v1989_v8 }
 0xa37   :  { %19271 = vmatprep.mubr.msk.f32.mxu1 %vm20531_vm2, %v20532_v31 }
 0xad0   :  { %v1829_v10 = vpop.f32.mrb[6].mxu0 }
 0xad1   :  { %v19248_v11 = vpop.f32.mrb[7].mxu0 }
 0xafc   :  { %v1984_v12 = vpop.f32.mrb[8].mxu0 }
 0xafd   :  { %v2066_v13 = vmul.f32 0.35355338, %v1984_v12  ;;  %v19258_v15 = vpop.f32.mrb[9].mxu0 }
 0xaff   :  { %v2068_v20 = vsel %vm1063_vm4, %v2066_v13, -inf }
 0xb00   :  { %2069 = vmax.xlane.f32.xlu0 %v2068_v20 }
 0xb05   :  { %v1906_v29 = vpop.f32.mrb[18].mxu1 }
 0xb06   :  { %v19253_v30 = vpop.f32.mrb[19].mxu1 }
 0xb09   :  { %v2062_v33 = vpop.f32.mrb[20].mxu1 }
 0xb0a   :  { %v2067_v37 = vmul.f32 0.35355338, %v2062_v33  ;;  %v19263_v38 = vpop.f32.mrb[21].mxu1 }
 0xb0c   :  { %v2071_v39 = vsel %vm1063_vm4, %v2067_v37, -inf }
 0xb0d   :  { %2072 = vmax.xlane.f32.xlu1 %v2071_v39 }
 0xb1e   :  { %2167 = vrot.lane.b32.xlu1 %v20954_v49, %s24213_s29 }
 0xb22   :  { %2246 = vrot.lane.b32.xlu1 %v21047_v32, %s24211_s9 }
 0xb26   :  { %2254 = vrot.lane.b32.xlu1 %v1829_v10, %s24209_s24 }
 0xb8d   :  { %v2070_v44 = vpop.xlane.xlu0 %2069 }
 0xb8e   :  { %v2074_v48 = vsub.f32 %v2066_v13, %v2070_v44 }
 0xb90   :  { %v2076_v54 = vmul.f32 1.442695, %v2074_v48 }
 0xb92   :  { %20328 = vpow2.f32 %v2076_v54 }
 0xb9a   :  { %v2073_v50 = vpop.xlane.xlu1 %2072 }
 0xb9b   :  { %v2075_v55 = vsub.f32 %v2067_v37, %v2073_v50 }
 0xb9c   :  { %v20329_v51 = vpop.eup %20328 }
 0xb9d   :  { %v2078_v56 = vmul.f32 1.442695, %v2075_v55  ;;  %v2080_v52 = vsel %vm1063_vm4, %v20329_v51, 0.0 }
 0xb9e   :  { %v2168_v57 = vpop.permute.xlu1 %2167  ;;  %2081 = vadd.xlane.f32.xlu0 %v2080_v52 }
 0xb9f   :  { %20330 = vpow2.f32 %v2078_v56  ;;  %19270 = vmatpush3.msk.msra.mxu1 %vm1092_vm5, %v2168_v57 }
 0xba0   :  { %20057 = vmatprep.subr.bf16.mxu1 %v20529_v1 }
 0xba2   :  { %v2247_v10 = vpop.permute.xlu1 %2246 }
 0xba3   :  { %v2268_v12 = vsel %vm887_vm3, %v21006_v34, %v2247_v10 }
 0xba6   :  { %v2255_v11 = vpop.permute.xlu1 %2254 }
 0xba7   :  { %v2271_v15 = vsel %vm2270_vm7, %v2268_v12, %v2255_v11 }
 0xba9   :  { %v20331_v49 = vpop.eup %20330 }
 0xbaa   :  { %v2083_v32 = vsel %vm1063_vm4, %v20331_v49, 0.0 }
 0xbab   :  { %2084 = vadd.xlane.f32.xlu0 %v2083_v32 }
 0xbc1   :  { %2090 = vrot.lane.b32.xlu0 %v20949_v47, %s24213_s29  ;;  %s24302_s29 = smov 72  }
 0xbc5   :  { %2248 = vrot.lane.b32.xlu0 %v21049_v35, %s24211_s9  ;;  %s24301_s9 = smov 48  }
 0xbc9   :  { %2256 = vrot.lane.b32.xlu0 %v1906_v29, %s24209_s24  ;;  %s24229_s24 = smov 24  }
 0xc2b   :  { %v2082_v53 = vpop.xlane.xlu0 %2081 }
 0xc2c   :  { %20332 = vrcp.f32 %v2082_v53 }
 0xc36   :  { %v20333_v3 = vpop.eup %20332 }
 0xc37   :  { %v2087_v62 = vmul.f32 %v20333_v3, %v20329_v51 }
 0xc38   :  { %v2085_v58 = vpop.xlane.xlu0 %2084 }
 0xc39   :  { %20334 = vrcp.f32 %v2085_v58 }
 0xc3c   :  { %v2091_v59 = vpop.permute.xlu0 %2090 }
 0xc3d   :  { %19265 = vmatpush3.msk.msra.mxu0 %vm1092_vm5, %v2091_v59 }
 0xc3e   :  { %19267 = vmatmul.mubr.msk.f32.vlgmr.msra.gmra.mrb[10].mxu0 %vm1088_vm6, %v2087_v62  ;;  %20033 = vmatprep.subr.bf16.mxu0 %v20529_v1 }
 0xc3f   :  { %19282 = vmatprep.mubr.msk.f32.mxu0 %vm20531_vm2, %v20532_v31  ;;  %20035 = vmatpush3.bf16.msra.mxu0 %v20034_v63 }
 0xc40   :  { %20036 = vmatprep.subr.bf16.mxu0 %v20529_v1  ;;  %v2249_v13 = vpop.permute.xlu0 %2248 }
 0xc41   :  { %v2269_v38 = vsel %vm887_vm3, %v21008_v36, %v2249_v13 }
 0xc43   :  { %v20335_v47 = vpop.eup %20334  ;;  %20038 = vmatpush3.bf16.msra.mxu0 %v20037_v6 }
 0xc44   :  { %v2089_v35 = vmul.f32 %v20335_v47, %v20331_v49  ;;  %20039 = vmatprep.subr.bf16.mxu0 %v20529_v1  ;;  %v2257_v37 = vpop.permute.xlu0 %2256 }
 0xc45   :  { %v2272_v39 = vsel %vm2270_vm7, %v2269_v38, %v2257_v37 }
 0xc46   :  { %19272 = vmatmul.mubr.msk.f32.vlgmr.msra.gmra.mrb[22].mxu1 %vm1088_vm6, %v2089_v35 }
 0xc47   :  { %19323 = vmatprep.mubr.msk.f32.mxu1 %vm20531_vm2, %v20532_v31 }
 0xd11   :  { %v2163_v60 = vpop.f32.mrb[10].mxu0 }
 0xd12   :  { %2262 = vrot.lane.b32.xlu1 %v2163_v60, %s24229_s24  ;;  %v19268_v61 = vpop.f32.mrb[11].mxu0  ;;  %v18517_v60 = vld [vmem:[%s24181_s11] ss:$0 sm:$0xff] }
 0xd19   :  { %v2240_v7 = vpop.f32.mrb[22].mxu1 }
 0xd1a   :  { %v19273_v8 = vpop.f32.mrb[23].mxu1  ;;  %2264 = vrot.lane.b32.xlu1 %v2240_v7, %s24229_s24  ;;  %s24304_s24 = smov 40  }
 0xd84   :  { %v2263_v20 = vpop.permute.xlu1 %2262 }
 0xd85   :  { %v2274_v29 = vsel %vm2273_vm8, %v2271_v15, %v2263_v20 }
 0xd86   :  { %v2284_v30 = vrot.slane %v2274_v29, %v20691_v14 }
 0xd88   :  { %v2285_v33 = vcombine.high %v2284_v30, %v2284_v30  ;;  %v2292_v44 = vrot.slane %v2284_v30, %v20691_v14 }
 0xd8a   :  { %v2299_v48 = vrot.slane %v2285_v33, %v20691_v14  ;;  %v2300_v55 = vcombine.high %v2292_v44, %v2292_v44 }
 0xd8c   :  { %v2265_v34 = vpop.permute.xlu1 %2264  ;;  %v2335_v51 = vcombine.low %v2292_v44, %v2299_v48 }
 0xd8d   :  { %v2275_v54 = vsel %vm2273_vm8, %v2272_v39, %v2265_v34 }
 0xd8e   :  { %v2307_v50 = vrot.slane %v2275_v54, %v20691_v14  ;;  %v2344_v32 = vrot.slane %v2335_v51, %v20691_v14 }
 0xd90   :  { %v2308_v56 = vcombine.high %v2307_v50, %v2307_v50  ;;  %v2315_v52 = vrot.slane %v2307_v50, %v20691_v14 }
 0xd92   :  { %v2322_v57 = vrot.slane %v2308_v56, %v20691_v14  ;;  %v2323_v49 = vcombine.high %v2315_v52, %v2315_v52  ;;  %v2336_v36 = vcombine.low %v2300_v55, %v2315_v52 }
 0xd94   :  { %v2337_v53 = vcombine.low %v2322_v57, %v2323_v49  ;;  %v2351_v58 = vrot.slane %v2336_v36, %v20691_v14 }
 0xd96   :  { %v2358_v3 = vrot.slane %v2337_v53, %v20691_v14  ;;  %v2359_v59 = vcombine.low %v2344_v32, %v2351_v58 }
 0xd98   :  { %v2366_v62 = vrot.slane %v2359_v59, %v20691_v14  ;;  %v2373_v47 = vrot.slane %v2358_v3, %v20691_v14 }
 0xd9a   :  { %v2374_v35 = vcombine.low %v2366_v62, %v2373_v47 }
 0xd9c   :  { %19283 = vmatmul.mubr.msk.f32.vlgmr.msra.gmra.mrb[12].mxu0 %vm209_vm0, %v2374_v35 }
 0xd9d   :  { %19293 = vmatprep.mubr.msk.f32.mxu0 %vm20531_vm2, %v20532_v31 }
 0xe6f   :  { %v2443_v61 = vpop.f32.mrb[12].mxu0 }
 0xe70   :  { %v2444_v5 = vadd.f32 %v18517_v60, %v2443_v61  ;;  %v19284_v2 = vpop.f32.mrb[13].mxu0 }
 0xe72   :  { %v2448_v63 = vcombine.high %v2444_v5, %v2444_v5  ;;  %v2455_v0 = vrot.slane %v2444_v5, %v20691_v14 }
 0xe74   :  { %v2462_v4 = vrot.slane %v2448_v63, %v20691_v14  ;;  %v2463_v6 = vcombine.high %v2455_v0, %v2455_v0  ;;  %v2471_v7 = vrot.slane %v2455_v0, %v20691_v14 }
 0xe76   :  { %v2464_v8 = vcombine.high %v2462_v4, %v2462_v4  ;;  %v2478_v10 = vrot.slane %v2462_v4, %v20691_v14  ;;  %v2485_v11 = vrot.slane %v2463_v6, %v20691_v14  ;;  %v2493_v12 = vcombine.high %v2471_v7, %v2471_v7 }
 0xe77   :  { %v21158_v20 = vadd.f32 %v2471_v7, %v20786_v21 }
 0xe78   :  { %v2492_v13 = vrot.slane %v2464_v8, %v20691_v14  ;;  %v2494_v15 = vcombine.high %v2485_v11, %v2485_v11  ;;  %v21161_v29 = vadd.f32 %v2485_v11, %v20789_v22  ;;  %v21164_v30 = vadd.f32 %v2493_v12, %v20792_v23 }
 0xe79   :  { %v21170_v37 = vadd.f32 %v2478_v10, %v20795_v24 }
 0xe7a   :  { %v21167_v33 = vadd.f32 %v2494_v15, %v20799_v26  ;;  %v21173_v38 = vadd.f32 %v2492_v13, %v20802_v27  ;;  %v2515_v39 = vcombine.low %v21158_v20, %v21161_v29 }
 0xe7c   :  { %v2516_v21 = vcombine.low %v21164_v30, %v21167_v33  ;;  %v2517_v22 = vcombine.low %v21170_v37, %v21173_v38  ;;  %v2524_v23 = vrot.slane %v2515_v39, %v20691_v14  ;;  %v2821_v39 = vld [vmem:[%s24182_s12] sm:$0xff] }
 0xe7e   :  { %v2531_v26 = vrot.slane %v2516_v21, %v20691_v14  ;;  %v2538_v44 = vrot.slane %v2517_v22, %v20691_v14  ;;  %v2822_v21 = vld [vmem:[%s24182_s12 + $0x8] sm:$0xff]  ;;  %v2823_v22 = vld [vmem:[%s24182_s12 + $0x10] sm:$0xff] }
 0xe80   :  { %v2539_v24 = vcombine.low %v2524_v23, %v2531_v26  ;;  %v2553_v27 = vrot.slane %v2538_v44, %v20691_v14  ;;  %v20040_v23 = vpack.c.bf16 %v2822_v21, %v2821_v39  ;;  %v2824_v26 = vld [vmem:[%s24182_s12 + $0x18] sm:$0xff] }
 0xe81   :  { %v20043_v44 = vpack.c.bf16 %v2824_v26, %v2823_v22 }
 0xe82   :  { %v2546_v48 = vrot.slane %v2539_v24, %v20691_v14  ;;  %20041 = vmatpush3.bf16.msra.mxu0 %v20040_v23 }
 0xe83   :  { %20042 = vmatprep.subr.bf16.mxu0 %v20529_v1 }
 0xe84   :  { %v2554_v34 = vcombine.low %v2546_v48, %v2553_v27  ;;  %v18519_v48 = vld [vmem:[%s24183_s18] ss:$0 sm:$0xff] }
 0xe86   :  { %v2556_v54 = vsel %vm418_vm1, %v2554_v34, 0.0  ;;  %20044 = vmatpush3.bf16.msra.mxu0 %v20043_v44  ;;  %v18520_v34 = vld [vmem:[%s24184_s19] ss:$0 sm:$0xff] }
 0xe87   :  { %2557 = vadd.xlane.f32.xlu0 %v2556_v54  ;;  %20045 = vmatprep.subr.bf16.mxu0 %v20529_v1 }
 0xf14   :  { %v2558_v50 = vpop.xlane.xlu0 %2557 }
 0xf15   :  { %v2559_v55 = vmul.f32 0.03125, %v2558_v50  ;;  %v2698_v50 = vcombine.high %v18519_v48, %v18519_v48 }
 0xf17   :  { %v2564_v51 = vrot.slane %v2559_v55, %v20819_v40  ;;  %v2568_v56 = vrot.slane %v2559_v55, %v20822_v41  ;;  %v2572_v52 = vrot.slane %v2559_v55, %v20825_v42  ;;  %v2576_v57 = vrot.slane %v2559_v55, %v20828_v43 }
 0xf18   :  { %v2580_v49 = vrot.slane %v2559_v55, %v20831_v45  ;;  %v2584_v36 = vrot.slane %v2559_v55, %v20834_v46  ;;  %v2705_v55 = vrot.slane %v18519_v48, %v20691_v14 }
 0xf19   :  { %v21194_v32 = vsub.f32 %v21158_v20, %v2564_v51  ;;  %v21197_v53 = vsub.f32 %v21161_v29, %v2568_v56  ;;  %v21200_v58 = vsub.f32 %v21164_v30, %v2572_v52  ;;  %v21203_v3 = vsub.f32 %v21167_v33, %v2576_v57 }
 0xf1a   :  { %v21206_v59 = vsub.f32 %v21170_v37, %v2580_v49  ;;  %v21209_v62 = vsub.f32 %v21173_v38, %v2584_v36  ;;  %v2769_v51 = vrot.slane %v18520_v34, %v20691_v14  ;;  %v2712_v56 = vrot.slane %v2698_v50, %v20691_v14 }
 0xf1b   :  { %v2597_v47 = vmul.f32 %v21194_v32, %v21194_v32  ;;  %v2598_v35 = vmul.f32 %v21197_v53, %v21197_v53  ;;  %v2599_v60 = vmul.f32 %v21200_v58, %v21200_v58  ;;  %v2600_v61 = vmul.f32 %v21203_v3, %v21203_v3 }
 0xf1c   :  { %v2601_v5 = vmul.f32 %v21206_v59, %v21206_v59  ;;  %v2602_v2 = vmul.f32 %v21209_v62, %v21209_v62  ;;  %v2713_v52 = vcombine.high %v2705_v55, %v2705_v55  ;;  %v2762_v57 = vcombine.high %v18520_v34, %v18520_v34 }
 0xf1d   :  { %v2609_v63 = vcombine.low %v2597_v47, %v2598_v35  ;;  %v2610_v0 = vcombine.low %v2599_v60, %v2600_v61  ;;  %v2777_v49 = vcombine.high %v2769_v51, %v2769_v51  ;;  %v2714_v36 = vcombine.high %v2712_v56, %v2712_v56 }
 0xf1e   :  { %v2611_v4 = vcombine.low %v2601_v5, %v2602_v2  ;;  %v2721_v47 = vrot.slane %v2705_v55, %v20691_v14  ;;  %v2735_v35 = vrot.slane %v2713_v52, %v20691_v14  ;;  %v2776_v60 = vrot.slane %v2762_v57, %v20691_v14 }
 0xf1f   :  { %v2618_v6 = vrot.slane %v2609_v63, %v20691_v14  ;;  %v2625_v7 = vrot.slane %v2610_v0, %v20691_v14  ;;  %v2785_v61 = vrot.slane %v2769_v51, %v20691_v14  ;;  %v2799_v5 = vrot.slane %v2777_v49, %v20691_v14 }
 0xf20   :  { %v2632_v8 = vrot.slane %v2611_v4, %v20691_v14  ;;  %v2728_v2 = vrot.slane %v2712_v56, %v20691_v14  ;;  %v2742_v0 = vrot.slane %v2714_v36, %v20691_v14  ;;  %v2743_v4 = vcombine.high %v2721_v47, %v2721_v47 }
 0xf21   :  { %v2633_v10 = vcombine.low %v2618_v6, %v2625_v7  ;;  %v2744_v6 = vcombine.high %v2735_v35, %v2735_v35  ;;  %v2778_v7 = vcombine.high %v2776_v60, %v2776_v60  ;;  %v2807_v39 = vcombine.high %v2785_v61, %v2785_v61 }
 0xf22   :  { %v2647_v12 = vrot.slane %v2632_v8, %v20691_v14  ;;  %v2808_v21 = vcombine.high %v2799_v5, %v2799_v5 }
 0xf23   :  { %v2640_v11 = vrot.slane %v2633_v10, %v20691_v14  ;;  %v2806_v34 = vrot.slane %v2778_v7, %v20691_v14  ;;  %v2953_v7 = vld [vmem:[%s24185_s14 + $0x10] sm:$0xff] }
 0xf25   :  { %v2648_v13 = vcombine.low %v2640_v11, %v2647_v12 }
 0xf27   :  { %v2650_v15 = vsel %vm418_vm1, %v2648_v13, 0.0 }
 0xf28   :  { %2651 = vadd.xlane.f32.xlu1 %v2650_v15 }
 0xfb5   :  { %v2652_v24 = vpop.xlane.xlu1 %2651 }
 0xfb6   :  { %v2653_v27 = vmul.f32 0.03125, %v2652_v24 }
 0xfb8   :  { %v2654_v54 = vadd.f32 1e-05, %v2653_v27  ;;  %v2792_v27 = vrot.slane %v2776_v60, %v20691_v14 }
 0xfba   :  { %20336 = vrsqrt.f32 %v2654_v54 }
 0xfc4   :  { %v20337_v63 = vpop.eup %20336 }
 0xfc5   :  { %v2660_v8 = vrot.slane %v20337_v63, %v20819_v40  ;;  %v2664_v10 = vrot.slane %v20337_v63, %v20822_v41  ;;  %v2668_v11 = vrot.slane %v20337_v63, %v20825_v42  ;;  %v2672_v12 = vrot.slane %v20337_v63, %v20828_v43 }
 0xfc6   :  { %v2676_v13 = vrot.slane %v20337_v63, %v20831_v45  ;;  %v2680_v15 = vrot.slane %v20337_v63, %v20834_v46 }
 0xfc7   :  { %v2687_v22 = vmul.f32 %v2660_v8, %v21194_v32  ;;  %v2688_v23 = vmul.f32 %v2664_v10, %v21197_v53  ;;  %v2689_v26 = vmul.f32 %v2668_v11, %v21200_v58  ;;  %v2690_v44 = vmul.f32 %v2672_v12, %v21203_v3  ;;  %v2954_v8 = vld [vmem:[%s24185_s14 + $0x18] sm:$0xff]  ;;  %v2955_v11 = vld [vmem:[%s24185_s14 + $0x20] sm:$0xff]  ;;  %v2956_v12 = vld [vmem:[%s24185_s14 + $0x28] sm:$0xff] }
 0xfc8   :  { %v2691_v24 = vmul.f32 %v2676_v13, %v21206_v59  ;;  %v2692_v48 = vmul.f32 %v2680_v15, %v21209_v62  ;;  %v20049_v10 = vpack.c.bf16 %v2954_v8, %v2953_v7  ;;  %v20052_v13 = vpack.c.bf16 %v2956_v12, %v2955_v11  ;;  %v2957_v15 = vld [vmem:[%s24185_s14 + $0x30] sm:$0xff] }
 0xfc9   :  { %v2751_v54 = vmul.f32 %v2721_v47, %v2687_v22  ;;  %v2752_v50 = vmul.f32 %v2735_v35, %v2688_v23  ;;  %v2753_v55 = vmul.f32 %v2743_v4, %v2689_v26  ;;  %v2754_v51 = vmul.f32 %v2744_v6, %v2690_v44  ;;  %v18521_v22 = vld [vmem:[%s24186_s13] ss:$0 sm:$0xff] }
 0xfca   :  { %v2755_v56 = vmul.f32 %v2728_v2, %v2691_v24  ;;  %v2756_v32 = vmul.f32 %v2742_v0, %v2692_v48  ;;  %v2951_v2 = vld [vmem:[%s24185_s14] sm:$0xff] }
 0xfcb   :  { %v2815_v52 = vadd.f32 %v2785_v61, %v2751_v54  ;;  %v2816_v53 = vadd.f32 %v2799_v5, %v2752_v50  ;;  %v2817_v57 = vadd.f32 %v2807_v39, %v2753_v55  ;;  %v2818_v58 = vadd.f32 %v2808_v21, %v2754_v51  ;;  %v2952_v61 = vld [vmem:[%s24185_s14 + $0x8] sm:$0xff]  ;;  %v2958_v39 = vld [vmem:[%s24185_s14 + $0x38] sm:$0xff]  ;;  %v18523_v48 = vld [vmem:[%s24187_s15] ss:$0 sm:$0xff] }
 0xfcc   :  { %v2819_v49 = vadd.f32 %v2792_v27, %v2755_v56  ;;  %v2820_v3 = vadd.f32 %v2806_v34, %v2756_v32  ;;  %v20046_v4 = vpack.c.bf16 %v2952_v61, %v2951_v2  ;;  %v20055_v21 = vpack.c.bf16 %v2958_v39, %v2957_v15 }
 0xfcd   :  { %v2838_v36 = vcombine.low %v2815_v52, %v2816_v53  ;;  %v2839_v59 = vcombine.low %v2817_v57, %v2818_v58 }
 0xfce   :  { %v2840_v63 = vcombine.low %v2819_v49, %v2820_v3 }
 0xfcf   :  { %v2847_v62 = vrot.slane %v2838_v36, %v20691_v14  ;;  %v2854_v60 = vrot.slane %v2839_v59, %v20691_v14 }
 0xfd0   :  { %v2861_v47 = vrot.slane %v2840_v63, %v20691_v14 }
 0xfd1   :  { %v2862_v35 = vcombine.low %v2847_v62, %v2854_v60 }
 0xfd2   :  { %v2876_v0 = vrot.slane %v2861_v47, %v20691_v14 }
 0xfd3   :  { %v2869_v5 = vrot.slane %v2862_v35, %v20691_v14 }
 0xfd5   :  { %v2877_v6 = vcombine.low %v2869_v5, %v2876_v0 }
 0xfd7   :  { %19294 = vmatmul.mubr.msk.f32.vlgmr.msra.gmra.mrb[14].mxu0 %vm209_vm0, %v2877_v6 }
 0xfd8   :  { %20047 = vmatpush3.bf16.msra.mxu0 %v20046_v4  ;;  %19312 = vmatprep.mubr.msk.f32.mxu0 %vm20531_vm2, %v20532_v31 }
 0xfd9   :  { %20048 = vmatprep.subr.bf16.mxu0 %v20529_v1 }
 0xfdc   :  { %20050 = vmatpush3.bf16.msra.mxu0 %v20049_v10 }
 0xfdd   :  { %20051 = vmatprep.subr.bf16.mxu0 %v20529_v1 }
 0xfe0   :  { %20053 = vmatpush3.bf16.msra.mxu0 %v20052_v13 }
 0xfe1   :  { %20054 = vmatprep.subr.bf16.mxu0 %v20529_v1 }
 0xfe4   :  { %20056 = vmatpush3.bf16.msra.mxu0 %v20055_v21 }
 0xfe5   :  { %19336 = vmatprep.subr.mxu0 %v20532_v31 }
0x10aa   :  { %v2946_v23 = vpop.f32.mrb[14].mxu0 }
0x10ab   :  { %v2947_v26 = vadd.f32 %v18521_v22, %v2946_v23  ;;  %v19295_v44 = vpop.f32.mrb[15].mxu0 }
0x10ad   :  { %v2950_v24 = vmax.f32 %v2947_v26, 0.0 }
0x10af   :  { %19313 = vmatmul.mubr.msk.f32.vlgmr.msra.gmra.mrb[16].mxu0 %vm2966_vm9, %v2950_v24 }
0x10b0   :  { %19338 = vmatprep.mubr.msk.f32.mxu0 %vm20531_vm2, %v20532_v31 }
0x1182   :  { %v3036_v27 = vpop.f32.mrb[16].mxu0 }
0x1183   :  { %v3037_v34 = vadd.f32 %v18523_v48, %v3036_v27  ;;  %v19314_v54 = vpop.f32.mrb[17].mxu0 }
0x1185   :  { %v3041_v50 = vcombine.high %v3037_v34, %v3037_v34  ;;  %v3048_v55 = vrot.slane %v3037_v34, %v20691_v14 }
0x1187   :  { %v3055_v51 = vrot.slane %v3041_v50, %v20691_v14  ;;  %v3056_v56 = vcombine.high %v3048_v55, %v3048_v55  ;;  %v3064_v32 = vrot.slane %v3048_v55, %v20691_v14 }
0x1189   :  { %v3057_v52 = vcombine.high %v3055_v51, %v3055_v51  ;;  %v3071_v53 = vrot.slane %v3055_v51, %v20691_v14  ;;  %v3078_v57 = vrot.slane %v3056_v56, %v20691_v14  ;;  %v3086_v58 = vcombine.high %v3064_v32, %v3064_v32 }
0x118a   :  { %v21325_v36 = vadd.f32 %v3064_v32, %v21158_v20 }
0x118b   :  { %v3085_v49 = vrot.slane %v3057_v52, %v20691_v14  ;;  %v3087_v3 = vcombine.high %v3078_v57, %v3078_v57  ;;  %v21328_v59 = vadd.f32 %v3078_v57, %v21161_v29  ;;  %v21331_v63 = vadd.f32 %v3086_v58, %v21164_v30 }
0x118c   :  { %v21337_v60 = vadd.f32 %v3071_v53, %v21170_v37 }
0x118d   :  { %v21334_v62 = vadd.f32 %v3087_v3, %v21167_v33  ;;  %v21340_v47 = vadd.f32 %v3085_v49, %v21173_v38  ;;  %v3110_v35 = vcombine.low %v21325_v36, %v21328_v59 }
0x118f   :  { %v3111_v20 = vcombine.low %v21331_v63, %v21334_v62  ;;  %v3112_v29 = vcombine.low %v21337_v60, %v21340_v47  ;;  %v3119_v30 = vrot.slane %v3110_v35, %v20691_v14  ;;  %v18529_v35 = vld [vmem:[%s24291_s28 + $0x20] sm:$0xff] }
0x1191   :  { %v3126_v33 = vrot.slane %v3111_v20, %v20691_v14  ;;  %v3133_v2 = vrot.slane %v3112_v29, %v20691_v14  ;;  %v18530_v20 = vld [vmem:[%s24291_s28 + $0x28] sm:$0xff]  ;;  %v18531_v29 = vld [vmem:[%s24291_s28 + $0x30] sm:$0xff] }
0x1193   :  { %v3134_v37 = vcombine.low %v3119_v30, %v3126_v33  ;;  %v3148_v38 = vrot.slane %v3133_v2, %v20691_v14  ;;  %v20058_v30 = vpack.c.bf16 %v18530_v20, %v18529_v35  ;;  %v18532_v33 = vld [vmem:[%s24291_s28 + $0x38] sm:$0xff] }
0x1194   :  { %v20061_v2 = vpack.c.bf16 %v18532_v33, %v18531_v29 }
0x1195   :  { %v3141_v61 = vrot.slane %v3134_v37, %v20691_v14  ;;  %20059 = vmatpush3.bf16.msra.mxu1 %v20058_v30 }
0x1196   :  { %20060 = vmatprep.subr.bf16.mxu1 %v20529_v1 }
0x1197   :  { %v3149_v5 = vcombine.low %v3141_v61, %v3148_v38  ;;  %v18527_v61 = vld [vmem:[%s24292_s1 + $0x1] ss:$0 sm:$0xff] }
0x1199   :  { %v3151_v0 = vsel %vm418_vm1, %v3149_v5, 0.0  ;;  %20062 = vmatpush3.bf16.msra.mxu1 %v20061_v2  ;;  %v18528_v5 = vld [vmem:[%s24293_s27 + $0x1] ss:$0 sm:$0xff] }
0x119a   :  { %3152 = vadd.xlane.f32.xlu0 %v3151_v0  ;;  %19326 = vmatprep.subr.mxu1 %v20532_v31 }
0x1227   :  { %v3153_v4 = vpop.xlane.xlu0 %3152 }
0x1228   :  { %v3154_v6 = vmul.f32 0.03125, %v3153_v4  ;;  %v3293_v4 = vcombine.high %v18527_v61, %v18527_v61 }
0x122a   :  { %v3159_v7 = vrot.slane %v3154_v6, %v20819_v40  ;;  %v3163_v8 = vrot.slane %v3154_v6, %v20822_v41  ;;  %v3167_v10 = vrot.slane %v3154_v6, %v20825_v42  ;;  %v3171_v11 = vrot.slane %v3154_v6, %v20828_v43 }
0x122b   :  { %v3175_v12 = vrot.slane %v3154_v6, %v20831_v45  ;;  %v3179_v13 = vrot.slane %v3154_v6, %v20834_v46  ;;  %v3300_v6 = vrot.slane %v18527_v61, %v20691_v14 }
0x122c   :  { %v21361_v15 = vsub.f32 %v21325_v36, %v3159_v7  ;;  %v21364_v39 = vsub.f32 %v21328_v59, %v3163_v8  ;;  %v21367_v21 = vsub.f32 %v21331_v63, %v3167_v10  ;;  %v21370_v22 = vsub.f32 %v21334_v62, %v3171_v11 }
0x122d   :  { %v21373_v23 = vsub.f32 %v21337_v60, %v3175_v12  ;;  %v21376_v26 = vsub.f32 %v21340_v47, %v3179_v13  ;;  %v3364_v7 = vrot.slane %v18528_v5, %v20691_v14  ;;  %v3307_v8 = vrot.slane %v3293_v4, %v20691_v14 }
0x122e   :  { %v3192_v44 = vmul.f32 %v21361_v15, %v21361_v15  ;;  %v3193_v24 = vmul.f32 %v21364_v39, %v21364_v39  ;;  %v3194_v48 = vmul.f32 %v21367_v21, %v21367_v21  ;;  %v3195_v27 = vmul.f32 %v21370_v22, %v21370_v22 }
0x122f   :  { %v3196_v34 = vmul.f32 %v21373_v23, %v21373_v23  ;;  %v3197_v54 = vmul.f32 %v21376_v26, %v21376_v26  ;;  %v3308_v10 = vcombine.high %v3300_v6, %v3300_v6  ;;  %v3357_v11 = vcombine.high %v18528_v5, %v18528_v5 }
0x1230   :  { %v3204_v50 = vcombine.low %v3192_v44, %v3193_v24  ;;  %v3205_v55 = vcombine.low %v3194_v48, %v3195_v27  ;;  %v3372_v12 = vcombine.high %v3364_v7, %v3364_v7  ;;  %v3309_v13 = vcombine.high %v3307_v8, %v3307_v8 }
0x1231   :  { %v3206_v51 = vcombine.low %v3196_v34, %v3197_v54  ;;  %v3316_v44 = vrot.slane %v3300_v6, %v20691_v14  ;;  %v3330_v24 = vrot.slane %v3308_v10, %v20691_v14  ;;  %v3371_v48 = vrot.slane %v3357_v11, %v20691_v14 }
0x1232   :  { %v3213_v56 = vrot.slane %v3204_v50, %v20691_v14  ;;  %v3220_v32 = vrot.slane %v3205_v55, %v20691_v14  ;;  %v3380_v27 = vrot.slane %v3364_v7, %v20691_v14  ;;  %v3394_v34 = vrot.slane %v3372_v12, %v20691_v14 }
0x1233   :  { %v3227_v52 = vrot.slane %v3206_v51, %v20691_v14  ;;  %v3323_v54 = vrot.slane %v3307_v8, %v20691_v14  ;;  %v3337_v55 = vrot.slane %v3309_v13, %v20691_v14  ;;  %v3338_v51 = vcombine.high %v3316_v44, %v3316_v44 }
0x1234   :  { %v3228_v53 = vcombine.low %v3213_v56, %v3220_v32  ;;  %v3339_v56 = vcombine.high %v3330_v24, %v3330_v24  ;;  %v3373_v32 = vcombine.high %v3371_v48, %v3371_v48  ;;  %v3402_v35 = vcombine.high %v3380_v27, %v3380_v27 }
0x1235   :  { %v3242_v58 = vrot.slane %v3227_v52, %v20691_v14  ;;  %v3403_v20 = vcombine.high %v3394_v34, %v3394_v34 }
0x1236   :  { %v3235_v57 = vrot.slane %v3228_v53, %v20691_v14  ;;  %v3401_v5 = vrot.slane %v3373_v32, %v20691_v14 }
0x1238   :  { %v3243_v49 = vcombine.low %v3235_v57, %v3242_v58 }
0x123a   :  { %v3245_v3 = vsel %vm418_vm1, %v3243_v49, 0.0 }
0x123b   :  { %3246 = vadd.xlane.f32.xlu0 %v3245_v3 }
0x12c8   :  { %v3247_v37 = vpop.xlane.xlu0 %3246 }
0x12c9   :  { %v3248_v38 = vmul.f32 0.03125, %v3247_v37 }
0x12cb   :  { %v3249_v0 = vadd.f32 1e-05, %v3248_v38  ;;  %v3387_v38 = vrot.slane %v3371_v48, %v20691_v14 }
0x12cd   :  { %20338 = vrsqrt.f32 %v3249_v0 }
0x12d7   :  { %v20339_v50 = vpop.eup %20338 }
0x12d8   :  { %v3255_v52 = vrot.slane %v20339_v50, %v20819_v40  ;;  %v3259_v53 = vrot.slane %v20339_v50, %v20822_v41  ;;  %v3263_v57 = vrot.slane %v20339_v50, %v20825_v42  ;;  %v3267_v58 = vrot.slane %v20339_v50, %v20828_v43 }
0x12d9   :  { %v3271_v49 = vrot.slane %v20339_v50, %v20831_v45  ;;  %v3275_v3 = vrot.slane %v20339_v50, %v20834_v46 }
0x12da   :  { %v3282_v29 = vmul.f32 %v3255_v52, %v21361_v15  ;;  %v3283_v30 = vmul.f32 %v3259_v53, %v21364_v39  ;;  %v3284_v33 = vmul.f32 %v3263_v57, %v21367_v21  ;;  %v3285_v2 = vmul.f32 %v3267_v58, %v21370_v22 }
0x12db   :  { %v3286_v37 = vmul.f32 %v3271_v49, %v21373_v23  ;;  %v3287_v61 = vmul.f32 %v3275_v3, %v21376_v26 }
0x12dc   :  { %v3346_v0 = vmul.f32 %v3316_v44, %v3282_v29  ;;  %v3347_v4 = vmul.f32 %v3330_v24, %v3283_v30  ;;  %v3348_v6 = vmul.f32 %v3338_v51, %v3284_v33  ;;  %v3349_v7 = vmul.f32 %v3339_v56, %v3285_v2 }
0x12dd   :  { %v3350_v8 = vmul.f32 %v3323_v54, %v3286_v37  ;;  %v3351_v15 = vmul.f32 %v3337_v55, %v3287_v61 }
0x12de   :  { %v3410_v10 = vadd.f32 %v3380_v27, %v3346_v0  ;;  %v3411_v39 = vadd.f32 %v3394_v34, %v3347_v4  ;;  %v3412_v11 = vadd.f32 %v3402_v35, %v3348_v6  ;;  %v3413_v21 = vadd.f32 %v3403_v20, %v3349_v7  ;;  %v18534_v34 = vld [vmem:[%s24294_s3 + $0x1] ss:$0 sm:$0xff] }
0x12df   :  { %v3414_v12 = vadd.f32 %v3387_v38, %v3350_v8  ;;  %v3415_v22 = vadd.f32 %v3401_v5, %v3351_v15 }
0x12e0   :  { %v3435_v13 = vcombine.low %v3410_v10, %v3411_v39  ;;  %v3436_v23 = vcombine.low %v3412_v11, %v3413_v21 }
0x12e1   :  { %v3437_v50 = vcombine.low %v3414_v12, %v3415_v22 }
0x12e2   :  { %v3444_v26 = vrot.slane %v3435_v13, %v20691_v14  ;;  %v3451_v48 = vrot.slane %v3436_v23, %v20691_v14 }
0x12e3   :  { %v3458_v44 = vrot.slane %v3437_v50, %v20691_v14 }
0x12e4   :  { %v3459_v24 = vcombine.low %v3444_v26, %v3451_v48 }
0x12e5   :  { %v3473_v54 = vrot.slane %v3458_v44, %v20691_v14 }
0x12e6   :  { %v3466_v51 = vrot.slane %v3459_v24, %v20691_v14 }
0x12e8   :  { %v3474_v27 = vcombine.low %v3466_v51, %v3473_v54 }
0x12ea   :  { %19324 = vmatmul.mubr.msk.f32.vlgmr.msra.gmra.mrb[24].mxu1 %vm209_vm0, %v3474_v27 }
0x12eb   :  { %19328 = vmatprep.mubr.msk.f32.mxu1 %vm20531_vm2, %v20532_v31 }
0x13bd   :  { %v3543_v55 = vpop.f32.mrb[24].mxu1 }
0x13be   :  { %v3544_v56 = vadd.f32 %v18534_v34, %v3543_v55  ;;  %v19325_v32 = vpop.f32.mrb[25].mxu1 }
0x13c0   :  { %v3548_v52 = vcombine.high %v3544_v56, %v3544_v56  ;;  %v3555_v53 = vrot.slane %v3544_v56, %v20691_v14 }
0x13c2   :  { %v3562_v57 = vrot.slane %v3548_v52, %v20691_v14  ;;  %v3563_v58 = vcombine.high %v3555_v53, %v3555_v53  ;;  %v3571_v49 = vrot.slane %v3555_v53, %v20691_v14 }
0x13c4   :  { %v3564_v3 = vcombine.high %v3562_v57, %v3562_v57  ;;  %v3585_v35 = vrot.slane %v3563_v58, %v20691_v14  ;;  %v3593_v20 = vcombine.high %v3571_v49, %v3571_v49  ;;  %v3578_v29 = vrot.slane %v3562_v57, %v20691_v14 }
0x13c6   :  { %v3592_v30 = vrot.slane %v3564_v3, %v20691_v14  ;;  %v3594_v33 = vcombine.high %v3585_v35, %v3585_v35  ;;  %v3595_v2 = vcombine.low %v3571_v49, %v3585_v35  ;;  %v3609_v61 = vrot.slane %v3593_v20, %v20691_v14 }
0x13c8   :  { %v3602_v37 = vrot.slane %v3595_v2, %v20691_v14  ;;  %v3694_v38 = vcombine.low %v3594_v33, %v3578_v29  ;;  %v3708_v4 = vrot.slane %v3592_v30, %v20691_v14 }
0x13ca   :  { %v3610_v5 = vcombine.low %v3602_v37, %v3609_v61  ;;  %v3701_v0 = vrot.slane %v3694_v38, %v20691_v14 }
0x13cc   :  { %v21462_v6 = vrot.slane %v3610_v5, %v20691_v14  ;;  %v3709_v7 = vcombine.low %v3701_v0, %v3708_v4 }
0x13ce   :  { %v21465_v8 = vrot.slane %v3709_v7, %v20691_v14  ;;  %3618 = vrot.lane.b32.xlu0 %v21462_v6, %s24227_s2 }
0x13d0   :  { %3717 = vrot.lane.b32.xlu1 %v21465_v8, %s24227_s2  ;;  %s24303_s2 = smov 104  }
0x1440   :  { %v3619_v15 = vpop.permute.xlu0 %3618 }
0x1441   :  { %19327 = vmatpush3.xpose.msk.msra.mxu1 %vm887_vm3, %v3619_v15 }
0x1442   :  { %19331 = vmatprep.subr.mxu1 %v20532_v31  ;;  %v3718_v10 = vpop.permute.xlu1 %3717 }
0x1444   :  { %19329 = vmatmul.mubr.msk.f32.vlgmr.msra.gmra.mrb[26].mxu1 %vm887_vm3, %v21462_v6 }
0x1445   :  { %19332 = vmatpush3.xpose.msk.msra.mxu1 %vm887_vm3, %v3718_v10  ;;  %19333 = vmatprep.mubr.msk.f32.mxu1 %vm20531_vm2, %v20532_v31 }
0x1446   :  { %19341 = vmatprep.subr.mxu1 %v20532_v31 }
0x1448   :  { %19334 = vmatmul.mubr.msk.f32.vlgmr.msra.gmra.mrb[28].mxu1 %vm887_vm3, %v21465_v8 }
0x1449   :  { %19343 = vmatprep.mubr.msk.f32.mxu1 %vm20531_vm2, %v20532_v31 }
0x1517   :  { %v3690_v39 = vpop.f32.mrb[26].mxu1 }
0x1518   :  { %v3793_v11 = vmul.f32 0.35355338, %v3690_v39  ;;  %v19330_v21 = vpop.f32.mrb[27].mxu1 }
0x151a   :  { %v3795_v12 = vsel %vm1063_vm4, %v3793_v11, -inf }
0x151b   :  { %3796 = vmax.xlane.f32.xlu1 %v3795_v12  ;;  %v3789_v22 = vpop.f32.mrb[28].mxu1 }
0x151c   :  { %v3794_v13 = vmul.f32 0.35355338, %v3789_v22  ;;  %v19335_v23 = vpop.f32.mrb[29].mxu1 }
0x151e   :  { %v3798_v50 = vsel %vm1063_vm4, %v3794_v13, -inf }
0x151f   :  { %3799 = vmax.xlane.f32.xlu0 %v3798_v50 }
0x152c   :  { %3894 = vrot.lane.b32.xlu1 %v21465_v8, %s24295_s8 }
0x1530   :  { %3973 = vrot.lane.b32.xlu1 %v21462_v6, %s24296_s30 }
0x1534   :  { %4051 = vrot.lane.b32.xlu1 %v21465_v8, %s24296_s30 }
0x1535   :  { %3817 = vrot.lane.b32.xlu0 %v21462_v6, %s24295_s8 }
0x15a8   :  { %v3797_v26 = vpop.xlane.xlu1 %3796 }
0x15a9   :  { %v3801_v48 = vsub.f32 %v3793_v11, %v3797_v26 }
0x15ab   :  { %v3803_v44 = vmul.f32 1.442695, %v3801_v48 }
0x15ac   :  { %v3895_v24 = vpop.permute.xlu1 %3894  ;;  %v3800_v51 = vpop.xlane.xlu0 %3799 }
0x15ad   :  { %20340 = vpow2.f32 %v3803_v44  ;;  %v3802_v54 = vsub.f32 %v3794_v13, %v3800_v51  ;;  %19342 = vmatpush3.msk.msra.mxu1 %vm1092_vm5, %v3895_v24 }
0x15ae   :  { %19351 = vmatprep.subr.mxu1 %v20532_v31 }
0x15af   :  { %v3805_v27 = vmul.f32 1.442695, %v3802_v54 }
0x15b0   :  { %v3818_v34 = vpop.permute.xlu0 %3817  ;;  %v3974_v53 = vpop.permute.xlu1 %3973 }
0x15b1   :  { %20342 = vpow2.f32 %v3805_v27  ;;  %19337 = vmatpush3.msk.msra.mxu0 %vm1092_vm5, %v3818_v34 }
0x15b2   :  { %19346 = vmatprep.subr.mxu0 %v20532_v31 }
0x15b4   :  { %v4052_v57 = vpop.permute.xlu1 %4051 }
0x15b7   :  { %v20341_v55 = vpop.eup %20340 }
0x15b8   :  { %v3807_v56 = vsel %vm1063_vm4, %v20341_v55, 0.0 }
0x15b9   :  { %3808 = vadd.xlane.f32.xlu0 %v3807_v56 }
0x15bb   :  { %v20343_v32 = vpop.eup %20342 }
0x15bc   :  { %v3810_v52 = vsel %vm1063_vm4, %v20343_v32, 0.0 }
0x15bd   :  { %3811 = vadd.xlane.f32.xlu1 %v3810_v52 }
0x15ce   :  { %4049 = vrot.lane.b32.xlu1 %v21465_v8, %s24297_s25 }
0x15cf   :  { %3971 = vrot.lane.b32.xlu0 %v21462_v6, %s24297_s25 }
0x1646   :  { %v3809_v58 = vpop.xlane.xlu0 %3808 }
0x1647   :  { %20344 = vrcp.f32 %v3809_v58 }
0x164a   :  { %v3812_v49 = vpop.xlane.xlu1 %3811  ;;  %v3972_v30 = vpop.permute.xlu0 %3971 }
0x164b   :  { %20346 = vrcp.f32 %v3812_v49 }
0x164e   :  { %v4050_v33 = vpop.permute.xlu1 %4049 }
0x1651   :  { %v20345_v3 = vpop.eup %20344 }
0x1652   :  { %v3814_v35 = vmul.f32 %v20345_v3, %v20341_v55 }
0x1654   :  { %19339 = vmatmul.mubr.msk.f32.vlgmr.msra.gmra.mrb[18].mxu0 %vm1088_vm6, %v3814_v35 }
0x1655   :  { %v20347_v20 = vpop.eup %20346  ;;  %19347 = vmatpush3.xpose.msk.msra.mxu0 %vm887_vm3, %v3974_v53  ;;  %19348 = vmatprep.mubr.msk.f32.mxu0 %vm20531_vm2, %v20532_v31 }
0x1656   :  { %v3816_v29 = vmul.f32 %v20347_v20, %v20343_v32  ;;  %19356 = vmatprep.subr.mxu0 %v20532_v31 }
0x1658   :  { %19344 = vmatmul.mubr.msk.f32.vlgmr.msra.gmra.mrb[30].mxu1 %vm1088_vm6, %v3816_v29  ;;  %19349 = vmatmul.mubr.msk.f32.vlgmr.msra.gmra.mrb[20].mxu0 %vm887_vm3, %v3972_v30 }
0x1659   :  { %19352 = vmatpush3.xpose.msk.msra.mxu1 %vm887_vm3, %v4052_v57  ;;  %19353 = vmatprep.mubr.msk.f32.mxu1 %vm20531_vm2, %v20532_v31 }
0x165a   :  { %19361 = vmatprep.subr.mxu1 %v20532_v31  ;;  %19358 = vmatprep.mubr.msk.f32.mxu0 %vm20531_vm2, %v20532_v31 }
0x165c   :  { %19354 = vmatmul.mubr.msk.f32.vlgmr.msra.gmra.mrb[32].mxu1 %vm887_vm3, %v4050_v33 }
0x165d   :  { %19363 = vmatprep.mubr.msk.f32.mxu1 %vm20531_vm2, %v20532_v31 }
0x1727   :  { %v21519_v2 = vpop.f32.mrb[18].mxu0 }
0x1728   :  { %v19340_v37 = vpop.f32.mrb[19].mxu0 }
0x172b   :  { %v21521_v61 = vpop.f32.mrb[30].mxu1  ;;  %v4045_v38 = vpop.f32.mrb[20].mxu0 }
0x172c   :  { %v4127_v5 = vmul.f32 0.35355338, %v4045_v38  ;;  %v19345_v0 = vpop.f32.mrb[31].mxu1  ;;  %v19350_v4 = vpop.f32.mrb[21].mxu0 }
0x172e   :  { %v4129_v7 = vsel %vm1063_vm4, %v4127_v5, -inf }
0x172f   :  { %v4123_v15 = vpop.f32.mrb[32].mxu1  ;;  %4130 = vmax.xlane.f32.xlu0 %v4129_v7 }
0x1730   :  { %v4128_v10 = vmul.f32 0.35355338, %v4123_v15  ;;  %v19355_v39 = vpop.f32.mrb[33].mxu1 }
0x1732   :  { %v4132_v11 = vsel %vm1063_vm4, %v4128_v10, -inf }
0x1733   :  { %4133 = vmax.xlane.f32.xlu1 %v4132_v11 }
0x1744   :  { %4228 = vrot.lane.b32.xlu1 %v21465_v8, %s24298_s16 }
0x1745   :  { %4151 = vrot.lane.b32.xlu0 %v21462_v6, %s24298_s16 }
0x1748   :  { %4307 = vrot.lane.b32.xlu1 %v21462_v6, %s24299_s0 }
0x174c   :  { %4385 = vrot.lane.b32.xlu1 %v21465_v8, %s24299_s0 }
0x1750   :  { %4383 = vrot.lane.b32.xlu1 %v21465_v8, %s24300_s17 }
0x17bc   :  { %v4131_v21 = vpop.xlane.xlu0 %4130 }
0x17bd   :  { %v4135_v12 = vsub.f32 %v4127_v5, %v4131_v21 }
0x17bf   :  { %v4137_v22 = vmul.f32 1.442695, %v4135_v12 }
0x17c0   :  { %v4134_v13 = vpop.xlane.xlu1 %4133  ;;  %v4152_v23 = vpop.permute.xlu0 %4151 }
0x17c1   :  { %20348 = vpow2.f32 %v4137_v22  ;;  %v4136_v50 = vsub.f32 %v4128_v10, %v4134_v13  ;;  %19357 = vmatpush3.msk.msra.mxu0 %vm1092_vm5, %v4152_v23 }
0x17c2   :  { %19366 = vmatprep.subr.mxu0 %v20532_v31 }
0x17c3   :  { %v4139_v26 = vmul.f32 1.442695, %v4136_v50 }
0x17c4   :  { %v4229_v48 = vpop.permute.xlu1 %4228 }
0x17c5   :  { %20350 = vpow2.f32 %v4139_v26  ;;  %19362 = vmatpush3.msk.msra.mxu1 %vm1092_vm5, %v4229_v48 }
0x17c6   :  { %19371 = vmatprep.subr.mxu1 %v20532_v31 }
0x17c8   :  { %v4308_v55 = vpop.permute.xlu1 %4307 }
0x17cb   :  { %v20349_v44 = vpop.eup %20348 }
0x17cc   :  { %v4141_v24 = vsel %vm1063_vm4, %v20349_v44, 0.0  ;;  %v4386_v53 = vpop.permute.xlu1 %4385 }
0x17cd   :  { %4142 = vadd.xlane.f32.xlu0 %v4141_v24 }
0x17cf   :  { %v20351_v51 = vpop.eup %20350 }
0x17d0   :  { %v4144_v54 = vsel %vm1063_vm4, %v20351_v51, 0.0  ;;  %v4384_v49 = vpop.permute.xlu1 %4383 }
0x17d1   :  { %4145 = vadd.xlane.f32.xlu0 %v4144_v54 }
0x17e7   :  { %4305 = vrot.lane.b32.xlu0 %v21462_v6, %s24300_s17  ;;  %s24311_s17 = smov 72  }
0x185a   :  { %v4143_v27 = vpop.xlane.xlu0 %4142 }
0x185b   :  { %20352 = vrcp.f32 %v4143_v27 }
0x185e   :  { %v4146_v34 = vpop.xlane.xlu0 %4145 }
0x185f   :  { %20354 = vrcp.f32 %v4146_v34 }
0x1862   :  { %v4306_v58 = vpop.permute.xlu0 %4305 }
0x1865   :  { %v20353_v56 = vpop.eup %20352 }
0x1866   :  { %v4148_v32 = vmul.f32 %v20353_v56, %v20349_v44 }
0x1868   :  { %19359 = vmatmul.mubr.msk.f32.vlgmr.msra.gmra.mrb[22].mxu0 %vm1088_vm6, %v4148_v32 }
0x1869   :  { %v20355_v52 = vpop.eup %20354  ;;  %19367 = vmatpush3.xpose.msk.msra.mxu0 %vm887_vm3, %v4308_v55  ;;  %19368 = vmatprep.mubr.msk.f32.mxu0 %vm20531_vm2, %v20532_v31 }
0x186a   :  { %v4150_v57 = vmul.f32 %v20355_v52, %v20351_v51  ;;  %19376 = vmatprep.subr.mxu0 %v20532_v31 }
0x186c   :  { %19364 = vmatmul.mubr.msk.f32.vlgmr.msra.gmra.mrb[34].mxu1 %vm1088_vm6, %v4150_v57  ;;  %19369 = vmatmul.mubr.msk.f32.vlgmr.msra.gmra.mrb[24].mxu0 %vm887_vm3, %v4306_v58 }
0x186d   :  { %19372 = vmatpush3.xpose.msk.msra.mxu1 %vm887_vm3, %v4386_v53  ;;  %19373 = vmatprep.mubr.msk.f32.mxu1 %vm20531_vm2, %v20532_v31 }
0x186e   :  { %19381 = vmatprep.subr.mxu1 %v20532_v31  ;;  %19378 = vmatprep.mubr.msk.f32.mxu0 %vm20531_vm2, %v20532_v31 }
0x1870   :  { %19374 = vmatmul.mubr.msk.f32.vlgmr.msra.gmra.mrb[36].mxu1 %vm887_vm3, %v4384_v49 }
0x1871   :  { %19383 = vmatprep.mubr.msk.f32.mxu1 %vm20531_vm2, %v20532_v31 }
0x193b   :  { %v21559_v3 = vpop.f32.mrb[22].mxu0 }
0x193c   :  { %v19360_v35 = vpop.f32.mrb[23].mxu0 }
0x193f   :  { %v21561_v20 = vpop.f32.mrb[34].mxu1  ;;  %v4379_v29 = vpop.f32.mrb[24].mxu0 }
0x1940   :  { %v4461_v30 = vmul.f32 0.35355338, %v4379_v29  ;;  %v19365_v33 = vpop.f32.mrb[35].mxu1  ;;  %v19370_v37 = vpop.f32.mrb[25].mxu0 }
0x1942   :  { %v4463_v38 = vsel %vm1063_vm4, %v4461_v30, -inf }
0x1943   :  { %v4457_v5 = vpop.f32.mrb[36].mxu1  ;;  %4464 = vmax.xlane.f32.xlu0 %v4463_v38 }
0x1944   :  { %v4462_v0 = vmul.f32 0.35355338, %v4457_v5  ;;  %v19375_v4 = vpop.f32.mrb[37].mxu1 }
0x1946   :  { %v4466_v7 = vsel %vm1063_vm4, %v4462_v0, -inf }
0x1947   :  { %4467 = vmax.xlane.f32.xlu1 %v4466_v7 }
0x1958   :  { %4562 = vrot.lane.b32.xlu1 %v21465_v8, %s24301_s9 }
0x1959   :  { %4485 = vrot.lane.b32.xlu0 %v21462_v6, %s24301_s9  ;;  %s24312_s9 = smov 104  }
0x195c   :  { %4641 = vrot.lane.b32.xlu1 %v21462_v6, %s24302_s29 }
0x1960   :  { %4719 = vrot.lane.b32.xlu1 %v21465_v8, %s24302_s29  ;;  %s24313_s29 = smov 40  }
0x1964   :  { %4717 = vrot.lane.b32.xlu1 %v21465_v8, %s24303_s2 }
0x19d0   :  { %v4465_v15 = vpop.xlane.xlu0 %4464 }
0x19d1   :  { %v4469_v10 = vsub.f32 %v4461_v30, %v4465_v15 }
0x19d3   :  { %v4471_v39 = vmul.f32 1.442695, %v4469_v10 }
0x19d4   :  { %v4468_v11 = vpop.xlane.xlu1 %4467  ;;  %v4486_v21 = vpop.permute.xlu0 %4485 }
0x19d5   :  { %20356 = vpow2.f32 %v4471_v39  ;;  %v4470_v12 = vsub.f32 %v4462_v0, %v4468_v11  ;;  %19377 = vmatpush3.msk.msra.mxu0 %vm1092_vm5, %v4486_v21 }
0x19d6   :  { %19386 = vmatprep.subr.mxu0 %v20532_v31 }
0x19d7   :  { %v4473_v22 = vmul.f32 1.442695, %v4470_v12 }
0x19d8   :  { %v4563_v13 = vpop.permute.xlu1 %4562 }
0x19d9   :  { %20358 = vpow2.f32 %v4473_v22  ;;  %19382 = vmatpush3.msk.msra.mxu1 %vm1092_vm5, %v4563_v13 }
0x19da   :  { %19391 = vmatprep.subr.mxu1 %v20532_v31 }
0x19dc   :  { %v4642_v51 = vpop.permute.xlu1 %4641 }
0x19df   :  { %v20357_v23 = vpop.eup %20356 }
0x19e0   :  { %v4475_v50 = vsel %vm1063_vm4, %v20357_v23, 0.0  ;;  %v4720_v55 = vpop.permute.xlu1 %4719 }
0x19e1   :  { %4476 = vadd.xlane.f32.xlu0 %v4475_v50 }
0x19e3   :  { %v20359_v26 = vpop.eup %20358 }
0x19e4   :  { %v4478_v48 = vsel %vm1063_vm4, %v20359_v26, 0.0  ;;  %v4718_v52 = vpop.permute.xlu1 %4717 }
0x19e5   :  { %4479 = vadd.xlane.f32.xlu0 %v4478_v48 }
0x19fb   :  { %4639 = vrot.lane.b32.xlu0 %v21462_v6, %s24303_s2  ;;  %s24310_s2 = smov 48  }
0x1a6e   :  { %v4477_v44 = vpop.xlane.xlu0 %4476 }
0x1a6f   :  { %20360 = vrcp.f32 %v4477_v44 }
0x1a72   :  { %v4480_v24 = vpop.xlane.xlu0 %4479 }
0x1a73   :  { %20362 = vrcp.f32 %v4480_v24  ;;  %v18569_v24 = vld [vmem:[%s24180_s10 + $0x28] sm:$0xff] }
0x1a76   :  { %v4640_v32 = vpop.permute.xlu0 %4639 }
0x1a79   :  { %v20361_v54 = vpop.eup %20360 }
0x1a7a   :  { %v4482_v27 = vmul.f32 %v20361_v54, %v20357_v23 }
0x1a7c   :  { %19379 = vmatmul.mubr.msk.f32.vlgmr.msra.gmra.mrb[26].mxu0 %vm1088_vm6, %v4482_v27 }
0x1a7d   :  { %v20363_v34 = vpop.eup %20362  ;;  %19387 = vmatpush3.xpose.msk.msra.mxu0 %vm887_vm3, %v4642_v51  ;;  %19388 = vmatprep.mubr.msk.f32.mxu0 %vm20531_vm2, %v20532_v31 }
0x1a7e   :  { %v4484_v56 = vmul.f32 %v20363_v34, %v20359_v26  ;;  %19396 = vmatprep.subr.mxu0 %v20532_v31  ;;  %v18570_v34 = vld [vmem:[%s24180_s10 + $0x30] sm:$0xff] }
0x1a80   :  { %19384 = vmatmul.mubr.msk.f32.vlgmr.msra.gmra.mrb[38].mxu1 %vm1088_vm6, %v4484_v56  ;;  %19389 = vmatmul.mubr.msk.f32.vlgmr.msra.gmra.mrb[28].mxu0 %vm887_vm3, %v4640_v32 }
0x1a81   :  { %19392 = vmatpush3.xpose.msk.msra.mxu1 %vm887_vm3, %v4720_v55  ;;  %19393 = vmatprep.mubr.msk.f32.mxu1 %vm20531_vm2, %v20532_v31  ;;  %v18571_v55 = vld [vmem:[%s24180_s10 + $0x38] sm:$0xff] }
0x1a82   :  { %19401 = vmatprep.subr.mxu1 %v20532_v31  ;;  %19398 = vmatprep.mubr.msk.f32.mxu0 %vm20531_vm2, %v20532_v31  ;;  %v20067_v56 = vpack.c.bf16 %v18571_v55, %v18570_v34 }
0x1a84   :  { %19394 = vmatmul.mubr.msk.f32.vlgmr.msra.gmra.mrb[40].mxu1 %vm887_vm3, %v4718_v52 }
0x1a85   :  { %19403 = vmatprep.mubr.msk.f32.mxu1 %vm20531_vm2, %v20532_v31 }
0x1b4f   :  { %v4558_v53 = vpop.f32.mrb[26].mxu0 }
0x1b50   :  { %v19380_v57 = vpop.f32.mrb[27].mxu0 }
0x1b53   :  { %v4635_v58 = vpop.f32.mrb[38].mxu1  ;;  %v4713_v49 = vpop.f32.mrb[28].mxu0 }
0x1b54   :  { %v4795_v35 = vmul.f32 0.35355338, %v4713_v49  ;;  %v19385_v29 = vpop.f32.mrb[39].mxu1  ;;  %v19390_v30 = vpop.f32.mrb[29].mxu0 }
0x1b56   :  { %v4797_v33 = vsel %vm1063_vm4, %v4795_v35, -inf }
0x1b57   :  { %v4791_v37 = vpop.f32.mrb[40].mxu1  ;;  %4798 = vmax.xlane.f32.xlu0 %v4797_v33 }
0x1b58   :  { %v4796_v38 = vmul.f32 0.35355338, %v4791_v37  ;;  %v19395_v5 = vpop.f32.mrb[41].mxu1 }
0x1b5a   :  { %v4800_v0 = vsel %vm1063_vm4, %v4796_v38, -inf }
0x1b5b   :  { %4801 = vmax.xlane.f32.xlu1 %v4800_v0 }
0x1b6c   :  { %4896 = vrot.lane.b32.xlu1 %v21465_v8, %s24304_s24 }
0x1b70   :  { %4975 = vrot.lane.b32.xlu1 %v21559_v3, %s24305_s23 }
0x1b74   :  { %4983 = vrot.lane.b32.xlu1 %v4558_v53, %s24306_s21 }
0x1be4   :  { %v4799_v4 = vpop.xlane.xlu0 %4798 }
0x1be5   :  { %v4803_v7 = vsub.f32 %v4795_v35, %v4799_v4 }
0x1be7   :  { %v4805_v15 = vmul.f32 1.442695, %v4803_v7 }
0x1be8   :  { %v4802_v10 = vpop.xlane.xlu1 %4801 }
0x1be9   :  { %20364 = vpow2.f32 %v4805_v15  ;;  %v4804_v39 = vsub.f32 %v4796_v38, %v4802_v10 }
0x1beb   :  { %v4807_v11 = vmul.f32 1.442695, %v4804_v39 }
0x1bec   :  { %v4897_v21 = vpop.permute.xlu1 %4896 }
0x1bed   :  { %20366 = vpow2.f32 %v4807_v11  ;;  %19402 = vmatpush3.msk.msra.mxu1 %vm1092_vm5, %v4897_v21 }
0x1bee   :  { %20069 = vmatprep.subr.bf16.mxu1 %v20529_v1 }
0x1bf0   :  { %v4976_v53 = vpop.permute.xlu1 %4975 }
0x1bf1   :  { %v4997_v49 = vsel %vm887_vm3, %v21519_v2, %v4976_v53 }
0x1bf3   :  { %v20365_v12 = vpop.eup %20364 }
0x1bf4   :  { %v4809_v8 = vsel %vm1063_vm4, %v20365_v12, 0.0 }
0x1bf5   :  { %4810 = vadd.xlane.f32.xlu0 %v4809_v8 }
0x1bf7   :  { %v20367_v3 = vpop.eup %20366 }
0x1bf8   :  { %v4812_v22 = vsel %vm1063_vm4, %v20367_v3, 0.0 }
0x1bf9   :  { %4813 = vadd.xlane.f32.xlu0 %v4812_v22 }
0x1c0f   :  { %4819 = vrot.lane.b32.xlu0 %v21462_v6, %s24304_s24  ;;  %s24307_s24 = smov 24  }
0x1c13   :  { %4977 = vrot.lane.b32.xlu0 %v21561_v20, %s24305_s23  ;;  %v18568_v20 = vld [vmem:[%s24180_s10 + $0x20] sm:$0xff]  ;;  %s24309_s23 = smov 112  }
0x1c14   :  { %v20064_v51 = vpack.c.bf16 %v18569_v24, %v18568_v20  ;;  %v18573_v20 = vld [vmem:[%s24181_s11 + $0x1] ss:$0 sm:$0xff] }
0x1c17   :  { %4985 = vrot.lane.b32.xlu0 %v4635_v58, %s24306_s21  ;;  %v4984_v58 = vpop.permute.xlu1 %4983  ;;  %s24323_s21 = sld [smem:[#allocation17_spill]] }
0x1c18   :  { %v4999_v35 = vsel %vm2270_vm7, %v4997_v49, %v4984_v58 }
0x1c82   :  { %v4811_v13 = vpop.xlane.xlu0 %4810 }
0x1c83   :  { %20368 = vrcp.f32 %v4811_v13 }
0x1c86   :  { %v4814_v23 = vpop.xlane.xlu0 %4813 }
0x1c87   :  { %20370 = vrcp.f32 %v4814_v23 }
0x1c8a   :  { %v4820_v50 = vpop.permute.xlu0 %4819 }
0x1c8b   :  { %19397 = vmatpush3.msk.msra.mxu0 %vm1092_vm5, %v4820_v50 }
0x1c8c   :  { %20063 = vmatprep.subr.bf16.mxu0 %v20529_v1 }
0x1c8d   :  { %v20369_v26 = vpop.eup %20368 }
0x1c8e   :  { %v4816_v48 = vmul.f32 %v20369_v26, %v20365_v12  ;;  %v4978_v57 = vpop.permute.xlu0 %4977 }
0x1c8f   :  { %v4998_v38 = vsel %vm887_vm3, %v21521_v61, %v4978_v57 }
0x1c90   :  { %19399 = vmatmul.mubr.msk.f32.vlgmr.msra.gmra.mrb[30].mxu0 %vm1088_vm6, %v4816_v48 }
0x1c91   :  { %v20371_v44 = vpop.eup %20370  ;;  %19414 = vmatprep.mubr.msk.f32.mxu0 %vm20531_vm2, %v20532_v31  ;;  %20065 = vmatpush3.bf16.msra.mxu0 %v20064_v51 }
0x1c92   :  { %v4818_v6 = vmul.f32 %v20371_v44, %v20367_v3  ;;  %20066 = vmatprep.subr.bf16.mxu0 %v20529_v1  ;;  %v4986_v30 = vpop.permute.xlu0 %4985 }
0x1c93   :  { %v5000_v5 = vsel %vm2270_vm7, %v4998_v38, %v4986_v30 }
0x1c94   :  { %19404 = vmatmul.mubr.msk.f32.vlgmr.msra.gmra.mrb[42].mxu1 %vm1088_vm6, %v4818_v6 }
0x1c95   :  { %19425 = vmatprep.mubr.msk.f32.mxu1 %vm20531_vm2, %v20532_v31  ;;  %20068 = vmatpush3.bf16.msra.mxu0 %v20067_v56 }
0x1c96   :  { %20075 = vmatprep.subr.bf16.mxu0 %v20529_v1 }
0x1d63   :  { %v4892_v54 = vpop.f32.mrb[30].mxu0 }
0x1d64   :  { %4991 = vrot.lane.b32.xlu1 %v4892_v54, %s24307_s24  ;;  %v19400_v27 = vpop.f32.mrb[31].mxu0 }
0x1d67   :  { %v4969_v32 = vpop.f32.mrb[42].mxu1 }
0x1d68   :  { %v19405_v52 = vpop.f32.mrb[43].mxu1  ;;  %4993 = vrot.lane.b32.xlu1 %v4969_v32, %s24307_s24 }
0x1dd6   :  { %v4992_v29 = vpop.permute.xlu1 %4991 }
0x1dd7   :  { %v5001_v33 = vsel %vm2273_vm8, %v4999_v35, %v4992_v29 }
0x1dd8   :  { %v5011_v37 = vrot.slane %v5001_v33, %v20691_v14 }
0x1dda   :  { %v5012_v0 = vcombine.high %v5011_v37, %v5011_v37  ;;  %v5019_v4 = vrot.slane %v5011_v37, %v20691_v14  ;;  %v4994_v7 = vpop.permute.xlu1 %4993 }
0x1ddb   :  { %v5002_v15 = vsel %vm2273_vm8, %v5000_v5, %v4994_v7 }
0x1ddc   :  { %v5026_v2 = vrot.slane %v5012_v0, %v20691_v14  ;;  %v5034_v10 = vrot.slane %v5002_v15, %v20691_v14  ;;  %v5027_v39 = vcombine.high %v5019_v4, %v5019_v4 }
0x1dde   :  { %v5064_v11 = vcombine.low %v5019_v4, %v5026_v2  ;;  %v5035_v21 = vcombine.high %v5034_v10, %v5034_v10  ;;  %v5042_v12 = vrot.slane %v5034_v10, %v20691_v14 }
0x1de0   :  { %v5049_v8 = vrot.slane %v5035_v21, %v20691_v14  ;;  %v5050_v61 = vcombine.high %v5042_v12, %v5042_v12  ;;  %v5065_v3 = vcombine.low %v5027_v39, %v5042_v12  ;;  %v5073_v22 = vrot.slane %v5064_v11, %v20691_v14 }
0x1de2   :  { %v5066_v13 = vcombine.low %v5049_v8, %v5050_v61  ;;  %v5080_v23 = vrot.slane %v5065_v3, %v20691_v14 }
0x1de4   :  { %v5087_v50 = vrot.slane %v5066_v13, %v20691_v14  ;;  %v5088_v26 = vcombine.low %v5073_v22, %v5080_v23 }
0x1de6   :  { %v5095_v48 = vrot.slane %v5088_v26, %v20691_v14  ;;  %v5102_v44 = vrot.slane %v5087_v50, %v20691_v14 }
0x1de8   :  { %v5103_v6 = vcombine.low %v5095_v48, %v5102_v44 }
0x1dea   :  { %19415 = vmatmul.mubr.msk.f32.vlgmr.msra.gmra.mrb[32].mxu0 %vm209_vm0, %v5103_v6 }
0x1deb   :  { %19444 = vmatprep.mubr.msk.f32.mxu0 %vm20531_vm2, %v20532_v31 }
0x1ebd   :  { %v5172_v24 = vpop.f32.mrb[32].mxu0 }
0x1ebe   :  { %v5173_v51 = vadd.f32 %v18573_v20, %v5172_v24  ;;  %v19416_v54 = vpop.f32.mrb[33].mxu0 }
0x1ec0   :  { %v5177_v27 = vcombine.high %v5173_v51, %v5173_v51  ;;  %v5184_v34 = vrot.slane %v5173_v51, %v20691_v14 }
0x1ec2   :  { %v5191_v55 = vrot.slane %v5177_v27, %v20691_v14  ;;  %v5192_v56 = vcombine.high %v5184_v34, %v5184_v34  ;;  %v5200_v32 = vrot.slane %v5184_v34, %v20691_v14 }
0x1ec4   :  { %v5193_v52 = vcombine.high %v5191_v55, %v5191_v55  ;;  %v5207_v53 = vrot.slane %v5191_v55, %v20691_v14  ;;  %v5214_v57 = vrot.slane %v5192_v56, %v20691_v14  ;;  %v5222_v58 = vcombine.high %v5200_v32, %v5200_v32 }
0x1ec5   :  { %v5230_v29 = vadd.f32 %v5200_v32, %v21325_v36 }
0x1ec6   :  { %v5221_v49 = vrot.slane %v5193_v52, %v20691_v14  ;;  %v5223_v35 = vcombine.high %v5214_v57, %v5214_v57  ;;  %v5231_v30 = vadd.f32 %v5214_v57, %v21328_v59  ;;  %v21673_v33 = vadd.f32 %v5222_v58, %v21331_v63 }
0x1ec7   :  { %v5234_v38 = vadd.f32 %v5207_v53, %v21337_v60 }
0x1ec8   :  { %v5233_v37 = vadd.f32 %v5223_v35, %v21334_v62  ;;  %v21678_v5 = vadd.f32 %v5221_v49, %v21340_v47  ;;  %v5246_v0 = vcombine.low %v5230_v29, %v5231_v30 }
0x1eca   :  { %v5247_v4 = vcombine.low %v21673_v33, %v5233_v37  ;;  %v5248_v7 = vcombine.low %v5234_v38, %v21678_v5  ;;  %v5255_v15 = vrot.slane %v5246_v0, %v20691_v14  ;;  %v18582_v0 = vld [vmem:[%s24182_s12 + $0x38] sm:$0xff] }
0x1ecc   :  { %v5262_v36 = vrot.slane %v5247_v4, %v20691_v14  ;;  %v5269_v59 = vrot.slane %v5248_v7, %v20691_v14  ;;  %v18586_v7 = vld [vmem:[%s24185_s14 + $0x40] sm:$0xff] }
0x1ece   :  { %v5270_v63 = vcombine.low %v5255_v15, %v5262_v36  ;;  %v5284_v62 = vrot.slane %v5269_v59, %v20691_v14  ;;  %v18587_v15 = vld [vmem:[%s24185_s14 + $0x48] sm:$0xff]  ;;  %v18588_v36 = vld [vmem:[%s24185_s14 + $0x50] sm:$0xff] }
0x1ecf   :  { %v20076_v59 = vpack.c.bf16 %v18587_v15, %v18586_v7 }
0x1ed0   :  { %v5277_v2 = vrot.slane %v5270_v63, %v20691_v14  ;;  %v18589_v63 = vld [vmem:[%s24185_s14 + $0x58] sm:$0xff] }
0x1ed1   :  { %20077 = vmatpush3.bf16.msra.mxu0 %v20076_v59 }
0x1ed2   :  { %v5285_v60 = vcombine.low %v5277_v2, %v5284_v62  ;;  %v20079_v2 = vpack.c.bf16 %v18589_v63, %v18588_v36  ;;  %20078 = vmatprep.subr.bf16.mxu0 %v20529_v1  ;;  %v18590_v62 = vld [vmem:[%s24185_s14 + $0x60] sm:$0xff] }
0x1ed4   :  { %v5287_v47 = vsel %vm418_vm1, %v5285_v60, 0.0  ;;  %v18591_v60 = vld [vmem:[%s24185_s14 + $0x68] sm:$0xff] }
0x1ed5   :  { %5288 = vadd.xlane.f32.xlu0 %v5287_v47  ;;  %20080 = vmatpush3.bf16.msra.mxu0 %v20079_v2  ;;  %v20082_v47 = vpack.c.bf16 %v18591_v60, %v18590_v62 }
0x1ed6   :  { %20081 = vmatprep.subr.bf16.mxu0 %v20529_v1 }
0x1ed9   :  { %20083 = vmatpush3.bf16.msra.mxu0 %v20082_v47 }
0x1eda   :  { %20084 = vmatprep.subr.bf16.mxu0 %v20529_v1 }
0x1f62   :  { %v5289_v10 = vpop.xlane.xlu0 %5288 }
0x1f63   :  { %v5290_v39 = vmul.f32 0.03125, %v5289_v10 }
0x1f65   :  { %v5295_v11 = vrot.slane %v5290_v39, %v20819_v40  ;;  %v5299_v21 = vrot.slane %v5290_v39, %v20822_v41  ;;  %v5303_v12 = vrot.slane %v5290_v39, %v20825_v42  ;;  %v5307_v8 = vrot.slane %v5290_v39, %v20828_v43 }
0x1f66   :  { %v5311_v61 = vrot.slane %v5290_v39, %v20831_v45  ;;  %v5315_v3 = vrot.slane %v5290_v39, %v20834_v46  ;;  %v18577_v39 = vld [vmem:[%s24183_s18 + $0x1] ss:$0 sm:$0xff] }
0x1f67   :  { %v21694_v22 = vsub.f32 %v5230_v29, %v5295_v11  ;;  %v21696_v13 = vsub.f32 %v5231_v30, %v5299_v21  ;;  %v21699_v23 = vsub.f32 %v21673_v33, %v5303_v12  ;;  %v21701_v50 = vsub.f32 %v5233_v37, %v5307_v8  ;;  %v18579_v29 = vld [vmem:[%s24182_s12 + $0x20] sm:$0xff]  ;;  %v18580_v30 = vld [vmem:[%s24182_s12 + $0x28] sm:$0xff]  ;;  %v18581_v37 = vld [vmem:[%s24182_s12 + $0x30] sm:$0xff]  ;;  %s24314_s12 = smov 8  }
0x1f68   :  { %v21703_v26 = vsub.f32 %v5234_v38, %v5311_v61  ;;  %v21706_v48 = vsub.f32 %v21678_v5, %v5315_v3  ;;  %v20070_v38 = vpack.c.bf16 %v18580_v30, %v18579_v29  ;;  %v20073_v4 = vpack.c.bf16 %v18582_v0, %v18581_v37  ;;  %v18578_v21 = vld [vmem:[%s24184_s19 + $0x1] ss:$0 sm:$0xff] }
0x1f69   :  { %v5328_v44 = vmul.f32 %v21694_v22, %v21694_v22  ;;  %v5329_v6 = vmul.f32 %v21696_v13, %v21696_v13  ;;  %v5330_v20 = vmul.f32 %v21699_v23, %v21699_v23  ;;  %v5331_v24 = vmul.f32 %v21701_v50, %v21701_v50 }
0x1f6a   :  { %v5332_v51 = vmul.f32 %v21703_v26, %v21703_v26  ;;  %v5333_v54 = vmul.f32 %v21706_v48, %v21706_v48  ;;  %20071 = vmatpush3.bf16.msra.mxu1 %v20070_v38  ;;  %v5429_v8 = vcombine.high %v18577_v39, %v18577_v39  ;;  %v5436_v61 = vrot.slane %v18577_v39, %v20691_v14 }
0x1f6b   :  { %v5340_v27 = vcombine.low %v5328_v44, %v5329_v6  ;;  %v5341_v34 = vcombine.low %v5330_v20, %v5331_v24  ;;  %20072 = vmatprep.subr.bf16.mxu1 %v20529_v1  ;;  %v5500_v3 = vrot.slane %v18578_v21, %v20691_v14  ;;  %v5493_v20 = vcombine.high %v18578_v21, %v18578_v21 }
0x1f6c   :  { %v5342_v55 = vcombine.low %v5332_v51, %v5333_v54  ;;  %v5443_v44 = vrot.slane %v5429_v8, %v20691_v14  ;;  %v5444_v6 = vcombine.high %v5436_v61, %v5436_v61  ;;  %v5452_v54 = vrot.slane %v5436_v61, %v20691_v14 }
0x1f6d   :  { %v5349_v56 = vrot.slane %v5340_v27, %v20691_v14  ;;  %v5356_v32 = vrot.slane %v5341_v34, %v20691_v14  ;;  %v5508_v24 = vcombine.high %v5500_v3, %v5500_v3  ;;  %v5507_v34 = vrot.slane %v5493_v20, %v20691_v14 }
0x1f6e   :  { %v5363_v52 = vrot.slane %v5342_v55, %v20691_v14  ;;  %20074 = vmatpush3.bf16.msra.mxu1 %v20073_v4  ;;  %v5445_v51 = vcombine.high %v5443_v44, %v5443_v44  ;;  %v5466_v27 = vrot.slane %v5444_v6, %v20691_v14  ;;  %v5516_v55 = vrot.slane %v5500_v3, %v20691_v14 }
0x1f6f   :  { %v5364_v53 = vcombine.low %v5349_v56, %v5356_v32  ;;  %v5530_v56 = vrot.slane %v5508_v24, %v20691_v14  ;;  %v5459_v32 = vrot.slane %v5443_v44, %v20691_v14  ;;  %v5523_v60 = vrot.slane %v5507_v34, %v20691_v14 }
0x1f70   :  { %v5378_v58 = vrot.slane %v5363_v52, %v20691_v14  ;;  %v5538_v4 = vcombine.high %v5516_v55, %v5516_v55 }
0x1f71   :  { %v5371_v57 = vrot.slane %v5364_v53, %v20691_v14  ;;  %v5473_v53 = vrot.slane %v5445_v51, %v20691_v14  ;;  %v5539_v7 = vcombine.high %v5530_v56, %v5530_v56 }
0x1f73   :  { %v5379_v49 = vcombine.low %v5371_v57, %v5378_v58  ;;  %v5474_v57 = vcombine.high %v5452_v54, %v5452_v54  ;;  %v5475_v58 = vcombine.high %v5466_v27, %v5466_v27 }
0x1f75   :  { %v5381_v35 = vsel %vm418_vm1, %v5379_v49, 0.0  ;;  %v5509_v49 = vcombine.high %v5507_v34, %v5507_v34 }
0x1f76   :  { %5382 = vadd.xlane.f32.xlu1 %v5381_v35 }
0x1f77   :  { %v5537_v47 = vrot.slane %v5509_v49, %v20691_v14 }
0x2003   :  { %v5383_v10 = vpop.xlane.xlu1 %5382 }
0x2004   :  { %v5384_v11 = vmul.f32 0.03125, %v5383_v10 }
0x2006   :  { %v5385_v12 = vadd.f32 1e-05, %v5384_v11 }
0x2008   :  { %20372 = vrsqrt.f32 %v5385_v12 }
0x2012   :  { %v20373_v52 = vpop.eup %20372 }
0x2013   :  { %v5391_v35 = vrot.slane %v20373_v52, %v20819_v40  ;;  %v5395_v29 = vrot.slane %v20373_v52, %v20822_v41  ;;  %v5399_v30 = vrot.slane %v20373_v52, %v20825_v42  ;;  %v5403_v37 = vrot.slane %v20373_v52, %v20828_v43 }
0x2014   :  { %v5407_v38 = vrot.slane %v20373_v52, %v20831_v45  ;;  %v5411_v0 = vrot.slane %v20373_v52, %v20834_v46  ;;  %v18584_v52 = vld [vmem:[%s24186_s13 + $0x1] ss:$0 sm:$0xff]  ;;  %s24308_s13 = smov 96  }
0x2015   :  { %v5418_v15 = vmul.f32 %v5391_v35, %v21694_v22  ;;  %v5419_v36 = vmul.f32 %v5395_v29, %v21696_v13  ;;  %v5420_v59 = vmul.f32 %v5399_v30, %v21699_v23  ;;  %v5421_v63 = vmul.f32 %v5403_v37, %v21701_v50  ;;  %v5811_v35 = vld [vmem:[%s24188_s4 + $0x8] sm:$0xff]  ;;  %v5813_v29 = vld [vmem:[%s24188_s4 + $0x18] sm:$0xff]  ;;  %v5810_v37 = vld [vmem:[%s24188_s4] sm:$0xff] }
0x2016   :  { %v5422_v2 = vmul.f32 %v5407_v38, %v21703_v26  ;;  %v5423_v62 = vmul.f32 %v5411_v0, %v21706_v48  ;;  %v20087_v30 = vpack.c.bf16 %v5813_v29, %v5811_v35  ;;  %v5812_v38 = vld [vmem:[%s24188_s4 + $0x10] sm:$0xff]  ;;  %v6046_v35 = vrot.slane %v6039_v28, %v20691_v14 }
0x2017   :  { %v5482_v10 = vmul.f32 %v5452_v54, %v5418_v15  ;;  %v5483_v39 = vmul.f32 %v5466_v27, %v5419_v36  ;;  %v5484_v11 = vmul.f32 %v5474_v57, %v5420_v59  ;;  %v5485_v21 = vmul.f32 %v5475_v58, %v5421_v63  ;;  %v5814_v36 = vld [vmem:[%s24188_s4 + $0x20] sm:$0xff]  ;;  %v5816_v59 = vld [vmem:[%s24188_s4 + $0x30] sm:$0xff] }
0x2018   :  { %v5486_v12 = vmul.f32 %v5459_v32, %v5422_v2  ;;  %v5487_v22 = vmul.f32 %v5473_v53, %v5423_v62  ;;  %v20089_v0 = vpack.c.bf16 %v5812_v38, %v5810_v37  ;;  %20088 = vmatprep.subr.bf16.mxu1 %v20087_v30  ;;  %v20093_v63 = vpack.c.bf16 %v5816_v59, %v5814_v36  ;;  %v18595_v2 = vld [vmem:[%s24187_s15 + $0x1] ss:$0 sm:$0xff] }
0x2019   :  { %v5546_v8 = vadd.f32 %v5516_v55, %v5482_v10  ;;  %v5547_v13 = vadd.f32 %v5530_v56, %v5483_v39  ;;  %v5548_v61 = vadd.f32 %v5538_v4, %v5484_v11  ;;  %v5549_v23 = vadd.f32 %v5539_v7, %v5485_v21  ;;  %v18592_v55 = vld [vmem:[%s24185_s14 + $0x70] sm:$0xff]  ;;  %v18593_v56 = vld [vmem:[%s24185_s14 + $0x78] sm:$0xff]  ;;  %v5815_v4 = vld [vmem:[%s24188_s4 + $0x28] sm:$0xff] }
0x201a   :  { %v5550_v3 = vadd.f32 %v5523_v60, %v5486_v12  ;;  %v5551_v50 = vadd.f32 %v5537_v47, %v5487_v22  ;;  %v20085_v32 = vpack.c.bf16 %v18593_v56, %v18592_v55  ;;  %v5817_v7 = vld [vmem:[%s24188_s4 + $0x38] sm:$0xff]  ;;  %v6053_v17 = vrot.slane %v6046_v35, %v20691_v14  ;;  %s24318_s4 = smov 16  }
0x201b   :  { %v5571_v44 = vcombine.low %v5546_v8, %v5547_v13  ;;  %v5572_v26 = vcombine.low %v5548_v61, %v5549_v23  ;;  %v20091_v15 = vpack.c.bf16 %v5817_v7, %v5815_v4 }
0x201c   :  { %v5573_v6 = vcombine.low %v5550_v3, %v5551_v50  ;;  %20086 = vmatpush3.bf16.msra.mxu0 %v20085_v32  ;;  %v5920_v3 = vld [vmem:[%s24189_s6] sm:$0xff]  ;;  %v5921_v50 = vld [vmem:[%s24189_s6 + $0x8] sm:$0xff] }
0x201d   :  { %v5580_v48 = vrot.slane %v5571_v44, %v20691_v14  ;;  %v5587_v20 = vrot.slane %v5572_v26, %v20691_v14  ;;  %20101 = vmatprep.subr.bf16.mxu0 %v20529_v1  ;;  %v20096_v26 = vpack.c.bf16 %v5921_v50, %v5920_v3  ;;  %v18598_v32 = vld [vmem:[%s24191_s7] ss:$0 sm:$0xff]  ;;  %s24320_s7 = sld [smem:[#allocation11_spill]] }
0x201e   :  { %v5594_v24 = vrot.slane %v5573_v6, %v20691_v14 }
0x201f   :  { %v5595_v51 = vcombine.low %v5580_v48, %v5587_v20  ;;  %v5818_v20 = vld [vmem:[%s24190_s5] sm:$0x3]  ;;  %s24328_s5 = sld [smem:[#allocation10_spill]] }
0x2020   :  { %v5609_v27 = vrot.slane %v5594_v24, %v20691_v14  ;;  %v5823_v24 = vrot.slane %v5818_v20, %v20819_v40 }
0x2021   :  { %v5602_v54 = vrot.slane %v5595_v51, %v20691_v14  ;;  %v5827_v51 = vrot.slane %v5818_v20, %v20822_v41 }
0x2023   :  { %v5610_v34 = vcombine.low %v5602_v54, %v5609_v27 }
0x2025   :  { %19426 = vmatmul.mubr.msk.f32.vlgmr.msra.gmra.mrb[44].mxu1 %vm209_vm0, %v5610_v34 }
0x2026   :  { %5913 = vmatprep.mubr.f32.mxu1 %v20532_v31  ;;  %20090 = vmatpush1.bf16.msra.mxu1 %v20089_v0 }
0x2027   :  { %20092 = vmatprep.subr.bf16.mxu1 %v20091_v15 }
0x202a   :  { %20094 = vmatpush1.bf16.msra.mxu1 %v20093_v63 }
0x202b   :  { %20095 = vmatprep.subr.bf16.mxu1 %v20529_v1 }
0x20f8   :  { %v5679_v53 = vpop.f32.mrb[44].mxu1 }
0x20f9   :  { %v5680_v57 = vadd.f32 %v18584_v52, %v5679_v53  ;;  %v19427_v58 = vpop.f32.mrb[45].mxu1 }
0x20fa   :  { %v6031_v58 = vrot.slane %v6024_v25, %v20691_v14 }
0x20fb   :  { %v5683_v49 = vmax.f32 %v5680_v57, 0.0 }
0x20fc   :  { %v6038_v37 = vrot.slane %v6031_v58, %v20691_v14 }
0x20fd   :  { %19445 = vmatmul.mubr.msk.f32.vlgmr.msra.gmra.mrb[34].mxu0 %vm2966_vm9, %v5683_v49 }
0x20fe   :  { %19466 = vmatprep.mubr.msk.f32.mxu0 %vm20531_vm2, %v20532_v31 }
0x21d0   :  { %v5770_v62 = vpop.f32.mrb[34].mxu0 }
0x21d1   :  { %v5771_v60 = vadd.f32 %v18595_v2, %v5770_v62  ;;  %v19446_v47 = vpop.f32.mrb[35].mxu0 }
0x21d3   :  { %v5775_v10 = vcombine.high %v5771_v60, %v5771_v60  ;;  %v5782_v39 = vrot.slane %v5771_v60, %v20691_v14 }
0x21d5   :  { %v5789_v11 = vrot.slane %v5775_v10, %v20691_v14  ;;  %v5797_v21 = vrot.slane %v5782_v39, %v20691_v14 }
0x21d7   :  { %v5790_v12 = vcombine.high %v5789_v11, %v5789_v11  ;;  %v5805_v22 = vcombine.high %v5797_v21, %v5797_v21 }
0x21d9   :  { %v5804_v8 = vrot.slane %v5790_v12, %v20691_v14  ;;  %v5808_v13 = vadd.f32 %v5805_v22, %v21673_v33  ;;  %v5922_v33 = vld [vmem:[%s24189_s6 + $0x10] sm:$0xff] }
0x21db   :  { %v5809_v61 = vadd.f32 %v5804_v8, %v21678_v5  ;;  %v5923_v5 = vld [vmem:[%s24189_s6 + $0x18] sm:$0xff]  ;;  %s24325_s6 = sld [smem:[#allocation4_spill]] }
0x21dc   :  { %v20099_v48 = vpack.c.bf16 %v5923_v5, %v5922_v33 }
0x21dd   :  { %v5832_v23 = vcombine.low %v5808_v13, %v5809_v61 }
0x21df   :  { %v5839_v44 = vrot.slane %v5832_v23, %v20691_v14 }
0x21e1   :  { %v5846_v6 = vrot.slane %v5839_v44, %v20691_v14 }
0x21e3   :  { %18597 = vmatmul.mubr.msk.f32.vlgmr.msra.gmra.mrb[46].mxu1 %vm209_vm0, %v5846_v6 }
0x21e4   :  { %20097 = vmatpush3.bf16.msra.mxu1 %v20096_v26  ;;  %19455 = vmatprep.mubr.msk.f32.mxu1 %vm20531_vm2, %v20532_v31 }
0x21e5   :  { %20098 = vmatprep.subr.bf16.mxu1 %v20529_v1 }
0x21e8   :  { %20100 = vmatpush3.bf16.msra.mxu1 %v20099_v48 }
0x21e9   :  { %19469 = vmatprep.subr.mxu1 %v20532_v31 }
0x21eb   :  { %19456 = vmatmul.mubr.msk.f32.vlgmr.msra.gmra.mrb[48].mxu1 %vm209_vm0, %v5846_v6 }
0x21ec   :  { %19471 = vmatprep.mubr.msk.f32.mxu1 %vm20531_vm2, %v20532_v31 }
0x22b6   :  { %v5915_v54 = vpop.f32.mrb[46].mxu1 }
0x22b7   :  { %v21871_v27 = vadd.f32 %v5915_v54, %v5823_v24  ;;  %v5917_v34 = vpop.f32.mrb[47].mxu1 }
0x22b8   :  { %v21873_v55 = vadd.f32 %v5917_v34, %v5827_v51 }
0x22ba   :  { %v17970_v56 = vcombine.low %v21871_v27, %v21873_v55 }
0x22be   :  { %v5997_v52 = vpop.f32.mrb[48].mxu1 }
0x22bf   :  { %v5998_v53 = vadd.f32 %v18598_v32, %v5997_v52  ;;  %v19457_v57 = vpop.f32.mrb[49].mxu1 }
0x22c1   :  { %v6008_v49 = vrot.slane %v5998_v53, %v20691_v14 }
0x22c3   :  { %v6009_v29 = vcombine.high %v6008_v49, %v6008_v49  ;;  %v6016_v30 = vrot.slane %v6008_v49, %v20691_v14 }
0x22c5   :  { %v6023_v38 = vrot.slane %v6009_v29, %v20691_v14  ;;  %v6059_v0 = vrot.slane %v6016_v30, %v20819_v40 }
0x22c7   :  { %v6063_v18 = vrot.slane %v6023_v38, %v20819_v40  ;;  %v21896_v25 = vsel %vm6066_vm10, %v6038_v37, %v6059_v0 }
0x22c8   :  { %v21902_v19 = vadd.f32 %v20526_v16, %v21896_v25 }
0x22c9   :  { %v21905_v28 = vsel %vm6066_vm10, %v6053_v17, %v6063_v18 }
0x22ca   :  { %v21908_v4 = vadd.f32 %v20526_v16, %v21905_v28  ;;  %v6079_v7 = vrot.slane %v21902_v19, %v20691_v14 }
0x22cc   :  { %v6087_v15 = vrot.slane %v6079_v7, %v20691_v14  ;;  %v6080_v36 = vcombine.high %v6079_v7, %v6079_v7  ;;  %v6102_v59 = vrot.slane %v21908_v4, %v20691_v14 }
0x22ce   :  { %v6094_v63 = vrot.slane %v6080_v36, %v20691_v14  ;;  %v6095_v2 = vcombine.high %v6087_v15, %v6087_v15  ;;  %v6103_v62 = vcombine.high %v6102_v59, %v6102_v59  ;;  %v6110_v60 = vrot.slane %v6102_v59, %v20691_v14 }
0x22d0   :  { %v6117_v47 = vrot.slane %v6103_v62, %v20691_v14  ;;  %v6118_v10 = vcombine.high %v6110_v60, %v6110_v60  ;;  %v6127_v39 = vcombine.low %v6087_v15, %v6094_v63  ;;  %v6128_v11 = vcombine.low %v6095_v2, %v6110_v60  ;;  %v6434_v62 = vld [vmem:[%s24291_s28 + $0x8] sm:$0xff] }
0x22d2   :  { %v6129_v21 = vcombine.low %v6117_v47, %v6118_v10  ;;  %v6136_v12 = vrot.slane %v6127_v39, %v20691_v14  ;;  %v6143_v22 = vrot.slane %v6128_v11, %v20691_v14 }
0x22d4   :  { %v6150_v8 = vrot.slane %v6129_v21, %v20691_v14  ;;  %v6151_v13 = vcombine.low %v6136_v12, %v6143_v22  ;;  %v18600_v21 = vld [vmem:[%s24292_s1] ss:$0 sm:$0xff] }
0x22d5   :  { %v18601_v22 = vld [vmem:[%s24293_s27] ss:$0 sm:$0xff] }
0x22d6   :  { %v6158_v61 = vrot.slane %v6151_v13, %v20691_v14  ;;  %v6165_v23 = vrot.slane %v6150_v8, %v20691_v14  ;;  %v6310_v13 = vcombine.high %v18600_v21, %v18600_v21 }
0x22d8   :  { %v6166_v3 = vcombine.low %v6158_v61, %v6165_v23  ;;  %v6317_v61 = vrot.slane %v18600_v21, %v20691_v14  ;;  %v6381_v23 = vrot.slane %v18601_v22, %v20691_v14 }
0x22da   :  { %v6168_v50 = vsel %vm418_vm1, %v6166_v3, 0.0  ;;  %v6324_v3 = vrot.slane %v6310_v13, %v20691_v14 }
0x22db   :  { %6169 = vadd.xlane.f32.xlu0 %v6168_v50  ;;  %v6325_v50 = vcombine.high %v6317_v61, %v6317_v61 }
0x2368   :  { %v6170_v44 = vpop.xlane.xlu0 %6169 }
0x2369   :  { %v6171_v26 = vmul.f32 0.03125, %v6170_v44  ;;  %v6374_v44 = vcombine.high %v18601_v22, %v18601_v22 }
0x236b   :  { %v6176_v6 = vrot.slane %v6171_v26, %v20819_v40  ;;  %v6180_v33 = vrot.slane %v6171_v26, %v20822_v41  ;;  %v6184_v5 = vrot.slane %v6171_v26, %v20825_v42  ;;  %v6188_v48 = vrot.slane %v6171_v26, %v20828_v43 }
0x236c   :  { %v6192_v20 = vrot.slane %v6171_v26, %v20831_v45  ;;  %v6196_v24 = vrot.slane %v6171_v26, %v20834_v46  ;;  %v6389_v26 = vcombine.high %v6381_v23, %v6381_v23 }
0x236d   :  { %v21930_v51 = vsub.f32 %v6087_v15, %v6176_v6  ;;  %v21932_v54 = vsub.f32 %v6094_v63, %v6180_v33  ;;  %v21934_v34 = vsub.f32 %v6095_v2, %v6184_v5  ;;  %v21936_v32 = vsub.f32 %v6110_v60, %v6188_v48  ;;  %v6433_v2 = vld [vmem:[%s24291_s28] sm:$0xff]  ;;  %v6435_v60 = vld [vmem:[%s24291_s28 + $0x10] sm:$0xff] }
0x236e   :  { %v21938_v52 = vsub.f32 %v6117_v47, %v6192_v20  ;;  %v21940_v53 = vsub.f32 %v6118_v10, %v6196_v24  ;;  %v20102_v47 = vpack.c.bf16 %v6434_v62, %v6433_v2  ;;  %v6436_v10 = vld [vmem:[%s24291_s28 + $0x18] sm:$0xff]  ;;  %v6326_v6 = vcombine.high %v6324_v3, %v6324_v3 }
0x236f   :  { %v6209_v57 = vmul.f32 %v21930_v51, %v21930_v51  ;;  %v6210_v58 = vmul.f32 %v21932_v54, %v21932_v54  ;;  %v6211_v49 = vmul.f32 %v21934_v34, %v21934_v34  ;;  %v6212_v35 = vmul.f32 %v21936_v32, %v21936_v32 }
0x2370   :  { %v6213_v29 = vmul.f32 %v21938_v52, %v21938_v52  ;;  %v6214_v30 = vmul.f32 %v21940_v53, %v21940_v53  ;;  %20103 = vmatpush3.bf16.msra.mxu0 %v20102_v47  ;;  %v20105_v39 = vpack.c.bf16 %v6436_v10, %v6435_v60  ;;  %v6333_v33 = vrot.slane %v6317_v61, %v20691_v14 }
0x2371   :  { %v6221_v37 = vcombine.low %v6209_v57, %v6210_v58  ;;  %v6222_v38 = vcombine.low %v6211_v49, %v6212_v35  ;;  %20104 = vmatprep.subr.bf16.mxu0 %v20529_v1  ;;  %v6347_v5 = vrot.slane %v6325_v50, %v20691_v14  ;;  %v6388_v48 = vrot.slane %v6374_v44, %v20691_v14 }
0x2372   :  { %v6223_v0 = vcombine.low %v6213_v29, %v6214_v30  ;;  %v6397_v20 = vrot.slane %v6381_v23, %v20691_v14  ;;  %v6411_v24 = vrot.slane %v6389_v26, %v20691_v14  ;;  %v6340_v57 = vrot.slane %v6324_v3, %v20691_v14 }
0x2373   :  { %v6230_v17 = vrot.slane %v6221_v37, %v20691_v14  ;;  %v6237_v18 = vrot.slane %v6222_v38, %v20691_v14  ;;  %v6354_v49 = vrot.slane %v6326_v6, %v20691_v14  ;;  %v6355_v35 = vcombine.high %v6333_v33, %v6333_v33 }
0x2374   :  { %v6244_v16 = vrot.slane %v6223_v0, %v20691_v14  ;;  %20106 = vmatpush3.bf16.msra.mxu0 %v20105_v39  ;;  %v6356_v29 = vcombine.high %v6347_v5, %v6347_v5  ;;  %v6390_v30 = vcombine.high %v6388_v48, %v6388_v48  ;;  %v6404_v47 = vrot.slane %v6388_v48, %v20691_v14  ;;  %v18602_v48 = vld [vmem:[%s24294_s3] ss:$0 sm:$0xff] }
0x2375   :  { %v6245_v7 = vcombine.low %v6230_v17, %v6237_v18  ;;  %19479 = vmatprep.subr.mxu0 %v20532_v31 }
0x2376   :  { %v6259_v36 = vrot.slane %v6244_v16, %v20691_v14  ;;  %v6418_v10 = vrot.slane %v6390_v30, %v20691_v14 }
0x2377   :  { %v6252_v15 = vrot.slane %v6245_v7, %v20691_v14  ;;  %v6419_v7 = vcombine.high %v6397_v20, %v6397_v20 }
0x2379   :  { %v6260_v59 = vcombine.low %v6252_v15, %v6259_v36  ;;  %v6420_v15 = vcombine.high %v6411_v24, %v6411_v24 }
0x237b   :  { %v6262_v63 = vsel %vm418_vm1, %v6260_v59, 0.0 }
0x237c   :  { %6263 = vadd.xlane.f32.xlu0 %v6262_v63 }
0x2409   :  { %v6264_v11 = vpop.xlane.xlu0 %6263 }
0x240a   :  { %v6265_v12 = vmul.f32 0.03125, %v6264_v11 }
0x240c   :  { %v6266_v8 = vadd.f32 1e-05, %v6265_v12 }
0x240e   :  { %20374 = vrsqrt.f32 %v6266_v8 }
0x2418   :  { %v20375_v58 = vpop.eup %20374 }
0x2419   :  { %v6272_v37 = vrot.slane %v20375_v58, %v20819_v40  ;;  %v6276_v38 = vrot.slane %v20375_v58, %v20822_v41  ;;  %v6280_v0 = vrot.slane %v20375_v58, %v20825_v42  ;;  %v6284_v17 = vrot.slane %v20375_v58, %v20828_v43 }
0x241a   :  { %v6288_v18 = vrot.slane %v20375_v58, %v20831_v45  ;;  %v6292_v16 = vrot.slane %v20375_v58, %v20834_v46 }
0x241b   :  { %v6299_v36 = vmul.f32 %v6272_v37, %v21930_v51  ;;  %v6300_v59 = vmul.f32 %v6276_v38, %v21932_v54  ;;  %v6301_v63 = vmul.f32 %v6280_v0, %v21934_v34  ;;  %v6302_v2 = vmul.f32 %v6284_v17, %v21936_v32 }
0x241c   :  { %v6303_v62 = vmul.f32 %v6288_v18, %v21938_v52  ;;  %v6304_v60 = vmul.f32 %v6292_v16, %v21940_v53 }
0x241d   :  { %v6363_v39 = vmul.f32 %v6333_v33, %v6299_v36  ;;  %v6364_v11 = vmul.f32 %v6347_v5, %v6300_v59  ;;  %v6365_v21 = vmul.f32 %v6355_v35, %v6301_v63  ;;  %v6366_v12 = vmul.f32 %v6356_v29, %v6302_v2 }
0x241e   :  { %v6367_v22 = vmul.f32 %v6340_v57, %v6303_v62  ;;  %v6368_v51 = vmul.f32 %v6354_v49, %v6304_v60 }
0x241f   :  { %v6427_v8 = vadd.f32 %v6397_v20, %v6363_v39  ;;  %v6428_v54 = vadd.f32 %v6411_v24, %v6364_v11  ;;  %v6429_v13 = vadd.f32 %v6419_v7, %v6365_v21  ;;  %v6430_v34 = vadd.f32 %v6420_v15, %v6366_v12 }
0x2420   :  { %v6431_v61 = vadd.f32 %v6404_v47, %v6367_v22  ;;  %v6432_v32 = vadd.f32 %v6418_v10, %v6368_v51 }
0x2421   :  { %v6450_v23 = vcombine.low %v6427_v8, %v6428_v54  ;;  %v6451_v52 = vcombine.low %v6429_v13, %v6430_v34 }
0x2422   :  { %v6452_v3 = vcombine.low %v6431_v61, %v6432_v32 }
0x2423   :  { %v6459_v53 = vrot.slane %v6450_v23, %v20691_v14  ;;  %v6466_v50 = vrot.slane %v6451_v52, %v20691_v14 }
0x2424   :  { %v6473_v44 = vrot.slane %v6452_v3, %v20691_v14 }
0x2425   :  { %v6474_v26 = vcombine.low %v6459_v53, %v6466_v50 }
0x2426   :  { %v6488_v33 = vrot.slane %v6473_v44, %v20691_v14 }
0x2427   :  { %v6481_v6 = vrot.slane %v6474_v26, %v20691_v14 }
0x2429   :  { %v6489_v5 = vcombine.low %v6481_v6, %v6488_v33 }
0x242b   :  { %19467 = vmatmul.mubr.msk.f32.vlgmr.msra.gmra.mrb[36].mxu0 %vm209_vm0, %v6489_v5 }
0x242c   :  { %19481 = vmatprep.mubr.msk.f32.mxu0 %vm20531_vm2, %v20532_v31 }
0x24fe   :  { %v6558_v20 = vpop.f32.mrb[36].mxu0 }
0x24ff   :  { %v6559_v24 = vadd.f32 %v18602_v48, %v6558_v20  ;;  %v19468_v57 = vpop.f32.mrb[37].mxu0 }
0x2501   :  { %v6563_v58 = vcombine.high %v6559_v24, %v6559_v24  ;;  %v6570_v49 = vrot.slane %v6559_v24, %v20691_v14 }
0x2503   :  { %v6577_v35 = vrot.slane %v6563_v58, %v20691_v14  ;;  %v6578_v29 = vcombine.high %v6570_v49, %v6570_v49  ;;  %v6586_v30 = vrot.slane %v6570_v49, %v20691_v14 }
0x2505   :  { %v6579_v37 = vcombine.high %v6577_v35, %v6577_v35  ;;  %v6600_v38 = vrot.slane %v6578_v29, %v20691_v14  ;;  %v6608_v0 = vcombine.high %v6586_v30, %v6586_v30  ;;  %v6593_v17 = vrot.slane %v6577_v35, %v20691_v14 }
0x2507   :  { %v6607_v18 = vrot.slane %v6579_v37, %v20691_v14  ;;  %v6609_v16 = vcombine.high %v6600_v38, %v6600_v38  ;;  %v6610_v7 = vcombine.low %v6586_v30, %v6600_v38  ;;  %v6624_v36 = vrot.slane %v6608_v0, %v20691_v14 }
0x2509   :  { %v6617_v15 = vrot.slane %v6610_v7, %v20691_v14  ;;  %v6709_v59 = vcombine.low %v6609_v16, %v6593_v17  ;;  %v6723_v62 = vrot.slane %v6607_v18, %v20691_v14 }
0x250b   :  { %v6625_v63 = vcombine.low %v6617_v15, %v6624_v36  ;;  %v6716_v2 = vrot.slane %v6709_v59, %v20691_v14 }
0x250d   :  { %v22026_v60 = vrot.slane %v6625_v63, %v20691_v14  ;;  %v6724_v47 = vcombine.low %v6716_v2, %v6723_v62 }
0x250f   :  { %v22029_v10 = vrot.slane %v6724_v47, %v20691_v14  ;;  %6633 = vrot.lane.b32.xlu0 %v22026_v60, %s24308_s13 }
0x2511   :  { %6732 = vrot.lane.b32.xlu1 %v22029_v10, %s24308_s13 }
0x2581   :  { %v6634_v39 = vpop.permute.xlu0 %6633 }
0x2582   :  { %19470 = vmatpush3.xpose.msk.msra.mxu1 %vm887_vm3, %v6634_v39 }
0x2583   :  { %19474 = vmatprep.subr.mxu1 %v20532_v31  ;;  %v6733_v11 = vpop.permute.xlu1 %6732 }
0x2585   :  { %19472 = vmatmul.mubr.msk.f32.vlgmr.msra.gmra.mrb[50].mxu1 %vm887_vm3, %v22026_v60 }
0x2586   :  { %19475 = vmatpush3.xpose.msk.msra.mxu1 %vm887_vm3, %v6733_v11  ;;  %19476 = vmatprep.mubr.msk.f32.mxu1 %vm20531_vm2, %v20532_v31 }
0x2587   :  { %19484 = vmatprep.subr.mxu1 %v20532_v31 }
0x2589   :  { %19477 = vmatmul.mubr.msk.f32.vlgmr.msra.gmra.mrb[52].mxu1 %vm887_vm3, %v22029_v10 }
0x258a   :  { %19486 = vmatprep.mubr.msk.f32.mxu1 %vm20531_vm2, %v20532_v31 }
0x2658   :  { %v6705_v21 = vpop.f32.mrb[50].mxu1 }
0x2659   :  { %v6808_v12 = vmul.f32 0.35355338, %v6705_v21  ;;  %v19473_v22 = vpop.f32.mrb[51].mxu1 }
0x265b   :  { %v6810_v51 = vsel %vm1063_vm4, %v6808_v12, -inf }
0x265c   :  { %6811 = vmax.xlane.f32.xlu1 %v6810_v51  ;;  %v6804_v8 = vpop.f32.mrb[52].mxu1 }
0x265d   :  { %v6809_v54 = vmul.f32 0.35355338, %v6804_v8  ;;  %v19478_v13 = vpop.f32.mrb[53].mxu1 }
0x265f   :  { %v6813_v34 = vsel %vm1063_vm4, %v6809_v54, -inf }
0x2660   :  { %6814 = vmax.xlane.f32.xlu0 %v6813_v34 }
0x266d   :  { %6909 = vrot.lane.b32.xlu1 %v22029_v10, %s24295_s8 }
0x2671   :  { %6988 = vrot.lane.b32.xlu1 %v22026_v60, %s24296_s30 }
0x2675   :  { %7066 = vrot.lane.b32.xlu1 %v22029_v10, %s24296_s30 }
0x2676   :  { %6832 = vrot.lane.b32.xlu0 %v22026_v60, %s24295_s8 }
0x26e9   :  { %v6812_v61 = vpop.xlane.xlu1 %6811 }
0x26ea   :  { %v6816_v32 = vsub.f32 %v6808_v12, %v6812_v61 }
0x26ec   :  { %v6818_v23 = vmul.f32 1.442695, %v6816_v32 }
0x26ed   :  { %v6815_v52 = vpop.xlane.xlu0 %6814  ;;  %v6910_v3 = vpop.permute.xlu1 %6909 }
0x26ee   :  { %20376 = vpow2.f32 %v6818_v23  ;;  %v6817_v53 = vsub.f32 %v6809_v54, %v6815_v52  ;;  %19485 = vmatpush3.msk.msra.mxu1 %vm1092_vm5, %v6910_v3 }
0x26ef   :  { %19494 = vmatprep.subr.mxu1 %v20532_v31 }
0x26f0   :  { %v6820_v50 = vmul.f32 1.442695, %v6817_v53 }
0x26f1   :  { %v6833_v44 = vpop.permute.xlu0 %6832  ;;  %v6989_v48 = vpop.permute.xlu1 %6988 }
0x26f2   :  { %20378 = vpow2.f32 %v6820_v50  ;;  %19480 = vmatpush3.msk.msra.mxu0 %vm1092_vm5, %v6833_v44 }
0x26f3   :  { %19489 = vmatprep.subr.mxu0 %v20532_v31 }
0x26f5   :  { %v7067_v20 = vpop.permute.xlu1 %7066 }
0x26f8   :  { %v20377_v26 = vpop.eup %20376 }
0x26f9   :  { %v6822_v6 = vsel %vm1063_vm4, %v20377_v26, 0.0 }
0x26fa   :  { %6823 = vadd.xlane.f32.xlu0 %v6822_v6 }
0x26fc   :  { %v20379_v33 = vpop.eup %20378 }
0x26fd   :  { %v6825_v5 = vsel %vm1063_vm4, %v20379_v33, 0.0 }
0x26fe   :  { %6826 = vadd.xlane.f32.xlu1 %v6825_v5 }
0x270f   :  { %7064 = vrot.lane.b32.xlu1 %v22029_v10, %s24297_s25 }
0x2710   :  { %6986 = vrot.lane.b32.xlu0 %v22026_v60, %s24297_s25 }
0x2787   :  { %v6824_v24 = vpop.xlane.xlu0 %6823 }
0x2788   :  { %20380 = vrcp.f32 %v6824_v24 }
0x278b   :  { %v6827_v57 = vpop.xlane.xlu1 %6826  ;;  %v6987_v30 = vpop.permute.xlu0 %6986 }
0x278c   :  { %20382 = vrcp.f32 %v6827_v57 }
0x278f   :  { %v7065_v37 = vpop.permute.xlu1 %7064 }
0x2792   :  { %v20381_v58 = vpop.eup %20380 }
0x2793   :  { %v6829_v49 = vmul.f32 %v20381_v58, %v20377_v26 }
0x2795   :  { %19482 = vmatmul.mubr.msk.f32.vlgmr.msra.gmra.mrb[38].mxu0 %vm1088_vm6, %v6829_v49 }
0x2796   :  { %v20383_v35 = vpop.eup %20382  ;;  %19490 = vmatpush3.xpose.msk.msra.mxu0 %vm887_vm3, %v6989_v48  ;;  %19491 = vmatprep.mubr.msk.f32.mxu0 %vm20531_vm2, %v20532_v31 }
0x2797   :  { %v6831_v29 = vmul.f32 %v20383_v35, %v20379_v33  ;;  %19499 = vmatprep.subr.mxu0 %v20532_v31 }
0x2799   :  { %19487 = vmatmul.mubr.msk.f32.vlgmr.msra.gmra.mrb[54].mxu1 %vm1088_vm6, %v6831_v29  ;;  %19492 = vmatmul.mubr.msk.f32.vlgmr.msra.gmra.mrb[40].mxu0 %vm887_vm3, %v6987_v30 }
0x279a   :  { %19495 = vmatpush3.xpose.msk.msra.mxu1 %vm887_vm3, %v7067_v20  ;;  %19496 = vmatprep.mubr.msk.f32.mxu1 %vm20531_vm2, %v20532_v31 }
0x279b   :  { %19504 = vmatprep.subr.mxu1 %v20532_v31  ;;  %19501 = vmatprep.mubr.msk.f32.mxu0 %vm20531_vm2, %v20532_v31 }
0x279d   :  { %19497 = vmatmul.mubr.msk.f32.vlgmr.msra.gmra.mrb[56].mxu1 %vm887_vm3, %v7065_v37 }
0x279e   :  { %19506 = vmatprep.mubr.msk.f32.mxu1 %vm20531_vm2, %v20532_v31 }
0x2868   :  { %v22083_v38 = vpop.f32.mrb[38].mxu0 }
0x2869   :  { %v19483_v0 = vpop.f32.mrb[39].mxu0 }
0x286c   :  { %v22085_v17 = vpop.f32.mrb[54].mxu1  ;;  %v7060_v18 = vpop.f32.mrb[40].mxu0 }
0x286d   :  { %v7142_v16 = vmul.f32 0.35355338, %v7060_v18  ;;  %v19488_v7 = vpop.f32.mrb[55].mxu1  ;;  %v19493_v15 = vpop.f32.mrb[41].mxu0 }
0x286f   :  { %v7144_v36 = vsel %vm1063_vm4, %v7142_v16, -inf }
0x2870   :  { %v7138_v59 = vpop.f32.mrb[56].mxu1  ;;  %7145 = vmax.xlane.f32.xlu0 %v7144_v36 }
0x2871   :  { %v7143_v63 = vmul.f32 0.35355338, %v7138_v59  ;;  %v19498_v2 = vpop.f32.mrb[57].mxu1 }
0x2873   :  { %v7147_v62 = vsel %vm1063_vm4, %v7143_v63, -inf }
0x2874   :  { %7148 = vmax.xlane.f32.xlu1 %v7147_v62 }
0x2885   :  { %7243 = vrot.lane.b32.xlu1 %v22029_v10, %s24298_s16 }
0x2886   :  { %7166 = vrot.lane.b32.xlu0 %v22026_v60, %s24298_s16 }
0x2889   :  { %7322 = vrot.lane.b32.xlu1 %v22026_v60, %s24299_s0 }
0x288d   :  { %7400 = vrot.lane.b32.xlu1 %v22029_v10, %s24299_s0 }
0x2891   :  { %7398 = vrot.lane.b32.xlu1 %v22029_v10, %s24309_s23 }
0x28fd   :  { %v7146_v47 = vpop.xlane.xlu0 %7145 }
0x28fe   :  { %v7150_v39 = vsub.f32 %v7142_v16, %v7146_v47 }
0x2900   :  { %v7152_v11 = vmul.f32 1.442695, %v7150_v39 }
0x2901   :  { %v7149_v21 = vpop.xlane.xlu1 %7148  ;;  %v7167_v12 = vpop.permute.xlu0 %7166 }
0x2902   :  { %20384 = vpow2.f32 %v7152_v11  ;;  %v7151_v22 = vsub.f32 %v7143_v63, %v7149_v21  ;;  %19500 = vmatpush3.msk.msra.mxu0 %vm1092_vm5, %v7167_v12 }
0x2903   :  { %19509 = vmatprep.subr.mxu0 %v20532_v31 }
0x2904   :  { %v7154_v51 = vmul.f32 1.442695, %v7151_v22 }
0x2905   :  { %v7244_v8 = vpop.permute.xlu1 %7243 }
0x2906   :  { %20386 = vpow2.f32 %v7154_v51  ;;  %19505 = vmatpush3.msk.msra.mxu1 %vm1092_vm5, %v7244_v8 }
0x2907   :  { %19514 = vmatprep.subr.mxu1 %v20532_v31 }
0x2909   :  { %v7323_v52 = vpop.permute.xlu1 %7322 }
0x290c   :  { %v20385_v54 = vpop.eup %20384 }
0x290d   :  { %v7156_v13 = vsel %vm1063_vm4, %v20385_v54, 0.0  ;;  %v7401_v44 = vpop.permute.xlu1 %7400 }
0x290e   :  { %7157 = vadd.xlane.f32.xlu0 %v7156_v13 }
0x2910   :  { %v20387_v34 = vpop.eup %20386 }
0x2911   :  { %v7159_v61 = vsel %vm1063_vm4, %v20387_v34, 0.0  ;;  %v7399_v33 = vpop.permute.xlu1 %7398 }
0x2912   :  { %7160 = vadd.xlane.f32.xlu0 %v7159_v61 }
0x2928   :  { %7320 = vrot.lane.b32.xlu0 %v22026_v60, %s24309_s23 }
0x299b   :  { %v7158_v32 = vpop.xlane.xlu0 %7157 }
0x299c   :  { %20388 = vrcp.f32 %v7158_v32 }
0x299f   :  { %v7161_v23 = vpop.xlane.xlu0 %7160 }
0x29a0   :  { %20390 = vrcp.f32 %v7161_v23 }
0x29a3   :  { %v7321_v6 = vpop.permute.xlu0 %7320 }
0x29a6   :  { %v20389_v3 = vpop.eup %20388 }
0x29a7   :  { %v7163_v53 = vmul.f32 %v20389_v3, %v20385_v54 }
0x29a9   :  { %19502 = vmatmul.mubr.msk.f32.vlgmr.msra.gmra.mrb[42].mxu0 %vm1088_vm6, %v7163_v53 }
0x29aa   :  { %v20391_v50 = vpop.eup %20390  ;;  %19510 = vmatpush3.xpose.msk.msra.mxu0 %vm887_vm3, %v7323_v52  ;;  %19511 = vmatprep.mubr.msk.f32.mxu0 %vm20531_vm2, %v20532_v31 }
0x29ab   :  { %v7165_v26 = vmul.f32 %v20391_v50, %v20387_v34  ;;  %19519 = vmatprep.subr.mxu0 %v20532_v31 }
0x29ad   :  { %19507 = vmatmul.mubr.msk.f32.vlgmr.msra.gmra.mrb[58].mxu1 %vm1088_vm6, %v7165_v26  ;;  %19512 = vmatmul.mubr.msk.f32.vlgmr.msra.gmra.mrb[44].mxu0 %vm887_vm3, %v7321_v6 }
0x29ae   :  { %19515 = vmatpush3.xpose.msk.msra.mxu1 %vm887_vm3, %v7401_v44  ;;  %19516 = vmatprep.mubr.msk.f32.mxu1 %vm20531_vm2, %v20532_v31 }
0x29af   :  { %19524 = vmatprep.subr.mxu1 %v20532_v31  ;;  %19521 = vmatprep.mubr.msk.f32.mxu0 %vm20531_vm2, %v20532_v31 }
0x29b1   :  { %19517 = vmatmul.mubr.msk.f32.vlgmr.msra.gmra.mrb[60].mxu1 %vm887_vm3, %v7399_v33 }
0x29b2   :  { %19526 = vmatprep.mubr.msk.f32.mxu1 %vm20531_vm2, %v20532_v31 }
0x2a7c   :  { %v22123_v5 = vpop.f32.mrb[42].mxu0 }
0x2a7d   :  { %v19503_v48 = vpop.f32.mrb[43].mxu0 }
0x2a80   :  { %v22125_v20 = vpop.f32.mrb[58].mxu1  ;;  %v7394_v24 = vpop.f32.mrb[44].mxu0 }
0x2a81   :  { %v7476_v57 = vmul.f32 0.35355338, %v7394_v24  ;;  %v19508_v58 = vpop.f32.mrb[59].mxu1  ;;  %v19513_v49 = vpop.f32.mrb[45].mxu0 }
0x2a83   :  { %v7478_v35 = vsel %vm1063_vm4, %v7476_v57, -inf }
0x2a84   :  { %v7472_v29 = vpop.f32.mrb[60].mxu1  ;;  %7479 = vmax.xlane.f32.xlu0 %v7478_v35 }
0x2a85   :  { %v7477_v30 = vmul.f32 0.35355338, %v7472_v29  ;;  %v19518_v37 = vpop.f32.mrb[61].mxu1 }
0x2a87   :  { %v7481_v0 = vsel %vm1063_vm4, %v7477_v30, -inf }
0x2a88   :  { %7482 = vmax.xlane.f32.xlu1 %v7481_v0 }
0x2a99   :  { %7577 = vrot.lane.b32.xlu1 %v22029_v10, %s24310_s2 }
0x2a9a   :  { %7500 = vrot.lane.b32.xlu0 %v22026_v60, %s24310_s2 }
0x2a9d   :  { %7656 = vrot.lane.b32.xlu1 %v22026_v60, %s24311_s17 }
0x2aa1   :  { %7734 = vrot.lane.b32.xlu1 %v22029_v10, %s24311_s17 }
0x2aa5   :  { %7732 = vrot.lane.b32.xlu1 %v22029_v10, %s24312_s9 }
0x2b11   :  { %v7480_v18 = vpop.xlane.xlu0 %7479 }
0x2b12   :  { %v7484_v16 = vsub.f32 %v7476_v57, %v7480_v18 }
0x2b14   :  { %v7486_v7 = vmul.f32 1.442695, %v7484_v16 }
0x2b15   :  { %v7483_v15 = vpop.xlane.xlu1 %7482  ;;  %v7501_v36 = vpop.permute.xlu0 %7500 }
0x2b16   :  { %20392 = vpow2.f32 %v7486_v7  ;;  %v7485_v59 = vsub.f32 %v7477_v30, %v7483_v15  ;;  %19520 = vmatpush3.msk.msra.mxu0 %vm1092_vm5, %v7501_v36 }
0x2b17   :  { %19529 = vmatprep.subr.mxu0 %v20532_v31 }
0x2b18   :  { %v7488_v63 = vmul.f32 1.442695, %v7485_v59 }
0x2b19   :  { %v7578_v2 = vpop.permute.xlu1 %7577 }
0x2b1a   :  { %20394 = vpow2.f32 %v7488_v63  ;;  %19525 = vmatpush3.msk.msra.mxu1 %vm1092_vm5, %v7578_v2 }
0x2b1b   :  { %19534 = vmatprep.subr.mxu1 %v20532_v31 }
0x2b1d   :  { %v7657_v22 = vpop.permute.xlu1 %7656 }
0x2b20   :  { %v20393_v62 = vpop.eup %20392 }
0x2b21   :  { %v7490_v47 = vsel %vm1063_vm4, %v20393_v62, 0.0  ;;  %v7735_v13 = vpop.permute.xlu1 %7734 }
0x2b22   :  { %7491 = vadd.xlane.f32.xlu0 %v7490_v47 }
0x2b24   :  { %v20395_v39 = vpop.eup %20394 }
0x2b25   :  { %v7493_v11 = vsel %vm1063_vm4, %v20395_v39, 0.0  ;;  %v7733_v32 = vpop.permute.xlu1 %7732 }
0x2b26   :  { %7494 = vadd.xlane.f32.xlu0 %v7493_v11 }
0x2b3c   :  { %7654 = vrot.lane.b32.xlu0 %v22026_v60, %s24312_s9 }
0x2baf   :  { %v7492_v21 = vpop.xlane.xlu0 %7491 }
0x2bb0   :  { %20396 = vrcp.f32 %v7492_v21  ;;  %v8068_v21 = vld [vmem:[%s24180_s10 + $0x10] sm:$0xff] }
0x2bb3   :  { %v7495_v12 = vpop.xlane.xlu0 %7494 }
0x2bb4   :  { %20398 = vrcp.f32 %v7495_v12  ;;  %v8069_v12 = vld [vmem:[%s24180_s10 + $0x18] sm:$0xff] }
0x2bb7   :  { %v7655_v61 = vpop.permute.xlu0 %7654 }
0x2bba   :  { %v20397_v51 = vpop.eup %20396 }
0x2bbb   :  { %v7497_v8 = vmul.f32 %v20397_v51, %v20393_v62  ;;  %v8067_v62 = vld [vmem:[%s24180_s10 + $0x8] sm:$0xff] }
0x2bbd   :  { %19522 = vmatmul.mubr.msk.f32.vlgmr.msra.gmra.mrb[46].mxu0 %vm1088_vm6, %v7497_v8 }
0x2bbe   :  { %v20399_v54 = vpop.eup %20398  ;;  %19530 = vmatpush3.xpose.msk.msra.mxu0 %vm887_vm3, %v7657_v22  ;;  %19531 = vmatprep.mubr.msk.f32.mxu0 %vm20531_vm2, %v20532_v31  ;;  %v20111_v22 = vpack.c.bf16 %v8069_v12, %v8068_v21 }
0x2bbf   :  { %v7499_v34 = vmul.f32 %v20399_v54, %v20395_v39  ;;  %19539 = vmatprep.subr.mxu0 %v20532_v31 }
0x2bc1   :  { %19527 = vmatmul.mubr.msk.f32.vlgmr.msra.gmra.mrb[62].mxu1 %vm1088_vm6, %v7499_v34  ;;  %19532 = vmatmul.mubr.msk.f32.vlgmr.msra.gmra.mrb[48].mxu0 %vm887_vm3, %v7655_v61 }
0x2bc2   :  { %19535 = vmatpush3.xpose.msk.msra.mxu1 %vm887_vm3, %v7735_v13  ;;  %19536 = vmatprep.mubr.msk.f32.mxu1 %vm20531_vm2, %v20532_v31 }
0x2bc3   :  { %19544 = vmatprep.subr.mxu1 %v20532_v31  ;;  %19541 = vmatprep.mubr.msk.f32.mxu0 %vm20531_vm2, %v20532_v31 }
0x2bc5   :  { %19537 = vmatmul.mubr.msk.f32.vlgmr.msra.gmra.mrb[64].mxu1 %vm887_vm3, %v7733_v32 }
0x2bc6   :  { %19546 = vmatprep.mubr.msk.f32.mxu1 %vm20531_vm2, %v20532_v31 }
0x2c90   :  { %v7573_v23 = vpop.f32.mrb[46].mxu0 }
0x2c91   :  { %v19523_v52 = vpop.f32.mrb[47].mxu0 }
0x2c94   :  { %v7650_v3 = vpop.f32.mrb[62].mxu1  ;;  %v7728_v53 = vpop.f32.mrb[48].mxu0 }
0x2c95   :  { %v7810_v50 = vmul.f32 0.35355338, %v7728_v53  ;;  %v19528_v44 = vpop.f32.mrb[63].mxu1  ;;  %v19533_v26 = vpop.f32.mrb[49].mxu0 }
0x2c97   :  { %v7812_v6 = vsel %vm1063_vm4, %v7810_v50, -inf }
0x2c98   :  { %v7806_v33 = vpop.f32.mrb[64].mxu1  ;;  %7813 = vmax.xlane.f32.xlu0 %v7812_v6 }
0x2c99   :  { %v7811_v48 = vmul.f32 0.35355338, %v7806_v33  ;;  %v19538_v24 = vpop.f32.mrb[65].mxu1 }
0x2c9b   :  { %v7815_v57 = vsel %vm1063_vm4, %v7811_v48, -inf }
0x2c9c   :  { %7816 = vmax.xlane.f32.xlu1 %v7815_v57 }
0x2cad   :  { %7911 = vrot.lane.b32.xlu1 %v22029_v10, %s24313_s29 }
0x2cb1   :  { %7990 = vrot.lane.b32.xlu1 %v22123_v5, %s24314_s12 }
0x2cb5   :  { %7998 = vrot.lane.b32.xlu1 %v7573_v23, %s24315_s20 }
0x2d25   :  { %v7814_v58 = vpop.xlane.xlu0 %7813 }
0x2d26   :  { %v7818_v49 = vsub.f32 %v7810_v50, %v7814_v58 }
0x2d28   :  { %v7820_v35 = vmul.f32 1.442695, %v7818_v49 }
0x2d29   :  { %v7817_v29 = vpop.xlane.xlu1 %7816 }
0x2d2a   :  { %20400 = vpow2.f32 %v7820_v35  ;;  %v7819_v30 = vsub.f32 %v7811_v48, %v7817_v29 }
0x2d2c   :  { %v7822_v37 = vmul.f32 1.442695, %v7819_v30 }
0x2d2d   :  { %v7912_v0 = vpop.permute.xlu1 %7911 }
0x2d2e   :  { %20402 = vpow2.f32 %v7822_v37  ;;  %19545 = vmatpush3.msk.msra.mxu1 %vm1092_vm5, %v7912_v0 }
0x2d2f   :  { %20113 = vmatprep.subr.bf16.mxu1 %v20529_v1 }
0x2d31   :  { %v7991_v54 = vpop.permute.xlu1 %7990 }
0x2d32   :  { %v8012_v61 = vsel %vm887_vm3, %v22083_v38, %v7991_v54 }
0x2d34   :  { %v20401_v18 = vpop.eup %20400 }
0x2d35   :  { %v7824_v10 = vsel %vm1063_vm4, %v20401_v18, 0.0  ;;  %v7999_v34 = vpop.permute.xlu1 %7998 }
0x2d36   :  { %7825 = vadd.xlane.f32.xlu0 %v7824_v10  ;;  %v8014_v32 = vsel %vm2270_vm7, %v8012_v61, %v7999_v34 }
0x2d38   :  { %v20403_v5 = vpop.eup %20402 }
0x2d39   :  { %v7827_v16 = vsel %vm1063_vm4, %v20403_v5, 0.0 }
0x2d3a   :  { %7828 = vadd.xlane.f32.xlu0 %v7827_v16 }
0x2d50   :  { %7834 = vrot.lane.b32.xlu0 %v22026_v60, %s24313_s29 }
0x2d54   :  { %7992 = vrot.lane.b32.xlu0 %v22125_v20, %s24314_s12  ;;  %v8066_v20 = vld [vmem:[%s24180_s10] sm:$0xff] }
0x2d55   :  { %v20108_v47 = vpack.c.bf16 %v8067_v62, %v8066_v20 }
0x2d58   :  { %8000 = vrot.lane.b32.xlu0 %v7650_v3, %s24315_s20  ;;  %s24329_s20 = sld [smem:[#allocation11_spill]] }
0x2dc3   :  { %v7826_v7 = vpop.xlane.xlu0 %7825 }
0x2dc4   :  { %20404 = vrcp.f32 %v7826_v7 }
0x2dc7   :  { %v7829_v15 = vpop.xlane.xlu0 %7828 }
0x2dc8   :  { %20406 = vrcp.f32 %v7829_v15 }
0x2dcb   :  { %v7835_v36 = vpop.permute.xlu0 %7834 }
0x2dcc   :  { %19540 = vmatpush3.msk.msra.mxu0 %vm1092_vm5, %v7835_v36  ;;  %v18636_v36 = vld [vmem:[%s24181_s11] ss:$0 sm:$0xff]  ;;  %s24319_s11 = sld [smem:[#allocation10_spill]] }
0x2dcd   :  { %20107 = vmatprep.subr.bf16.mxu0 %v20529_v1 }
0x2dce   :  { %v20405_v59 = vpop.eup %20404 }
0x2dcf   :  { %v7831_v63 = vmul.f32 %v20405_v59, %v20401_v18  ;;  %v7993_v13 = vpop.permute.xlu0 %7992 }
0x2dd0   :  { %v8013_v50 = vsel %vm887_vm3, %v22085_v17, %v7993_v13 }
0x2dd1   :  { %19542 = vmatmul.mubr.msk.f32.vlgmr.msra.gmra.mrb[50].mxu0 %vm1088_vm6, %v7831_v63 }
0x2dd2   :  { %v20407_v2 = vpop.eup %20406  ;;  %19557 = vmatprep.mubr.msk.f32.mxu0 %vm20531_vm2, %v20532_v31  ;;  %20109 = vmatpush3.bf16.msra.mxu0 %v20108_v47 }
0x2dd3   :  { %v7833_v60 = vmul.f32 %v20407_v2, %v20403_v5  ;;  %20110 = vmatprep.subr.bf16.mxu0 %v20529_v1  ;;  %v8001_v52 = vpop.permute.xlu0 %8000 }
0x2dd4   :  { %v8015_v44 = vsel %vm2270_vm7, %v8013_v50, %v8001_v52 }
0x2dd5   :  { %19547 = vmatmul.mubr.msk.f32.vlgmr.msra.gmra.mrb[66].mxu1 %vm1088_vm6, %v7833_v60 }
0x2dd6   :  { %19568 = vmatprep.mubr.msk.f32.mxu1 %vm20531_vm2, %v20532_v31  ;;  %20112 = vmatpush3.bf16.msra.mxu0 %v20111_v22 }
0x2dd7   :  { %20119 = vmatprep.subr.bf16.mxu0 %v20529_v1 }
0x2ea4   :  { %v7907_v39 = vpop.f32.mrb[50].mxu0 }
0x2ea5   :  { %8006 = vrot.lane.b32.xlu1 %v7907_v39, %s24307_s24  ;;  %v19543_v11 = vpop.f32.mrb[51].mxu0 }
0x2ea8   :  { %v7984_v51 = vpop.f32.mrb[66].mxu1 }
0x2ea9   :  { %v19548_v8 = vpop.f32.mrb[67].mxu1  ;;  %8008 = vrot.lane.b32.xlu1 %v7984_v51, %s24307_s24 }
0x2f17   :  { %v8007_v23 = vpop.permute.xlu1 %8006 }
0x2f18   :  { %v8016_v3 = vsel %vm2273_vm8, %v8014_v32, %v8007_v23 }
0x2f19   :  { %v8026_v53 = vrot.slane %v8016_v3, %v20691_v14 }
0x2f1b   :  { %v8027_v26 = vcombine.high %v8026_v53, %v8026_v53  ;;  %v8034_v6 = vrot.slane %v8026_v53, %v20691_v14  ;;  %v8009_v33 = vpop.permute.xlu1 %8008 }
0x2f1c   :  { %v8017_v48 = vsel %vm2273_vm8, %v8015_v44, %v8009_v33 }
0x2f1d   :  { %v8041_v38 = vrot.slane %v8027_v26, %v20691_v14  ;;  %v8049_v24 = vrot.slane %v8017_v48, %v20691_v14  ;;  %v8042_v57 = vcombine.high %v8034_v6, %v8034_v6 }
0x2f1f   :  { %v8077_v58 = vcombine.low %v8034_v6, %v8041_v38  ;;  %v8050_v49 = vcombine.high %v8049_v24, %v8049_v24  ;;  %v8057_v35 = vrot.slane %v8049_v24, %v20691_v14 }
0x2f21   :  { %v8064_v29 = vrot.slane %v8050_v49, %v20691_v14  ;;  %v8065_v17 = vcombine.high %v8057_v35, %v8057_v35  ;;  %v8078_v30 = vcombine.low %v8042_v57, %v8057_v35  ;;  %v8086_v37 = vrot.slane %v8077_v58, %v20691_v14 }
0x2f23   :  { %v8079_v0 = vcombine.low %v8064_v29, %v8065_v17  ;;  %v8093_v18 = vrot.slane %v8078_v30, %v20691_v14 }
0x2f25   :  { %v8100_v10 = vrot.slane %v8079_v0, %v20691_v14  ;;  %v8101_v5 = vcombine.low %v8086_v37, %v8093_v18 }
0x2f27   :  { %v8108_v16 = vrot.slane %v8101_v5, %v20691_v14  ;;  %v8115_v7 = vrot.slane %v8100_v10, %v20691_v14 }
0x2f29   :  { %v8116_v15 = vcombine.low %v8108_v16, %v8115_v7 }
0x2f2b   :  { %19558 = vmatmul.mubr.msk.f32.vlgmr.msra.gmra.mrb[52].mxu0 %vm209_vm0, %v8116_v15 }
0x2f2c   :  { %19587 = vmatprep.mubr.msk.f32.mxu0 %vm20531_vm2, %v20532_v31 }
0x2ffe   :  { %v8185_v59 = vpop.f32.mrb[52].mxu0 }
0x2fff   :  { %v8186_v63 = vadd.f32 %v18636_v36, %v8185_v59  ;;  %v19559_v2 = vpop.f32.mrb[53].mxu0 }
0x3001   :  { %v8190_v60 = vcombine.high %v8186_v63, %v8186_v63  ;;  %v8197_v20 = vrot.slane %v8186_v63, %v20691_v14 }
0x3003   :  { %v8204_v62 = vrot.slane %v8190_v60, %v20691_v14  ;;  %v8205_v47 = vcombine.high %v8197_v20, %v8197_v20  ;;  %v8213_v39 = vrot.slane %v8197_v20, %v20691_v14 }
0x3005   :  { %v8206_v11 = vcombine.high %v8204_v62, %v8204_v62  ;;  %v8227_v21 = vrot.slane %v8205_v47, %v20691_v14  ;;  %v8235_v12 = vcombine.high %v8213_v39, %v8213_v39  ;;  %v8220_v22 = vrot.slane %v8204_v62, %v20691_v14 }
0x3007   :  { %v8234_v51 = vrot.slane %v8206_v11, %v20691_v14  ;;  %v8236_v8 = vcombine.high %v8227_v21, %v8227_v21  ;;  %v8237_v54 = vcombine.low %v8213_v39, %v8227_v21  ;;  %v8251_v34 = vrot.slane %v8235_v12, %v20691_v14 }
0x3009   :  { %v8244_v13 = vrot.slane %v8237_v54, %v20691_v14  ;;  %v8260_v61 = vcombine.low %v8236_v8, %v8220_v22  ;;  %v8274_v52 = vrot.slane %v8234_v51, %v20691_v14 }
0x300b   :  { %v8252_v32 = vcombine.low %v8244_v13, %v8251_v34  ;;  %v8267_v23 = vrot.slane %v8260_v61, %v20691_v14 }
0x300d   :  { %v8259_v3 = vrot.slane %v8252_v32, %v20691_v14  ;;  %v8275_v53 = vcombine.low %v8267_v23, %v8274_v52 }
0x300f   :  { %v8282_v50 = vrot.slane %v8275_v53, %v20691_v14  ;;  %v22241_v44 = vadd.f32 %v8259_v3, %v21902_v19 }
0x3011   :  { %v22244_v26 = vadd.f32 %v8282_v50, %v21908_v4  ;;  %v8295_v6 = vrot.slane %v22241_v44, %v20691_v14 }
0x3013   :  { %v8296_v33 = vcombine.high %v8295_v6, %v8295_v6  ;;  %v8303_v48 = vrot.slane %v8295_v6, %v20691_v14  ;;  %v8318_v38 = vrot.slane %v22244_v26, %v20691_v14 }
0x3015   :  { %v8310_v24 = vrot.slane %v8296_v33, %v20691_v14  ;;  %v8311_v57 = vcombine.high %v8303_v48, %v8303_v48  ;;  %v8319_v58 = vcombine.high %v8318_v38, %v8318_v38  ;;  %v8326_v49 = vrot.slane %v8318_v38, %v20691_v14 }
0x3017   :  { %v8333_v19 = vrot.slane %v8319_v58, %v20691_v14  ;;  %v8334_v35 = vcombine.high %v8326_v49, %v8326_v49  ;;  %v8343_v4 = vcombine.low %v8303_v48, %v8310_v24  ;;  %v8344_v29 = vcombine.low %v8311_v57, %v8326_v49  ;;  %v8650_v58 = vld [vmem:[%s24316_s26 + $0x8] sm:$0xff] }
0x3019   :  { %v8345_v17 = vcombine.low %v8333_v19, %v8334_v35  ;;  %v8352_v30 = vrot.slane %v8343_v4, %v20691_v14  ;;  %v8359_v37 = vrot.slane %v8344_v29, %v20691_v14  ;;  %v8779_v29 = vld [vmem:[%s24185_s14] sm:$0xff] }
0x301b   :  { %v8366_v0 = vrot.slane %v8345_v17, %v20691_v14  ;;  %v8367_v18 = vcombine.low %v8352_v30, %v8359_v37  ;;  %v8780_v17 = vld [vmem:[%s24185_s14 + $0x8] sm:$0xff]  ;;  %v8781_v30 = vld [vmem:[%s24185_s14 + $0x10] sm:$0xff] }
0x301c   :  { %v20120_v37 = vpack.c.bf16 %v8780_v17, %v8779_v29 }
0x301d   :  { %v8374_v10 = vrot.slane %v8367_v18, %v20691_v14  ;;  %v8381_v5 = vrot.slane %v8366_v0, %v20691_v14  ;;  %v8782_v0 = vld [vmem:[%s24185_s14 + $0x18] sm:$0xff] }
0x301e   :  { %20121 = vmatpush3.bf16.msra.mxu0 %v20120_v37  ;;  %v20123_v18 = vpack.c.bf16 %v8782_v0, %v8781_v30 }
0x301f   :  { %v8382_v16 = vcombine.low %v8374_v10, %v8381_v5  ;;  %20122 = vmatprep.subr.bf16.mxu0 %v20529_v1  ;;  %v8783_v10 = vld [vmem:[%s24185_s14 + $0x20] sm:$0xff]  ;;  %v8784_v5 = vld [vmem:[%s24185_s14 + $0x28] sm:$0xff] }
0x3021   :  { %v8384_v7 = vsel %vm418_vm1, %v8382_v16, 0.0  ;;  %v20126_v16 = vpack.c.bf16 %v8784_v5, %v8783_v10 }
0x3022   :  { %8385 = vadd.xlane.f32.xlu0 %v8384_v7  ;;  %20124 = vmatpush3.bf16.msra.mxu0 %v20123_v18 }
0x3023   :  { %20125 = vmatprep.subr.bf16.mxu0 %v20529_v1 }
0x3026   :  { %20127 = vmatpush3.bf16.msra.mxu0 %v20126_v16 }
0x3027   :  { %20128 = vmatprep.subr.bf16.mxu0 %v20529_v1 }
0x30af   :  { %v8386_v15 = vpop.xlane.xlu0 %8385 }
0x30b0   :  { %v8387_v36 = vmul.f32 0.03125, %v8386_v15  ;;  %v18638_v15 = vld [vmem:[%s24183_s18] ss:$0 sm:$0xff] }
0x30b2   :  { %v8392_v59 = vrot.slane %v8387_v36, %v20819_v40  ;;  %v8396_v63 = vrot.slane %v8387_v36, %v20822_v41  ;;  %v8400_v2 = vrot.slane %v8387_v36, %v20825_v42  ;;  %v8404_v60 = vrot.slane %v8387_v36, %v20828_v43 }
0x30b3   :  { %v8408_v20 = vrot.slane %v8387_v36, %v20831_v45  ;;  %v8412_v62 = vrot.slane %v8387_v36, %v20834_v46 }
0x30b4   :  { %v22266_v47 = vsub.f32 %v8303_v48, %v8392_v59  ;;  %v22268_v39 = vsub.f32 %v8310_v24, %v8396_v63  ;;  %v22270_v11 = vsub.f32 %v8311_v57, %v8400_v2  ;;  %v22272_v21 = vsub.f32 %v8326_v49, %v8404_v60  ;;  %v8649_v57 = vld [vmem:[%s24316_s26] sm:$0xff]  ;;  %v8651_v49 = vld [vmem:[%s24316_s26 + $0x10] sm:$0xff] }
0x30b5   :  { %v22274_v12 = vsub.f32 %v8333_v19, %v8408_v20  ;;  %v22276_v22 = vsub.f32 %v8334_v35, %v8412_v62  ;;  %v20114_v19 = vpack.c.bf16 %v8650_v58, %v8649_v57  ;;  %v8652_v35 = vld [vmem:[%s24316_s26 + $0x18] sm:$0xff]  ;;  %v18639_v59 = vld [vmem:[%s24184_s19] ss:$0 sm:$0xff]  ;;  %v8526_v2 = vcombine.high %v18638_v15, %v18638_v15 }
0x30b6   :  { %v8425_v51 = vmul.f32 %v22266_v47, %v22266_v47  ;;  %v8426_v8 = vmul.f32 %v22268_v39, %v22268_v39  ;;  %v8427_v54 = vmul.f32 %v22270_v11, %v22270_v11  ;;  %v8428_v13 = vmul.f32 %v22272_v21, %v22272_v21 }
0x30b7   :  { %v8429_v34 = vmul.f32 %v22274_v12, %v22274_v12  ;;  %v8430_v61 = vmul.f32 %v22276_v22, %v22276_v22  ;;  %20115 = vmatpush3.bf16.msra.mxu1 %v20114_v19  ;;  %v20117_v4 = vpack.c.bf16 %v8652_v35, %v8651_v49  ;;  %v8533_v60 = vrot.slane %v18638_v15, %v20691_v14 }
0x30b8   :  { %v8437_v32 = vcombine.low %v8425_v51, %v8426_v8  ;;  %v8438_v23 = vcombine.low %v8427_v54, %v8428_v13  ;;  %20116 = vmatprep.subr.bf16.mxu1 %v20529_v1  ;;  %v8597_v20 = vrot.slane %v18639_v59, %v20691_v14  ;;  %v8540_v62 = vrot.slane %v8526_v2, %v20691_v14 }
0x30b9   :  { %v8439_v52 = vcombine.low %v8429_v34, %v8430_v61  ;;  %v8541_v51 = vcombine.high %v8533_v60, %v8533_v60  ;;  %v8590_v8 = vcombine.high %v18639_v59, %v18639_v59  ;;  %v8549_v34 = vrot.slane %v8533_v60, %v20691_v14 }
0x30ba   :  { %v8446_v3 = vrot.slane %v8437_v32, %v20691_v14  ;;  %v8453_v53 = vrot.slane %v8438_v23, %v20691_v14  ;;  %v8605_v54 = vcombine.high %v8597_v20, %v8597_v20  ;;  %v8542_v13 = vcombine.high %v8540_v62, %v8540_v62 }
0x30bb   :  { %v8460_v50 = vrot.slane %v8439_v52, %v20691_v14  ;;  %20118 = vmatpush3.bf16.msra.mxu1 %v20117_v4  ;;  %v8563_v61 = vrot.slane %v8541_v51, %v20691_v14  ;;  %v8604_v32 = vrot.slane %v8590_v8, %v20691_v14  ;;  %v8613_v23 = vrot.slane %v8597_v20, %v20691_v14 }
0x30bc   :  { %v8461_v6 = vcombine.low %v8446_v3, %v8453_v53  ;;  %20131 = vmatprep.subr.bf16.mxu1 %v20529_v1  ;;  %v8627_v52 = vrot.slane %v8605_v54, %v20691_v14  ;;  %v8556_v3 = vrot.slane %v8540_v62, %v20691_v14 }
0x30bd   :  { %v8475_v48 = vrot.slane %v8460_v50, %v20691_v14  ;;  %v8570_v50 = vrot.slane %v8542_v13, %v20691_v14  ;;  %v8635_v35 = vcombine.high %v8613_v23, %v8613_v23  ;;  %v8620_v10 = vrot.slane %v8604_v32, %v20691_v14 }
0x30be   :  { %v8468_v33 = vrot.slane %v8461_v6, %v20691_v14  ;;  %v8571_v6 = vcombine.high %v8549_v34, %v8549_v34  ;;  %v8636_v4 = vcombine.high %v8627_v52, %v8627_v52 }
0x30c0   :  { %v8476_v38 = vcombine.low %v8468_v33, %v8475_v48  ;;  %v8572_v33 = vcombine.high %v8563_v61, %v8563_v61  ;;  %v8606_v48 = vcombine.high %v8604_v32, %v8604_v32  ;;  %v8785_v32 = vld [vmem:[%s24185_s14 + $0x30] sm:$0xff] }
0x30c2   :  { %v8478_v24 = vsel %vm418_vm1, %v8476_v38, 0.0  ;;  %v8634_v5 = vrot.slane %v8606_v48, %v20691_v14  ;;  %v18642_v48 = vld [vmem:[%s24187_s15] ss:$0 sm:$0xff] }
0x30c3   :  { %8479 = vadd.xlane.f32.xlu1 %v8478_v24 }
0x3150   :  { %v8480_v7 = vpop.xlane.xlu1 %8479 }
0x3151   :  { %v8481_v36 = vmul.f32 0.03125, %v8480_v7 }
0x3153   :  { %v8482_v63 = vadd.f32 1e-05, %v8481_v36 }
0x3155   :  { %20408 = vrsqrt.f32 %v8482_v63 }
0x315f   :  { %v20409_v53 = vpop.eup %20408 }
0x3160   :  { %v8488_v38 = vrot.slane %v20409_v53, %v20819_v40  ;;  %v8492_v24 = vrot.slane %v20409_v53, %v20822_v41  ;;  %v8496_v57 = vrot.slane %v20409_v53, %v20825_v42  ;;  %v8500_v58 = vrot.slane %v20409_v53, %v20828_v43 }
0x3161   :  { %v8504_v49 = vrot.slane %v20409_v53, %v20831_v45  ;;  %v8508_v19 = vrot.slane %v20409_v53, %v20834_v46 }
0x3162   :  { %v8515_v29 = vmul.f32 %v8488_v38, %v22266_v47  ;;  %v8516_v17 = vmul.f32 %v8492_v24, %v22268_v39  ;;  %v8517_v30 = vmul.f32 %v8496_v57, %v22270_v11  ;;  %v8518_v37 = vmul.f32 %v8500_v58, %v22272_v21 }
0x3163   :  { %v8519_v0 = vmul.f32 %v8504_v49, %v22274_v12  ;;  %v8520_v18 = vmul.f32 %v8508_v19, %v22276_v22 }
0x3164   :  { %v8579_v16 = vmul.f32 %v8549_v34, %v8515_v29  ;;  %v8580_v7 = vmul.f32 %v8563_v61, %v8516_v17  ;;  %v8581_v15 = vmul.f32 %v8571_v6, %v8517_v30  ;;  %v8582_v36 = vmul.f32 %v8572_v33, %v8518_v37 }
0x3165   :  { %v8583_v59 = vmul.f32 %v8556_v3, %v8519_v0  ;;  %v8584_v47 = vmul.f32 %v8570_v50, %v8520_v18  ;;  %v18640_v3 = vld [vmem:[%s24317_s22] ss:$0 sm:$0xff] }
0x3166   :  { %v8643_v63 = vadd.f32 %v8613_v23, %v8579_v16  ;;  %v8644_v39 = vadd.f32 %v8627_v52, %v8580_v7  ;;  %v8645_v2 = vadd.f32 %v8635_v35, %v8581_v15  ;;  %v8646_v11 = vadd.f32 %v8636_v4, %v8582_v36  ;;  %v8786_v23 = vld [vmem:[%s24185_s14 + $0x38] sm:$0xff] }
0x3167   :  { %v8647_v60 = vadd.f32 %v8620_v10, %v8583_v59  ;;  %v8648_v21 = vadd.f32 %v8634_v5, %v8584_v47  ;;  %v20129_v52 = vpack.c.bf16 %v8786_v23, %v8785_v32 }
0x3168   :  { %v8666_v20 = vcombine.low %v8643_v63, %v8644_v39  ;;  %v8667_v12 = vcombine.low %v8645_v2, %v8646_v11 }
0x3169   :  { %v8668_v62 = vcombine.low %v8647_v60, %v8648_v21  ;;  %20130 = vmatpush3.bf16.msra.mxu0 %v20129_v52 }
0x316a   :  { %v8675_v22 = vrot.slane %v8666_v20, %v20691_v14  ;;  %v8682_v51 = vrot.slane %v8667_v12, %v20691_v14  ;;  %19611 = vmatprep.subr.mxu0 %v20532_v31 }
0x316b   :  { %v8689_v8 = vrot.slane %v8668_v62, %v20691_v14 }
0x316c   :  { %v8690_v54 = vcombine.low %v8675_v22, %v8682_v51 }
0x316d   :  { %v8704_v34 = vrot.slane %v8689_v8, %v20691_v14 }
0x316e   :  { %v8697_v13 = vrot.slane %v8690_v54, %v20691_v14 }
0x3170   :  { %v8705_v61 = vcombine.low %v8697_v13, %v8704_v34 }
0x3172   :  { %19569 = vmatmul.mubr.msk.f32.vlgmr.msra.gmra.mrb[68].mxu1 %vm209_vm0, %v8705_v61 }
0x3173   :  { %19598 = vmatprep.mubr.msk.f32.mxu1 %vm20531_vm2, %v20532_v31 }
0x3245   :  { %v8774_v53 = vpop.f32.mrb[68].mxu1 }
0x3246   :  { %v8775_v50 = vadd.f32 %v18640_v3, %v8774_v53  ;;  %v19570_v6 = vpop.f32.mrb[69].mxu1 }
0x3248   :  { %v8778_v33 = vmax.f32 %v8775_v50, 0.0 }
0x324a   :  { %19588 = vmatmul.mubr.msk.f32.vlgmr.msra.gmra.mrb[54].mxu0 %vm2966_vm9, %v8778_v33 }
0x324b   :  { %19613 = vmatprep.mubr.msk.f32.mxu0 %vm20531_vm2, %v20532_v31 }
0x331d   :  { %v8863_v38 = vpop.f32.mrb[54].mxu0 }
0x331e   :  { %v8864_v24 = vadd.f32 %v18642_v48, %v8863_v38  ;;  %v19589_v57 = vpop.f32.mrb[55].mxu0 }
0x3320   :  { %v8868_v58 = vcombine.high %v8864_v24, %v8864_v24  ;;  %v8875_v49 = vrot.slane %v8864_v24, %v20691_v14 }
0x3322   :  { %v8882_v19 = vrot.slane %v8868_v58, %v20691_v14  ;;  %v8883_v35 = vcombine.high %v8875_v49, %v8875_v49  ;;  %v8891_v4 = vrot.slane %v8875_v49, %v20691_v14 }
0x3324   :  { %v8884_v29 = vcombine.high %v8882_v19, %v8882_v19  ;;  %v8905_v17 = vrot.slane %v8883_v35, %v20691_v14  ;;  %v8913_v30 = vcombine.high %v8891_v4, %v8891_v4  ;;  %v8898_v37 = vrot.slane %v8882_v19, %v20691_v14 }
0x3326   :  { %v8912_v0 = vrot.slane %v8884_v29, %v20691_v14  ;;  %v8914_v18 = vcombine.high %v8905_v17, %v8905_v17  ;;  %v8915_v10 = vcombine.low %v8891_v4, %v8905_v17  ;;  %v8929_v16 = vrot.slane %v8913_v30, %v20691_v14 }
0x3328   :  { %v8922_v5 = vrot.slane %v8915_v10, %v20691_v14  ;;  %v8938_v7 = vcombine.low %v8914_v18, %v8898_v37  ;;  %v8952_v59 = vrot.slane %v8912_v0, %v20691_v14 }
0x332a   :  { %v8930_v15 = vcombine.low %v8922_v5, %v8929_v16  ;;  %v8945_v36 = vrot.slane %v8938_v7, %v20691_v14 }
0x332c   :  { %v8937_v47 = vrot.slane %v8930_v15, %v20691_v14  ;;  %v8953_v63 = vcombine.low %v8945_v36, %v8952_v59 }
0x332e   :  { %v8960_v39 = vrot.slane %v8953_v63, %v20691_v14  ;;  %v22398_v2 = vadd.f32 %v8937_v47, %v22241_v44 }
0x3330   :  { %v22401_v11 = vadd.f32 %v8960_v39, %v22244_v26  ;;  %v8973_v60 = vrot.slane %v22398_v2, %v20691_v14 }
0x3332   :  { %v8974_v21 = vcombine.high %v8973_v60, %v8973_v60  ;;  %v8981_v20 = vrot.slane %v8973_v60, %v20691_v14  ;;  %v8996_v12 = vrot.slane %v22401_v11, %v20691_v14 }
0x3334   :  { %v8988_v62 = vrot.slane %v8974_v21, %v20691_v14  ;;  %v8989_v22 = vcombine.high %v8981_v20, %v8981_v20  ;;  %v8997_v51 = vcombine.high %v8996_v12, %v8996_v12  ;;  %v9004_v8 = vrot.slane %v8996_v12, %v20691_v14 }
0x3336   :  { %v9011_v44 = vrot.slane %v8997_v51, %v20691_v14  ;;  %v9012_v54 = vcombine.high %v9004_v8, %v9004_v8  ;;  %v9021_v26 = vcombine.low %v8981_v20, %v8988_v62  ;;  %v9022_v13 = vcombine.low %v8989_v22, %v9004_v8  ;;  %v18649_v51 = vld [vmem:[%s24291_s28 + $0x28] sm:$0xff] }
0x3338   :  { %v9023_v34 = vcombine.low %v9011_v44, %v9012_v54  ;;  %v9030_v61 = vrot.slane %v9021_v26, %v20691_v14  ;;  %v9037_v32 = vrot.slane %v9022_v13, %v20691_v14 }
0x333a   :  { %v9044_v23 = vrot.slane %v9023_v34, %v20691_v14  ;;  %v9045_v52 = vcombine.low %v9030_v61, %v9037_v32  ;;  %v18646_v34 = vld [vmem:[%s24292_s1 + $0x1] ss:$0 sm:$0xff] }
0x333b   :  { %v18647_v32 = vld [vmem:[%s24293_s27 + $0x1] ss:$0 sm:$0xff] }
0x333c   :  { %v9052_v3 = vrot.slane %v9045_v52, %v20691_v14  ;;  %v9059_v53 = vrot.slane %v9044_v23, %v20691_v14  ;;  %v9204_v52 = vcombine.high %v18646_v34, %v18646_v34 }
0x333e   :  { %v9060_v50 = vcombine.low %v9052_v3, %v9059_v53  ;;  %v9211_v3 = vrot.slane %v18646_v34, %v20691_v14  ;;  %v9275_v53 = vrot.slane %v18647_v32, %v20691_v14 }
0x3340   :  { %v9062_v6 = vsel %vm418_vm1, %v9060_v50, 0.0  ;;  %v9218_v50 = vrot.slane %v9204_v52, %v20691_v14 }
0x3341   :  { %9063 = vadd.xlane.f32.xlu0 %v9062_v6  ;;  %v9219_v6 = vcombine.high %v9211_v3, %v9211_v3 }
0x33ce   :  { %v9064_v33 = vpop.xlane.xlu0 %9063 }
0x33cf   :  { %v9065_v48 = vmul.f32 0.03125, %v9064_v33  ;;  %v9268_v33 = vcombine.high %v18647_v32, %v18647_v32 }
0x33d1   :  { %v9070_v38 = vrot.slane %v9065_v48, %v20819_v40  ;;  %v9074_v24 = vrot.slane %v9065_v48, %v20822_v41  ;;  %v9078_v57 = vrot.slane %v9065_v48, %v20825_v42  ;;  %v9082_v58 = vrot.slane %v9065_v48, %v20828_v43 }
0x33d2   :  { %v9086_v49 = vrot.slane %v9065_v48, %v20831_v45  ;;  %v9090_v19 = vrot.slane %v9065_v48, %v20834_v46  ;;  %v9283_v48 = vcombine.high %v9275_v53, %v9275_v53 }
0x33d3   :  { %v22423_v35 = vsub.f32 %v8981_v20, %v9070_v38  ;;  %v22425_v4 = vsub.f32 %v8988_v62, %v9074_v24  ;;  %v22427_v29 = vsub.f32 %v8989_v22, %v9078_v57  ;;  %v22429_v17 = vsub.f32 %v9004_v8, %v9082_v58  ;;  %v18648_v22 = vld [vmem:[%s24291_s28 + $0x20] sm:$0xff]  ;;  %v18650_v8 = vld [vmem:[%s24291_s28 + $0x30] sm:$0xff] }
0x33d4   :  { %v22431_v30 = vsub.f32 %v9011_v44, %v9086_v49  ;;  %v22433_v37 = vsub.f32 %v9012_v54, %v9090_v19  ;;  %v20132_v44 = vpack.c.bf16 %v18649_v51, %v18648_v22  ;;  %v18651_v54 = vld [vmem:[%s24291_s28 + $0x38] sm:$0xff]  ;;  %v9220_v38 = vcombine.high %v9218_v50, %v9218_v50 }
0x33d5   :  { %v9103_v0 = vmul.f32 %v22423_v35, %v22423_v35  ;;  %v9104_v18 = vmul.f32 %v22425_v4, %v22425_v4  ;;  %v9105_v10 = vmul.f32 %v22427_v29, %v22427_v29  ;;  %v9106_v5 = vmul.f32 %v22429_v17, %v22429_v17 }
0x33d6   :  { %v9107_v16 = vmul.f32 %v22431_v30, %v22431_v30  ;;  %v9108_v7 = vmul.f32 %v22433_v37, %v22433_v37  ;;  %20133 = vmatpush3.bf16.msra.mxu1 %v20132_v44  ;;  %v20135_v26 = vpack.c.bf16 %v18651_v54, %v18650_v8  ;;  %v9227_v24 = vrot.slane %v9211_v3, %v20691_v14 }
0x33d7   :  { %v9115_v15 = vcombine.low %v9103_v0, %v9104_v18  ;;  %v9116_v36 = vcombine.low %v9105_v10, %v9106_v5  ;;  %20134 = vmatprep.subr.bf16.mxu1 %v20529_v1  ;;  %v9241_v57 = vrot.slane %v9219_v6, %v20691_v14  ;;  %v9282_v58 = vrot.slane %v9268_v33, %v20691_v14 }
0x33d8   :  { %v9117_v59 = vcombine.low %v9107_v16, %v9108_v7  ;;  %v9291_v49 = vrot.slane %v9275_v53, %v20691_v14  ;;  %v9305_v19 = vrot.slane %v9283_v48, %v20691_v14  ;;  %v9234_v0 = vrot.slane %v9218_v50, %v20691_v14 }
0x33d9   :  { %v9124_v47 = vrot.slane %v9115_v15, %v20691_v14  ;;  %v9131_v63 = vrot.slane %v9116_v36, %v20691_v14  ;;  %v9248_v10 = vrot.slane %v9220_v38, %v20691_v14  ;;  %v9249_v5 = vcombine.high %v9227_v24, %v9227_v24 }
0x33da   :  { %v9138_v39 = vrot.slane %v9117_v59, %v20691_v14  ;;  %20136 = vmatpush3.bf16.msra.mxu1 %v20135_v26  ;;  %v9250_v16 = vcombine.high %v9241_v57, %v9241_v57  ;;  %v9284_v7 = vcombine.high %v9282_v58, %v9282_v58  ;;  %v9298_v44 = vrot.slane %v9282_v58, %v20691_v14  ;;  %v18653_v58 = vld [vmem:[%s24294_s3 + $0x1] ss:$0 sm:$0xff] }
0x33db   :  { %v9139_v60 = vcombine.low %v9124_v47, %v9131_v63  ;;  %19601 = vmatprep.subr.mxu1 %v20532_v31 }
0x33dc   :  { %v9153_v20 = vrot.slane %v9138_v39, %v20691_v14  ;;  %v9312_v54 = vrot.slane %v9284_v7, %v20691_v14 }
0x33dd   :  { %v9146_v21 = vrot.slane %v9139_v60, %v20691_v14  ;;  %v9313_v60 = vcombine.high %v9291_v49, %v9291_v49 }
0x33df   :  { %v9154_v12 = vcombine.low %v9146_v21, %v9153_v20  ;;  %v9314_v21 = vcombine.high %v9305_v19, %v9305_v19 }
0x33e1   :  { %v9156_v62 = vsel %vm418_vm1, %v9154_v12, 0.0 }
0x33e2   :  { %9157 = vadd.xlane.f32.xlu0 %v9156_v62 }
0x346f   :  { %v9158_v13 = vpop.xlane.xlu0 %9157 }
0x3470   :  { %v9159_v61 = vmul.f32 0.03125, %v9158_v13 }
0x3472   :  { %v9160_v23 = vadd.f32 1e-05, %v9159_v61 }
0x3474   :  { %20410 = vrsqrt.f32 %v9160_v23 }
0x347e   :  { %v20411_v18 = vpop.eup %20410 }
0x347f   :  { %v9166_v15 = vrot.slane %v20411_v18, %v20819_v40  ;;  %v9170_v36 = vrot.slane %v20411_v18, %v20822_v41  ;;  %v9174_v59 = vrot.slane %v20411_v18, %v20825_v42  ;;  %v9178_v47 = vrot.slane %v20411_v18, %v20828_v43 }
0x3480   :  { %v9182_v63 = vrot.slane %v20411_v18, %v20831_v45  ;;  %v9186_v39 = vrot.slane %v20411_v18, %v20834_v46 }
0x3481   :  { %v9193_v20 = vmul.f32 %v9166_v15, %v22423_v35  ;;  %v9194_v12 = vmul.f32 %v9170_v36, %v22425_v4  ;;  %v9195_v62 = vmul.f32 %v9174_v59, %v22427_v29  ;;  %v9196_v22 = vmul.f32 %v9178_v47, %v22429_v17 }
0x3482   :  { %v9197_v51 = vmul.f32 %v9182_v63, %v22431_v30  ;;  %v9198_v8 = vmul.f32 %v9186_v39, %v22433_v37 }
0x3483   :  { %v9257_v26 = vmul.f32 %v9227_v24, %v9193_v20  ;;  %v9258_v13 = vmul.f32 %v9241_v57, %v9194_v12  ;;  %v9259_v34 = vmul.f32 %v9249_v5, %v9195_v62  ;;  %v9260_v61 = vmul.f32 %v9250_v16, %v9196_v22 }
0x3484   :  { %v9261_v32 = vmul.f32 %v9234_v0, %v9197_v51  ;;  %v9262_v35 = vmul.f32 %v9248_v10, %v9198_v8 }
0x3485   :  { %v9321_v23 = vadd.f32 %v9291_v49, %v9257_v26  ;;  %v9322_v4 = vadd.f32 %v9305_v19, %v9258_v13  ;;  %v9323_v52 = vadd.f32 %v9313_v60, %v9259_v34  ;;  %v9324_v29 = vadd.f32 %v9314_v21, %v9260_v61 }
0x3486   :  { %v9325_v3 = vadd.f32 %v9298_v44, %v9261_v32  ;;  %v9326_v17 = vadd.f32 %v9312_v54, %v9262_v35 }
0x3487   :  { %v9344_v53 = vcombine.low %v9321_v23, %v9322_v4  ;;  %v9345_v30 = vcombine.low %v9323_v52, %v9324_v29 }
0x3488   :  { %v9346_v50 = vcombine.low %v9325_v3, %v9326_v17 }
0x3489   :  { %v9353_v37 = vrot.slane %v9344_v53, %v20691_v14  ;;  %v9360_v6 = vrot.slane %v9345_v30, %v20691_v14 }
0x348a   :  { %v9367_v33 = vrot.slane %v9346_v50, %v20691_v14 }
0x348b   :  { %v9368_v48 = vcombine.low %v9353_v37, %v9360_v6 }
0x348c   :  { %v9382_v24 = vrot.slane %v9367_v33, %v20691_v14 }
0x348d   :  { %v9375_v38 = vrot.slane %v9368_v48, %v20691_v14 }
0x348f   :  { %v9383_v57 = vcombine.low %v9375_v38, %v9382_v24 }
0x3491   :  { %19599 = vmatmul.mubr.msk.f32.vlgmr.msra.gmra.mrb[70].mxu1 %vm209_vm0, %v9383_v57 }
0x3492   :  { %19603 = vmatprep.mubr.msk.f32.mxu1 %vm20531_vm2, %v20532_v31 }
0x3564   :  { %v9452_v49 = vpop.f32.mrb[70].mxu1 }
0x3565   :  { %v9453_v19 = vadd.f32 %v18653_v58, %v9452_v49  ;;  %v19600_v0 = vpop.f32.mrb[71].mxu1 }
0x3567   :  { %v9457_v18 = vcombine.high %v9453_v19, %v9453_v19  ;;  %v9464_v10 = vrot.slane %v9453_v19, %v20691_v14 }
0x3569   :  { %v9471_v5 = vrot.slane %v9457_v18, %v20691_v14  ;;  %v9472_v16 = vcombine.high %v9464_v10, %v9464_v10  ;;  %v9480_v7 = vrot.slane %v9464_v10, %v20691_v14 }
0x356b   :  { %v9473_v15 = vcombine.high %v9471_v5, %v9471_v5  ;;  %v9494_v36 = vrot.slane %v9472_v16, %v20691_v14  ;;  %v9502_v59 = vcombine.high %v9480_v7, %v9480_v7  ;;  %v9487_v47 = vrot.slane %v9471_v5, %v20691_v14 }
0x356d   :  { %v9501_v63 = vrot.slane %v9473_v15, %v20691_v14  ;;  %v9503_v39 = vcombine.high %v9494_v36, %v9494_v36  ;;  %v9504_v60 = vcombine.low %v9480_v7, %v9494_v36  ;;  %v9518_v20 = vrot.slane %v9502_v59, %v20691_v14 }
0x356f   :  { %v9511_v21 = vrot.slane %v9504_v60, %v20691_v14  ;;  %v9603_v12 = vcombine.low %v9503_v39, %v9487_v47  ;;  %v9617_v51 = vrot.slane %v9501_v63, %v20691_v14 }
0x3571   :  { %v9519_v62 = vcombine.low %v9511_v21, %v9518_v20  ;;  %v9610_v22 = vrot.slane %v9603_v12, %v20691_v14 }
0x3573   :  { %v22519_v8 = vrot.slane %v9519_v62, %v20691_v14  ;;  %v9618_v44 = vcombine.low %v9610_v22, %v9617_v51 }
0x3575   :  { %v22522_v54 = vrot.slane %v9618_v44, %v20691_v14  ;;  %9527 = vrot.lane.b32.xlu0 %v22519_v8, %s24308_s13 }
0x3577   :  { %9626 = vrot.lane.b32.xlu1 %v22522_v54, %s24308_s13 }
0x35e7   :  { %v9528_v26 = vpop.permute.xlu0 %9527 }
0x35e8   :  { %19602 = vmatpush3.xpose.msk.msra.mxu1 %vm887_vm3, %v9528_v26 }
0x35e9   :  { %19606 = vmatprep.subr.mxu1 %v20532_v31  ;;  %v9627_v13 = vpop.permute.xlu1 %9626 }
0x35eb   :  { %19604 = vmatmul.mubr.msk.f32.vlgmr.msra.gmra.mrb[72].mxu1 %vm887_vm3, %v22519_v8 }
0x35ec   :  { %19607 = vmatpush3.xpose.msk.msra.mxu1 %vm887_vm3, %v9627_v13  ;;  %19608 = vmatprep.mubr.msk.f32.mxu1 %vm20531_vm2, %v20532_v31 }
0x35ed   :  { %19616 = vmatprep.subr.mxu1 %v20532_v31 }
0x35ef   :  { %19609 = vmatmul.mubr.msk.f32.vlgmr.msra.gmra.mrb[74].mxu1 %vm887_vm3, %v22522_v54 }
0x35f0   :  { %19618 = vmatprep.mubr.msk.f32.mxu1 %vm20531_vm2, %v20532_v31 }
0x36be   :  { %v9599_v34 = vpop.f32.mrb[72].mxu1 }
0x36bf   :  { %v9702_v61 = vmul.f32 0.35355338, %v9599_v34  ;;  %v19605_v32 = vpop.f32.mrb[73].mxu1 }
0x36c1   :  { %v9704_v35 = vsel %vm1063_vm4, %v9702_v61, -inf }
0x36c2   :  { %9705 = vmax.xlane.f32.xlu1 %v9704_v35  ;;  %v9698_v23 = vpop.f32.mrb[74].mxu1 }
0x36c3   :  { %v9703_v4 = vmul.f32 0.35355338, %v9698_v23  ;;  %v19610_v52 = vpop.f32.mrb[75].mxu1 }
0x36c5   :  { %v9707_v29 = vsel %vm1063_vm4, %v9703_v4, -inf }
0x36c6   :  { %9708 = vmax.xlane.f32.xlu0 %v9707_v29 }
0x36d3   :  { %9803 = vrot.lane.b32.xlu1 %v22522_v54, %s24295_s8 }
0x36d7   :  { %9882 = vrot.lane.b32.xlu1 %v22519_v8, %s24296_s30 }
0x36db   :  { %9960 = vrot.lane.b32.xlu1 %v22522_v54, %s24296_s30 }
0x36dc   :  { %9726 = vrot.lane.b32.xlu0 %v22519_v8, %s24295_s8 }
0x374f   :  { %v9706_v3 = vpop.xlane.xlu1 %9705 }
0x3750   :  { %v9710_v17 = vsub.f32 %v9702_v61, %v9706_v3 }
0x3752   :  { %v9712_v53 = vmul.f32 1.442695, %v9710_v17 }
0x3753   :  { %v9804_v30 = vpop.permute.xlu1 %9803  ;;  %v9709_v50 = vpop.xlane.xlu0 %9708 }
0x3754   :  { %20412 = vpow2.f32 %v9712_v53  ;;  %v9711_v37 = vsub.f32 %v9703_v4, %v9709_v50  ;;  %19617 = vmatpush3.msk.msra.mxu1 %vm1092_vm5, %v9804_v30 }
0x3755   :  { %19626 = vmatprep.subr.mxu1 %v20532_v31 }
0x3756   :  { %v9714_v6 = vmul.f32 1.442695, %v9711_v37 }
0x3757   :  { %v9727_v33 = vpop.permute.xlu0 %9726  ;;  %v9883_v58 = vpop.permute.xlu1 %9882 }
0x3758   :  { %20414 = vpow2.f32 %v9714_v6  ;;  %19612 = vmatpush3.msk.msra.mxu0 %vm1092_vm5, %v9727_v33 }
0x3759   :  { %19621 = vmatprep.subr.mxu0 %v20532_v31 }
0x375b   :  { %v9961_v49 = vpop.permute.xlu1 %9960 }
0x375e   :  { %v20413_v48 = vpop.eup %20412 }
0x375f   :  { %v9716_v38 = vsel %vm1063_vm4, %v20413_v48, 0.0 }
0x3760   :  { %9717 = vadd.xlane.f32.xlu0 %v9716_v38 }
0x3762   :  { %v20415_v24 = vpop.eup %20414 }
0x3763   :  { %v9719_v57 = vsel %vm1063_vm4, %v20415_v24, 0.0 }
0x3764   :  { %9720 = vadd.xlane.f32.xlu1 %v9719_v57 }
0x3775   :  { %9958 = vrot.lane.b32.xlu1 %v22522_v54, %s24297_s25 }
0x3776   :  { %9880 = vrot.lane.b32.xlu0 %v22519_v8, %s24297_s25 }
0x37ed   :  { %v9718_v19 = vpop.xlane.xlu0 %9717 }
0x37ee   :  { %20416 = vrcp.f32 %v9718_v19 }
0x37f1   :  { %v9721_v0 = vpop.xlane.xlu1 %9720  ;;  %v9881_v7 = vpop.permute.xlu0 %9880 }
0x37f2   :  { %20418 = vrcp.f32 %v9721_v0 }
0x37f5   :  { %v9959_v15 = vpop.permute.xlu1 %9958 }
0x37f8   :  { %v20417_v18 = vpop.eup %20416 }
0x37f9   :  { %v9723_v10 = vmul.f32 %v20417_v18, %v20413_v48 }
0x37fb   :  { %19614 = vmatmul.mubr.msk.f32.vlgmr.msra.gmra.mrb[56].mxu0 %vm1088_vm6, %v9723_v10 }
0x37fc   :  { %v20419_v5 = vpop.eup %20418  ;;  %19622 = vmatpush3.xpose.msk.msra.mxu0 %vm887_vm3, %v9883_v58  ;;  %19623 = vmatprep.mubr.msk.f32.mxu0 %vm20531_vm2, %v20532_v31 }
0x37fd   :  { %v9725_v16 = vmul.f32 %v20419_v5, %v20415_v24  ;;  %19631 = vmatprep.subr.mxu0 %v20532_v31 }
0x37ff   :  { %19619 = vmatmul.mubr.msk.f32.vlgmr.msra.gmra.mrb[76].mxu1 %vm1088_vm6, %v9725_v16  ;;  %19624 = vmatmul.mubr.msk.f32.vlgmr.msra.gmra.mrb[58].mxu0 %vm887_vm3, %v9881_v7 }
0x3800   :  { %19627 = vmatpush3.xpose.msk.msra.mxu1 %vm887_vm3, %v9961_v49  ;;  %19628 = vmatprep.mubr.msk.f32.mxu1 %vm20531_vm2, %v20532_v31 }
0x3801   :  { %19636 = vmatprep.subr.mxu1 %v20532_v31  ;;  %19633 = vmatprep.mubr.msk.f32.mxu0 %vm20531_vm2, %v20532_v31 }
0x3803   :  { %19629 = vmatmul.mubr.msk.f32.vlgmr.msra.gmra.mrb[78].mxu1 %vm887_vm3, %v9959_v15 }
0x3804   :  { %19638 = vmatprep.mubr.msk.f32.mxu1 %vm20531_vm2, %v20532_v31 }
0x38ce   :  { %v22576_v36 = vpop.f32.mrb[56].mxu0 }
0x38cf   :  { %v19615_v59 = vpop.f32.mrb[57].mxu0 }
0x38d2   :  { %v22578_v47 = vpop.f32.mrb[76].mxu1  ;;  %v9954_v63 = vpop.f32.mrb[58].mxu0 }
0x38d3   :  { %v10036_v39 = vmul.f32 0.35355338, %v9954_v63  ;;  %v19620_v60 = vpop.f32.mrb[77].mxu1  ;;  %v19625_v21 = vpop.f32.mrb[59].mxu0 }
0x38d5   :  { %v10038_v20 = vsel %vm1063_vm4, %v10036_v39, -inf }
0x38d6   :  { %v10032_v12 = vpop.f32.mrb[78].mxu1  ;;  %10039 = vmax.xlane.f32.xlu0 %v10038_v20 }
0x38d7   :  { %v10037_v62 = vmul.f32 0.35355338, %v10032_v12  ;;  %v19630_v22 = vpop.f32.mrb[79].mxu1 }
0x38d9   :  { %v10041_v51 = vsel %vm1063_vm4, %v10037_v62, -inf }
0x38da   :  { %10042 = vmax.xlane.f32.xlu1 %v10041_v51 }
0x38eb   :  { %10137 = vrot.lane.b32.xlu1 %v22522_v54, %s24298_s16 }
0x38ec   :  { %10060 = vrot.lane.b32.xlu0 %v22519_v8, %s24298_s16 }
0x38ef   :  { %10216 = vrot.lane.b32.xlu1 %v22519_v8, %s24299_s0 }
0x38f3   :  { %10294 = vrot.lane.b32.xlu1 %v22522_v54, %s24299_s0 }
0x38f7   :  { %10292 = vrot.lane.b32.xlu1 %v22522_v54, %s24309_s23 }
0x3963   :  { %v10040_v44 = vpop.xlane.xlu0 %10039 }
0x3964   :  { %v10044_v26 = vsub.f32 %v10036_v39, %v10040_v44 }
0x3966   :  { %v10046_v13 = vmul.f32 1.442695, %v10044_v26 }
0x3967   :  { %v10043_v34 = vpop.xlane.xlu1 %10042  ;;  %v10061_v61 = vpop.permute.xlu0 %10060 }
0x3968   :  { %20420 = vpow2.f32 %v10046_v13  ;;  %v10045_v32 = vsub.f32 %v10037_v62, %v10043_v34  ;;  %19632 = vmatpush3.msk.msra.mxu0 %vm1092_vm5, %v10061_v61 }
0x3969   :  { %19641 = vmatprep.subr.mxu0 %v20532_v31 }
0x396a   :  { %v10048_v35 = vmul.f32 1.442695, %v10045_v32 }
0x396b   :  { %v10138_v23 = vpop.permute.xlu1 %10137 }
0x396c   :  { %20422 = vpow2.f32 %v10048_v35  ;;  %19637 = vmatpush3.msk.msra.mxu1 %vm1092_vm5, %v10138_v23 }
0x396d   :  { %19646 = vmatprep.subr.mxu1 %v20532_v31 }
0x396f   :  { %v10217_v30 = vpop.permute.xlu1 %10216 }
0x3972   :  { %v20421_v4 = vpop.eup %20420 }
0x3973   :  { %v10050_v52 = vsel %vm1063_vm4, %v20421_v4, 0.0  ;;  %v10295_v33 = vpop.permute.xlu1 %10294 }
0x3974   :  { %10051 = vadd.xlane.f32.xlu0 %v10050_v52 }
0x3976   :  { %v20423_v29 = vpop.eup %20422 }
0x3977   :  { %v10053_v3 = vsel %vm1063_vm4, %v20423_v29, 0.0  ;;  %v10293_v24 = vpop.permute.xlu1 %10292 }
0x3978   :  { %10054 = vadd.xlane.f32.xlu0 %v10053_v3 }
0x398e   :  { %10214 = vrot.lane.b32.xlu0 %v22519_v8, %s24309_s23 }
0x3a01   :  { %v10052_v17 = vpop.xlane.xlu0 %10051 }
0x3a02   :  { %20424 = vrcp.f32 %v10052_v17 }
0x3a05   :  { %v10055_v53 = vpop.xlane.xlu0 %10054 }
0x3a06   :  { %20426 = vrcp.f32 %v10055_v53 }
0x3a09   :  { %v10215_v38 = vpop.permute.xlu0 %10214 }
0x3a0c   :  { %v20425_v50 = vpop.eup %20424 }
0x3a0d   :  { %v10057_v37 = vmul.f32 %v20425_v50, %v20421_v4 }
0x3a0f   :  { %19634 = vmatmul.mubr.msk.f32.vlgmr.msra.gmra.mrb[60].mxu0 %vm1088_vm6, %v10057_v37 }
0x3a10   :  { %v20427_v6 = vpop.eup %20426  ;;  %19642 = vmatpush3.xpose.msk.msra.mxu0 %vm887_vm3, %v10217_v30  ;;  %19643 = vmatprep.mubr.msk.f32.mxu0 %vm20531_vm2, %v20532_v31 }
0x3a11   :  { %v10059_v48 = vmul.f32 %v20427_v6, %v20423_v29  ;;  %19651 = vmatprep.subr.mxu0 %v20532_v31 }
0x3a13   :  { %19639 = vmatmul.mubr.msk.f32.vlgmr.msra.gmra.mrb[80].mxu1 %vm1088_vm6, %v10059_v48  ;;  %19644 = vmatmul.mubr.msk.f32.vlgmr.msra.gmra.mrb[62].mxu0 %vm887_vm3, %v10215_v38 }
0x3a14   :  { %19647 = vmatpush3.xpose.msk.msra.mxu1 %vm887_vm3, %v10295_v33  ;;  %19648 = vmatprep.mubr.msk.f32.mxu1 %vm20531_vm2, %v20532_v31 }
0x3a15   :  { %19656 = vmatprep.subr.mxu1 %v20532_v31  ;;  %19653 = vmatprep.mubr.msk.f32.mxu0 %vm20531_vm2, %v20532_v31 }
0x3a17   :  { %19649 = vmatmul.mubr.msk.f32.vlgmr.msra.gmra.mrb[82].mxu1 %vm887_vm3, %v10293_v24 }
0x3a18   :  { %19658 = vmatprep.mubr.msk.f32.mxu1 %vm20531_vm2, %v20532_v31 }
0x3ae2   :  { %v22616_v57 = vpop.f32.mrb[60].mxu0 }
0x3ae3   :  { %v19635_v58 = vpop.f32.mrb[61].mxu0 }
0x3ae6   :  { %v22618_v49 = vpop.f32.mrb[80].mxu1  ;;  %v10288_v19 = vpop.f32.mrb[62].mxu0 }
0x3ae7   :  { %v10370_v0 = vmul.f32 0.35355338, %v10288_v19  ;;  %v19640_v18 = vpop.f32.mrb[81].mxu1  ;;  %v19645_v10 = vpop.f32.mrb[63].mxu0 }
0x3ae9   :  { %v10372_v5 = vsel %vm1063_vm4, %v10370_v0, -inf }
0x3aea   :  { %v10366_v16 = vpop.f32.mrb[82].mxu1  ;;  %10373 = vmax.xlane.f32.xlu0 %v10372_v5 }
0x3aeb   :  { %v10371_v7 = vmul.f32 0.35355338, %v10366_v16  ;;  %v19650_v15 = vpop.f32.mrb[83].mxu1 }
0x3aed   :  { %v10375_v59 = vsel %vm1063_vm4, %v10371_v7, -inf }
0x3aee   :  { %10376 = vmax.xlane.f32.xlu1 %v10375_v59 }
0x3aff   :  { %10471 = vrot.lane.b32.xlu1 %v22522_v54, %s24310_s2 }
0x3b00   :  { %10394 = vrot.lane.b32.xlu0 %v22519_v8, %s24310_s2 }
0x3b03   :  { %10550 = vrot.lane.b32.xlu1 %v22519_v8, %s24311_s17 }
0x3b07   :  { %10628 = vrot.lane.b32.xlu1 %v22522_v54, %s24311_s17 }
0x3b0b   :  { %10626 = vrot.lane.b32.xlu1 %v22522_v54, %s24312_s9 }
0x3b77   :  { %v10374_v63 = vpop.xlane.xlu0 %10373 }
0x3b78   :  { %v10378_v39 = vsub.f32 %v10370_v0, %v10374_v63 }
0x3b7a   :  { %v10380_v60 = vmul.f32 1.442695, %v10378_v39 }
0x3b7b   :  { %v10377_v21 = vpop.xlane.xlu1 %10376  ;;  %v10395_v20 = vpop.permute.xlu0 %10394 }
0x3b7c   :  { %20428 = vpow2.f32 %v10380_v60  ;;  %v10379_v12 = vsub.f32 %v10371_v7, %v10377_v21  ;;  %19652 = vmatpush3.msk.msra.mxu0 %vm1092_vm5, %v10395_v20 }
0x3b7d   :  { %19661 = vmatprep.subr.mxu0 %v20532_v31 }
0x3b7e   :  { %v10382_v62 = vmul.f32 1.442695, %v10379_v12 }
0x3b7f   :  { %v10472_v22 = vpop.permute.xlu1 %10471 }
0x3b80   :  { %20430 = vpow2.f32 %v10382_v62  ;;  %19657 = vmatpush3.msk.msra.mxu1 %vm1092_vm5, %v10472_v22 }
0x3b81   :  { %19666 = vmatprep.subr.mxu1 %v20532_v31 }
0x3b83   :  { %v10551_v32 = vpop.permute.xlu1 %10550 }
0x3b86   :  { %v20429_v51 = vpop.eup %20428 }
0x3b87   :  { %v10384_v44 = vsel %vm1063_vm4, %v20429_v51, 0.0  ;;  %v10629_v52 = vpop.permute.xlu1 %10628 }
0x3b88   :  { %10385 = vadd.xlane.f32.xlu0 %v10384_v44 }
0x3b8a   :  { %v20431_v26 = vpop.eup %20430 }
0x3b8b   :  { %v10387_v13 = vsel %vm1063_vm4, %v20431_v26, 0.0  ;;  %v10627_v17 = vpop.permute.xlu1 %10626 }
0x3b8c   :  { %10388 = vadd.xlane.f32.xlu0 %v10387_v13 }
0x3ba2   :  { %10548 = vrot.lane.b32.xlu0 %v22519_v8, %s24312_s9 }
0x3c15   :  { %v10386_v34 = vpop.xlane.xlu0 %10385 }
0x3c16   :  { %20432 = vrcp.f32 %v10386_v34  ;;  %v18689_v34 = vld [vmem:[%s24180_s10 + $0x30] sm:$0xff] }
0x3c19   :  { %v10389_v61 = vpop.xlane.xlu0 %10388 }
0x3c1a   :  { %20434 = vrcp.f32 %v10389_v61  ;;  %v18690_v61 = vld [vmem:[%s24180_s10 + $0x38] sm:$0xff] }
0x3c1d   :  { %v10549_v3 = vpop.permute.xlu0 %10548 }
0x3c20   :  { %v20433_v35 = vpop.eup %20432 }
0x3c21   :  { %v10391_v23 = vmul.f32 %v20433_v35, %v20429_v51  ;;  %v18688_v51 = vld [vmem:[%s24180_s10 + $0x28] sm:$0xff] }
0x3c23   :  { %19654 = vmatmul.mubr.msk.f32.vlgmr.msra.gmra.mrb[64].mxu0 %vm1088_vm6, %v10391_v23 }
0x3c24   :  { %v20435_v4 = vpop.eup %20434  ;;  %19662 = vmatpush3.xpose.msk.msra.mxu0 %vm887_vm3, %v10551_v32  ;;  %19663 = vmatprep.mubr.msk.f32.mxu0 %vm20531_vm2, %v20532_v31  ;;  %v20141_v32 = vpack.c.bf16 %v18690_v61, %v18689_v34 }
0x3c25   :  { %v10393_v29 = vmul.f32 %v20435_v4, %v20431_v26  ;;  %19671 = vmatprep.subr.mxu0 %v20532_v31 }
0x3c27   :  { %19659 = vmatmul.mubr.msk.f32.vlgmr.msra.gmra.mrb[84].mxu1 %vm1088_vm6, %v10393_v29  ;;  %19664 = vmatmul.mubr.msk.f32.vlgmr.msra.gmra.mrb[66].mxu0 %vm887_vm3, %v10549_v3 }
0x3c28   :  { %19667 = vmatpush3.xpose.msk.msra.mxu1 %vm887_vm3, %v10629_v52  ;;  %19668 = vmatprep.mubr.msk.f32.mxu1 %vm20531_vm2, %v20532_v31 }
0x3c29   :  { %19676 = vmatprep.subr.mxu1 %v20532_v31  ;;  %19673 = vmatprep.mubr.msk.f32.mxu0 %vm20531_vm2, %v20532_v31 }
0x3c2b   :  { %19669 = vmatmul.mubr.msk.f32.vlgmr.msra.gmra.mrb[86].mxu1 %vm887_vm3, %v10627_v17 }
0x3c2c   :  { %19678 = vmatprep.mubr.msk.f32.mxu1 %vm20531_vm2, %v20532_v31 }
0x3cf6   :  { %v10467_v53 = vpop.f32.mrb[64].mxu0 }
0x3cf7   :  { %v19655_v30 = vpop.f32.mrb[65].mxu0 }
0x3cfa   :  { %v10544_v50 = vpop.f32.mrb[84].mxu1  ;;  %v10622_v37 = vpop.f32.mrb[66].mxu0 }
0x3cfb   :  { %v10704_v6 = vmul.f32 0.35355338, %v10622_v37  ;;  %v19660_v33 = vpop.f32.mrb[85].mxu1  ;;  %v19665_v48 = vpop.f32.mrb[67].mxu0 }
0x3cfd   :  { %v10706_v38 = vsel %vm1063_vm4, %v10704_v6, -inf }
0x3cfe   :  { %v10700_v24 = vpop.f32.mrb[86].mxu1  ;;  %10707 = vmax.xlane.f32.xlu0 %v10706_v38 }
0x3cff   :  { %v10705_v58 = vmul.f32 0.35355338, %v10700_v24  ;;  %v19670_v19 = vpop.f32.mrb[87].mxu1 }
0x3d01   :  { %v10709_v0 = vsel %vm1063_vm4, %v10705_v58, -inf }
0x3d02   :  { %10710 = vmax.xlane.f32.xlu1 %v10709_v0 }
0x3d13   :  { %10805 = vrot.lane.b32.xlu1 %v22522_v54, %s24313_s29 }
0x3d17   :  { %10884 = vrot.lane.b32.xlu1 %v22616_v57, %s24314_s12 }
0x3d1b   :  { %10892 = vrot.lane.b32.xlu1 %v10467_v53, %s24318_s4 }
0x3d8b   :  { %v10708_v18 = vpop.xlane.xlu0 %10707 }
0x3d8c   :  { %v10712_v10 = vsub.f32 %v10704_v6, %v10708_v18 }
0x3d8e   :  { %v10714_v5 = vmul.f32 1.442695, %v10712_v10 }
0x3d8f   :  { %v10711_v16 = vpop.xlane.xlu1 %10710 }
0x3d90   :  { %20436 = vpow2.f32 %v10714_v5  ;;  %v10713_v7 = vsub.f32 %v10705_v58, %v10711_v16 }
0x3d92   :  { %v10716_v15 = vmul.f32 1.442695, %v10713_v7 }
0x3d93   :  { %v10806_v59 = vpop.permute.xlu1 %10805 }
0x3d94   :  { %20438 = vpow2.f32 %v10716_v15  ;;  %19677 = vmatpush3.msk.msra.mxu1 %vm1092_vm5, %v10806_v59 }
0x3d95   :  { %20143 = vmatprep.subr.bf16.mxu1 %v20529_v1 }
0x3d97   :  { %v10885_v4 = vpop.permute.xlu1 %10884 }
0x3d98   :  { %v10906_v3 = vsel %vm887_vm3, %v22576_v36, %v10885_v4 }
0x3d9a   :  { %v20437_v63 = vpop.eup %20436 }
0x3d9b   :  { %v10718_v54 = vsel %vm1063_vm4, %v20437_v63, 0.0  ;;  %v10893_v29 = vpop.permute.xlu1 %10892 }
0x3d9c   :  { %10719 = vadd.xlane.f32.xlu0 %v10718_v54  ;;  %v10908_v17 = vsel %vm2270_vm7, %v10906_v3, %v10893_v29 }
0x3d9e   :  { %v20439_v57 = vpop.eup %20438 }
0x3d9f   :  { %v10721_v39 = vsel %vm1063_vm4, %v20439_v57, 0.0 }
0x3da0   :  { %10722 = vadd.xlane.f32.xlu0 %v10721_v39 }
0x3db6   :  { %10728 = vrot.lane.b32.xlu0 %v22519_v8, %s24313_s29 }
0x3dba   :  { %10886 = vrot.lane.b32.xlu0 %v22618_v49, %s24314_s12  ;;  %v18687_v49 = vld [vmem:[%s24180_s10 + $0x20] sm:$0xff] }
0x3dbb   :  { %v20138_v44 = vpack.c.bf16 %v18688_v51, %v18687_v49 }
0x3dbe   :  { %10894 = vrot.lane.b32.xlu0 %v10544_v50, %s24318_s4  ;;  %s24322_s4 = sld [smem:[#allocation16_spill]] }
0x3e29   :  { %v10720_v60 = vpop.xlane.xlu0 %10719 }
0x3e2a   :  { %20440 = vrcp.f32 %v10720_v60 }
0x3e2d   :  { %v10723_v21 = vpop.xlane.xlu0 %10722 }
0x3e2e   :  { %20442 = vrcp.f32 %v10723_v21 }
0x3e31   :  { %v10729_v20 = vpop.permute.xlu0 %10728 }
0x3e32   :  { %19672 = vmatpush3.msk.msra.mxu0 %vm1092_vm5, %v10729_v20  ;;  %v18692_v20 = vld [vmem:[%s24319_s11 + $0x1] ss:$0 sm:$0xff]  ;;  %s24331_s11 = sld [smem:[#allocation13_spill]] }
0x3e33   :  { %20137 = vmatprep.subr.bf16.mxu0 %v20529_v1 }
0x3e34   :  { %v20441_v12 = vpop.eup %20440 }
0x3e35   :  { %v10725_v62 = vmul.f32 %v20441_v12, %v20437_v63  ;;  %v10887_v52 = vpop.permute.xlu0 %10886 }
0x3e36   :  { %v10907_v6 = vsel %vm887_vm3, %v22578_v47, %v10887_v52 }
0x3e37   :  { %19674 = vmatmul.mubr.msk.f32.vlgmr.msra.gmra.mrb[68].mxu0 %vm1088_vm6, %v10725_v62 }
0x3e38   :  { %v20443_v22 = vpop.eup %20442  ;;  %19689 = vmatprep.mubr.msk.f32.mxu0 %vm20531_vm2, %v20532_v31  ;;  %20139 = vmatpush3.bf16.msra.mxu0 %v20138_v44 }
0x3e39   :  { %v10727_v8 = vmul.f32 %v20443_v22, %v20439_v57  ;;  %20140 = vmatprep.subr.bf16.mxu0 %v20529_v1  ;;  %v10895_v30 = vpop.permute.xlu0 %10894 }
0x3e3a   :  { %v10909_v33 = vsel %vm2270_vm7, %v10907_v6, %v10895_v30 }
0x3e3b   :  { %19679 = vmatmul.mubr.msk.f32.vlgmr.msra.gmra.mrb[88].mxu1 %vm1088_vm6, %v10727_v8 }
0x3e3c   :  { %19700 = vmatprep.mubr.msk.f32.mxu1 %vm20531_vm2, %v20532_v31  ;;  %20142 = vmatpush3.bf16.msra.mxu0 %v20141_v32 }
0x3e3d   :  { %20149 = vmatprep.subr.bf16.mxu0 %v20529_v1 }
0x3f0a   :  { %v10801_v26 = vpop.f32.mrb[68].mxu0 }
0x3f0b   :  { %10900 = vrot.lane.b32.xlu1 %v10801_v26, %s24307_s24  ;;  %v19675_v13 = vpop.f32.mrb[69].mxu0 }
0x3f0e   :  { %v10878_v35 = vpop.f32.mrb[88].mxu1 }
0x3f0f   :  { %v19680_v23 = vpop.f32.mrb[89].mxu1  ;;  %10902 = vrot.lane.b32.xlu1 %v10878_v35, %s24307_s24  ;;  %s24324_s24 = sld [smem:[#allocation18_spill]] }
0x3f7d   :  { %v10901_v53 = vpop.permute.xlu1 %10900 }
0x3f7e   :  { %v10910_v50 = vsel %vm2273_vm8, %v10908_v17, %v10901_v53 }
0x3f7f   :  { %v10920_v37 = vrot.slane %v10910_v50, %v20691_v14 }
0x3f81   :  { %v10921_v48 = vcombine.high %v10920_v37, %v10920_v37  ;;  %v10928_v38 = vrot.slane %v10920_v37, %v20691_v14  ;;  %v10903_v24 = vpop.permute.xlu1 %10902 }
0x3f82   :  { %v10911_v58 = vsel %vm2273_vm8, %v10909_v33, %v10903_v24 }
0x3f83   :  { %v10935_v36 = vrot.slane %v10921_v48, %v20691_v14  ;;  %v10943_v19 = vrot.slane %v10911_v58, %v20691_v14  ;;  %v10936_v0 = vcombine.high %v10928_v38, %v10928_v38 }
0x3f85   :  { %v10971_v18 = vcombine.low %v10928_v38, %v10935_v36  ;;  %v10944_v10 = vcombine.high %v10943_v19, %v10943_v19  ;;  %v10951_v5 = vrot.slane %v10943_v19, %v20691_v14 }
0x3f87   :  { %v10958_v16 = vrot.slane %v10944_v10, %v20691_v14  ;;  %v10959_v47 = vcombine.high %v10951_v5, %v10951_v5  ;;  %v10972_v7 = vcombine.low %v10936_v0, %v10951_v5  ;;  %v10980_v15 = vrot.slane %v10971_v18, %v20691_v14 }
0x3f89   :  { %v10973_v59 = vcombine.low %v10958_v16, %v10959_v47  ;;  %v10987_v63 = vrot.slane %v10972_v7, %v20691_v14 }
0x3f8b   :  { %v10994_v54 = vrot.slane %v10973_v59, %v20691_v14  ;;  %v10995_v57 = vcombine.low %v10980_v15, %v10987_v63 }
0x3f8d   :  { %v11002_v39 = vrot.slane %v10995_v57, %v20691_v14  ;;  %v11009_v60 = vrot.slane %v10994_v54, %v20691_v14 }
0x3f8f   :  { %v11010_v21 = vcombine.low %v11002_v39, %v11009_v60 }
0x3f91   :  { %19690 = vmatmul.mubr.msk.f32.vlgmr.msra.gmra.mrb[70].mxu0 %vm209_vm0, %v11010_v21 }
0x3f92   :  { %19719 = vmatprep.mubr.msk.f32.mxu0 %vm20531_vm2, %v20532_v31 }
0x4064   :  { %v11079_v12 = vpop.f32.mrb[70].mxu0 }
0x4065   :  { %v11080_v62 = vadd.f32 %v18692_v20, %v11079_v12  ;;  %v19691_v22 = vpop.f32.mrb[71].mxu0 }
0x4067   :  { %v11084_v8 = vcombine.high %v11080_v62, %v11080_v62  ;;  %v11091_v49 = vrot.slane %v11080_v62, %v20691_v14 }
0x4069   :  { %v11098_v51 = vrot.slane %v11084_v8, %v20691_v14  ;;  %v11099_v44 = vcombine.high %v11091_v49, %v11091_v49  ;;  %v11107_v26 = vrot.slane %v11091_v49, %v20691_v14 }
0x406b   :  { %v11100_v13 = vcombine.high %v11098_v51, %v11098_v51  ;;  %v11121_v34 = vrot.slane %v11099_v44, %v20691_v14  ;;  %v11129_v61 = vcombine.high %v11107_v26, %v11107_v26  ;;  %v11114_v32 = vrot.slane %v11098_v51, %v20691_v14 }
0x406d   :  { %v11128_v35 = vrot.slane %v11100_v13, %v20691_v14  ;;  %v11130_v23 = vcombine.high %v11121_v34, %v11121_v34  ;;  %v11131_v4 = vcombine.low %v11107_v26, %v11121_v34  ;;  %v11145_v29 = vrot.slane %v11129_v61, %v20691_v14 }
0x406f   :  { %v11138_v52 = vrot.slane %v11131_v4, %v20691_v14  ;;  %v11154_v3 = vcombine.low %v11130_v23, %v11114_v32  ;;  %v11168_v30 = vrot.slane %v11128_v35, %v20691_v14 }
0x4071   :  { %v11146_v17 = vcombine.low %v11138_v52, %v11145_v29  ;;  %v11161_v53 = vrot.slane %v11154_v3, %v20691_v14 }
0x4073   :  { %v11153_v50 = vrot.slane %v11146_v17, %v20691_v14  ;;  %v11169_v37 = vcombine.low %v11161_v53, %v11168_v30 }
0x4075   :  { %v11176_v6 = vrot.slane %v11169_v37, %v20691_v14  ;;  %v22734_v33 = vadd.f32 %v11153_v50, %v22398_v2 }
0x4077   :  { %v22737_v48 = vadd.f32 %v11176_v6, %v22401_v11  ;;  %v11189_v38 = vrot.slane %v22734_v33, %v20691_v14 }
0x4079   :  { %v11190_v24 = vcombine.high %v11189_v38, %v11189_v38  ;;  %v11197_v58 = vrot.slane %v11189_v38, %v20691_v14  ;;  %v11212_v36 = vrot.slane %v22737_v48, %v20691_v14 }
0x407b   :  { %v11204_v19 = vrot.slane %v11190_v24, %v20691_v14  ;;  %v11205_v0 = vcombine.high %v11197_v58, %v11197_v58  ;;  %v11213_v18 = vcombine.high %v11212_v36, %v11212_v36  ;;  %v11220_v10 = vrot.slane %v11212_v36, %v20691_v14 }
0x407d   :  { %v11227_v2 = vrot.slane %v11213_v18, %v20691_v14  ;;  %v11228_v5 = vcombine.high %v11220_v10, %v11220_v10  ;;  %v11237_v11 = vcombine.low %v11197_v58, %v11204_v19  ;;  %v11238_v16 = vcombine.low %v11205_v0, %v11220_v10  ;;  %v18699_v18 = vld [vmem:[%s24320_s7 + $0x28] sm:$0xff] }
0x407f   :  { %v11239_v47 = vcombine.low %v11227_v2, %v11228_v5  ;;  %v11246_v7 = vrot.slane %v11237_v11, %v20691_v14  ;;  %v11253_v15 = vrot.slane %v11238_v16, %v20691_v14  ;;  %v18705_v16 = vld [vmem:[%s24185_s14 + $0x40] sm:$0xff] }
0x4081   :  { %v11260_v59 = vrot.slane %v11239_v47, %v20691_v14  ;;  %v11261_v63 = vcombine.low %v11246_v7, %v11253_v15  ;;  %v18706_v47 = vld [vmem:[%s24185_s14 + $0x48] sm:$0xff]  ;;  %v18707_v7 = vld [vmem:[%s24185_s14 + $0x50] sm:$0xff] }
0x4082   :  { %v20150_v15 = vpack.c.bf16 %v18706_v47, %v18705_v16 }
0x4083   :  { %v11268_v54 = vrot.slane %v11261_v63, %v20691_v14  ;;  %v11275_v57 = vrot.slane %v11260_v59, %v20691_v14  ;;  %v18708_v59 = vld [vmem:[%s24185_s14 + $0x58] sm:$0xff] }
0x4084   :  { %20151 = vmatpush3.bf16.msra.mxu0 %v20150_v15  ;;  %v20153_v63 = vpack.c.bf16 %v18708_v59, %v18707_v7 }
0x4085   :  { %v11276_v39 = vcombine.low %v11268_v54, %v11275_v57  ;;  %20152 = vmatprep.subr.bf16.mxu0 %v20529_v1  ;;  %v18709_v54 = vld [vmem:[%s24185_s14 + $0x60] sm:$0xff]  ;;  %v18710_v57 = vld [vmem:[%s24185_s14 + $0x68] sm:$0xff] }
0x4087   :  { %v11278_v60 = vsel %vm418_vm1, %v11276_v39, 0.0  ;;  %v20156_v39 = vpack.c.bf16 %v18710_v57, %v18709_v54 }
0x4088   :  { %11279 = vadd.xlane.f32.xlu0 %v11278_v60  ;;  %20154 = vmatpush3.bf16.msra.mxu0 %v20153_v63 }
0x4089   :  { %20155 = vmatprep.subr.bf16.mxu0 %v20529_v1 }
0x408c   :  { %20157 = vmatpush3.bf16.msra.mxu0 %v20156_v39 }
0x408d   :  { %20158 = vmatprep.subr.bf16.mxu0 %v20529_v1 }
0x4115   :  { %v11280_v21 = vpop.xlane.xlu0 %11279 }
0x4116   :  { %v11281_v20 = vmul.f32 0.03125, %v11280_v21  ;;  %v18696_v21 = vld [vmem:[%s24183_s18 + $0x1] ss:$0 sm:$0xff] }
0x4118   :  { %v11286_v12 = vrot.slane %v11281_v20, %v20819_v40  ;;  %v11290_v62 = vrot.slane %v11281_v20, %v20822_v41  ;;  %v11294_v22 = vrot.slane %v11281_v20, %v20825_v42  ;;  %v11298_v8 = vrot.slane %v11281_v20, %v20828_v43 }
0x4119   :  { %v11302_v49 = vrot.slane %v11281_v20, %v20831_v45  ;;  %v11306_v51 = vrot.slane %v11281_v20, %v20834_v46 }
0x411a   :  { %v22759_v44 = vsub.f32 %v11197_v58, %v11286_v12  ;;  %v22761_v26 = vsub.f32 %v11204_v19, %v11290_v62  ;;  %v22763_v13 = vsub.f32 %v11205_v0, %v11294_v22  ;;  %v22765_v34 = vsub.f32 %v11220_v10, %v11298_v8  ;;  %v18698_v0 = vld [vmem:[%s24320_s7 + $0x20] sm:$0xff]  ;;  %v18700_v10 = vld [vmem:[%s24320_s7 + $0x30] sm:$0xff] }
0x411b   :  { %v22767_v61 = vsub.f32 %v11227_v2, %v11302_v49  ;;  %v22769_v32 = vsub.f32 %v11228_v5, %v11306_v51  ;;  %v20144_v2 = vpack.c.bf16 %v18699_v18, %v18698_v0  ;;  %v18701_v5 = vld [vmem:[%s24320_s7 + $0x38] sm:$0xff]  ;;  %v18697_v12 = vld [vmem:[%s24184_s19 + $0x1] ss:$0 sm:$0xff]  ;;  %v11420_v22 = vcombine.high %v18696_v21, %v18696_v21  ;;  %s24321_s7 = sld [smem:[#allocation15_spill]] }
0x411c   :  { %v11319_v35 = vmul.f32 %v22759_v44, %v22759_v44  ;;  %v11320_v23 = vmul.f32 %v22761_v26, %v22761_v26  ;;  %v11321_v4 = vmul.f32 %v22763_v13, %v22763_v13  ;;  %v11322_v52 = vmul.f32 %v22765_v34, %v22765_v34 }
0x411d   :  { %v11323_v29 = vmul.f32 %v22767_v61, %v22767_v61  ;;  %v11324_v3 = vmul.f32 %v22769_v32, %v22769_v32  ;;  %20145 = vmatpush3.bf16.msra.mxu1 %v20144_v2  ;;  %v20147_v11 = vpack.c.bf16 %v18701_v5, %v18700_v10  ;;  %v11427_v8 = vrot.slane %v18696_v21, %v20691_v14 }
0x411e   :  { %v11331_v17 = vcombine.low %v11319_v35, %v11320_v23  ;;  %v11332_v53 = vcombine.low %v11321_v4, %v11322_v52  ;;  %20146 = vmatprep.subr.bf16.mxu1 %v20529_v1  ;;  %v11491_v49 = vrot.slane %v18697_v12, %v20691_v14  ;;  %v11434_v51 = vrot.slane %v11420_v22, %v20691_v14 }
0x411f   :  { %v11333_v30 = vcombine.low %v11323_v29, %v11324_v3  ;;  %v11435_v35 = vcombine.high %v11427_v8, %v11427_v8  ;;  %v11484_v23 = vcombine.high %v18697_v12, %v18697_v12  ;;  %v11443_v29 = vrot.slane %v11427_v8, %v20691_v14 }
0x4120   :  { %v11340_v50 = vrot.slane %v11331_v17, %v20691_v14  ;;  %v11347_v37 = vrot.slane %v11332_v53, %v20691_v14  ;;  %v11499_v4 = vcombine.high %v11491_v49, %v11491_v49  ;;  %v11436_v52 = vcombine.high %v11434_v51, %v11434_v51 }
0x4121   :  { %v11354_v6 = vrot.slane %v11333_v30, %v20691_v14  ;;  %20148 = vmatpush3.bf16.msra.mxu1 %v20147_v11  ;;  %v11457_v3 = vrot.slane %v11435_v35, %v20691_v14  ;;  %v11498_v17 = vrot.slane %v11484_v23, %v20691_v14  ;;  %v11507_v53 = vrot.slane %v11491_v49, %v20691_v14 }
0x4122   :  { %v11355_v38 = vcombine.low %v11340_v50, %v11347_v37  ;;  %v11521_v30 = vrot.slane %v11499_v4, %v20691_v14  ;;  %v11450_v50 = vrot.slane %v11434_v51, %v20691_v14 }
0x4123   :  { %v11369_v58 = vrot.slane %v11354_v6, %v20691_v14  ;;  %v11464_v6 = vrot.slane %v11436_v52, %v20691_v14  ;;  %v11529_v5 = vcombine.high %v11507_v53, %v11507_v53  ;;  %v11514_v54 = vrot.slane %v11498_v17, %v20691_v14 }
0x4124   :  { %v11362_v24 = vrot.slane %v11355_v38, %v20691_v14  ;;  %v11465_v38 = vcombine.high %v11443_v29, %v11443_v29  ;;  %v11530_v11 = vcombine.high %v11521_v30, %v11521_v30 }
0x4126   :  { %v11370_v36 = vcombine.low %v11362_v24, %v11369_v58  ;;  %v11466_v24 = vcombine.high %v11457_v3, %v11457_v3  ;;  %v11500_v58 = vcombine.high %v11498_v17, %v11498_v17  ;;  %v18711_v17 = vld [vmem:[%s24185_s14 + $0x70] sm:$0xff] }
0x4128   :  { %v11372_v19 = vsel %vm418_vm1, %v11370_v36, 0.0  ;;  %v11528_v57 = vrot.slane %v11500_v58, %v20691_v14  ;;  %v11860_v58 = vld [vmem:[%s24321_s7 + $0x8] sm:$0xff] }
0x4129   :  { %11373 = vadd.xlane.f32.xlu1 %v11372_v19 }
0x41b6   :  { %v11374_v60 = vpop.xlane.xlu1 %11373 }
0x41b7   :  { %v11375_v20 = vmul.f32 0.03125, %v11374_v60 }
0x41b9   :  { %v11376_v62 = vadd.f32 1e-05, %v11375_v20 }
0x41bb   :  { %20444 = vrsqrt.f32 %v11376_v62 }
0x41c5   :  { %v20445_v37 = vpop.eup %20444 }
0x41c6   :  { %v11382_v36 = vrot.slane %v20445_v37, %v20819_v40  ;;  %v11386_v19 = vrot.slane %v20445_v37, %v20822_v41  ;;  %v11390_v0 = vrot.slane %v20445_v37, %v20825_v42  ;;  %v11394_v18 = vrot.slane %v20445_v37, %v20828_v43 }
0x41c7   :  { %v11398_v10 = vrot.slane %v20445_v37, %v20831_v45  ;;  %v11402_v2 = vrot.slane %v20445_v37, %v20834_v46 }
0x41c8   :  { %v11409_v16 = vmul.f32 %v11382_v36, %v22759_v44  ;;  %v11410_v47 = vmul.f32 %v11386_v19, %v22761_v26  ;;  %v11411_v7 = vmul.f32 %v11390_v0, %v22763_v13  ;;  %v11412_v15 = vmul.f32 %v11394_v18, %v22765_v34  ;;  %v11862_v36 = vld [vmem:[%s24321_s7 + $0x18] sm:$0xff]  ;;  %v11859_v0 = vld [vmem:[%s24321_s7] sm:$0xff]  ;;  %v11861_v18 = vld [vmem:[%s24321_s7 + $0x10] sm:$0xff] }
0x41c9   :  { %v11413_v59 = vmul.f32 %v11398_v10, %v22767_v61  ;;  %v11414_v63 = vmul.f32 %v11402_v2, %v22769_v32  ;;  %v20161_v19 = vpack.c.bf16 %v11862_v36, %v11860_v58  ;;  %v20163_v10 = vpack.c.bf16 %v11861_v18, %v11859_v0  ;;  %v11864_v2 = vld [vmem:[%s24321_s7 + $0x28] sm:$0xff] }
0x41ca   :  { %v11473_v39 = vmul.f32 %v11443_v29, %v11409_v16  ;;  %v11474_v60 = vmul.f32 %v11457_v3, %v11410_v47  ;;  %v11475_v21 = vmul.f32 %v11465_v38, %v11411_v7  ;;  %v11476_v20 = vmul.f32 %v11466_v24, %v11412_v15  ;;  %v11865_v47 = vld [vmem:[%s24321_s7 + $0x30] sm:$0xff]  ;;  %v18714_v15 = vld [vmem:[%s24187_s15 + $0x1] ss:$0 sm:$0xff] }
0x41cb   :  { %v11477_v12 = vmul.f32 %v11450_v50, %v11413_v59  ;;  %v11478_v44 = vmul.f32 %v11464_v6, %v11414_v63  ;;  %v18703_v50 = vld [vmem:[%s24317_s22 + $0x1] ss:$0 sm:$0xff]  ;;  %20162 = vmatprep.subr.bf16.mxu1 %v20161_v19  ;;  %v17977_v19 = vrot.slane %v17970_v56, %v20691_v14  ;;  %s24327_s22 = smov 24  }
0x41cc   :  { %v11537_v62 = vadd.f32 %v11507_v53, %v11473_v39  ;;  %v11538_v26 = vadd.f32 %v11521_v30, %v11474_v60  ;;  %v11539_v22 = vadd.f32 %v11529_v5, %v11475_v21  ;;  %v11540_v13 = vadd.f32 %v11530_v11, %v11476_v20  ;;  %v18712_v53 = vld [vmem:[%s24185_s14 + $0x78] sm:$0xff]  ;;  %v11863_v11 = vld [vmem:[%s24321_s7 + $0x20] sm:$0xff] }
0x41cd   :  { %v11541_v8 = vadd.f32 %v11514_v54, %v11477_v12  ;;  %v11542_v34 = vadd.f32 %v11528_v57, %v11478_v44  ;;  %v20159_v30 = vpack.c.bf16 %v18712_v53, %v18711_v17  ;;  %v11866_v5 = vld [vmem:[%s24321_s7 + $0x38] sm:$0xff]  ;;  %v20167_v7 = vpack.c.bf16 %v11865_v47, %v11863_v11  ;;  %v11959_v17 = vld [vmem:[%s24322_s4 + $0x8] sm:$0xff]  ;;  %s24330_s7 = sld [smem:[#allocation12_spill]] }
0x41ce   :  { %v11560_v49 = vcombine.low %v11537_v62, %v11538_v26  ;;  %v11561_v61 = vcombine.low %v11539_v22, %v11540_v13  ;;  %v20165_v16 = vpack.c.bf16 %v11866_v5, %v11864_v2  ;;  %v17978_v5 = vcombine.high %v17977_v19, %v17977_v19 }
0x41cf   :  { %v11562_v51 = vcombine.low %v11541_v8, %v11542_v34  ;;  %20160 = vmatpush3.bf16.msra.mxu0 %v20159_v30 }
0x41d0   :  { %v11569_v32 = vrot.slane %v11560_v49, %v20691_v14  ;;  %v11576_v35 = vrot.slane %v11561_v61, %v20691_v14  ;;  %20175 = vmatprep.subr.bf16.mxu0 %v20529_v1 }
0x41d1   :  { %v11583_v23 = vrot.slane %v11562_v51, %v20691_v14 }
0x41d2   :  { %v11584_v4 = vcombine.low %v11569_v32, %v11576_v35 }
0x41d3   :  { %v11598_v29 = vrot.slane %v11583_v23, %v20691_v14 }
0x41d4   :  { %v11591_v52 = vrot.slane %v11584_v4, %v20691_v14 }
0x41d6   :  { %v11599_v3 = vcombine.low %v11591_v52, %v11598_v29 }
0x41d8   :  { %19701 = vmatmul.mubr.msk.f32.vlgmr.msra.gmra.mrb[90].mxu1 %vm209_vm0, %v11599_v3  ;;  %v11958_v3 = vld [vmem:[%s24322_s4] sm:$0xff] }
0x41d9   :  { %11951 = vmatprep.mubr.f32.mxu1 %v20532_v31  ;;  %20164 = vmatpush1.bf16.msra.mxu1 %v20163_v10 }
0x41da   :  { %20166 = vmatprep.subr.bf16.mxu1 %v20165_v16  ;;  %v17985_v16 = vrot.slane %v17977_v19, %v20691_v14 }
0x41dc   :  { %v18046_v56 = vrot.slane %v17985_v16, %v20819_v40 }
0x41dd   :  { %20168 = vmatpush1.bf16.msra.mxu1 %v20167_v7  ;;  %v18717_v7 = vld [vmem:[%s24324_s24] ss:$0 sm:$0xff]  ;;  %s24326_s24 = smov 16  }
0x41de   :  { %20169 = vmatprep.subr.bf16.mxu1 %v20529_v1 }
0x42ab   :  { %v11668_v37 = vpop.f32.mrb[90].mxu1 }
0x42ac   :  { %v11669_v6 = vadd.f32 %v18703_v50, %v11668_v37  ;;  %v19702_v38 = vpop.f32.mrb[91].mxu1  ;;  %v20170_v37 = vpack.c.bf16 %v11959_v17, %v11958_v3 }
0x42ae   :  { %v11672_v24 = vmax.f32 %v11669_v6, 0.0  ;;  %v11960_v6 = vld [vmem:[%s24322_s4 + $0x10] sm:$0xff] }
0x42b0   :  { %19720 = vmatmul.mubr.msk.f32.vlgmr.msra.gmra.mrb[72].mxu0 %vm2966_vm9, %v11672_v24 }
0x42b1   :  { %19741 = vmatprep.mubr.msk.f32.mxu0 %vm20531_vm2, %v20532_v31 }
0x4383   :  { %v11757_v59 = vpop.f32.mrb[72].mxu0 }
0x4384   :  { %v11758_v63 = vadd.f32 %v18714_v15, %v11757_v59  ;;  %v19721_v54 = vpop.f32.mrb[73].mxu0  ;;  %v17992_v15 = vrot.slane %v17978_v5, %v20691_v14 }
0x4386   :  { %v11762_v57 = vcombine.high %v11758_v63, %v11758_v63  ;;  %v11769_v39 = vrot.slane %v11758_v63, %v20691_v14 }
0x4388   :  { %v11776_v60 = vrot.slane %v11762_v57, %v20691_v14  ;;  %v11777_v21 = vcombine.high %v11769_v39, %v11769_v39  ;;  %v11785_v20 = vrot.slane %v11769_v39, %v20691_v14  ;;  %v18050_v57 = vrot.slane %v17985_v16, %v20822_v41 }
0x438a   :  { %v11778_v12 = vcombine.high %v11776_v60, %v11776_v60  ;;  %v11799_v44 = vrot.slane %v11777_v21, %v20691_v14  ;;  %v11807_v62 = vcombine.high %v11785_v20, %v11785_v20  ;;  %v11792_v26 = vrot.slane %v11776_v60, %v20691_v14 }
0x438c   :  { %v11806_v22 = vrot.slane %v11778_v12, %v20691_v14  ;;  %v11808_v13 = vcombine.high %v11799_v44, %v11799_v44  ;;  %v11809_v8 = vcombine.low %v11785_v20, %v11799_v44  ;;  %v11823_v49 = vrot.slane %v11807_v62, %v20691_v14 }
0x438d   :  { %v18054_v20 = vrot.slane %v17992_v15, %v20819_v40  ;;  %v18058_v12 = vrot.slane %v17992_v15, %v20822_v41 }
0x438e   :  { %v11816_v34 = vrot.slane %v11809_v8, %v20691_v14  ;;  %v11832_v61 = vcombine.low %v11808_v13, %v11792_v26  ;;  %v11846_v35 = vrot.slane %v11806_v22, %v20691_v14 }
0x4390   :  { %v11824_v51 = vcombine.low %v11816_v34, %v11823_v49  ;;  %v11839_v32 = vrot.slane %v11832_v61, %v20691_v14 }
0x4392   :  { %v11831_v23 = vrot.slane %v11824_v51, %v20691_v14  ;;  %v11847_v4 = vcombine.low %v11839_v32, %v11846_v35  ;;  %v12064_v51 = vrot.slane %v21896_v25, 1 }
0x4394   :  { %v11854_v52 = vrot.slane %v11847_v4, %v20691_v14  ;;  %v11857_v29 = vadd.f32 %v11831_v23, %v22734_v33  ;;  %v11961_v33 = vld [vmem:[%s24322_s4 + $0x18] sm:$0xff]  ;;  %v12065_v23 = vrot.slane %v21905_v28, 1  ;;  %s24337_s4 = sld [smem:[#allocation17_spill]] }
0x4395   :  { %v20173_v24 = vpack.c.bf16 %v11961_v33, %v11960_v6 }
0x4396   :  { %v11858_v53 = vadd.f32 %v11854_v52, %v22737_v48  ;;  %v11881_v30 = vrot.slane %v11857_v29, 2  ;;  %v11867_v48 = vld [vmem:[%s24323_s21] sm:$0x3] }
0x4397   :  { %v11872_v58 = vrot.slane %v11867_v48, %v20819_v40  ;;  %v11876_v36 = vrot.slane %v11867_v48, %v20822_v41  ;;  %v20527_v29 = vld [vmem:[%s24325_s6] sm:$0x7] }
0x4398   :  { %v11882_v50 = vrot.slane %v11858_v53, 1 }
0x439a   :  { %v11884_v38 = vsel %vm11883_vm11, %v11882_v50, %v11881_v30 }
0x439b   :  { %18716 = vmatmul.mubr.msk.f32.vlgmr.msra.gmra.mrb[92].mxu1 %vm209_vm0, %v11884_v38 }
0x439c   :  { %20171 = vmatpush3.bf16.msra.mxu1 %v20170_v37  ;;  %19730 = vmatprep.mubr.msk.f32.mxu1 %vm20531_vm2, %v20532_v31 }
0x439d   :  { %20172 = vmatprep.subr.bf16.mxu1 %v20529_v1 }
0x43a0   :  { %20174 = vmatpush3.bf16.msra.mxu1 %v20173_v24 }
0x43a1   :  { %19744 = vmatprep.subr.mxu1 %v20532_v31 }
0x43a3   :  { %19731 = vmatmul.mubr.msk.f32.vlgmr.msra.gmra.mrb[94].mxu1 %vm209_vm0, %v11884_v38 }
0x43a4   :  { %19746 = vmatprep.mubr.msk.f32.mxu1 %vm20531_vm2, %v20532_v31 }
0x446e   :  { %v11953_v0 = vpop.f32.mrb[92].mxu1 }
0x446f   :  { %v11954_v18 = vadd.f32 %v11953_v0, %v11872_v58  ;;  %v11955_v10 = vpop.f32.mrb[93].mxu1 }
0x4470   :  { %v11956_v2 = vadd.f32 %v11955_v10, %v11876_v36 }
0x4472   :  { %v17995_v11 = vcombine.low %v11954_v18, %v11956_v2 }
0x4474   :  { %v18002_v47 = vrot.slane %v17995_v11, %v20691_v14 }
0x4476   :  { %v18003_v59 = vcombine.high %v18002_v47, %v18002_v47  ;;  %v18010_v27 = vrot.slane %v18002_v47, %v20691_v14  ;;  %v12035_v55 = vpop.f32.mrb[94].mxu1 }
0x4477   :  { %v12036_v63 = vadd.f32 %v18717_v7, %v12035_v55  ;;  %v19732_v54 = vpop.f32.mrb[95].mxu1 }
0x4478   :  { %v18017_v39 = vrot.slane %v18003_v59, %v20691_v14  ;;  %v18066_v60 = vrot.slane %v18010_v27, %v20819_v40  ;;  %v18070_v21 = vrot.slane %v18010_v27, %v20822_v41 }
0x4479   :  { %v12046_v44 = vrot.slane %v12036_v63, %v20691_v14 }
0x447a   :  { %v18074_v62 = vrot.slane %v18017_v39, %v20819_v40  ;;  %v18078_v26 = vrot.slane %v18017_v39, %v20822_v41  ;;  %v22963_v22 = vsel %vm18103_vm12, %v18046_v56, %v18066_v60  ;;  %v22966_v13 = vsel %vm18103_vm12, %v18050_v57, %v18070_v21 }
0x447b   :  { %v12047_v8 = vcombine.high %v12046_v44, %v12046_v44  ;;  %v12054_v34 = vrot.slane %v12046_v44, %v20691_v14 }
0x447c   :  { %v22970_v49 = vsel %vm18103_vm12, %v18054_v20, %v18074_v62  ;;  %v22973_v61 = vsel %vm18103_vm12, %v18058_v12, %v18078_v26 }
0x447d   :  { %v12061_v32 = vrot.slane %v12047_v8, %v20691_v14  ;;  %v12071_v35 = vrot.slane %v12054_v34, %v20819_v40 }
0x447f   :  { %v12075_v4 = vrot.slane %v12061_v32, %v20819_v40  ;;  %v12078_v52 = vsel %vm6066_vm10, %v12064_v51, %v12071_v35 }
0x4480   :  { %v22984_v3 = vadd.f32 %v20527_v29, %v12078_v52 }
0x4481   :  { %v12079_v17 = vsel %vm6066_vm10, %v12065_v23, %v12075_v4 }
0x4482   :  { %v22987_v53 = vadd.f32 %v20527_v29, %v12079_v17  ;;  %v12090_v25 = vrot.slane %v22984_v3, %v20691_v14 }
0x4484   :  { %v12098_v30 = vrot.slane %v12090_v25, %v20691_v14  ;;  %v12091_v28 = vcombine.high %v12090_v25, %v12090_v25  ;;  %v12113_v50 = vrot.slane %v22987_v53, %v20691_v14 }
0x4486   :  { %v12105_v37 = vrot.slane %v12091_v28, %v20691_v14  ;;  %v12106_v6 = vcombine.high %v12098_v30, %v12098_v30  ;;  %v12114_v33 = vcombine.high %v12113_v50, %v12113_v50  ;;  %v12121_v38 = vrot.slane %v12113_v50, %v20691_v14 }
0x4488   :  { %v12128_v24 = vrot.slane %v12114_v33, %v20691_v14  ;;  %v12129_v48 = vcombine.high %v12121_v38, %v12121_v38  ;;  %v12138_v58 = vcombine.low %v12098_v30, %v12105_v37  ;;  %v12139_v36 = vcombine.low %v12106_v6, %v12121_v38  ;;  %v12446_v33 = vld [vmem:[%s24291_s28 + $0x10] sm:$0xff] }
0x448a   :  { %v12140_v19 = vcombine.low %v12128_v24, %v12129_v48  ;;  %v12147_v0 = vrot.slane %v12138_v58, %v20691_v14  ;;  %v12154_v18 = vrot.slane %v12139_v36, %v20691_v14  ;;  %v18719_v36 = vld [vmem:[%s24292_s1] ss:$0 sm:$0xff] }
0x448c   :  { %v12161_v10 = vrot.slane %v12140_v19, %v20691_v14  ;;  %v12162_v2 = vcombine.low %v12147_v0, %v12154_v18  ;;  %v18720_v0 = vld [vmem:[%s24293_s27] ss:$0 sm:$0xff] }
0x448e   :  { %v12169_v5 = vrot.slane %v12162_v2, %v20691_v14  ;;  %v12176_v11 = vrot.slane %v12161_v10, %v20691_v14  ;;  %v12321_v10 = vcombine.high %v18719_v36, %v18719_v36  ;;  %v12328_v2 = vrot.slane %v18719_v36, %v20691_v14 }
0x4490   :  { %v12177_v16 = vcombine.low %v12169_v5, %v12176_v11  ;;  %v12392_v5 = vrot.slane %v18720_v0, %v20691_v14  ;;  %v12335_v11 = vrot.slane %v12321_v10, %v20691_v14 }
0x4492   :  { %v12179_v47 = vsel %vm418_vm1, %v12177_v16, 0.0  ;;  %v12336_v16 = vcombine.high %v12328_v2, %v12328_v2 }
0x4493   :  { %12180 = vadd.xlane.f32.xlu0 %v12179_v47  ;;  %v12385_v47 = vcombine.high %v18720_v0, %v18720_v0 }
0x4520   :  { %v12181_v7 = vpop.xlane.xlu0 %12180 }
0x4521   :  { %v12182_v15 = vmul.f32 0.03125, %v12181_v7  ;;  %v12400_v7 = vcombine.high %v12392_v5, %v12392_v5 }
0x4523   :  { %v12187_v59 = vrot.slane %v12182_v15, %v20819_v40  ;;  %v12191_v27 = vrot.slane %v12182_v15, %v20822_v41  ;;  %v12195_v55 = vrot.slane %v12182_v15, %v20825_v42  ;;  %v12199_v56 = vrot.slane %v12182_v15, %v20828_v43 }
0x4524   :  { %v12203_v63 = vrot.slane %v12182_v15, %v20831_v45  ;;  %v12207_v54 = vrot.slane %v12182_v15, %v20834_v46  ;;  %v12337_v15 = vcombine.high %v12335_v11, %v12335_v11 }
0x4525   :  { %v23009_v57 = vsub.f32 %v12098_v30, %v12187_v59  ;;  %v23011_v39 = vsub.f32 %v12105_v37, %v12191_v27  ;;  %v23013_v60 = vsub.f32 %v12106_v6, %v12195_v55  ;;  %v23015_v21 = vsub.f32 %v12121_v38, %v12199_v56  ;;  %v12444_v37 = vld [vmem:[%s24291_s28] sm:$0xff]  ;;  %v12445_v6 = vld [vmem:[%s24291_s28 + $0x8] sm:$0xff] }
0x4526   :  { %v23017_v20 = vsub.f32 %v12128_v24, %v12203_v63  ;;  %v23019_v12 = vsub.f32 %v12129_v48, %v12207_v54  ;;  %v20176_v38 = vpack.c.bf16 %v12445_v6, %v12444_v37  ;;  %v12447_v24 = vld [vmem:[%s24291_s28 + $0x18] sm:$0xff]  ;;  %v12344_v59 = vrot.slane %v12328_v2, %v20691_v14 }
0x4527   :  { %v12220_v44 = vmul.f32 %v23009_v57, %v23009_v57  ;;  %v12221_v62 = vmul.f32 %v23011_v39, %v23011_v39  ;;  %v12222_v26 = vmul.f32 %v23013_v60, %v23013_v60  ;;  %v12223_v8 = vmul.f32 %v23015_v21, %v23015_v21 }
0x4528   :  { %v12224_v34 = vmul.f32 %v23017_v20, %v23017_v20  ;;  %v12225_v51 = vmul.f32 %v23019_v12, %v23019_v12  ;;  %20177 = vmatpush3.bf16.msra.mxu0 %v20176_v38  ;;  %v20179_v48 = vpack.c.bf16 %v12447_v24, %v12446_v33  ;;  %v12358_v27 = vrot.slane %v12336_v16, %v20691_v14 }
0x4529   :  { %v12232_v32 = vcombine.low %v12220_v44, %v12221_v62  ;;  %v12233_v35 = vcombine.low %v12222_v26, %v12223_v8  ;;  %20178 = vmatprep.subr.bf16.mxu0 %v20529_v1  ;;  %v12399_v55 = vrot.slane %v12385_v47, %v20691_v14  ;;  %v12408_v56 = vrot.slane %v12392_v5, %v20691_v14 }
0x452a   :  { %v12234_v23 = vcombine.low %v12224_v34, %v12225_v51  ;;  %v12422_v63 = vrot.slane %v12400_v7, %v20691_v14  ;;  %v12351_v54 = vrot.slane %v12335_v11, %v20691_v14  ;;  %v12365_v62 = vrot.slane %v12337_v15, %v20691_v14 }
0x452b   :  { %v12241_v4 = vrot.slane %v12232_v32, %v20691_v14  ;;  %v12248_v52 = vrot.slane %v12233_v35, %v20691_v14  ;;  %v12366_v26 = vcombine.high %v12344_v59, %v12344_v59  ;;  %v12367_v8 = vcombine.high %v12358_v27, %v12358_v27 }
0x452c   :  { %v12255_v29 = vrot.slane %v12234_v23, %v20691_v14  ;;  %20180 = vmatpush3.bf16.msra.mxu0 %v20179_v48  ;;  %v12401_v34 = vcombine.high %v12399_v55, %v12399_v55  ;;  %v12415_v33 = vrot.slane %v12399_v55, %v20691_v14 }
0x452d   :  { %v12256_v17 = vcombine.low %v12241_v4, %v12248_v52  ;;  %19754 = vmatprep.subr.mxu0 %v20532_v31 }
0x452e   :  { %v12270_v30 = vrot.slane %v12255_v29, %v20691_v14  ;;  %v12430_v29 = vcombine.high %v12408_v56, %v12408_v56  ;;  %v12429_v38 = vrot.slane %v12401_v34, %v20691_v14 }
0x452f   :  { %v12263_v25 = vrot.slane %v12256_v17, %v20691_v14  ;;  %v12431_v17 = vcombine.high %v12422_v63, %v12422_v63 }
0x4531   :  { %v12271_v28 = vcombine.low %v12263_v25, %v12270_v30 }
0x4533   :  { %v12273_v50 = vsel %vm418_vm1, %v12271_v28, 0.0 }
0x4534   :  { %12274 = vadd.xlane.f32.xlu0 %v12273_v50 }
0x45c1   :  { %v12275_v58 = vpop.xlane.xlu0 %12274 }
0x45c2   :  { %v12276_v19 = vmul.f32 0.03125, %v12275_v58 }
0x45c4   :  { %v12277_v18 = vadd.f32 1e-05, %v12276_v19 }
0x45c6   :  { %20446 = vrsqrt.f32 %v12277_v18 }
0x45d0   :  { %v20447_v44 = vpop.eup %20446 }
0x45d1   :  { %v12283_v51 = vrot.slane %v20447_v44, %v20819_v40  ;;  %v12287_v32 = vrot.slane %v20447_v44, %v20822_v41  ;;  %v12291_v35 = vrot.slane %v20447_v44, %v20825_v42  ;;  %v12295_v23 = vrot.slane %v20447_v44, %v20828_v43 }
0x45d2   :  { %v12299_v4 = vrot.slane %v20447_v44, %v20831_v45  ;;  %v12303_v52 = vrot.slane %v20447_v44, %v20834_v46 }
0x45d3   :  { %v12310_v25 = vmul.f32 %v12283_v51, %v23009_v57  ;;  %v12311_v30 = vmul.f32 %v12287_v32, %v23011_v39  ;;  %v12312_v28 = vmul.f32 %v12291_v35, %v23013_v60  ;;  %v12313_v50 = vmul.f32 %v12295_v23, %v23015_v21 }
0x45d4   :  { %v12314_v37 = vmul.f32 %v12299_v4, %v23017_v20  ;;  %v12315_v6 = vmul.f32 %v12303_v52, %v23019_v12 }
0x45d5   :  { %v12374_v24 = vmul.f32 %v12344_v59, %v12310_v25  ;;  %v12375_v48 = vmul.f32 %v12358_v27, %v12311_v30  ;;  %v12376_v58 = vmul.f32 %v12366_v26, %v12312_v28  ;;  %v12377_v36 = vmul.f32 %v12367_v8, %v12313_v50  ;;  %v18721_v27 = vld [vmem:[%s24294_s3] ss:$0 sm:$0xff] }
0x45d6   :  { %v12378_v19 = vmul.f32 %v12351_v54, %v12314_v37  ;;  %v12379_v57 = vmul.f32 %v12365_v62, %v12315_v6 }
0x45d7   :  { %v12438_v0 = vadd.f32 %v12408_v56, %v12374_v24  ;;  %v12439_v39 = vadd.f32 %v12422_v63, %v12375_v48  ;;  %v12440_v18 = vadd.f32 %v12430_v29, %v12376_v58  ;;  %v12441_v60 = vadd.f32 %v12431_v17, %v12377_v36 }
0x45d8   :  { %v12442_v10 = vadd.f32 %v12415_v33, %v12378_v19  ;;  %v12443_v21 = vadd.f32 %v12429_v38, %v12379_v57 }
0x45d9   :  { %v12461_v2 = vcombine.low %v12438_v0, %v12439_v39  ;;  %v12462_v20 = vcombine.low %v12440_v18, %v12441_v60 }
0x45da   :  { %v12463_v5 = vcombine.low %v12442_v10, %v12443_v21 }
0x45db   :  { %v12470_v12 = vrot.slane %v12461_v2, %v20691_v14  ;;  %v12477_v11 = vrot.slane %v12462_v20, %v20691_v14 }
0x45dc   :  { %v12484_v16 = vrot.slane %v12463_v5, %v20691_v14 }
0x45dd   :  { %v12485_v47 = vcombine.low %v12470_v12, %v12477_v11 }
0x45de   :  { %v12499_v15 = vrot.slane %v12484_v16, %v20691_v14 }
0x45df   :  { %v12492_v7 = vrot.slane %v12485_v47, %v20691_v14 }
0x45e1   :  { %v12500_v59 = vcombine.low %v12492_v7, %v12499_v15 }
0x45e3   :  { %19742 = vmatmul.mubr.msk.f32.vlgmr.msra.gmra.mrb[74].mxu0 %vm209_vm0, %v12500_v59 }
0x45e4   :  { %19756 = vmatprep.mubr.msk.f32.mxu0 %vm20531_vm2, %v20532_v31 }
0x46b6   :  { %v12569_v55 = vpop.f32.mrb[74].mxu0 }
0x46b7   :  { %v12570_v56 = vadd.f32 %v18721_v27, %v12569_v55  ;;  %v19743_v63 = vpop.f32.mrb[75].mxu0 }
0x46b9   :  { %v12574_v54 = vcombine.high %v12570_v56, %v12570_v56  ;;  %v12581_v44 = vrot.slane %v12570_v56, %v20691_v14 }
0x46bb   :  { %v12588_v62 = vrot.slane %v12574_v54, %v20691_v14  ;;  %v12589_v26 = vcombine.high %v12581_v44, %v12581_v44  ;;  %v12597_v8 = vrot.slane %v12581_v44, %v20691_v14 }
0x46bd   :  { %v12590_v34 = vcombine.high %v12588_v62, %v12588_v62  ;;  %v12611_v51 = vrot.slane %v12589_v26, %v20691_v14  ;;  %v12619_v32 = vcombine.high %v12597_v8, %v12597_v8  ;;  %v12604_v35 = vrot.slane %v12588_v62, %v20691_v14 }
0x46bf   :  { %v12618_v23 = vrot.slane %v12590_v34, %v20691_v14  ;;  %v12620_v4 = vcombine.high %v12611_v51, %v12611_v51  ;;  %v12621_v52 = vcombine.low %v12597_v8, %v12611_v51  ;;  %v12635_v17 = vrot.slane %v12619_v32, %v20691_v14 }
0x46c1   :  { %v12628_v29 = vrot.slane %v12621_v52, %v20691_v14  ;;  %v12720_v25 = vcombine.low %v12620_v4, %v12604_v35  ;;  %v12734_v50 = vrot.slane %v12618_v23, %v20691_v14 }
0x46c3   :  { %v12636_v30 = vcombine.low %v12628_v29, %v12635_v17  ;;  %v12727_v28 = vrot.slane %v12720_v25, %v20691_v14 }
0x46c5   :  { %v23105_v37 = vrot.slane %v12636_v30, %v20691_v14  ;;  %v12735_v6 = vcombine.low %v12727_v28, %v12734_v50 }
0x46c7   :  { %v23108_v33 = vrot.slane %v12735_v6, %v20691_v14  ;;  %12644 = vrot.lane.b32.xlu0 %v23105_v37, %s24308_s13 }
0x46c9   :  { %12743 = vrot.lane.b32.xlu1 %v23108_v33, %s24308_s13 }
0x4739   :  { %v12645_v38 = vpop.permute.xlu0 %12644 }
0x473a   :  { %19745 = vmatpush3.xpose.msk.msra.mxu1 %vm887_vm3, %v12645_v38 }
0x473b   :  { %19749 = vmatprep.subr.mxu1 %v20532_v31  ;;  %v12744_v24 = vpop.permute.xlu1 %12743 }
0x473d   :  { %19747 = vmatmul.mubr.msk.f32.vlgmr.msra.gmra.mrb[96].mxu1 %vm887_vm3, %v23105_v37 }
0x473e   :  { %19750 = vmatpush3.xpose.msk.msra.mxu1 %vm887_vm3, %v12744_v24  ;;  %19751 = vmatprep.mubr.msk.f32.mxu1 %vm20531_vm2, %v20532_v31 }
0x473f   :  { %19759 = vmatprep.subr.mxu1 %v20532_v31 }
0x4741   :  { %19752 = vmatmul.mubr.msk.f32.vlgmr.msra.gmra.mrb[98].mxu1 %vm887_vm3, %v23108_v33 }
0x4742   :  { %19761 = vmatprep.mubr.msk.f32.mxu1 %vm20531_vm2, %v20532_v31 }
0x4810   :  { %v12716_v48 = vpop.f32.mrb[96].mxu1 }
0x4811   :  { %v12819_v58 = vmul.f32 0.35355338, %v12716_v48  ;;  %v19748_v36 = vpop.f32.mrb[97].mxu1 }
0x4813   :  { %v12821_v19 = vsel %vm1063_vm4, %v12819_v58, -inf }
0x4814   :  { %12822 = vmax.xlane.f32.xlu1 %v12821_v19  ;;  %v12815_v57 = vpop.f32.mrb[98].mxu1 }
0x4815   :  { %v12820_v0 = vmul.f32 0.35355338, %v12815_v57  ;;  %v19753_v39 = vpop.f32.mrb[99].mxu1 }
0x4817   :  { %v12824_v18 = vsel %vm1063_vm4, %v12820_v0, -inf }
0x4818   :  { %12825 = vmax.xlane.f32.xlu0 %v12824_v18 }
0x4825   :  { %12920 = vrot.lane.b32.xlu1 %v23108_v33, %s24295_s8 }
0x4829   :  { %12999 = vrot.lane.b32.xlu1 %v23105_v37, %s24296_s30 }
0x482d   :  { %13077 = vrot.lane.b32.xlu1 %v23108_v33, %s24296_s30 }
0x482e   :  { %12843 = vrot.lane.b32.xlu0 %v23105_v37, %s24295_s8 }
0x48a1   :  { %v12823_v60 = vpop.xlane.xlu1 %12822 }
0x48a2   :  { %v12827_v10 = vsub.f32 %v12819_v58, %v12823_v60 }
0x48a4   :  { %v12829_v21 = vmul.f32 1.442695, %v12827_v10 }
0x48a5   :  { %v12826_v2 = vpop.xlane.xlu0 %12825  ;;  %v12921_v20 = vpop.permute.xlu1 %12920 }
0x48a6   :  { %20448 = vpow2.f32 %v12829_v21  ;;  %v12828_v5 = vsub.f32 %v12820_v0, %v12826_v2  ;;  %19760 = vmatpush3.msk.msra.mxu1 %vm1092_vm5, %v12921_v20 }
0x48a7   :  { %19769 = vmatprep.subr.mxu1 %v20532_v31 }
0x48a8   :  { %v12831_v12 = vmul.f32 1.442695, %v12828_v5 }
0x48a9   :  { %v12844_v11 = vpop.permute.xlu0 %12843  ;;  %v13000_v59 = vpop.permute.xlu1 %12999 }
0x48aa   :  { %20450 = vpow2.f32 %v12831_v12  ;;  %19755 = vmatpush3.msk.msra.mxu0 %vm1092_vm5, %v12844_v11 }
0x48ab   :  { %19764 = vmatprep.subr.mxu0 %v20532_v31 }
0x48ad   :  { %v13078_v27 = vpop.permute.xlu1 %13077 }
0x48b0   :  { %v20449_v16 = vpop.eup %20448 }
0x48b1   :  { %v12833_v47 = vsel %vm1063_vm4, %v20449_v16, 0.0 }
0x48b2   :  { %12834 = vadd.xlane.f32.xlu0 %v12833_v47 }
0x48b4   :  { %v20451_v7 = vpop.eup %20450 }
0x48b5   :  { %v12836_v15 = vsel %vm1063_vm4, %v20451_v7, 0.0 }
0x48b6   :  { %12837 = vadd.xlane.f32.xlu1 %v12836_v15 }
0x48c7   :  { %13075 = vrot.lane.b32.xlu1 %v23108_v33, %s24297_s25 }
0x48c8   :  { %12997 = vrot.lane.b32.xlu0 %v23105_v37, %s24297_s25 }
0x493f   :  { %v12835_v55 = vpop.xlane.xlu0 %12834 }
0x4940   :  { %20452 = vrcp.f32 %v12835_v55 }
0x4943   :  { %v12838_v56 = vpop.xlane.xlu1 %12837  ;;  %v12998_v26 = vpop.permute.xlu0 %12997 }
0x4944   :  { %20454 = vrcp.f32 %v12838_v56 }
0x4947   :  { %v13076_v8 = vpop.permute.xlu1 %13075 }
0x494a   :  { %v20453_v63 = vpop.eup %20452 }
0x494b   :  { %v12840_v54 = vmul.f32 %v20453_v63, %v20449_v16 }
0x494d   :  { %19757 = vmatmul.mubr.msk.f32.vlgmr.msra.gmra.mrb[76].mxu0 %vm1088_vm6, %v12840_v54 }
0x494e   :  { %v20455_v44 = vpop.eup %20454  ;;  %19765 = vmatpush3.xpose.msk.msra.mxu0 %vm887_vm3, %v13000_v59  ;;  %19766 = vmatprep.mubr.msk.f32.mxu0 %vm20531_vm2, %v20532_v31 }
0x494f   :  { %v12842_v62 = vmul.f32 %v20455_v44, %v20451_v7  ;;  %19774 = vmatprep.subr.mxu0 %v20532_v31 }
0x4951   :  { %19762 = vmatmul.mubr.msk.f32.vlgmr.msra.gmra.mrb[100].mxu1 %vm1088_vm6, %v12842_v62  ;;  %19767 = vmatmul.mubr.msk.f32.vlgmr.msra.gmra.mrb[78].mxu0 %vm887_vm3, %v12998_v26 }
0x4952   :  { %19770 = vmatpush3.xpose.msk.msra.mxu1 %vm887_vm3, %v13078_v27  ;;  %19771 = vmatprep.mubr.msk.f32.mxu1 %vm20531_vm2, %v20532_v31 }
0x4953   :  { %19779 = vmatprep.subr.mxu1 %v20532_v31  ;;  %19776 = vmatprep.mubr.msk.f32.mxu0 %vm20531_vm2, %v20532_v31 }
0x4955   :  { %19772 = vmatmul.mubr.msk.f32.vlgmr.msra.gmra.mrb[102].mxu1 %vm887_vm3, %v13076_v8 }
0x4956   :  { %19781 = vmatprep.mubr.msk.f32.mxu1 %vm20531_vm2, %v20532_v31 }
0x4a20   :  { %v23162_v34 = vpop.f32.mrb[76].mxu0 }
0x4a21   :  { %v19758_v51 = vpop.f32.mrb[77].mxu0 }
0x4a24   :  { %v23164_v32 = vpop.f32.mrb[100].mxu1  ;;  %v13071_v35 = vpop.f32.mrb[78].mxu0 }
0x4a25   :  { %v13153_v23 = vmul.f32 0.35355338, %v13071_v35  ;;  %v19763_v4 = vpop.f32.mrb[101].mxu1  ;;  %v19768_v52 = vpop.f32.mrb[79].mxu0 }
0x4a27   :  { %v13155_v29 = vsel %vm1063_vm4, %v13153_v23, -inf }
0x4a28   :  { %v13149_v17 = vpop.f32.mrb[102].mxu1  ;;  %13156 = vmax.xlane.f32.xlu0 %v13155_v29 }
0x4a29   :  { %v13154_v25 = vmul.f32 0.35355338, %v13149_v17  ;;  %v19773_v30 = vpop.f32.mrb[103].mxu1 }
0x4a2b   :  { %v13158_v28 = vsel %vm1063_vm4, %v13154_v25, -inf }
0x4a2c   :  { %13159 = vmax.xlane.f32.xlu1 %v13158_v28 }
0x4a3d   :  { %13254 = vrot.lane.b32.xlu1 %v23108_v33, %s24298_s16 }
0x4a3e   :  { %13177 = vrot.lane.b32.xlu0 %v23105_v37, %s24298_s16 }
0x4a41   :  { %13333 = vrot.lane.b32.xlu1 %v23105_v37, %s24299_s0 }
0x4a45   :  { %13411 = vrot.lane.b32.xlu1 %v23108_v33, %s24299_s0 }
0x4a49   :  { %13409 = vrot.lane.b32.xlu1 %v23108_v33, %s24309_s23 }
0x4ab5   :  { %v13157_v50 = vpop.xlane.xlu0 %13156 }
0x4ab6   :  { %v13161_v6 = vsub.f32 %v13153_v23, %v13157_v50 }
0x4ab8   :  { %v13163_v38 = vmul.f32 1.442695, %v13161_v6 }
0x4ab9   :  { %v13160_v24 = vpop.xlane.xlu1 %13159  ;;  %v13178_v48 = vpop.permute.xlu0 %13177 }
0x4aba   :  { %20456 = vpow2.f32 %v13163_v38  ;;  %v13162_v58 = vsub.f32 %v13154_v25, %v13160_v24  ;;  %19775 = vmatpush3.msk.msra.mxu0 %vm1092_vm5, %v13178_v48 }
0x4abb   :  { %19784 = vmatprep.subr.mxu0 %v20532_v31 }
0x4abc   :  { %v13165_v36 = vmul.f32 1.442695, %v13162_v58 }
0x4abd   :  { %v13255_v19 = vpop.permute.xlu1 %13254 }
0x4abe   :  { %20458 = vpow2.f32 %v13165_v36  ;;  %19780 = vmatpush3.msk.msra.mxu1 %vm1092_vm5, %v13255_v19 }
0x4abf   :  { %19789 = vmatprep.subr.mxu1 %v20532_v31 }
0x4ac1   :  { %v13334_v21 = vpop.permute.xlu1 %13333 }
0x4ac4   :  { %v20457_v57 = vpop.eup %20456 }
0x4ac5   :  { %v13167_v0 = vsel %vm1063_vm4, %v20457_v57, 0.0  ;;  %v13412_v12 = vpop.permute.xlu1 %13411 }
0x4ac6   :  { %13168 = vadd.xlane.f32.xlu0 %v13167_v0 }
0x4ac8   :  { %v20459_v39 = vpop.eup %20458 }
0x4ac9   :  { %v13170_v18 = vsel %vm1063_vm4, %v20459_v39, 0.0  ;;  %v13410_v47 = vpop.permute.xlu1 %13409 }
0x4aca   :  { %13171 = vadd.xlane.f32.xlu0 %v13170_v18 }
0x4ae0   :  { %13331 = vrot.lane.b32.xlu0 %v23105_v37, %s24309_s23 }
0x4b53   :  { %v13169_v60 = vpop.xlane.xlu0 %13168 }
0x4b54   :  { %20460 = vrcp.f32 %v13169_v60 }
0x4b57   :  { %v13172_v10 = vpop.xlane.xlu0 %13171 }
0x4b58   :  { %20462 = vrcp.f32 %v13172_v10 }
0x4b5b   :  { %v13332_v16 = vpop.permute.xlu0 %13331 }
0x4b5e   :  { %v20461_v2 = vpop.eup %20460 }
0x4b5f   :  { %v13174_v20 = vmul.f32 %v20461_v2, %v20457_v57 }
0x4b61   :  { %19777 = vmatmul.mubr.msk.f32.vlgmr.msra.gmra.mrb[80].mxu0 %vm1088_vm6, %v13174_v20 }
0x4b62   :  { %v20463_v5 = vpop.eup %20462  ;;  %19785 = vmatpush3.xpose.msk.msra.mxu0 %vm887_vm3, %v13334_v21  ;;  %19786 = vmatprep.mubr.msk.f32.mxu0 %vm20531_vm2, %v20532_v31 }
0x4b63   :  { %v13176_v11 = vmul.f32 %v20463_v5, %v20459_v39  ;;  %19794 = vmatprep.subr.mxu0 %v20532_v31 }
0x4b65   :  { %19782 = vmatmul.mubr.msk.f32.vlgmr.msra.gmra.mrb[104].mxu1 %vm1088_vm6, %v13176_v11  ;;  %19787 = vmatmul.mubr.msk.f32.vlgmr.msra.gmra.mrb[82].mxu0 %vm887_vm3, %v13332_v16 }
0x4b66   :  { %19790 = vmatpush3.xpose.msk.msra.mxu1 %vm887_vm3, %v13412_v12  ;;  %19791 = vmatprep.mubr.msk.f32.mxu1 %vm20531_vm2, %v20532_v31 }
0x4b67   :  { %19799 = vmatprep.subr.mxu1 %v20532_v31  ;;  %19796 = vmatprep.mubr.msk.f32.mxu0 %vm20531_vm2, %v20532_v31 }
0x4b69   :  { %19792 = vmatmul.mubr.msk.f32.vlgmr.msra.gmra.mrb[106].mxu1 %vm887_vm3, %v13410_v47 }
0x4b6a   :  { %19801 = vmatprep.mubr.msk.f32.mxu1 %vm20531_vm2, %v20532_v31 }
0x4c34   :  { %v23202_v7 = vpop.f32.mrb[80].mxu0 }
0x4c35   :  { %v19778_v15 = vpop.f32.mrb[81].mxu0 }
0x4c38   :  { %v23204_v59 = vpop.f32.mrb[104].mxu1  ;;  %v13405_v27 = vpop.f32.mrb[82].mxu0 }
0x4c39   :  { %v13487_v55 = vmul.f32 0.35355338, %v13405_v27  ;;  %v19783_v56 = vpop.f32.mrb[105].mxu1  ;;  %v19788_v63 = vpop.f32.mrb[83].mxu0 }
0x4c3b   :  { %v13489_v54 = vsel %vm1063_vm4, %v13487_v55, -inf }
0x4c3c   :  { %v13483_v44 = vpop.f32.mrb[106].mxu1  ;;  %13490 = vmax.xlane.f32.xlu0 %v13489_v54 }
0x4c3d   :  { %v13488_v62 = vmul.f32 0.35355338, %v13483_v44  ;;  %v19793_v26 = vpop.f32.mrb[107].mxu1 }
0x4c3f   :  { %v13492_v8 = vsel %vm1063_vm4, %v13488_v62, -inf }
0x4c40   :  { %13493 = vmax.xlane.f32.xlu1 %v13492_v8 }
0x4c51   :  { %13588 = vrot.lane.b32.xlu1 %v23108_v33, %s24310_s2 }
0x4c52   :  { %13511 = vrot.lane.b32.xlu0 %v23105_v37, %s24310_s2 }
0x4c55   :  { %13667 = vrot.lane.b32.xlu1 %v23105_v37, %s24311_s17 }
0x4c59   :  { %13745 = vrot.lane.b32.xlu1 %v23108_v33, %s24311_s17 }
0x4c5d   :  { %13743 = vrot.lane.b32.xlu1 %v23108_v33, %s24312_s9 }
0x4cc9   :  { %v13491_v51 = vpop.xlane.xlu0 %13490 }
0x4cca   :  { %v13495_v35 = vsub.f32 %v13487_v55, %v13491_v51 }
0x4ccc   :  { %v13497_v23 = vmul.f32 1.442695, %v13495_v35 }
0x4ccd   :  { %v13494_v4 = vpop.xlane.xlu1 %13493  ;;  %v13512_v52 = vpop.permute.xlu0 %13511 }
0x4cce   :  { %20464 = vpow2.f32 %v13497_v23  ;;  %v13496_v29 = vsub.f32 %v13488_v62, %v13494_v4  ;;  %19795 = vmatpush3.msk.msra.mxu0 %vm1092_vm5, %v13512_v52 }
0x4ccf   :  { %19804 = vmatprep.subr.mxu0 %v20532_v31 }
0x4cd0   :  { %v13499_v17 = vmul.f32 1.442695, %v13496_v29 }
0x4cd1   :  { %v13589_v25 = vpop.permute.xlu1 %13588 }
0x4cd2   :  { %20466 = vpow2.f32 %v13499_v17  ;;  %19800 = vmatpush3.msk.msra.mxu1 %vm1092_vm5, %v13589_v25  ;;  %v14078_v25 = vld [vmem:[%s24180_s10 + $0x8] sm:$0xff] }
0x4cd3   :  { %19809 = vmatprep.subr.mxu1 %v20532_v31 }
0x4cd5   :  { %v13668_v48 = vpop.permute.xlu1 %13667 }
0x4cd8   :  { %v20465_v30 = vpop.eup %20464 }
0x4cd9   :  { %v13501_v28 = vsel %vm1063_vm4, %v20465_v30, 0.0  ;;  %v13746_v57 = vpop.permute.xlu1 %13745 }
0x4cda   :  { %13502 = vadd.xlane.f32.xlu0 %v13501_v28 }
0x4cdc   :  { %v20467_v50 = vpop.eup %20466 }
0x4cdd   :  { %v13504_v6 = vsel %vm1063_vm4, %v20467_v50, 0.0  ;;  %v13744_v18 = vpop.permute.xlu1 %13743 }
0x4cde   :  { %13505 = vadd.xlane.f32.xlu0 %v13504_v6  ;;  %v14079_v6 = vld [vmem:[%s24180_s10 + $0x10] sm:$0xff] }
0x4cf4   :  { %13665 = vrot.lane.b32.xlu0 %v23105_v37, %s24312_s9 }
0x4d67   :  { %v13503_v38 = vpop.xlane.xlu0 %13502 }
0x4d68   :  { %20468 = vrcp.f32 %v13503_v38  ;;  %v14080_v38 = vld [vmem:[%s24180_s10 + $0x18] sm:$0xff] }
0x4d6b   :  { %v13506_v24 = vpop.xlane.xlu0 %13505 }
0x4d6c   :  { %20470 = vrcp.f32 %v13506_v24  ;;  %v20185_v24 = vpack.c.bf16 %v14080_v38, %v14079_v6 }
0x4d6f   :  { %v13666_v39 = vpop.permute.xlu0 %13665 }
0x4d72   :  { %v20469_v58 = vpop.eup %20468 }
0x4d73   :  { %v13508_v36 = vmul.f32 %v20469_v58, %v20465_v30 }
0x4d75   :  { %19797 = vmatmul.mubr.msk.f32.vlgmr.msra.gmra.mrb[84].mxu0 %vm1088_vm6, %v13508_v36 }
0x4d76   :  { %v20471_v19 = vpop.eup %20470  ;;  %19805 = vmatpush3.xpose.msk.msra.mxu0 %vm887_vm3, %v13668_v48  ;;  %19806 = vmatprep.mubr.msk.f32.mxu0 %vm20531_vm2, %v20532_v31 }
0x4d77   :  { %v13510_v0 = vmul.f32 %v20471_v19, %v20467_v50  ;;  %19814 = vmatprep.subr.mxu0 %v20532_v31 }
0x4d79   :  { %19802 = vmatmul.mubr.msk.f32.vlgmr.msra.gmra.mrb[108].mxu1 %vm1088_vm6, %v13510_v0  ;;  %19807 = vmatmul.mubr.msk.f32.vlgmr.msra.gmra.mrb[86].mxu0 %vm887_vm3, %v13666_v39 }
0x4d7a   :  { %19810 = vmatpush3.xpose.msk.msra.mxu1 %vm887_vm3, %v13746_v57  ;;  %19811 = vmatprep.mubr.msk.f32.mxu1 %vm20531_vm2, %v20532_v31 }
0x4d7b   :  { %19819 = vmatprep.subr.mxu1 %v20532_v31  ;;  %19816 = vmatprep.mubr.msk.f32.mxu0 %vm20531_vm2, %v20532_v31 }
0x4d7d   :  { %19812 = vmatmul.mubr.msk.f32.vlgmr.msra.gmra.mrb[110].mxu1 %vm887_vm3, %v13744_v18 }
0x4d7e   :  { %19821 = vmatprep.mubr.msk.f32.mxu1 %vm20531_vm2, %v20532_v31 }
0x4e48   :  { %v13584_v60 = vpop.f32.mrb[84].mxu0 }
0x4e49   :  { %v19798_v10 = vpop.f32.mrb[85].mxu0 }
0x4e4c   :  { %v13661_v21 = vpop.f32.mrb[108].mxu1  ;;  %v13739_v2 = vpop.f32.mrb[86].mxu0 }
0x4e4d   :  { %v13821_v20 = vmul.f32 0.35355338, %v13739_v2  ;;  %v19803_v5 = vpop.f32.mrb[109].mxu1  ;;  %v19808_v12 = vpop.f32.mrb[87].mxu0 }
0x4e4f   :  { %v13823_v11 = vsel %vm1063_vm4, %v13821_v20, -inf }
0x4e50   :  { %v13817_v16 = vpop.f32.mrb[110].mxu1  ;;  %13824 = vmax.xlane.f32.xlu0 %v13823_v11 }
0x4e51   :  { %v13822_v47 = vmul.f32 0.35355338, %v13817_v16  ;;  %v19813_v15 = vpop.f32.mrb[111].mxu1 }
0x4e53   :  { %v13826_v27 = vsel %vm1063_vm4, %v13822_v47, -inf }
0x4e54   :  { %13827 = vmax.xlane.f32.xlu1 %v13826_v27 }
0x4e65   :  { %13922 = vrot.lane.b32.xlu1 %v23108_v33, %s24313_s29 }
0x4e69   :  { %14001 = vrot.lane.b32.xlu1 %v23202_v7, %s24314_s12 }
0x4e6d   :  { %14009 = vrot.lane.b32.xlu1 %v13584_v60, %s24326_s24 }
0x4edd   :  { %v13825_v55 = vpop.xlane.xlu0 %13824 }
0x4ede   :  { %v13829_v56 = vsub.f32 %v13821_v20, %v13825_v55 }
0x4ee0   :  { %v13831_v63 = vmul.f32 1.442695, %v13829_v56 }
0x4ee1   :  { %v13828_v54 = vpop.xlane.xlu1 %13827 }
0x4ee2   :  { %20472 = vpow2.f32 %v13831_v63  ;;  %v13830_v44 = vsub.f32 %v13822_v47, %v13828_v54 }
0x4ee4   :  { %v13833_v62 = vmul.f32 1.442695, %v13830_v44 }
0x4ee5   :  { %v13923_v26 = vpop.permute.xlu1 %13922 }
0x4ee6   :  { %20474 = vpow2.f32 %v13833_v62  ;;  %19820 = vmatpush3.msk.msra.mxu1 %vm1092_vm5, %v13923_v26 }
0x4ee7   :  { %20187 = vmatprep.subr.bf16.mxu1 %v20529_v1 }
0x4ee9   :  { %v14002_v36 = vpop.permute.xlu1 %14001 }
0x4eea   :  { %v14023_v0 = vsel %vm887_vm3, %v23162_v34, %v14002_v36 }
0x4eec   :  { %v20473_v8 = vpop.eup %20472 }
0x4eed   :  { %v13835_v33 = vsel %vm1063_vm4, %v20473_v8, 0.0  ;;  %v14010_v57 = vpop.permute.xlu1 %14009 }
0x4eee   :  { %13836 = vadd.xlane.f32.xlu0 %v13835_v33  ;;  %v14025_v39 = vsel %vm2270_vm7, %v14023_v0, %v14010_v57 }
0x4ef0   :  { %v20475_v7 = vpop.eup %20474 }
0x4ef1   :  { %v13838_v51 = vsel %vm1063_vm4, %v20475_v7, 0.0 }
0x4ef2   :  { %13839 = vadd.xlane.f32.xlu0 %v13838_v51 }
0x4f08   :  { %13845 = vrot.lane.b32.xlu0 %v23105_v37, %s24313_s29 }
0x4f0c   :  { %14003 = vrot.lane.b32.xlu0 %v23204_v59, %s24314_s12  ;;  %v14077_v59 = vld [vmem:[%s24180_s10] sm:$0xff] }
0x4f0d   :  { %v20182_v30 = vpack.c.bf16 %v14078_v25, %v14077_v59 }
0x4f10   :  { %14011 = vrot.lane.b32.xlu0 %v13661_v21, %s24326_s24 }
0x4f7b   :  { %v13837_v35 = vpop.xlane.xlu0 %13836 }
0x4f7c   :  { %20476 = vrcp.f32 %v13837_v35 }
0x4f7f   :  { %v13840_v23 = vpop.xlane.xlu0 %13839 }
0x4f80   :  { %20478 = vrcp.f32 %v13840_v23  ;;  %v18755_v23 = vld [vmem:[%s24328_s5] ss:$0 sm:$0xff] }
0x4f83   :  { %v13846_v4 = vpop.permute.xlu0 %13845 }
0x4f84   :  { %19815 = vmatpush3.msk.msra.mxu0 %vm1092_vm5, %v13846_v4 }
0x4f85   :  { %20181 = vmatprep.subr.bf16.mxu0 %v20529_v1 }
0x4f86   :  { %v20477_v52 = vpop.eup %20476 }
0x4f87   :  { %v13842_v29 = vmul.f32 %v20477_v52, %v20473_v8  ;;  %v14004_v19 = vpop.permute.xlu0 %14003 }
0x4f88   :  { %v14024_v2 = vsel %vm887_vm3, %v23164_v32, %v14004_v19 }
0x4f89   :  { %19817 = vmatmul.mubr.msk.f32.vlgmr.msra.gmra.mrb[88].mxu0 %vm1088_vm6, %v13842_v29 }
0x4f8a   :  { %v20479_v17 = vpop.eup %20478  ;;  %19832 = vmatprep.mubr.msk.f32.mxu0 %vm20531_vm2, %v20532_v31  ;;  %20183 = vmatpush3.bf16.msra.mxu0 %v20182_v30 }
0x4f8b   :  { %v13844_v37 = vmul.f32 %v20479_v17, %v20475_v7  ;;  %20184 = vmatprep.subr.bf16.mxu0 %v20529_v1  ;;  %v14012_v60 = vpop.permute.xlu0 %14011 }
0x4f8c   :  { %v14026_v20 = vsel %vm2270_vm7, %v14024_v2, %v14012_v60 }
0x4f8d   :  { %19822 = vmatmul.mubr.msk.f32.vlgmr.msra.gmra.mrb[112].mxu1 %vm1088_vm6, %v13844_v37 }
0x4f8e   :  { %19843 = vmatprep.mubr.msk.f32.mxu1 %vm20531_vm2, %v20532_v31  ;;  %20186 = vmatpush3.bf16.msra.mxu0 %v20185_v24 }
0x4f8f   :  { %20193 = vmatprep.subr.bf16.mxu0 %v20529_v1 }
0x505c   :  { %v13918_v28 = vpop.f32.mrb[88].mxu0 }
0x505d   :  { %14017 = vrot.lane.b32.xlu1 %v13918_v28, %s24327_s22  ;;  %v19818_v50 = vpop.f32.mrb[89].mxu0 }
0x5060   :  { %v13995_v48 = vpop.f32.mrb[112].mxu1 }
0x5061   :  { %v19823_v58 = vpop.f32.mrb[113].mxu1  ;;  %14019 = vrot.lane.b32.xlu1 %v13995_v48, %s24327_s22 }
0x50cf   :  { %v14018_v18 = vpop.permute.xlu1 %14017 }
0x50d0   :  { %v14027_v10 = vsel %vm2273_vm8, %v14025_v39, %v14018_v18 }
0x50d1   :  { %v14037_v21 = vrot.slane %v14027_v10, %v20691_v14 }
0x50d3   :  { %v14038_v5 = vcombine.high %v14037_v21, %v14037_v21  ;;  %v14045_v12 = vrot.slane %v14037_v21, %v20691_v14  ;;  %v14020_v11 = vpop.permute.xlu1 %14019 }
0x50d4   :  { %v14028_v16 = vsel %vm2273_vm8, %v14026_v20, %v14020_v11 }
0x50d5   :  { %v14052_v34 = vrot.slane %v14038_v5, %v20691_v14  ;;  %v14060_v47 = vrot.slane %v14028_v16, %v20691_v14  ;;  %v14053_v15 = vcombine.high %v14045_v12, %v14045_v12 }
0x50d7   :  { %v14088_v27 = vcombine.low %v14045_v12, %v14052_v34  ;;  %v14061_v55 = vcombine.high %v14060_v47, %v14060_v47  ;;  %v14068_v56 = vrot.slane %v14060_v47, %v20691_v14 }
0x50d9   :  { %v14075_v63 = vrot.slane %v14061_v55, %v20691_v14  ;;  %v14076_v32 = vcombine.high %v14068_v56, %v14068_v56  ;;  %v14089_v54 = vcombine.low %v14053_v15, %v14068_v56  ;;  %v14097_v44 = vrot.slane %v14088_v27, %v20691_v14 }
0x50db   :  { %v14090_v62 = vcombine.low %v14075_v63, %v14076_v32  ;;  %v14104_v26 = vrot.slane %v14089_v54, %v20691_v14 }
0x50dd   :  { %v14111_v8 = vrot.slane %v14090_v62, %v20691_v14  ;;  %v14112_v33 = vcombine.low %v14097_v44, %v14104_v26 }
0x50df   :  { %v14119_v7 = vrot.slane %v14112_v33, %v20691_v14  ;;  %v14126_v51 = vrot.slane %v14111_v8, %v20691_v14 }
0x50e1   :  { %v14127_v35 = vcombine.low %v14119_v7, %v14126_v51 }
0x50e3   :  { %19833 = vmatmul.mubr.msk.f32.vlgmr.msra.gmra.mrb[90].mxu0 %vm209_vm0, %v14127_v35 }
0x50e4   :  { %19862 = vmatprep.mubr.msk.f32.mxu0 %vm20531_vm2, %v20532_v31 }
0x51b6   :  { %v14196_v4 = vpop.f32.mrb[90].mxu0 }
0x51b7   :  { %v14197_v52 = vadd.f32 %v18755_v23, %v14196_v4  ;;  %v19834_v29 = vpop.f32.mrb[91].mxu0 }
0x51b9   :  { %v14201_v17 = vcombine.high %v14197_v52, %v14197_v52  ;;  %v14208_v37 = vrot.slane %v14197_v52, %v20691_v14 }
0x51bb   :  { %v14215_v59 = vrot.slane %v14201_v17, %v20691_v14  ;;  %v14216_v25 = vcombine.high %v14208_v37, %v14208_v37  ;;  %v14224_v30 = vrot.slane %v14208_v37, %v20691_v14 }
0x51bd   :  { %v14217_v28 = vcombine.high %v14215_v59, %v14215_v59  ;;  %v14238_v50 = vrot.slane %v14216_v25, %v20691_v14  ;;  %v14246_v6 = vcombine.high %v14224_v30, %v14224_v30  ;;  %v14231_v38 = vrot.slane %v14215_v59, %v20691_v14 }
0x51bf   :  { %v14245_v24 = vrot.slane %v14217_v28, %v20691_v14  ;;  %v14247_v48 = vcombine.high %v14238_v50, %v14238_v50  ;;  %v14248_v58 = vcombine.low %v14224_v30, %v14238_v50  ;;  %v14262_v19 = vrot.slane %v14246_v6, %v20691_v14 }
0x51c1   :  { %v14255_v36 = vrot.slane %v14248_v58, %v20691_v14  ;;  %v14271_v57 = vcombine.low %v14247_v48, %v14231_v38  ;;  %v14285_v18 = vrot.slane %v14245_v24, %v20691_v14 }
0x51c3   :  { %v14263_v0 = vcombine.low %v14255_v36, %v14262_v19  ;;  %v14278_v39 = vrot.slane %v14271_v57, %v20691_v14 }
0x51c5   :  { %v14270_v60 = vrot.slane %v14263_v0, %v20691_v14  ;;  %v14286_v10 = vcombine.low %v14278_v39, %v14285_v18 }
0x51c7   :  { %v14293_v21 = vrot.slane %v14286_v10, %v20691_v14  ;;  %v23320_v2 = vadd.f32 %v14270_v60, %v22984_v3 }
0x51c9   :  { %v23323_v20 = vadd.f32 %v14293_v21, %v22987_v53  ;;  %v14306_v5 = vrot.slane %v23320_v2, %v20691_v14 }
0x51cb   :  { %v14307_v12 = vcombine.high %v14306_v5, %v14306_v5  ;;  %v14314_v11 = vrot.slane %v14306_v5, %v20691_v14  ;;  %v14329_v16 = vrot.slane %v23323_v20, %v20691_v14 }
0x51cd   :  { %v14321_v34 = vrot.slane %v14307_v12, %v20691_v14  ;;  %v14322_v47 = vcombine.high %v14314_v11, %v14314_v11  ;;  %v14330_v15 = vcombine.high %v14329_v16, %v14329_v16  ;;  %v14337_v27 = vrot.slane %v14329_v16, %v20691_v14 }
0x51cf   :  { %v14344_v3 = vrot.slane %v14330_v15, %v20691_v14  ;;  %v14345_v55 = vcombine.high %v14337_v27, %v14337_v27  ;;  %v14354_v53 = vcombine.low %v14314_v11, %v14321_v34  ;;  %v14355_v56 = vcombine.low %v14322_v47, %v14337_v27  ;;  %v14662_v15 = vld [vmem:[%s24329_s20 + $0x10] sm:$0xff] }
0x51d1   :  { %v14356_v63 = vcombine.low %v14344_v3, %v14345_v55  ;;  %v14363_v32 = vrot.slane %v14354_v53, %v20691_v14  ;;  %v14370_v54 = vrot.slane %v14355_v56, %v20691_v14  ;;  %v14790_v53 = vld [vmem:[%s24185_s14] sm:$0xff]  ;;  %v14791_v56 = vld [vmem:[%s24185_s14 + $0x8] sm:$0xff] }
0x51d3   :  { %v14377_v44 = vrot.slane %v14356_v63, %v20691_v14  ;;  %v14378_v62 = vcombine.low %v14363_v32, %v14370_v54  ;;  %v14792_v63 = vld [vmem:[%s24185_s14 + $0x10] sm:$0xff]  ;;  %v20194_v32 = vpack.c.bf16 %v14791_v56, %v14790_v53  ;;  %v14793_v54 = vld [vmem:[%s24185_s14 + $0x18] sm:$0xff] }
0x51d5   :  { %v14385_v26 = vrot.slane %v14378_v62, %v20691_v14  ;;  %v14392_v8 = vrot.slane %v14377_v44, %v20691_v14  ;;  %20195 = vmatpush3.bf16.msra.mxu0 %v20194_v32  ;;  %v20197_v44 = vpack.c.bf16 %v14793_v54, %v14792_v63  ;;  %v14794_v62 = vld [vmem:[%s24185_s14 + $0x20] sm:$0xff] }
0x51d6   :  { %20196 = vmatprep.subr.bf16.mxu0 %v20529_v1 }
0x51d7   :  { %v14393_v33 = vcombine.low %v14385_v26, %v14392_v8  ;;  %v14795_v26 = vld [vmem:[%s24185_s14 + $0x28] sm:$0xff] }
0x51d8   :  { %v20200_v8 = vpack.c.bf16 %v14795_v26, %v14794_v62 }
0x51d9   :  { %v14395_v7 = vsel %vm418_vm1, %v14393_v33, 0.0  ;;  %20198 = vmatpush3.bf16.msra.mxu0 %v20197_v44 }
0x51da   :  { %14396 = vadd.xlane.f32.xlu0 %v14395_v7  ;;  %20199 = vmatprep.subr.bf16.mxu0 %v20529_v1  ;;  %v18757_v7 = vld [vmem:[%s24183_s18] ss:$0 sm:$0xff] }
0x51dd   :  { %20201 = vmatpush3.bf16.msra.mxu0 %v20200_v8 }
0x51de   :  { %20202 = vmatprep.subr.bf16.mxu0 %v20529_v1 }
0x5267   :  { %v14397_v51 = vpop.xlane.xlu0 %14396 }
0x5268   :  { %v14398_v35 = vmul.f32 0.03125, %v14397_v51 }
0x526a   :  { %v14403_v23 = vrot.slane %v14398_v35, %v20819_v40  ;;  %v14407_v4 = vrot.slane %v14398_v35, %v20822_v41  ;;  %v14411_v52 = vrot.slane %v14398_v35, %v20825_v42  ;;  %v14415_v29 = vrot.slane %v14398_v35, %v20828_v43 }
0x526b   :  { %v14419_v17 = vrot.slane %v14398_v35, %v20831_v45  ;;  %v14423_v37 = vrot.slane %v14398_v35, %v20834_v46  ;;  %v18758_v35 = vld [vmem:[%s24330_s7] ss:$0 sm:$0xff] }
0x526c   :  { %v23345_v59 = vsub.f32 %v14314_v11, %v14403_v23  ;;  %v23347_v25 = vsub.f32 %v14321_v34, %v14407_v4  ;;  %v23349_v30 = vsub.f32 %v14322_v47, %v14411_v52  ;;  %v23351_v28 = vsub.f32 %v14337_v27, %v14415_v29  ;;  %v14660_v34 = vld [vmem:[%s24329_s20] sm:$0xff]  ;;  %v14661_v47 = vld [vmem:[%s24329_s20 + $0x8] sm:$0xff] }
0x526d   :  { %v23353_v50 = vsub.f32 %v14344_v3, %v14419_v17  ;;  %v23355_v6 = vsub.f32 %v14345_v55, %v14423_v37  ;;  %v20188_v27 = vpack.c.bf16 %v14661_v47, %v14660_v34  ;;  %v14663_v3 = vld [vmem:[%s24329_s20 + $0x18] sm:$0xff]  ;;  %v14537_v4 = vcombine.high %v18757_v7, %v18757_v7 }
0x526e   :  { %v14436_v38 = vmul.f32 %v23345_v59, %v23345_v59  ;;  %v14437_v24 = vmul.f32 %v23347_v25, %v23347_v25  ;;  %v14438_v48 = vmul.f32 %v23349_v30, %v23349_v30  ;;  %v14439_v58 = vmul.f32 %v23351_v28, %v23351_v28 }
0x526f   :  { %v14440_v36 = vmul.f32 %v23353_v50, %v23353_v50  ;;  %v14441_v19 = vmul.f32 %v23355_v6, %v23355_v6  ;;  %20189 = vmatpush3.bf16.msra.mxu1 %v20188_v27  ;;  %v20191_v55 = vpack.c.bf16 %v14663_v3, %v14662_v15  ;;  %v14544_v52 = vrot.slane %v18757_v7, %v20691_v14 }
0x5270   :  { %v14448_v57 = vcombine.low %v14436_v38, %v14437_v24  ;;  %v14449_v0 = vcombine.low %v14438_v48, %v14439_v58  ;;  %20190 = vmatprep.subr.bf16.mxu1 %v20529_v1  ;;  %v14608_v29 = vrot.slane %v18758_v35, %v20691_v14  ;;  %v14551_v17 = vrot.slane %v14537_v4, %v20691_v14 }
0x5271   :  { %v14450_v39 = vcombine.low %v14440_v36, %v14441_v19  ;;  %v14552_v37 = vcombine.high %v14544_v52, %v14544_v52  ;;  %v14601_v38 = vcombine.high %v18758_v35, %v18758_v35  ;;  %v14560_v58 = vrot.slane %v14544_v52, %v20691_v14 }
0x5272   :  { %v14457_v18 = vrot.slane %v14448_v57, %v20691_v14  ;;  %v14464_v60 = vrot.slane %v14449_v0, %v20691_v14  ;;  %v14616_v24 = vcombine.high %v14608_v29, %v14608_v29  ;;  %v14553_v48 = vcombine.high %v14551_v17, %v14551_v17 }
0x5273   :  { %v14471_v10 = vrot.slane %v14450_v39, %v20691_v14  ;;  %20192 = vmatpush3.bf16.msra.mxu1 %v20191_v55  ;;  %v14574_v36 = vrot.slane %v14552_v37, %v20691_v14  ;;  %v14615_v19 = vrot.slane %v14601_v38, %v20691_v14  ;;  %v14624_v57 = vrot.slane %v14608_v29, %v20691_v14 }
0x5274   :  { %v14472_v21 = vcombine.low %v14457_v18, %v14464_v60  ;;  %20205 = vmatprep.subr.bf16.mxu1 %v20529_v1  ;;  %v14638_v0 = vrot.slane %v14616_v24, %v20691_v14  ;;  %v14567_v39 = vrot.slane %v14551_v17, %v20691_v14  ;;  %v14581_v60 = vrot.slane %v14553_v48, %v20691_v14 }
0x5275   :  { %v14486_v12 = vrot.slane %v14471_v10, %v20691_v14  ;;  %v14582_v10 = vcombine.high %v14560_v58, %v14560_v58  ;;  %v14646_v27 = vcombine.high %v14624_v57, %v14624_v57  ;;  %v14631_v44 = vrot.slane %v14615_v19, %v20691_v14 }
0x5276   :  { %v14479_v5 = vrot.slane %v14472_v21, %v20691_v14  ;;  %v14583_v21 = vcombine.high %v14574_v36, %v14574_v36  ;;  %v14647_v3 = vcombine.high %v14638_v0, %v14638_v0 }
0x5278   :  { %v14487_v11 = vcombine.low %v14479_v5, %v14486_v12  ;;  %v14617_v5 = vcombine.high %v14615_v19, %v14615_v19  ;;  %v14797_v19 = vld [vmem:[%s24185_s14 + $0x38] sm:$0xff] }
0x527a   :  { %v14489_v16 = vsel %vm418_vm1, %v14487_v11, 0.0  ;;  %v14645_v62 = vrot.slane %v14617_v5, %v20691_v14 }
0x527b   :  { %14490 = vadd.xlane.f32.xlu1 %v14489_v16 }
0x5308   :  { %v14491_v33 = vpop.xlane.xlu1 %14490 }
0x5309   :  { %v14492_v51 = vmul.f32 0.03125, %v14491_v33 }
0x530b   :  { %v14493_v23 = vadd.f32 1e-05, %v14492_v51 }
0x530d   :  { %20480 = vrsqrt.f32 %v14493_v23 }
0x5317   :  { %v20481_v18 = vpop.eup %20480 }
0x5318   :  { %v14499_v12 = vrot.slane %v20481_v18, %v20819_v40  ;;  %v14503_v11 = vrot.slane %v20481_v18, %v20822_v41  ;;  %v14507_v16 = vrot.slane %v20481_v18, %v20825_v42  ;;  %v14511_v34 = vrot.slane %v20481_v18, %v20828_v43 }
0x5319   :  { %v14515_v47 = vrot.slane %v20481_v18, %v20831_v45  ;;  %v14519_v15 = vrot.slane %v20481_v18, %v20834_v46 }
0x531a   :  { %v14526_v55 = vmul.f32 %v14499_v12, %v23345_v59  ;;  %v14527_v53 = vmul.f32 %v14503_v11, %v23347_v25  ;;  %v14528_v56 = vmul.f32 %v14507_v16, %v23349_v30  ;;  %v14529_v63 = vmul.f32 %v14511_v34, %v23351_v28 }
0x531b   :  { %v14530_v32 = vmul.f32 %v14515_v47, %v23353_v50  ;;  %v14531_v54 = vmul.f32 %v14519_v15, %v23355_v6 }
0x531c   :  { %v14590_v26 = vmul.f32 %v14560_v58, %v14526_v55  ;;  %v14591_v8 = vmul.f32 %v14574_v36, %v14527_v53  ;;  %v14592_v33 = vmul.f32 %v14582_v10, %v14528_v56  ;;  %v14593_v7 = vmul.f32 %v14583_v21, %v14529_v63  ;;  %v14796_v36 = vld [vmem:[%s24185_s14 + $0x30] sm:$0xff]  ;;  %v18761_v21 = vld [vmem:[%s24187_s15] ss:$0 sm:$0xff]  ;;  %s24338_s15 = sld [smem:[#allocation20_spill]] }
0x531d   :  { %v14594_v51 = vmul.f32 %v14567_v39, %v14530_v32  ;;  %v14595_v59 = vmul.f32 %v14581_v60, %v14531_v54 }
0x531e   :  { %v14654_v35 = vadd.f32 %v14624_v57, %v14590_v26  ;;  %v14655_v25 = vadd.f32 %v14638_v0, %v14591_v8  ;;  %v14656_v23 = vadd.f32 %v14646_v27, %v14592_v33  ;;  %v14657_v30 = vadd.f32 %v14647_v3, %v14593_v7  ;;  %v18759_v0 = vld [vmem:[%s24331_s11] ss:$0 sm:$0xff] }
0x531f   :  { %v14658_v4 = vadd.f32 %v14631_v44, %v14594_v51  ;;  %v14659_v28 = vadd.f32 %v14645_v62, %v14595_v59  ;;  %v20203_v57 = vpack.c.bf16 %v14797_v19, %v14796_v36 }
0x5320   :  { %v14677_v52 = vcombine.low %v14654_v35, %v14655_v25  ;;  %v14678_v50 = vcombine.low %v14656_v23, %v14657_v30 }
0x5321   :  { %v14679_v29 = vcombine.low %v14658_v4, %v14659_v28  ;;  %20204 = vmatpush3.bf16.msra.mxu0 %v20203_v57 }
0x5322   :  { %v14686_v6 = vrot.slane %v14677_v52, %v20691_v14  ;;  %v14693_v17 = vrot.slane %v14678_v50, %v20691_v14  ;;  %19886 = vmatprep.subr.mxu0 %v20532_v31 }
0x5323   :  { %v14700_v37 = vrot.slane %v14679_v29, %v20691_v14 }
0x5324   :  { %v14701_v38 = vcombine.low %v14686_v6, %v14693_v17 }
0x5325   :  { %v14715_v48 = vrot.slane %v14700_v37, %v20691_v14 }
0x5326   :  { %v14708_v24 = vrot.slane %v14701_v38, %v20691_v14 }
0x5328   :  { %v14716_v58 = vcombine.low %v14708_v24, %v14715_v48 }
0x532a   :  { %19844 = vmatmul.mubr.msk.f32.vlgmr.msra.gmra.mrb[114].mxu1 %vm209_vm0, %v14716_v58 }
0x532b   :  { %19873 = vmatprep.mubr.msk.f32.mxu1 %vm20531_vm2, %v20532_v31 }
0x53fd   :  { %v14785_v39 = vpop.f32.mrb[114].mxu1 }
0x53fe   :  { %v14786_v18 = vadd.f32 %v18759_v0, %v14785_v39  ;;  %v19845_v60 = vpop.f32.mrb[115].mxu1 }
0x5400   :  { %v14789_v10 = vmax.f32 %v14786_v18, 0.0 }
0x5402   :  { %19863 = vmatmul.mubr.msk.f32.vlgmr.msra.gmra.mrb[92].mxu0 %vm2966_vm9, %v14789_v10 }
0x5403   :  { %19888 = vmatprep.mubr.msk.f32.mxu0 %vm20531_vm2, %v20532_v31 }
0x54d5   :  { %v14874_v5 = vpop.f32.mrb[92].mxu0 }
0x54d6   :  { %v14875_v12 = vadd.f32 %v18761_v21, %v14874_v5  ;;  %v19864_v11 = vpop.f32.mrb[93].mxu0 }
0x54d8   :  { %v14879_v16 = vcombine.high %v14875_v12, %v14875_v12  ;;  %v14886_v34 = vrot.slane %v14875_v12, %v20691_v14 }
0x54da   :  { %v14893_v47 = vrot.slane %v14879_v16, %v20691_v14  ;;  %v14894_v15 = vcombine.high %v14886_v34, %v14886_v34  ;;  %v14902_v27 = vrot.slane %v14886_v34, %v20691_v14 }
0x54dc   :  { %v14895_v3 = vcombine.high %v14893_v47, %v14893_v47  ;;  %v14916_v55 = vrot.slane %v14894_v15, %v20691_v14  ;;  %v14924_v53 = vcombine.high %v14902_v27, %v14902_v27  ;;  %v14909_v56 = vrot.slane %v14893_v47, %v20691_v14 }
0x54de   :  { %v14923_v63 = vrot.slane %v14895_v3, %v20691_v14  ;;  %v14925_v32 = vcombine.high %v14916_v55, %v14916_v55  ;;  %v14926_v54 = vcombine.low %v14902_v27, %v14916_v55  ;;  %v14940_v62 = vrot.slane %v14924_v53, %v20691_v14 }
0x54e0   :  { %v14933_v44 = vrot.slane %v14926_v54, %v20691_v14  ;;  %v14949_v26 = vcombine.low %v14925_v32, %v14909_v56  ;;  %v14963_v7 = vrot.slane %v14923_v63, %v20691_v14 }
0x54e2   :  { %v14941_v8 = vcombine.low %v14933_v44, %v14940_v62  ;;  %v14956_v33 = vrot.slane %v14949_v26, %v20691_v14 }
0x54e4   :  { %v14948_v51 = vrot.slane %v14941_v8, %v20691_v14  ;;  %v14964_v59 = vcombine.low %v14956_v33, %v14963_v7 }
0x54e6   :  { %v14971_v35 = vrot.slane %v14964_v59, %v20691_v14  ;;  %v23477_v25 = vadd.f32 %v14948_v51, %v23320_v2 }
0x54e8   :  { %v23480_v23 = vadd.f32 %v14971_v35, %v23323_v20  ;;  %v14984_v30 = vrot.slane %v23477_v25, %v20691_v14 }
0x54ea   :  { %v14985_v4 = vcombine.high %v14984_v30, %v14984_v30  ;;  %v14992_v28 = vrot.slane %v14984_v30, %v20691_v14  ;;  %v15007_v52 = vrot.slane %v23480_v23, %v20691_v14 }
0x54ec   :  { %v14999_v50 = vrot.slane %v14985_v4, %v20691_v14  ;;  %v15000_v29 = vcombine.high %v14992_v28, %v14992_v28  ;;  %v15008_v6 = vcombine.high %v15007_v52, %v15007_v52  ;;  %v15015_v17 = vrot.slane %v15007_v52, %v20691_v14 }
0x54ee   :  { %v15022_v2 = vrot.slane %v15008_v6, %v20691_v14  ;;  %v15023_v37 = vcombine.high %v15015_v17, %v15015_v17  ;;  %v15032_v20 = vcombine.low %v14992_v28, %v14999_v50  ;;  %v15033_v38 = vcombine.low %v15000_v29, %v15015_v17  ;;  %v18769_v6 = vld [vmem:[%s24291_s28 + $0x30] sm:$0xff] }
0x54f0   :  { %v15034_v24 = vcombine.low %v15022_v2, %v15023_v37  ;;  %v15041_v48 = vrot.slane %v15032_v20, %v20691_v14  ;;  %v15048_v58 = vrot.slane %v15033_v38, %v20691_v14  ;;  %v18765_v38 = vld [vmem:[%s24292_s1 + $0x1] ss:$0 sm:$0xff] }
0x54f2   :  { %v15055_v36 = vrot.slane %v15034_v24, %v20691_v14  ;;  %v15056_v19 = vcombine.low %v15041_v48, %v15048_v58  ;;  %v18766_v48 = vld [vmem:[%s24293_s27 + $0x1] ss:$0 sm:$0xff] }
0x54f4   :  { %v15063_v57 = vrot.slane %v15056_v19, %v20691_v14  ;;  %v15070_v0 = vrot.slane %v15055_v36, %v20691_v14  ;;  %v15215_v36 = vcombine.high %v18765_v38, %v18765_v38  ;;  %v15222_v19 = vrot.slane %v18765_v38, %v20691_v14 }
0x54f6   :  { %v15071_v39 = vcombine.low %v15063_v57, %v15070_v0  ;;  %v15286_v57 = vrot.slane %v18766_v48, %v20691_v14  ;;  %v15229_v0 = vrot.slane %v15215_v36, %v20691_v14 }
0x54f8   :  { %v15073_v18 = vsel %vm418_vm1, %v15071_v39, 0.0  ;;  %v15230_v39 = vcombine.high %v15222_v19, %v15222_v19 }
0x54f9   :  { %15074 = vadd.xlane.f32.xlu0 %v15073_v18  ;;  %v15279_v18 = vcombine.high %v18766_v48, %v18766_v48 }
0x5586   :  { %v15075_v60 = vpop.xlane.xlu0 %15074 }
0x5587   :  { %v15076_v10 = vmul.f32 0.03125, %v15075_v60  ;;  %v15294_v60 = vcombine.high %v15286_v57, %v15286_v57 }
0x5589   :  { %v15081_v21 = vrot.slane %v15076_v10, %v20819_v40  ;;  %v15085_v5 = vrot.slane %v15076_v10, %v20822_v41  ;;  %v15089_v12 = vrot.slane %v15076_v10, %v20825_v42  ;;  %v15093_v11 = vrot.slane %v15076_v10, %v20828_v43 }
0x558a   :  { %v15097_v16 = vrot.slane %v15076_v10, %v20831_v45  ;;  %v15101_v34 = vrot.slane %v15076_v10, %v20834_v46  ;;  %v15231_v10 = vcombine.high %v15229_v0, %v15229_v0 }
0x558b   :  { %v23502_v47 = vsub.f32 %v14992_v28, %v15081_v21  ;;  %v23504_v15 = vsub.f32 %v14999_v50, %v15085_v5  ;;  %v23506_v27 = vsub.f32 %v15000_v29, %v15089_v12  ;;  %v23508_v3 = vsub.f32 %v15015_v17, %v15093_v11  ;;  %v18767_v50 = vld [vmem:[%s24291_s28 + $0x20] sm:$0xff]  ;;  %v18768_v29 = vld [vmem:[%s24291_s28 + $0x28] sm:$0xff] }
0x558c   :  { %v23510_v55 = vsub.f32 %v15022_v2, %v15097_v16  ;;  %v23512_v53 = vsub.f32 %v15023_v37, %v15101_v34  ;;  %v20206_v17 = vpack.c.bf16 %v18768_v29, %v18767_v50  ;;  %v18770_v2 = vld [vmem:[%s24291_s28 + $0x38] sm:$0xff]  ;;  %v15238_v21 = vrot.slane %v15222_v19, %v20691_v14 }
0x558d   :  { %v15114_v56 = vmul.f32 %v23502_v47, %v23502_v47  ;;  %v15115_v63 = vmul.f32 %v23504_v15, %v23504_v15  ;;  %v15116_v32 = vmul.f32 %v23506_v27, %v23506_v27  ;;  %v15117_v54 = vmul.f32 %v23508_v3, %v23508_v3 }
0x558e   :  { %v15118_v44 = vmul.f32 %v23510_v55, %v23510_v55  ;;  %v15119_v62 = vmul.f32 %v23512_v53, %v23512_v53  ;;  %20207 = vmatpush3.bf16.msra.mxu1 %v20206_v17  ;;  %v20209_v37 = vpack.c.bf16 %v18770_v2, %v18769_v6  ;;  %v15252_v5 = vrot.slane %v15230_v39, %v20691_v14 }
0x558f   :  { %v15126_v26 = vcombine.low %v15114_v56, %v15115_v63  ;;  %v15127_v8 = vcombine.low %v15116_v32, %v15117_v54  ;;  %20208 = vmatprep.subr.bf16.mxu1 %v20529_v1  ;;  %v15293_v12 = vrot.slane %v15279_v18, %v20691_v14  ;;  %v15302_v11 = vrot.slane %v15286_v57, %v20691_v14 }
0x5590   :  { %v15128_v33 = vcombine.low %v15118_v44, %v15119_v62  ;;  %v15316_v16 = vrot.slane %v15294_v60, %v20691_v14  ;;  %v15245_v34 = vrot.slane %v15229_v0, %v20691_v14  ;;  %v15259_v63 = vrot.slane %v15231_v10, %v20691_v14 }
0x5591   :  { %v15135_v7 = vrot.slane %v15126_v26, %v20691_v14  ;;  %v15142_v51 = vrot.slane %v15127_v8, %v20691_v14  ;;  %v15260_v32 = vcombine.high %v15238_v21, %v15238_v21  ;;  %v15261_v54 = vcombine.high %v15252_v5, %v15252_v5 }
0x5592   :  { %v15149_v59 = vrot.slane %v15128_v33, %v20691_v14  ;;  %20210 = vmatpush3.bf16.msra.mxu1 %v20209_v37  ;;  %v15295_v44 = vcombine.high %v15293_v12, %v15293_v12  ;;  %v15309_v6 = vrot.slane %v15293_v12, %v20691_v14 }
0x5593   :  { %v15150_v35 = vcombine.low %v15135_v7, %v15142_v51  ;;  %19876 = vmatprep.subr.mxu1 %v20532_v31 }
0x5594   :  { %v15164_v4 = vrot.slane %v15149_v59, %v20691_v14  ;;  %v15324_v59 = vcombine.high %v15302_v11, %v15302_v11  ;;  %v15323_v17 = vrot.slane %v15295_v44, %v20691_v14 }
0x5595   :  { %v15157_v30 = vrot.slane %v15150_v35, %v20691_v14  ;;  %v15325_v35 = vcombine.high %v15316_v16, %v15316_v16 }
0x5597   :  { %v15165_v28 = vcombine.low %v15157_v30, %v15164_v4 }
0x5599   :  { %v15167_v52 = vsel %vm418_vm1, %v15165_v28, 0.0 }
0x559a   :  { %15168 = vadd.xlane.f32.xlu0 %v15167_v52 }
0x5627   :  { %v15169_v20 = vpop.xlane.xlu0 %15168 }
0x5628   :  { %v15170_v24 = vmul.f32 0.03125, %v15169_v20 }
0x562a   :  { %v15171_v58 = vadd.f32 1e-05, %v15170_v24 }
0x562c   :  { %20482 = vrsqrt.f32 %v15171_v58 }
0x5636   :  { %v20483_v56 = vpop.eup %20482 }
0x5637   :  { %v15177_v62 = vrot.slane %v20483_v56, %v20819_v40  ;;  %v15181_v26 = vrot.slane %v20483_v56, %v20822_v41  ;;  %v15185_v8 = vrot.slane %v20483_v56, %v20825_v42  ;;  %v15189_v33 = vrot.slane %v20483_v56, %v20828_v43 }
0x5638   :  { %v15193_v7 = vrot.slane %v20483_v56, %v20831_v45  ;;  %v15197_v51 = vrot.slane %v20483_v56, %v20834_v46 }
0x5639   :  { %v15204_v30 = vmul.f32 %v15177_v62, %v23502_v47  ;;  %v15205_v4 = vmul.f32 %v15181_v26, %v23504_v15  ;;  %v15206_v28 = vmul.f32 %v15185_v8, %v23506_v27  ;;  %v15207_v52 = vmul.f32 %v15189_v33, %v23508_v3 }
0x563a   :  { %v15208_v50 = vmul.f32 %v15193_v7, %v23510_v55  ;;  %v15209_v29 = vmul.f32 %v15197_v51, %v23512_v53 }
0x563b   :  { %v15268_v2 = vmul.f32 %v15238_v21, %v15204_v30  ;;  %v15269_v37 = vmul.f32 %v15252_v5, %v15205_v4  ;;  %v15270_v20 = vmul.f32 %v15260_v32, %v15206_v28  ;;  %v15271_v38 = vmul.f32 %v15261_v54, %v15207_v52  ;;  %v18772_v5 = vld [vmem:[%s24294_s3 + $0x1] ss:$0 sm:$0xff] }
0x563c   :  { %v15272_v24 = vmul.f32 %v15245_v34, %v15208_v50  ;;  %v15273_v47 = vmul.f32 %v15259_v63, %v15209_v29 }
0x563d   :  { %v15332_v48 = vadd.f32 %v15302_v11, %v15268_v2  ;;  %v15333_v15 = vadd.f32 %v15316_v16, %v15269_v37  ;;  %v15334_v58 = vadd.f32 %v15324_v59, %v15270_v20  ;;  %v15335_v27 = vadd.f32 %v15325_v35, %v15271_v38 }
0x563e   :  { %v15336_v36 = vadd.f32 %v15309_v6, %v15272_v24  ;;  %v15337_v3 = vadd.f32 %v15323_v17, %v15273_v47 }
0x563f   :  { %v15355_v19 = vcombine.low %v15332_v48, %v15333_v15  ;;  %v15356_v55 = vcombine.low %v15334_v58, %v15335_v27 }
0x5640   :  { %v15357_v57 = vcombine.low %v15336_v36, %v15337_v3 }
0x5641   :  { %v15364_v53 = vrot.slane %v15355_v19, %v20691_v14  ;;  %v15371_v0 = vrot.slane %v15356_v55, %v20691_v14 }
0x5642   :  { %v15378_v39 = vrot.slane %v15357_v57, %v20691_v14 }
0x5643   :  { %v15379_v18 = vcombine.low %v15364_v53, %v15371_v0 }
0x5644   :  { %v15393_v10 = vrot.slane %v15378_v39, %v20691_v14 }
0x5645   :  { %v15386_v60 = vrot.slane %v15379_v18, %v20691_v14 }
0x5647   :  { %v15394_v21 = vcombine.low %v15386_v60, %v15393_v10 }
0x5649   :  { %19874 = vmatmul.mubr.msk.f32.vlgmr.msra.gmra.mrb[116].mxu1 %vm209_vm0, %v15394_v21 }
0x564a   :  { %19878 = vmatprep.mubr.msk.f32.mxu1 %vm20531_vm2, %v20532_v31 }
0x571c   :  { %v15463_v12 = vpop.f32.mrb[116].mxu1 }
0x571d   :  { %v15464_v11 = vadd.f32 %v18772_v5, %v15463_v12  ;;  %v19875_v16 = vpop.f32.mrb[117].mxu1 }
0x571f   :  { %v15468_v34 = vcombine.high %v15464_v11, %v15464_v11  ;;  %v15475_v56 = vrot.slane %v15464_v11, %v20691_v14 }
0x5721   :  { %v15482_v63 = vrot.slane %v15468_v34, %v20691_v14  ;;  %v15483_v32 = vcombine.high %v15475_v56, %v15475_v56  ;;  %v15491_v54 = vrot.slane %v15475_v56, %v20691_v14 }
0x5723   :  { %v15484_v44 = vcombine.high %v15482_v63, %v15482_v63  ;;  %v15505_v62 = vrot.slane %v15483_v32, %v20691_v14  ;;  %v15513_v26 = vcombine.high %v15491_v54, %v15491_v54  ;;  %v15498_v8 = vrot.slane %v15482_v63, %v20691_v14 }
0x5725   :  { %v15512_v33 = vrot.slane %v15484_v44, %v20691_v14  ;;  %v15514_v7 = vcombine.high %v15505_v62, %v15505_v62  ;;  %v15515_v51 = vcombine.low %v15491_v54, %v15505_v62  ;;  %v15529_v35 = vrot.slane %v15513_v26, %v20691_v14 }
0x5727   :  { %v15522_v59 = vrot.slane %v15515_v51, %v20691_v14  ;;  %v15614_v30 = vcombine.low %v15514_v7, %v15498_v8  ;;  %v15628_v52 = vrot.slane %v15512_v33, %v20691_v14 }
0x5729   :  { %v15530_v4 = vcombine.low %v15522_v59, %v15529_v35  ;;  %v15621_v28 = vrot.slane %v15614_v30, %v20691_v14 }
0x572b   :  { %v23598_v50 = vrot.slane %v15530_v4, %v20691_v14  ;;  %v15629_v29 = vcombine.low %v15621_v28, %v15628_v52 }
0x572d   :  { %v23601_v6 = vrot.slane %v15629_v29, %v20691_v14  ;;  %15538 = vrot.lane.b32.xlu0 %v23598_v50, %s24308_s13 }
0x572f   :  { %15637 = vrot.lane.b32.xlu1 %v23601_v6, %s24308_s13 }
0x579f   :  { %v15539_v17 = vpop.permute.xlu0 %15538 }
0x57a0   :  { %19877 = vmatpush3.xpose.msk.msra.mxu1 %vm887_vm3, %v15539_v17 }
0x57a1   :  { %19881 = vmatprep.subr.mxu1 %v20532_v31  ;;  %v15638_v2 = vpop.permute.xlu1 %15637 }
0x57a3   :  { %19879 = vmatmul.mubr.msk.f32.vlgmr.msra.gmra.mrb[118].mxu1 %vm887_vm3, %v23598_v50 }
0x57a4   :  { %19882 = vmatpush3.xpose.msk.msra.mxu1 %vm887_vm3, %v15638_v2  ;;  %19883 = vmatprep.mubr.msk.f32.mxu1 %vm20531_vm2, %v20532_v31 }
0x57a5   :  { %19891 = vmatprep.subr.mxu1 %v20532_v31 }
0x57a7   :  { %19884 = vmatmul.mubr.msk.f32.vlgmr.msra.gmra.mrb[120].mxu1 %vm887_vm3, %v23601_v6 }
0x57a8   :  { %19893 = vmatprep.mubr.msk.f32.mxu1 %vm20531_vm2, %v20532_v31 }
0x5876   :  { %v15610_v37 = vpop.f32.mrb[118].mxu1 }
0x5877   :  { %v15713_v20 = vmul.f32 0.35355338, %v15610_v37  ;;  %v19880_v38 = vpop.f32.mrb[119].mxu1 }
0x5879   :  { %v15715_v24 = vsel %vm1063_vm4, %v15713_v20, -inf }
0x587a   :  { %15716 = vmax.xlane.f32.xlu1 %v15715_v24  ;;  %v15709_v47 = vpop.f32.mrb[120].mxu1 }
0x587b   :  { %v15714_v48 = vmul.f32 0.35355338, %v15709_v47  ;;  %v19885_v15 = vpop.f32.mrb[121].mxu1 }
0x587d   :  { %v15718_v58 = vsel %vm1063_vm4, %v15714_v48, -inf }
0x587e   :  { %15719 = vmax.xlane.f32.xlu0 %v15718_v58 }
0x588b   :  { %15814 = vrot.lane.b32.xlu1 %v23601_v6, %s24295_s8 }
0x588f   :  { %15893 = vrot.lane.b32.xlu1 %v23598_v50, %s24296_s30 }
0x5893   :  { %15971 = vrot.lane.b32.xlu1 %v23601_v6, %s24296_s30  ;;  %s24339_s30 = sld [smem:[#allocation21_spill]] }
0x5894   :  { %15737 = vrot.lane.b32.xlu0 %v23598_v50, %s24295_s8  ;;  %s24335_s8 = sld [smem:[#allocation19_spill]] }
0x5907   :  { %v15717_v27 = vpop.xlane.xlu1 %15716 }
0x5908   :  { %v15721_v36 = vsub.f32 %v15713_v20, %v15717_v27 }
0x590a   :  { %v15723_v3 = vmul.f32 1.442695, %v15721_v36 }
0x590b   :  { %v15815_v19 = vpop.permute.xlu1 %15814  ;;  %v15720_v55 = vpop.xlane.xlu0 %15719 }
0x590c   :  { %20484 = vpow2.f32 %v15723_v3  ;;  %v15722_v57 = vsub.f32 %v15714_v48, %v15720_v55  ;;  %19892 = vmatpush3.msk.msra.mxu1 %vm1092_vm5, %v15815_v19 }
0x590d   :  { %19901 = vmatprep.subr.mxu1 %v20532_v31 }
0x590e   :  { %v15725_v53 = vmul.f32 1.442695, %v15722_v57 }
0x590f   :  { %v15738_v0 = vpop.permute.xlu0 %15737  ;;  %v15894_v21 = vpop.permute.xlu1 %15893 }
0x5910   :  { %20486 = vpow2.f32 %v15725_v53  ;;  %19887 = vmatpush3.msk.msra.mxu0 %vm1092_vm5, %v15738_v0 }
0x5911   :  { %19896 = vmatprep.subr.mxu0 %v20532_v31 }
0x5913   :  { %v15972_v5 = vpop.permute.xlu1 %15971 }
0x5916   :  { %v20485_v39 = vpop.eup %20484 }
0x5917   :  { %v15727_v18 = vsel %vm1063_vm4, %v20485_v39, 0.0 }
0x5918   :  { %15728 = vadd.xlane.f32.xlu0 %v15727_v18 }
0x591a   :  { %v20487_v60 = vpop.eup %20486 }
0x591b   :  { %v15730_v10 = vsel %vm1063_vm4, %v20487_v60, 0.0 }
0x591c   :  { %15731 = vadd.xlane.f32.xlu1 %v15730_v10 }
0x592d   :  { %15969 = vrot.lane.b32.xlu1 %v23601_v6, %s24297_s25 }
0x592e   :  { %15891 = vrot.lane.b32.xlu0 %v23598_v50, %s24297_s25 }
0x59a5   :  { %v15729_v12 = vpop.xlane.xlu0 %15728 }
0x59a6   :  { %20488 = vrcp.f32 %v15729_v12 }
0x59a9   :  { %v15732_v11 = vpop.xlane.xlu1 %15731  ;;  %v15892_v32 = vpop.permute.xlu0 %15891 }
0x59aa   :  { %20490 = vrcp.f32 %v15732_v11 }
0x59ad   :  { %v15970_v54 = vpop.permute.xlu1 %15969 }
0x59b0   :  { %v20489_v16 = vpop.eup %20488 }
0x59b1   :  { %v15734_v34 = vmul.f32 %v20489_v16, %v20485_v39 }
0x59b3   :  { %19889 = vmatmul.mubr.msk.f32.vlgmr.msra.gmra.mrb[94].mxu0 %vm1088_vm6, %v15734_v34 }
0x59b4   :  { %v20491_v56 = vpop.eup %20490  ;;  %19897 = vmatpush3.xpose.msk.msra.mxu0 %vm887_vm3, %v15894_v21  ;;  %19898 = vmatprep.mubr.msk.f32.mxu0 %vm20531_vm2, %v20532_v31 }
0x59b5   :  { %v15736_v63 = vmul.f32 %v20491_v56, %v20487_v60  ;;  %19906 = vmatprep.subr.mxu0 %v20532_v31 }
0x59b7   :  { %19894 = vmatmul.mubr.msk.f32.vlgmr.msra.gmra.mrb[122].mxu1 %vm1088_vm6, %v15736_v63  ;;  %19899 = vmatmul.mubr.msk.f32.vlgmr.msra.gmra.mrb[96].mxu0 %vm887_vm3, %v15892_v32 }
0x59b8   :  { %19902 = vmatpush3.xpose.msk.msra.mxu1 %vm887_vm3, %v15972_v5  ;;  %19903 = vmatprep.mubr.msk.f32.mxu1 %vm20531_vm2, %v20532_v31 }
0x59b9   :  { %19911 = vmatprep.subr.mxu1 %v20532_v31  ;;  %19908 = vmatprep.mubr.msk.f32.mxu0 %vm20531_vm2, %v20532_v31 }
0x59bb   :  { %19904 = vmatmul.mubr.msk.f32.vlgmr.msra.gmra.mrb[124].mxu1 %vm887_vm3, %v15970_v54 }
0x59bc   :  { %19913 = vmatprep.mubr.msk.f32.mxu1 %vm20531_vm2, %v20532_v31 }
0x5a86   :  { %v23655_v44 = vpop.f32.mrb[94].mxu0 }
0x5a87   :  { %v19890_v62 = vpop.f32.mrb[95].mxu0 }
0x5a8a   :  { %v23657_v26 = vpop.f32.mrb[122].mxu1  ;;  %v15965_v8 = vpop.f32.mrb[96].mxu0 }
0x5a8b   :  { %v16047_v33 = vmul.f32 0.35355338, %v15965_v8  ;;  %v19895_v7 = vpop.f32.mrb[123].mxu1  ;;  %v19900_v51 = vpop.f32.mrb[97].mxu0 }
0x5a8d   :  { %v16049_v59 = vsel %vm1063_vm4, %v16047_v33, -inf }
0x5a8e   :  { %v16043_v35 = vpop.f32.mrb[124].mxu1  ;;  %16050 = vmax.xlane.f32.xlu0 %v16049_v59 }
0x5a8f   :  { %v16048_v30 = vmul.f32 0.35355338, %v16043_v35  ;;  %v19905_v4 = vpop.f32.mrb[125].mxu1 }
0x5a91   :  { %v16052_v28 = vsel %vm1063_vm4, %v16048_v30, -inf }
0x5a92   :  { %16053 = vmax.xlane.f32.xlu1 %v16052_v28 }
0x5aa3   :  { %16148 = vrot.lane.b32.xlu1 %v23601_v6, %s24298_s16 }
0x5aa4   :  { %16071 = vrot.lane.b32.xlu0 %v23598_v50, %s24298_s16 }
0x5aa7   :  { %16227 = vrot.lane.b32.xlu1 %v23598_v50, %s24299_s0 }
0x5aab   :  { %16305 = vrot.lane.b32.xlu1 %v23601_v6, %s24299_s0  ;;  %s24340_s0 = sld [smem:[#allocation22_spill]] }
0x5aaf   :  { %16303 = vrot.lane.b32.xlu1 %v23601_v6, %s24309_s23 }
0x5b1b   :  { %v16051_v52 = vpop.xlane.xlu0 %16050 }
0x5b1c   :  { %v16055_v29 = vsub.f32 %v16047_v33, %v16051_v52 }
0x5b1e   :  { %v16057_v17 = vmul.f32 1.442695, %v16055_v29 }
0x5b1f   :  { %v16054_v2 = vpop.xlane.xlu1 %16053  ;;  %v16072_v37 = vpop.permute.xlu0 %16071 }
0x5b20   :  { %20492 = vpow2.f32 %v16057_v17  ;;  %v16056_v20 = vsub.f32 %v16048_v30, %v16054_v2  ;;  %19907 = vmatpush3.msk.msra.mxu0 %vm1092_vm5, %v16072_v37 }
0x5b21   :  { %19916 = vmatprep.subr.mxu0 %v20532_v31 }
0x5b22   :  { %v16059_v38 = vmul.f32 1.442695, %v16056_v20 }
0x5b23   :  { %v16149_v24 = vpop.permute.xlu1 %16148 }
0x5b24   :  { %20494 = vpow2.f32 %v16059_v38  ;;  %19912 = vmatpush3.msk.msra.mxu1 %vm1092_vm5, %v16149_v24 }
0x5b25   :  { %19921 = vmatprep.subr.mxu1 %v20532_v31 }
0x5b27   :  { %v16228_v3 = vpop.permute.xlu1 %16227 }
0x5b2a   :  { %v20493_v47 = vpop.eup %20492 }
0x5b2b   :  { %v16061_v48 = vsel %vm1063_vm4, %v20493_v47, 0.0  ;;  %v16306_v53 = vpop.permute.xlu1 %16305 }
0x5b2c   :  { %16062 = vadd.xlane.f32.xlu0 %v16061_v48 }
0x5b2e   :  { %v20495_v15 = vpop.eup %20494 }
0x5b2f   :  { %v16064_v58 = vsel %vm1063_vm4, %v20495_v15, 0.0  ;;  %v16304_v18 = vpop.permute.xlu1 %16303 }
0x5b30   :  { %16065 = vadd.xlane.f32.xlu0 %v16064_v58 }
0x5b46   :  { %16225 = vrot.lane.b32.xlu0 %v23598_v50, %s24309_s23  ;;  %s24332_s23 = sld [smem:[#allocation10_spill]] }
0x5bb9   :  { %v16063_v27 = vpop.xlane.xlu0 %16062 }
0x5bba   :  { %20496 = vrcp.f32 %v16063_v27 }
0x5bbd   :  { %v16066_v36 = vpop.xlane.xlu0 %16065 }
0x5bbe   :  { %20498 = vrcp.f32 %v16066_v36 }
0x5bc1   :  { %v16226_v39 = vpop.permute.xlu0 %16225 }
0x5bc4   :  { %v20497_v19 = vpop.eup %20496 }
0x5bc5   :  { %v16068_v55 = vmul.f32 %v20497_v19, %v20493_v47 }
0x5bc7   :  { %19909 = vmatmul.mubr.msk.f32.vlgmr.msra.gmra.mrb[98].mxu0 %vm1088_vm6, %v16068_v55 }
0x5bc8   :  { %v20499_v57 = vpop.eup %20498  ;;  %19917 = vmatpush3.xpose.msk.msra.mxu0 %vm887_vm3, %v16228_v3  ;;  %19918 = vmatprep.mubr.msk.f32.mxu0 %vm20531_vm2, %v20532_v31 }
0x5bc9   :  { %v16070_v0 = vmul.f32 %v20499_v57, %v20495_v15  ;;  %19926 = vmatprep.subr.mxu0 %v20532_v31 }
0x5bcb   :  { %19914 = vmatmul.mubr.msk.f32.vlgmr.msra.gmra.mrb[126].mxu1 %vm1088_vm6, %v16070_v0  ;;  %19919 = vmatmul.mubr.msk.f32.vlgmr.msra.gmra.mrb[100].mxu0 %vm887_vm3, %v16226_v39 }
0x5bcc   :  { %19922 = vmatpush3.xpose.msk.msra.mxu1 %vm887_vm3, %v16306_v53  ;;  %19923 = vmatprep.mubr.msk.f32.mxu1 %vm20531_vm2, %v20532_v31 }
0x5bcd   :  { %19931 = vmatprep.subr.mxu1 %v20532_v31  ;;  %19928 = vmatprep.mubr.msk.f32.mxu0 %vm20531_vm2, %v20532_v31 }
0x5bcf   :  { %19924 = vmatmul.mubr.msk.f32.vlgmr.msra.gmra.mrb[128].mxu1 %vm887_vm3, %v16304_v18 }
0x5bd0   :  { %19933 = vmatprep.mubr.msk.f32.mxu1 %vm20531_vm2, %v20532_v31 }
0x5c9a   :  { %v23695_v60 = vpop.f32.mrb[98].mxu0 }
0x5c9b   :  { %v19910_v10 = vpop.f32.mrb[99].mxu0 }
0x5c9e   :  { %v23697_v21 = vpop.f32.mrb[126].mxu1  ;;  %v16299_v5 = vpop.f32.mrb[100].mxu0 }
0x5c9f   :  { %v16381_v12 = vmul.f32 0.35355338, %v16299_v5  ;;  %v19915_v11 = vpop.f32.mrb[127].mxu1  ;;  %v19920_v16 = vpop.f32.mrb[101].mxu0 }
0x5ca1   :  { %v16383_v34 = vsel %vm1063_vm4, %v16381_v12, -inf }
0x5ca2   :  { %v16377_v56 = vpop.f32.mrb[128].mxu1  ;;  %16384 = vmax.xlane.f32.xlu0 %v16383_v34 }
0x5ca3   :  { %v16382_v63 = vmul.f32 0.35355338, %v16377_v56  ;;  %v19925_v32 = vpop.f32.mrb[129].mxu1 }
0x5ca5   :  { %v16386_v54 = vsel %vm1063_vm4, %v16382_v63, -inf }
0x5ca6   :  { %16387 = vmax.xlane.f32.xlu1 %v16386_v54 }
0x5cb7   :  { %16482 = vrot.lane.b32.xlu1 %v23601_v6, %s24310_s2 }
0x5cb8   :  { %16405 = vrot.lane.b32.xlu0 %v23598_v50, %s24310_s2 }
0x5cbb   :  { %16561 = vrot.lane.b32.xlu1 %v23598_v50, %s24311_s17 }
0x5cbf   :  { %16639 = vrot.lane.b32.xlu1 %v23601_v6, %s24311_s17 }
0x5cc3   :  { %16637 = vrot.lane.b32.xlu1 %v23601_v6, %s24312_s9 }
0x5d2f   :  { %v16385_v62 = vpop.xlane.xlu0 %16384 }
0x5d30   :  { %v16389_v8 = vsub.f32 %v16381_v12, %v16385_v62 }
0x5d32   :  { %v16391_v33 = vmul.f32 1.442695, %v16389_v8 }
0x5d33   :  { %v16388_v7 = vpop.xlane.xlu1 %16387  ;;  %v16406_v51 = vpop.permute.xlu0 %16405 }
0x5d34   :  { %20500 = vpow2.f32 %v16391_v33  ;;  %v16390_v59 = vsub.f32 %v16382_v63, %v16388_v7  ;;  %19927 = vmatpush3.msk.msra.mxu0 %vm1092_vm5, %v16406_v51 }
0x5d35   :  { %19936 = vmatprep.subr.mxu0 %v20532_v31 }
0x5d36   :  { %v16393_v35 = vmul.f32 1.442695, %v16390_v59 }
0x5d37   :  { %v16483_v30 = vpop.permute.xlu1 %16482 }
0x5d38   :  { %20502 = vpow2.f32 %v16393_v35  ;;  %19932 = vmatpush3.msk.msra.mxu1 %vm1092_vm5, %v16483_v30  ;;  %v18807_v30 = vld [vmem:[%s24180_s10 + $0x28] sm:$0xff] }
0x5d39   :  { %19941 = vmatprep.subr.mxu1 %v20532_v31 }
0x5d3b   :  { %v16562_v37 = vpop.permute.xlu1 %16561 }
0x5d3e   :  { %v20501_v4 = vpop.eup %20500 }
0x5d3f   :  { %v16395_v28 = vsel %vm1063_vm4, %v20501_v4, 0.0  ;;  %v16640_v47 = vpop.permute.xlu1 %16639 }
0x5d40   :  { %16396 = vadd.xlane.f32.xlu0 %v16395_v28 }
0x5d42   :  { %v20503_v52 = vpop.eup %20502 }
0x5d43   :  { %v16398_v29 = vsel %vm1063_vm4, %v20503_v52, 0.0  ;;  %v16638_v58 = vpop.permute.xlu1 %16637 }
0x5d44   :  { %16399 = vadd.xlane.f32.xlu0 %v16398_v29  ;;  %v18808_v29 = vld [vmem:[%s24180_s10 + $0x30] sm:$0xff] }
0x5d5a   :  { %16559 = vrot.lane.b32.xlu0 %v23598_v50, %s24312_s9  ;;  %s24333_s9 = sld [smem:[#allocation11_spill]] }
0x5dcd   :  { %v16397_v17 = vpop.xlane.xlu0 %16396 }
0x5dce   :  { %20504 = vrcp.f32 %v16397_v17  ;;  %v18809_v17 = vld [vmem:[%s24180_s10 + $0x38] sm:$0xff] }
0x5dd1   :  { %v16400_v2 = vpop.xlane.xlu0 %16399 }
0x5dd2   :  { %20506 = vrcp.f32 %v16400_v2  ;;  %v20215_v2 = vpack.c.bf16 %v18809_v17, %v18808_v29 }
0x5dd5   :  { %v16560_v15 = vpop.permute.xlu0 %16559 }
0x5dd8   :  { %v20505_v20 = vpop.eup %20504 }
0x5dd9   :  { %v16402_v38 = vmul.f32 %v20505_v20, %v20501_v4 }
0x5ddb   :  { %19929 = vmatmul.mubr.msk.f32.vlgmr.msra.gmra.mrb[102].mxu0 %vm1088_vm6, %v16402_v38 }
0x5ddc   :  { %v20507_v24 = vpop.eup %20506  ;;  %19937 = vmatpush3.xpose.msk.msra.mxu0 %vm887_vm3, %v16562_v37  ;;  %19938 = vmatprep.mubr.msk.f32.mxu0 %vm20531_vm2, %v20532_v31 }
0x5ddd   :  { %v16404_v48 = vmul.f32 %v20507_v24, %v20503_v52  ;;  %19946 = vmatprep.subr.mxu0 %v20532_v31 }
0x5ddf   :  { %19934 = vmatmul.mubr.msk.f32.vlgmr.msra.gmra.mrb[130].mxu1 %vm1088_vm6, %v16404_v48  ;;  %19939 = vmatmul.mubr.msk.f32.vlgmr.msra.gmra.mrb[104].mxu0 %vm887_vm3, %v16560_v15 }
0x5de0   :  { %19942 = vmatpush3.xpose.msk.msra.mxu1 %vm887_vm3, %v16640_v47  ;;  %19943 = vmatprep.mubr.msk.f32.mxu1 %vm20531_vm2, %v20532_v31 }
0x5de1   :  { %19951 = vmatprep.subr.mxu1 %v20532_v31  ;;  %19948 = vmatprep.mubr.msk.f32.mxu0 %vm20531_vm2, %v20532_v31 }
0x5de3   :  { %19944 = vmatmul.mubr.msk.f32.vlgmr.msra.gmra.mrb[132].mxu1 %vm887_vm3, %v16638_v58 }
0x5de4   :  { %19953 = vmatprep.mubr.msk.f32.mxu1 %vm20531_vm2, %v20532_v31 }
0x5eae   :  { %v16478_v27 = vpop.f32.mrb[102].mxu0 }
0x5eaf   :  { %v19930_v36 = vpop.f32.mrb[103].mxu0 }
0x5eb2   :  { %v16555_v3 = vpop.f32.mrb[130].mxu1  ;;  %v16633_v19 = vpop.f32.mrb[104].mxu0 }
0x5eb3   :  { %v16715_v55 = vmul.f32 0.35355338, %v16633_v19  ;;  %v19935_v57 = vpop.f32.mrb[131].mxu1  ;;  %v19940_v53 = vpop.f32.mrb[105].mxu0 }
0x5eb5   :  { %v16717_v0 = vsel %vm1063_vm4, %v16715_v55, -inf }
0x5eb6   :  { %v16711_v39 = vpop.f32.mrb[132].mxu1  ;;  %16718 = vmax.xlane.f32.xlu0 %v16717_v0 }
0x5eb7   :  { %v16716_v18 = vmul.f32 0.35355338, %v16711_v39  ;;  %v19945_v10 = vpop.f32.mrb[133].mxu1 }
0x5eb9   :  { %v16720_v5 = vsel %vm1063_vm4, %v16716_v18, -inf }
0x5eba   :  { %16721 = vmax.xlane.f32.xlu1 %v16720_v5 }
0x5ecb   :  { %16816 = vrot.lane.b32.xlu1 %v23601_v6, %s24313_s29 }
0x5ecf   :  { %16895 = vrot.lane.b32.xlu1 %v23695_v60, %s24314_s12 }
0x5ed3   :  { %16903 = vrot.lane.b32.xlu1 %v16478_v27, %s24326_s24 }
0x5f43   :  { %v16719_v12 = vpop.xlane.xlu0 %16718 }
0x5f44   :  { %v16723_v11 = vsub.f32 %v16715_v55, %v16719_v12 }
0x5f46   :  { %v16725_v16 = vmul.f32 1.442695, %v16723_v11 }
0x5f47   :  { %v16722_v34 = vpop.xlane.xlu1 %16721 }
0x5f48   :  { %20508 = vpow2.f32 %v16725_v16  ;;  %v16724_v56 = vsub.f32 %v16716_v18, %v16722_v34 }
0x5f4a   :  { %v16727_v63 = vmul.f32 1.442695, %v16724_v56 }
0x5f4b   :  { %v16817_v32 = vpop.permute.xlu1 %16816 }
0x5f4c   :  { %20510 = vpow2.f32 %v16727_v63  ;;  %19952 = vmatpush3.msk.msra.mxu1 %vm1092_vm5, %v16817_v32 }
0x5f4d   :  { %20217 = vmatprep.subr.bf16.mxu1 %v20529_v1 }
0x5f4f   :  { %v16896_v38 = vpop.permute.xlu1 %16895 }
0x5f50   :  { %v16917_v48 = vsel %vm887_vm3, %v23655_v44, %v16896_v38 }
0x5f52   :  { %v20509_v54 = vpop.eup %20508 }
0x5f53   :  { %v16729_v6 = vsel %vm1063_vm4, %v20509_v54, 0.0  ;;  %v16904_v47 = vpop.permute.xlu1 %16903 }
0x5f54   :  { %16730 = vadd.xlane.f32.xlu0 %v16729_v6  ;;  %v16919_v15 = vsel %vm2270_vm7, %v16917_v48, %v16904_v47 }
0x5f56   :  { %v20511_v60 = vpop.eup %20510 }
0x5f57   :  { %v16732_v62 = vsel %vm1063_vm4, %v20511_v60, 0.0 }
0x5f58   :  { %16733 = vadd.xlane.f32.xlu0 %v16732_v62 }
0x5f6e   :  { %16739 = vrot.lane.b32.xlu0 %v23598_v50, %s24313_s29 }
0x5f72   :  { %16897 = vrot.lane.b32.xlu0 %v23697_v21, %s24314_s12  ;;  %v18806_v21 = vld [vmem:[%s24180_s10 + $0x20] sm:$0xff]  ;;  %s24334_s12 = sld [smem:[#allocation15_spill]]  ;;  %s24336_s10 = sld [smem:[#allocation14_spill]] }
0x5f73   :  { %v20212_v4 = vpack.c.bf16 %v18807_v30, %v18806_v21 }
0x5f76   :  { %16905 = vrot.lane.b32.xlu0 %v16555_v3, %s24326_s24 }
0x5fe1   :  { %v16731_v8 = vpop.xlane.xlu0 %16730 }
0x5fe2   :  { %20512 = vrcp.f32 %v16731_v8 }
0x5fe5   :  { %v16734_v33 = vpop.xlane.xlu0 %16733 }
0x5fe6   :  { %20514 = vrcp.f32 %v16734_v33  ;;  %v18811_v33 = vld [vmem:[%s24332_s23 + $0x1] ss:$0 sm:$0xff] }
0x5fe9   :  { %v16740_v7 = vpop.permute.xlu0 %16739 }
0x5fea   :  { %19947 = vmatpush3.msk.msra.mxu0 %vm1092_vm5, %v16740_v7 }
0x5feb   :  { %20211 = vmatprep.subr.bf16.mxu0 %v20529_v1 }
0x5fec   :  { %v20513_v51 = vpop.eup %20512 }
0x5fed   :  { %v16736_v59 = vmul.f32 %v20513_v51, %v20509_v54  ;;  %v16898_v24 = vpop.permute.xlu0 %16897 }
0x5fee   :  { %v16918_v19 = vsel %vm887_vm3, %v23657_v26, %v16898_v24 }
0x5fef   :  { %19949 = vmatmul.mubr.msk.f32.vlgmr.msra.gmra.mrb[106].mxu0 %vm1088_vm6, %v16736_v59 }
0x5ff0   :  { %v20515_v35 = vpop.eup %20514  ;;  %19964 = vmatprep.mubr.msk.f32.mxu0 %vm20531_vm2, %v20532_v31  ;;  %20213 = vmatpush3.bf16.msra.mxu0 %v20212_v4 }
0x5ff1   :  { %v16738_v50 = vmul.f32 %v20515_v35, %v20511_v60  ;;  %20214 = vmatprep.subr.bf16.mxu0 %v20529_v1  ;;  %v16906_v27 = vpop.permute.xlu0 %16905 }
0x5ff2   :  { %v16920_v55 = vsel %vm2270_vm7, %v16918_v19, %v16906_v27 }
0x5ff3   :  { %19954 = vmatmul.mubr.msk.f32.vlgmr.msra.gmra.mrb[134].mxu1 %vm1088_vm6, %v16738_v50 }
0x5ff4   :  { %19975 = vmatprep.mubr.msk.f32.mxu1 %vm20531_vm2, %v20532_v31  ;;  %20216 = vmatpush3.bf16.msra.mxu0 %v20215_v2 }
0x5ff5   :  { %20223 = vmatprep.subr.bf16.mxu0 %v20529_v1 }
0x60c2   :  { %v16812_v28 = vpop.f32.mrb[106].mxu0 }
0x60c3   :  { %16911 = vrot.lane.b32.xlu1 %v16812_v28, %s24327_s22  ;;  %v19950_v52 = vpop.f32.mrb[107].mxu0 }
0x60c6   :  { %v16889_v37 = vpop.f32.mrb[134].mxu1 }
0x60c7   :  { %v19955_v20 = vpop.f32.mrb[135].mxu1  ;;  %16913 = vrot.lane.b32.xlu1 %v16889_v37, %s24327_s22 }
0x6135   :  { %v16912_v58 = vpop.permute.xlu1 %16911 }
0x6136   :  { %v16921_v36 = vsel %vm2273_vm8, %v16919_v15, %v16912_v58 }
0x6137   :  { %v16931_v3 = vrot.slane %v16921_v36, %v20691_v14 }
0x6139   :  { %v16932_v57 = vcombine.high %v16931_v3, %v16931_v3  ;;  %v16939_v53 = vrot.slane %v16931_v3, %v20691_v14  ;;  %v16914_v0 = vpop.permute.xlu1 %16913 }
0x613a   :  { %v16922_v39 = vsel %vm2273_vm8, %v16920_v55, %v16914_v0 }
0x613b   :  { %v16946_v44 = vrot.slane %v16932_v57, %v20691_v14  ;;  %v16954_v18 = vrot.slane %v16922_v39, %v20691_v14  ;;  %v16947_v10 = vcombine.high %v16939_v53, %v16939_v53 }
0x613d   :  { %v16982_v5 = vcombine.low %v16939_v53, %v16946_v44  ;;  %v16955_v12 = vcombine.high %v16954_v18, %v16954_v18  ;;  %v16962_v11 = vrot.slane %v16954_v18, %v20691_v14 }
0x613f   :  { %v16969_v16 = vrot.slane %v16955_v12, %v20691_v14  ;;  %v16970_v26 = vcombine.high %v16962_v11, %v16962_v11  ;;  %v16983_v34 = vcombine.low %v16947_v10, %v16962_v11  ;;  %v16991_v56 = vrot.slane %v16982_v5, %v20691_v14 }
0x6141   :  { %v16984_v63 = vcombine.low %v16969_v16, %v16970_v26  ;;  %v16998_v32 = vrot.slane %v16983_v34, %v20691_v14 }
0x6143   :  { %v17005_v54 = vrot.slane %v16984_v63, %v20691_v14  ;;  %v17006_v6 = vcombine.low %v16991_v56, %v16998_v32 }
0x6145   :  { %v17013_v60 = vrot.slane %v17006_v6, %v20691_v14  ;;  %v17020_v62 = vrot.slane %v17005_v54, %v20691_v14 }
0x6147   :  { %v17021_v8 = vcombine.low %v17013_v60, %v17020_v62 }
0x6149   :  { %19965 = vmatmul.mubr.msk.f32.vlgmr.msra.gmra.mrb[108].mxu0 %vm209_vm0, %v17021_v8 }
0x614a   :  { %19994 = vmatprep.mubr.msk.f32.mxu0 %vm20531_vm2, %v20532_v31 }
0x621c   :  { %v17090_v7 = vpop.f32.mrb[108].mxu0 }
0x621d   :  { %v17091_v51 = vadd.f32 %v18811_v33, %v17090_v7  ;;  %v19966_v59 = vpop.f32.mrb[109].mxu0 }
0x621f   :  { %v17095_v35 = vcombine.high %v17091_v51, %v17091_v51  ;;  %v17102_v50 = vrot.slane %v17091_v51, %v20691_v14 }
0x6221   :  { %v17109_v21 = vrot.slane %v17095_v35, %v20691_v14  ;;  %v17110_v30 = vcombine.high %v17102_v50, %v17102_v50  ;;  %v17118_v4 = vrot.slane %v17102_v50, %v20691_v14 }
0x6223   :  { %v17111_v28 = vcombine.high %v17109_v21, %v17109_v21  ;;  %v17132_v52 = vrot.slane %v17110_v30, %v20691_v14  ;;  %v17140_v29 = vcombine.high %v17118_v4, %v17118_v4  ;;  %v17125_v17 = vrot.slane %v17109_v21, %v20691_v14 }
0x6225   :  { %v17139_v2 = vrot.slane %v17111_v28, %v20691_v14  ;;  %v17141_v37 = vcombine.high %v17132_v52, %v17132_v52  ;;  %v17142_v20 = vcombine.low %v17118_v4, %v17132_v52  ;;  %v17156_v24 = vrot.slane %v17140_v29, %v20691_v14 }
0x6227   :  { %v17149_v38 = vrot.slane %v17142_v20, %v20691_v14  ;;  %v17165_v47 = vcombine.low %v17141_v37, %v17125_v17  ;;  %v17179_v58 = vrot.slane %v17139_v2, %v20691_v14 }
0x6229   :  { %v17157_v48 = vcombine.low %v17149_v38, %v17156_v24  ;;  %v17172_v15 = vrot.slane %v17165_v47, %v20691_v14 }
0x622b   :  { %v17164_v27 = vrot.slane %v17157_v48, %v20691_v14  ;;  %v17180_v36 = vcombine.low %v17172_v15, %v17179_v58 }
0x622d   :  { %v17187_v3 = vrot.slane %v17180_v36, %v20691_v14  ;;  %v23813_v19 = vadd.f32 %v17164_v27, %v23477_v25 }
0x622f   :  { %v23816_v55 = vadd.f32 %v17187_v3, %v23480_v23  ;;  %v17200_v57 = vrot.slane %v23813_v19, %v20691_v14 }
0x6231   :  { %v17201_v53 = vcombine.high %v17200_v57, %v17200_v57  ;;  %v17208_v0 = vrot.slane %v17200_v57, %v20691_v14  ;;  %v17223_v39 = vrot.slane %v23816_v55, %v20691_v14 }
0x6233   :  { %v17215_v44 = vrot.slane %v17201_v53, %v20691_v14  ;;  %v17216_v18 = vcombine.high %v17208_v0, %v17208_v0  ;;  %v17224_v10 = vcombine.high %v17223_v39, %v17223_v39  ;;  %v17231_v5 = vrot.slane %v17223_v39, %v20691_v14 }
0x6235   :  { %v17238_v25 = vrot.slane %v17224_v10, %v20691_v14  ;;  %v17239_v12 = vcombine.high %v17231_v5, %v17231_v5  ;;  %v17248_v23 = vcombine.low %v17208_v0, %v17215_v44  ;;  %v17249_v11 = vcombine.low %v17216_v18, %v17231_v5  ;;  %v18819_v10 = vld [vmem:[%s24333_s9 + $0x30] sm:$0xff] }
0x6237   :  { %v17250_v16 = vcombine.low %v17238_v25, %v17239_v12  ;;  %v17257_v26 = vrot.slane %v17248_v23, %v20691_v14  ;;  %v17264_v34 = vrot.slane %v17249_v11, %v20691_v14  ;;  %v18824_v23 = vld [vmem:[%s24185_s14 + $0x40] sm:$0xff]  ;;  %v18825_v11 = vld [vmem:[%s24185_s14 + $0x48] sm:$0xff] }
0x6239   :  { %v17271_v56 = vrot.slane %v17250_v16, %v20691_v14  ;;  %v17272_v63 = vcombine.low %v17257_v26, %v17264_v34  ;;  %v18826_v16 = vld [vmem:[%s24185_s14 + $0x50] sm:$0xff]  ;;  %v20224_v26 = vpack.c.bf16 %v18825_v11, %v18824_v23  ;;  %v18827_v34 = vld [vmem:[%s24185_s14 + $0x58] sm:$0xff] }
0x623b   :  { %v17279_v32 = vrot.slane %v17272_v63, %v20691_v14  ;;  %v17286_v54 = vrot.slane %v17271_v56, %v20691_v14  ;;  %20225 = vmatpush3.bf16.msra.mxu0 %v20224_v26  ;;  %v20227_v56 = vpack.c.bf16 %v18827_v34, %v18826_v16  ;;  %v18828_v63 = vld [vmem:[%s24185_s14 + $0x60] sm:$0xff] }
0x623c   :  { %20226 = vmatprep.subr.bf16.mxu0 %v20529_v1 }
0x623d   :  { %v17287_v6 = vcombine.low %v17279_v32, %v17286_v54  ;;  %v18829_v32 = vld [vmem:[%s24185_s14 + $0x68] sm:$0xff] }
0x623e   :  { %v20230_v54 = vpack.c.bf16 %v18829_v32, %v18828_v63 }
0x623f   :  { %v17289_v60 = vsel %vm418_vm1, %v17287_v6, 0.0  ;;  %20228 = vmatpush3.bf16.msra.mxu0 %v20227_v56 }
0x6240   :  { %17290 = vadd.xlane.f32.xlu0 %v17289_v60  ;;  %20229 = vmatprep.subr.bf16.mxu0 %v20529_v1  ;;  %v18815_v60 = vld [vmem:[%s24183_s18 + $0x1] ss:$0 sm:$0xff] }
0x6243   :  { %20231 = vmatpush3.bf16.msra.mxu0 %v20230_v54 }
0x6244   :  { %20232 = vmatprep.subr.bf16.mxu0 %v20529_v1 }
0x62cd   :  { %v17291_v62 = vpop.xlane.xlu0 %17290 }
0x62ce   :  { %v17292_v8 = vmul.f32 0.03125, %v17291_v62 }
0x62d0   :  { %v17297_v33 = vrot.slane %v17292_v8, %v20819_v40  ;;  %v17301_v7 = vrot.slane %v17292_v8, %v20822_v41  ;;  %v17305_v51 = vrot.slane %v17292_v8, %v20825_v42  ;;  %v17309_v59 = vrot.slane %v17292_v8, %v20828_v43 }
0x62d1   :  { %v17313_v35 = vrot.slane %v17292_v8, %v20831_v45  ;;  %v17317_v50 = vrot.slane %v17292_v8, %v20834_v46  ;;  %v18816_v8 = vld [vmem:[%s24330_s7 + $0x1] ss:$0 sm:$0xff] }
0x62d2   :  { %v23838_v21 = vsub.f32 %v17208_v0, %v17297_v33  ;;  %v23840_v30 = vsub.f32 %v17215_v44, %v17301_v7  ;;  %v23842_v4 = vsub.f32 %v17216_v18, %v17305_v51  ;;  %v23844_v28 = vsub.f32 %v17231_v5, %v17309_v59  ;;  %v18817_v44 = vld [vmem:[%s24333_s9 + $0x20] sm:$0xff]  ;;  %v18818_v18 = vld [vmem:[%s24333_s9 + $0x28] sm:$0xff] }
0x62d3   :  { %v23846_v52 = vsub.f32 %v17238_v25, %v17313_v35  ;;  %v23848_v29 = vsub.f32 %v17239_v12, %v17317_v50  ;;  %v20218_v5 = vpack.c.bf16 %v18818_v18, %v18817_v44  ;;  %v18820_v25 = vld [vmem:[%s24333_s9 + $0x38] sm:$0xff]  ;;  %v17431_v7 = vcombine.high %v18815_v60, %v18815_v60 }
0x62d4   :  { %v17330_v17 = vmul.f32 %v23838_v21, %v23838_v21  ;;  %v17331_v2 = vmul.f32 %v23840_v30, %v23840_v30  ;;  %v17332_v37 = vmul.f32 %v23842_v4, %v23842_v4  ;;  %v17333_v20 = vmul.f32 %v23844_v28, %v23844_v28 }
0x62d5   :  { %v17334_v38 = vmul.f32 %v23846_v52, %v23846_v52  ;;  %v17335_v24 = vmul.f32 %v23848_v29, %v23848_v29  ;;  %20219 = vmatpush3.bf16.msra.mxu1 %v20218_v5  ;;  %v20221_v12 = vpack.c.bf16 %v18820_v25, %v18819_v10  ;;  %v17438_v51 = vrot.slane %v18815_v60, %v20691_v14 }
0x62d6   :  { %v17342_v47 = vcombine.low %v17330_v17, %v17331_v2  ;;  %v17343_v48 = vcombine.low %v17332_v37, %v17333_v20  ;;  %20220 = vmatprep.subr.bf16.mxu1 %v20529_v1  ;;  %v17502_v59 = vrot.slane %v18816_v8, %v20691_v14  ;;  %v17445_v35 = vrot.slane %v17431_v7, %v20691_v14 }
0x62d7   :  { %v17344_v15 = vcombine.low %v17334_v38, %v17335_v24  ;;  %v17446_v1 = vcombine.high %v17438_v51, %v17438_v51  ;;  %v17495_v50 = vcombine.high %v18816_v8, %v18816_v8  ;;  %v17454_v37 = vrot.slane %v17438_v51, %v20691_v14 }
0x62d8   :  { %v17351_v58 = vrot.slane %v17342_v47, %v20691_v14  ;;  %v17358_v27 = vrot.slane %v17343_v48, %v20691_v14  ;;  %v17510_v17 = vcombine.high %v17502_v59, %v17502_v59  ;;  %v17447_v2 = vcombine.high %v17445_v35, %v17445_v35 }
0x62d9   :  { %v17365_v36 = vrot.slane %v17344_v15, %v20691_v14  ;;  %20222 = vmatpush3.bf16.msra.mxu1 %v20221_v12  ;;  %v17468_v20 = vrot.slane %v17446_v1, %v20691_v14  ;;  %v17509_v38 = vrot.slane %v17495_v50, %v20691_v14  ;;  %v17518_v24 = vrot.slane %v17502_v59, %v20691_v14  ;;  %v18830_v1 = vld [vmem:[%s24185_s14 + $0x70] sm:$0xff]  ;;  %v18831_v50 = vld [vmem:[%s24185_s14 + $0x78] sm:$0xff] }
0x62da   :  { %v17366_v3 = vcombine.low %v17351_v58, %v17358_v27  ;;  %v17532_v47 = vrot.slane %v17510_v17, %v20691_v14  ;;  %v17461_v48 = vrot.slane %v17445_v35, %v20691_v14  ;;  %v17475_v58 = vrot.slane %v17447_v2, %v20691_v14  ;;  %v18822_v2 = vld [vmem:[%s24331_s11 + $0x1] ss:$0 sm:$0xff] }
0x62db   :  { %v17380_v53 = vrot.slane %v17365_v36, %v20691_v14  ;;  %v17476_v27 = vcombine.high %v17454_v37, %v17454_v37  ;;  %v17477_v36 = vcombine.high %v17468_v20, %v17468_v20  ;;  %v17540_v10 = vcombine.high %v17518_v24, %v17518_v24 }
0x62dc   :  { %v17373_v57 = vrot.slane %v17366_v3, %v20691_v14  ;;  %v17511_v3 = vcombine.high %v17509_v38, %v17509_v38  ;;  %v17541_v5 = vcombine.high %v17532_v47, %v17532_v47  ;;  %v20233_v17 = vpack.c.bf16 %v18831_v50, %v18830_v1 }
0x62de   :  { %v17381_v0 = vcombine.low %v17373_v57, %v17380_v53  ;;  %20234 = vmatpush3.bf16.msra.mxu0 %v20233_v17 }
0x62e0   :  { %v17383_v39 = vsel %vm418_vm1, %v17381_v0, 0.0 }
0x62e1   :  { %17384 = vadd.xlane.f32.xlu1 %v17383_v39 }
0x636e   :  { %v17385_v6 = vpop.xlane.xlu1 %17384 }
0x636f   :  { %v17386_v62 = vmul.f32 0.03125, %v17385_v6 }
0x6371   :  { %v17387_v33 = vadd.f32 1e-05, %v17386_v62 }
0x6373   :  { %20516 = vrsqrt.f32 %v17387_v33 }
0x637d   :  { %v20517_v15 = vpop.eup %20516 }
0x637e   :  { %v17393_v57 = vrot.slane %v20517_v15, %v20819_v40  ;;  %v17397_v53 = vrot.slane %v20517_v15, %v20822_v41  ;;  %v17401_v0 = vrot.slane %v20517_v15, %v20825_v42  ;;  %v17405_v39 = vrot.slane %v20517_v15, %v20828_v43 }
0x637f   :  { %v17409_v44 = vrot.slane %v20517_v15, %v20831_v45  ;;  %v17413_v18 = vrot.slane %v20517_v15, %v20834_v46  ;;  %v17525_v43 = vrot.slane %v17509_v38, %v20691_v14  ;;  %v17539_v45 = vrot.slane %v17511_v3, %v20691_v14  ;;  %v17870_v15 = vld [vmem:[%s24334_s12] sm:$0xff]  ;;  %v17877_v3 = vld [vmem:[%s24334_s12 + $0x38] sm:$0xff] }
0x6380   :  { %v17420_v25 = vmul.f32 %v17393_v57, %v23838_v21  ;;  %v17421_v12 = vmul.f32 %v17397_v53, %v23840_v30  ;;  %v17422_v23 = vmul.f32 %v17401_v0, %v23842_v4  ;;  %v17423_v11 = vmul.f32 %v17405_v39, %v23844_v28  ;;  %v17874_v57 = vld [vmem:[%s24334_s12 + $0x20] sm:$0xff]  ;;  %v17876_v53 = vld [vmem:[%s24334_s12 + $0x30] sm:$0xff] }
0x6381   :  { %v17424_v16 = vmul.f32 %v17409_v44, %v23846_v52  ;;  %v17425_v42 = vmul.f32 %v17413_v18, %v23848_v29  ;;  %v20241_v39 = vpack.c.bf16 %v17876_v53, %v17874_v57  ;;  %v18171_v44 = vld [vmem:[%s24335_s8 + $0x8] sm:$0xff]  ;;  %v18173_v18 = vld [vmem:[%s24335_s8 + $0x18] sm:$0xff]  ;;  %v18184_v57 = vld [vmem:[%s24335_s8 + $0x70] sm:$0xff] }
0x6382   :  { %v17484_v26 = vmul.f32 %v17454_v37, %v17420_v25  ;;  %v17485_v46 = vmul.f32 %v17468_v20, %v17421_v12  ;;  %v17486_v34 = vmul.f32 %v17476_v27, %v17422_v23  ;;  %v17487_v56 = vmul.f32 %v17477_v36, %v17423_v11  ;;  %v17875_v27 = vld [vmem:[%s24334_s12 + $0x28] sm:$0xff] }
0x6383   :  { %v17488_v63 = vmul.f32 %v17461_v48, %v17424_v16  ;;  %v17489_v21 = vmul.f32 %v17475_v58, %v17425_v42  ;;  %v17872_v58 = vld [vmem:[%s24334_s12 + $0x10] sm:$0xff]  ;;  %v20239_v0 = vpack.c.bf16 %v17877_v3, %v17875_v27  ;;  %v18185_v27 = vld [vmem:[%s24335_s8 + $0x78] sm:$0xff]  ;;  %v18182_v3 = vld [vmem:[%s24335_s8 + $0x60] sm:$0xff] }
0x6384   :  { %v17548_v32 = vadd.f32 %v17518_v24, %v17484_v26  ;;  %v17549_v30 = vadd.f32 %v17532_v47, %v17485_v46  ;;  %v17550_v54 = vadd.f32 %v17540_v10, %v17486_v34  ;;  %v17551_v4 = vadd.f32 %v17541_v5, %v17487_v56  ;;  %v17873_v47 = vld [vmem:[%s24334_s12 + $0x18] sm:$0xff]  ;;  %v18833_v5 = vld [vmem:[%s24336_s10 + $0x1] ss:$0 sm:$0xff] }
0x6385   :  { %v17552_v6 = vadd.f32 %v17525_v43, %v17488_v63  ;;  %v17553_v28 = vadd.f32 %v17539_v45, %v17489_v21  ;;  %v20237_v36 = vpack.c.bf16 %v17872_v58, %v17870_v15  ;;  %v20243_v10 = vpack.c.bf16 %v18173_v18, %v18171_v44  ;;  %v18183_v58 = vld [vmem:[%s24335_s8 + $0x68] sm:$0xff]  ;;  %v18186_v18 = vld [vmem:[%s24335_s8 + $0x80] sm:$0xff] }
0x6386   :  { %v17571_v60 = vcombine.low %v17548_v32, %v17549_v30  ;;  %v17572_v52 = vcombine.low %v17550_v54, %v17551_v4  ;;  %v20257_v53 = vpack.c.bf16 %v18184_v57, %v18182_v3 }
0x6387   :  { %v17573_v62 = vcombine.low %v17552_v6, %v17553_v28 }
0x6388   :  { %v17580_v29 = vrot.slane %v17571_v60, %v20691_v14  ;;  %v17587_v8 = vrot.slane %v17572_v52, %v20691_v14 }
0x6389   :  { %v17594_v33 = vrot.slane %v17573_v62, %v20691_v14 }
0x638a   :  { %v17595_v7 = vcombine.low %v17580_v29, %v17587_v8 }
0x638b   :  { %v17609_v59 = vrot.slane %v17594_v33, %v20691_v14  ;;  %v18170_v33 = vld [vmem:[%s24335_s8] sm:$0xff] }
0x638c   :  { %v17602_v51 = vrot.slane %v17595_v7, %v20691_v14  ;;  %v18172_v7 = vld [vmem:[%s24335_s8 + $0x10] sm:$0xff] }
0x638d   :  { %v20245_v50 = vpack.c.bf16 %v18172_v7, %v18170_v33 }
0x638e   :  { %v17610_v35 = vcombine.low %v17602_v51, %v17609_v59  ;;  %v18175_v59 = vld [vmem:[%s24335_s8 + $0x28] sm:$0xff] }
0x6390   :  { %19976 = vmatmul.mubr.msk.f32.vlgmr.msra.gmra.mrb[136].mxu1 %vm209_vm0, %v17610_v35  ;;  %v18177_v35 = vld [vmem:[%s24335_s8 + $0x38] sm:$0xff] }
0x6391   :  { %17961 = vmatprep.mubr.f32.mxu1 %v20532_v31  ;;  %v17871_v31 = vld [vmem:[%s24334_s12 + $0x8] sm:$0xff]  ;;  %v20247_v17 = vpack.c.bf16 %v18177_v35, %v18175_v59  ;;  %v18208_v59 = vld [vmem:[%s24335_s8 + $0x130] sm:$0xff] }
0x6392   :  { %v20235_v48 = vpack.c.bf16 %v17873_v47, %v17871_v31  ;;  %v18178_v47 = vld [vmem:[%s24335_s8 + $0x40] sm:$0xff] }
0x6394   :  { %20236 = vmatprep.subr.bf16.mxu1 %v20235_v48  ;;  %v18180_v48 = vld [vmem:[%s24335_s8 + $0x50] sm:$0xff] }
0x6395   :  { %20238 = vmatpush1.bf16.msra.mxu1 %v20237_v36  ;;  %v20253_v15 = vpack.c.bf16 %v18180_v48, %v18178_v47  ;;  %v20255_v36 = vpack.c.bf16 %v18185_v27, %v18183_v58 }
0x6396   :  { %20240 = vmatprep.subr.bf16.mxu1 %v20239_v0  ;;  %v18187_v0 = vld [vmem:[%s24335_s8 + $0x88] sm:$0xff] }
0x6399   :  { %20242 = vmatpush1.bf16.msra.mxu1 %v20241_v39  ;;  %v18189_v39 = vld [vmem:[%s24335_s8 + $0x98] sm:$0xff] }
0x639a   :  { %20244 = vmatprep.subr.bf16.mxu1 %v20243_v10  ;;  %v20259_v44 = vpack.c.bf16 %v18189_v39, %v18187_v0  ;;  %v18188_v10 = vld [vmem:[%s24335_s8 + $0x90] sm:$0xff] }
0x6463   :  { %v17679_v37 = vpop.f32.mrb[136].mxu1 }
0x6464   :  { %v17680_v20 = vadd.f32 %v18822_v2, %v17679_v37  ;;  %v19977_v38 = vpop.f32.mrb[137].mxu1  ;;  %v18174_v2 = vld [vmem:[%s24335_s8 + $0x20] sm:$0xff] }
0x6465   :  { %v18179_v38 = vld [vmem:[%s24335_s8 + $0x48] sm:$0xff] }
0x6466   :  { %v17683_v24 = vmax.f32 %v17680_v20, 0.0 }
0x6468   :  { %19995 = vmatmul.mubr.msk.f32.vlgmr.msra.gmra.mrb[110].mxu0 %vm2966_vm9, %v17683_v24  ;;  %v18181_v24 = vld [vmem:[%s24335_s8 + $0x58] sm:$0xff] }
0x6469   :  { %v20251_v31 = vpack.c.bf16 %v18181_v24, %v18179_v38 }
0x653b   :  { %v17768_v25 = vpop.f32.mrb[110].mxu0 }
0x653c   :  { %v17769_v12 = vadd.f32 %v18833_v5, %v17768_v25  ;;  %v19996_v23 = vpop.f32.mrb[111].mxu0  ;;  %v20261_v5 = vpack.c.bf16 %v18188_v10, %v18186_v18  ;;  %v18191_v25 = vld [vmem:[%s24335_s8 + $0xa8] sm:$0xff] }
0x653e   :  { %v17773_v11 = vcombine.high %v17769_v12, %v17769_v12  ;;  %v17780_v16 = vrot.slane %v17769_v12, %v20691_v14  ;;  %v18193_v12 = vld [vmem:[%s24335_s8 + $0xb8] sm:$0xff] }
0x653f   :  { %v20263_v23 = vpack.c.bf16 %v18193_v12, %v18191_v25 }
0x6540   :  { %v17787_v42 = vrot.slane %v17773_v11, %v20691_v14  ;;  %v17788_v43 = vcombine.high %v17780_v16, %v17780_v16  ;;  %v17796_v45 = vrot.slane %v17780_v16, %v20691_v14  ;;  %v18190_v11 = vld [vmem:[%s24335_s8 + $0xa0] sm:$0xff]  ;;  %v18192_v16 = vld [vmem:[%s24335_s8 + $0xb0] sm:$0xff] }
0x6542   :  { %v17789_v26 = vcombine.high %v17787_v42, %v17787_v42  ;;  %v17810_v46 = vrot.slane %v17788_v43, %v20691_v14  ;;  %v17818_v34 = vcombine.high %v17796_v45, %v17796_v45  ;;  %v17803_v56 = vrot.slane %v17787_v42, %v20691_v14  ;;  %v18195_v43 = vld [vmem:[%s24335_s8 + $0xc8] sm:$0xff] }
0x6543   :  { %v20265_v42 = vpack.c.bf16 %v18192_v16, %v18190_v11 }
0x6544   :  { %v17817_v63 = vrot.slane %v17789_v26, %v20691_v14  ;;  %v17819_v21 = vcombine.high %v17810_v46, %v17810_v46  ;;  %v17820_v32 = vcombine.low %v17796_v45, %v17810_v46  ;;  %v17834_v54 = vrot.slane %v17818_v34, %v20691_v14  ;;  %v18197_v45 = vld [vmem:[%s24335_s8 + $0xd8] sm:$0xff]  ;;  %v18194_v46 = vld [vmem:[%s24335_s8 + $0xc0] sm:$0xff]  ;;  %v18196_v34 = vld [vmem:[%s24335_s8 + $0xd0] sm:$0xff] }
0x6545   :  { %v20267_v26 = vpack.c.bf16 %v18197_v45, %v18195_v43 }
0x6546   :  { %v17827_v30 = vrot.slane %v17820_v32, %v20691_v14  ;;  %v17843_v4 = vcombine.low %v17819_v21, %v17803_v56  ;;  %v17857_v60 = vrot.slane %v17817_v63, %v20691_v14  ;;  %v18199_v56 = vld [vmem:[%s24335_s8 + $0xe8] sm:$0xff]  ;;  %v20269_v63 = vpack.c.bf16 %v18196_v34, %v18194_v46  ;;  %v18201_v21 = vld [vmem:[%s24335_s8 + $0xf8] sm:$0xff]  ;;  %v18198_v32 = vld [vmem:[%s24335_s8 + $0xe0] sm:$0xff] }
0x6548   :  { %v17835_v6 = vcombine.low %v17827_v30, %v17834_v54  ;;  %v17850_v28 = vrot.slane %v17843_v4, %v20691_v14  ;;  %v18200_v30 = vld [vmem:[%s24335_s8 + $0xf0] sm:$0xff]  ;;  %v20271_v54 = vpack.c.bf16 %v18201_v21, %v18199_v56  ;;  %v18203_v4 = vld [vmem:[%s24335_s8 + $0x108] sm:$0xff] }
0x654a   :  { %v17842_v52 = vrot.slane %v17835_v6, %v20691_v14  ;;  %v17858_v62 = vcombine.low %v17850_v28, %v17857_v60  ;;  %v18205_v6 = vld [vmem:[%s24335_s8 + $0x118] sm:$0xff]  ;;  %v20273_v28 = vpack.c.bf16 %v18200_v30, %v18198_v32 }
0x654b   :  { %v20275_v60 = vpack.c.bf16 %v18205_v6, %v18203_v4  ;;  %v18210_v4 = vld [vmem:[%s24339_s30] sm:$0x3] }
0x654c   :  { %v17865_v29 = vrot.slane %v17858_v62, %v20691_v14  ;;  %v17868_v8 = vadd.f32 %v17842_v52, %v23813_v19  ;;  %v18202_v52 = vld [vmem:[%s24335_s8 + $0x100] sm:$0xff]  ;;  %v18204_v62 = vld [vmem:[%s24335_s8 + $0x110] sm:$0xff]  ;;  %v18215_v6 = vrot.slane %v18210_v4, %v20819_v40 }
0x654d   :  { %v20277_v33 = vpack.c.bf16 %v18204_v62, %v18202_v52 }
0x654e   :  { %v17869_v51 = vadd.f32 %v17865_v29, %v23816_v55  ;;  %v17892_v1 = vrot.slane %v17868_v8, 2  ;;  %v18176_v55 = vld [vmem:[%s24335_s8 + $0x30] sm:$0xff]  ;;  %v18207_v29 = vld [vmem:[%s24335_s8 + $0x128] sm:$0xff]  ;;  %v18209_v8 = vld [vmem:[%s24335_s8 + $0x138] sm:$0xff] }
0x654f   :  { %v20249_v20 = vpack.c.bf16 %v18176_v55, %v18174_v2  ;;  %v20279_v7 = vpack.c.bf16 %v18209_v8, %v18207_v29 }
0x6550   :  { %v17893_v19 = vrot.slane %v17869_v51, 1  ;;  %v18206_v51 = vld [vmem:[%s24335_s8 + $0x120] sm:$0xff] }
0x6551   :  { %v20281_v35 = vpack.c.bf16 %v18208_v59, %v18206_v51 }
0x6552   :  { %v17894_v37 = vsel %vm11883_vm11, %v17893_v19, %v17892_v1  ;;  %v17878_v1 = vld [vmem:[%s24337_s4] sm:$0x3] }
0x6553   :  { %18835 = vmatmul.mubr.msk.f32.vlgmr.msra.gmra.mrb[138].mxu1 %vm209_vm0, %v17894_v37  ;;  %v17883_v19 = vrot.slane %v17878_v1, %v20819_v40 }
0x6554   :  { %20246 = vmatpush1.bf16.msra.mxu1 %v20245_v50  ;;  %v17887_v50 = vrot.slane %v17878_v1, %v20822_v41 }
0x6555   :  { %20248 = vmatprep.subr.bf16.mxu1 %v20247_v17 }
0x6558   :  { %20250 = vmatpush1.bf16.msra.mxu1 %v20249_v20 }
0x6559   :  { %20252 = vmatprep.subr.bf16.mxu1 %v20251_v31 }
0x655c   :  { %20254 = vmatpush1.bf16.msra.mxu1 %v20253_v15 }
0x655d   :  { %20256 = vmatprep.subr.bf16.mxu1 %v20255_v36 }
0x6560   :  { %20258 = vmatpush1.bf16.msra.mxu1 %v20257_v53 }
0x6561   :  { %20260 = vmatprep.subr.bf16.mxu1 %v20259_v44 }
0x6564   :  { %20262 = vmatpush1.bf16.msra.mxu1 %v20261_v5 }
0x6565   :  { %20264 = vmatprep.subr.bf16.mxu1 %v20263_v23 }
0x6568   :  { %20266 = vmatpush1.bf16.msra.mxu1 %v20265_v42 }
0x6569   :  { %20268 = vmatprep.subr.bf16.mxu1 %v20267_v26 }
0x656c   :  { %20270 = vmatpush1.bf16.msra.mxu1 %v20269_v63 }
0x656d   :  { %20272 = vmatprep.subr.bf16.mxu1 %v20271_v54 }
0x6570   :  { %20274 = vmatpush1.bf16.msra.mxu1 %v20273_v28  ;;  %v18219_v28 = vrot.slane %v18210_v4, %v20822_v41 }
0x6571   :  { %20276 = vmatprep.subr.bf16.mxu1 %v20275_v60 }
0x6574   :  { %20278 = vmatpush1.bf16.msra.mxu1 %v20277_v33 }
0x6575   :  { %20280 = vmatprep.subr.bf16.mxu1 %v20279_v7 }
0x6578   :  { %20282 = vmatpush1.bf16.msra.mxu1 %v20281_v35 }
0x6626   :  { %v17963_v17 = vpop.f32.mrb[138].mxu1 }
0x6627   :  { %v17964_v2 = vadd.f32 %v17963_v17, %v17883_v19  ;;  %v17965_v55 = vpop.f32.mrb[139].mxu1 }
0x6628   :  { %v17966_v37 = vadd.f32 %v17965_v55, %v17887_v50 }
0x662a   :  { %v18020_v20 = vcombine.low %v17964_v2, %v17966_v37  ;;  %v20547_v2 = vmov 1935823168  }
0x662b   :  { %v18419_v55 = vunpack.c.l.s4 %v20547_v2 }
0x662c   :  { %v18027_v38 = vrot.slane %v18020_v20, %v20691_v14 }
0x662e   :  { %v18028_v24 = vcombine.high %v18027_v38, %v18027_v38  ;;  %v18035_v31 = vrot.slane %v18027_v38, %v20691_v14 }
0x6630   :  { %v18042_v47 = vrot.slane %v18028_v24, %v20691_v14  ;;  %v18086_v48 = vrot.slane %v18035_v31, %v20819_v40  ;;  %v18090_v15 = vrot.slane %v18035_v31, %v20822_v41  ;;  %v18420_v31 = vunpack.c.0.s8 %v18419_v55 }
0x6632   :  { %v18094_v58 = vrot.slane %v18042_v47, %v20819_v40  ;;  %v18098_v27 = vrot.slane %v18042_v47, %v20822_v41  ;;  %v18108_v36 = vsel %vm6066_vm10, %v22963_v22, %v18086_v48  ;;  %v18109_v3 = vsel %vm6066_vm10, %v22966_v13, %v18090_v15 }
0x6633   :  { %v18116_v57 = vcombine.low %v18108_v36, %v18109_v3  ;;  %v18423_v36 = vsub.s32 %v18420_v31, %v20681_v9 }
0x6634   :  { %v18110_v53 = vsel %vm6066_vm10, %v22970_v49, %v18094_v58  ;;  %v18111_v0 = vsel %vm6066_vm10, %v22973_v61, %v18098_v27 }
0x6635   :  { %v18117_v39 = vcombine.low %v18110_v53, %v18111_v0  ;;  %18122 = vst.msk [vmem:[%s24338_s15] sm:$0x77] %vm18121_vm14, %v18116_v57  ;;  %v18130_v44 = vrot.slane %v18116_v57, %v20691_v14 }
0x6637   :  { %18123 = vst.msk [vmem:[%s24338_s15 + $0x8] sm:$0x77] %vm18121_vm14, %v18117_v39  ;;  %v18131_v22 = vcombine.high %v18130_v44, %v18130_v44  ;;  %v18153_v13 = vrot.slane %v18117_v39, %v20691_v14  ;;  %v18138_v18 = vrot.slane %v18130_v44, %v20691_v14 }
0x6639   :  { %v18145_v49 = vrot.slane %v18131_v22, %v20691_v14  ;;  %v18146_v10 = vcombine.high %v18138_v18, %v18138_v18  ;;  %v18154_v61 = vcombine.high %v18153_v13, %v18153_v13  ;;  %v18161_v5 = vrot.slane %v18153_v13, %v20691_v14 }
0x663b   :  { %v18168_v25 = vrot.slane %v18154_v61, %v20691_v14  ;;  %v18169_v12 = vcombine.high %v18161_v5, %v18161_v5  ;;  %v18222_v23 = vcombine.low %v18138_v18, %v18145_v49  ;;  %v18223_v11 = vcombine.low %v18146_v10, %v18161_v5 }
0x663d   :  { %v18224_v16 = vcombine.low %v18168_v25, %v18169_v12  ;;  %v18231_v42 = vrot.slane %v18222_v23, %v20691_v14  ;;  %v18238_v43 = vrot.slane %v18223_v11, %v20691_v14 }
0x663f   :  { %v18245_v45 = vrot.slane %v18224_v16, %v20691_v14  ;;  %v18247_v26 = vcombine.high %v18231_v42, %v18238_v43  ;;  %v18246_v46 = vcombine.low %v18231_v42, %v18238_v43 }
0x6641   :  { %v18248_v34 = vcombine.high %v18245_v45, %v18245_v45  ;;  %v18255_v56 = vrot.slane %v18246_v46, %v20691_v14  ;;  %v18269_v63 = vrot.slane %v18245_v45, %v20691_v14  ;;  %v18262_v21 = vrot.slane %v18247_v26, %v20691_v14 }
0x6643   :  { %v18276_v32 = vrot.slane %v18248_v34, %v20691_v14  ;;  %v18277_v30 = vcombine.low %v18255_v56, %v18269_v63 }
0x6645   :  { %v18278_v54 = vcombine.low %v18262_v21, %v18276_v32 }
0x6647   :  { %18836 = vmatprep.mubr.msk.f32.mxu1 %vm209_vm0, %v18278_v54  ;;  %vm18466_vm0 = vmor %vm18465_vm15, %vm1092_vm5 }
0x6648   :  { %18347 = vmatmul.mubr.f32.vlgmr.msra.gmra.mrb[140].mxu1 %v18277_v30 }
0x671b   :  { %v18348_v60 = vpop.f32.mrb[140].mxu1 }
0x671c   :  { %v18349_v52 = vadd.f32 %v18348_v60, %v18215_v6  ;;  %v18350_v62 = vpop.f32.mrb[141].mxu1 }
0x671d   :  { %v18351_v29 = vadd.f32 %v18350_v62, %v18219_v28 }
0x671e   :  { %v18353_v8 = vsub.f32 0.0, %v18349_v52 }
0x671f   :  { %v18354_v33 = vsub.f32 0.0, %v18351_v29 }
0x6720   :  { %v18355_v7 = vmul.f32 1.442695, %v18353_v8 }
0x6721   :  { %v18357_v51 = vmul.f32 1.442695, %v18354_v33 }
0x6722   :  { %20518 = vpow2.f32 %v18355_v7 }
0x6723   :  { %20520 = vpow2.f32 %v18357_v51 }
0x672c   :  { %v20519_v59 = vpop.eup %20518 }
0x672d   :  { %v20521_v35 = vpop.eup %20520  ;;  %v18359_v1 = vadd.f32 1.0, %v20519_v59 }
0x672e   :  { %v18360_v19 = vadd.f32 1.0, %v20521_v35 }
0x672f   :  { %20522 = vrcp.f32 %v18359_v1 }
0x6730   :  { %20524 = vrcp.f32 %v18360_v19 }
0x6739   :  { %v20523_v50 = vpop.eup %20522 }
0x673a   :  { %v20525_v40 = vpop.eup %20524  ;;  %v18365_v17 = vadd.f32 1e-10, %v20523_v50 }
0x673b   :  { %v18366_v41 = vadd.f32 1e-10, %v20525_v40 }
0x673d   :  { %v18369_v37 = vcombine.low %v18365_v17, %v18366_v41  ;;  %v18370_v20 = vcombine.high %v18365_v17, %v18366_v41 }
0x673f   :  { %v18377_v38 = vrot.slane %v18369_v37, %v20691_v14  ;;  %v18384_v24 = vrot.slane %v18370_v20, %v20691_v14 }
0x6741   :  { %v18385_v47 = vcombine.high %v18377_v38, %v18377_v38  ;;  %v18386_v48 = vcombine.high %v18384_v24, %v18384_v24  ;;  %v18393_v15 = vrot.slane %v18377_v38, %v20691_v14  ;;  %v18400_v3 = vrot.slane %v18384_v24, %v20691_v14 }
0x6743   :  { %v18407_v58 = vrot.slane %v18385_v47, %v20691_v14  ;;  %v18415_v27 = vcombine.high %v18393_v15, %v18393_v15  ;;  %v18414_v57 = vrot.slane %v18386_v48, %v20691_v14  ;;  %v18454_v49 = vrot.slane %v18400_v3, %v18423_v36 }
0x6745   :  { %v18416_v53 = vcombine.high %v18407_v58, %v18407_v58  ;;  %v18417_v0 = vcombine.low %v18393_v15, %v18415_v27  ;;  %v18431_v44 = vrot.slane %v18407_v58, %v18423_v36 }
0x6747   :  { %v18424_v39 = vrot.slane %v18417_v0, %v18423_v36  ;;  %v18440_v22 = vcombine.low %v18416_v53, %v18414_v57 }
0x6749   :  { %v18432_v13 = vcombine.low %v18424_v39, %v18431_v44  ;;  %v18447_v18 = vrot.slane %v18440_v22, %v18423_v36 }
0x674b   :  { %v18439_v10 = vrot.slane %v18432_v13, %v18423_v36  ;;  %v18455_v61 = vcombine.low %v18447_v18, %v18454_v49 }
0x674d   :  { %v18462_v5 = vrot.slane %v18455_v61, %v18423_v36  ;;  %18467 = vst.msk [vmem:[%s24340_s0] sm:$0x77] %vm18466_vm0, %v18439_v10 }
0x674f   :  { %18468 = vst.msk [vmem:[%s24340_s0 + $0x8] sm:$0x77] %vm18466_vm0, %v18462_v5 }

</bundles_post_ra>
